<compile_context>
chip_gen: v7x
topology: tpu7x:2x2x1
jax: 0.10.0
libtpu: 0.0.40
codegen_flags: <defaults>
</compile_context>

<pallas_src>
import numpy as np
import jax
import jax.numpy as jnp
from jax.experimental import pallas as pl
from jax.experimental.pallas import tpu as pltpu


def _round_up(x, m):
    return (x + m - 1) // m * m


def _mxu_is_256_wide():
    """True on TPU generations with a 256-wide MXU (v6e / v7x)."""
    try:
        kind = jax.devices()[0].device_kind.lower()
    except Exception:
        return False
    if any(t in kind for t in ("v2", "v3", "v4", "v5")):
        return False
    return ("v6" in kind) or ("v7" in kind) or ("7x" in kind)


# ------------------------------ fused kernel -------------------------------- #
def _make_fused_block_kernel(*, H, S, cout, off, k_pack, mid_dtype, last_relu):
    """Fused BasicBlock kernel: one image per grid step, both convs in one pass.

    Layouts (channels lane-minor):
      x_ref   (1, (H+3)*S, Cin)   zero-padded image, rows flattened with stride
                                  S = W+1 (single shared zero column).  Padded
                                  pixel (py, px) sits at flat row py*S + px.
      mid_ref (off+H*S+S+1, Cout) VMEM scratch with the padded-flat stage-1
                                  activation; padded position p maps to scratch
                                  row p + (off - S - 1); `off` is an aligned
                                  write offset >= S+1.
      o_ref   (1, H*S, Cout)      output pixel (i, j) at flat row i*S + j
                                  (j < W); the S-1'th column of each row is junk.
    """
    M = H * S                # output rows computed per image (junk cols incl.)
    doff = off - (S + 1)     # padded-flat position -> mid scratch row shift

    def conv3x3(load, w_ref):
        """3x3 conv as row-shifted MXU matmuls; f32 accumulation."""
        acc = jnp.zeros((M, cout), jnp.float32)
        if k_pack:
            # K-packed form (v6e/v7x): 3 matmuls with K = 3*Cin fill the
            # 256-wide MXU; the lane-concat copies hide under the MXU pushes.
            for dy in range(3):
                lhs = jnp.concatenate(
                    [load(dy * S + dx) for dx in range(3)], axis=-1)
                acc += jnp.dot(lhs, w_ref[dy],
                               preferred_element_type=jnp.float32)
        else:
            # 9 matmuls with K = Cin (matches v5e's 128x128 MXU tiles).
            for dy in range(3):
                for dx in range(3):
                    acc += jnp.dot(load(dy * S + dx), w_ref[3 * dy + dx],
                                   preferred_element_type=jnp.float32)
        return acc

    def kernel(x_ref, w1_ref, b1_ref, w2_ref, b2_ref, o_ref, mid_ref):
        # Zero the whole intermediate slab: covers the top/bottom pad rows and
        # every shared-zero-column position the stage-2 taps read.  Single
        # aligned full-ref store; stage-1 rows are overwritten below.
        mid_ref[...] = jnp.zeros_like(mid_ref)

        # Junk rows of the flat layout: flat row % S == S-1.  In the padded
        # layout they alias the shared zero column, so they MUST be zeroed.
        junk = (jax.lax.broadcasted_iota(jnp.int32, (M, 1), 0) % S) == (S - 1)

        # ---- stage 1: conv1 (+ folded bn1, iconv_1) + ReLU ------------------
        h = conv3x3(lambda o: x_ref[0, o:o + M, :], w1_ref)
        h = jnp.maximum(h + b1_ref[...], 0.0)
        h = jnp.where(junk, 0.0, h)
        mid_ref[off:off + M, :] = h.astype(mid_dtype)      # aligned static store

        # ---- stage 2: conv2 (+ folded bn2, iconv_2) + residual (+ ReLU) -----
        out = conv3x3(lambda o: mid_ref[o + doff:o + doff + M, :], w2_ref)
        out = out + b2_ref[...]
        # identity shortcut read from the resident x slab: pixel (i, j) of x
        # sits at slab row (i*S + j) + (S + 1).
        # TODO(synk): reference adds f32 x; here the bf16 slab is added
        #             (accumulation stays f32) — pass an f32 slab if it matters.
        out = out + x_ref[0, S + 1:S + 1 + M, :].astype(jnp.float32)
        if last_relu:
            out = jnp.maximum(out, 0.0)
        o_ref[0] = out.astype(o_ref.dtype)

    return kernel


def _fused_block_call(x_flat, w1, b1, w2, b2, *, H, S, out_dtype, k_pack,
                      last_relu):
    N, P, cin = x_flat.shape
    cout = b1.shape[-1]
    M = H * S

    # Stage-1 scratch: padded-flat layout shifted so the single in-kernel write
    # lands at an aligned row (`off` >= S+1, multiple of 32).
    off = _round_up(S + 1, 32)
    mid_rows = off + M + S + 1
    mid_dtype = x_flat.dtype

    kernel = _make_fused_block_kernel(H=H, S=S, cout=cout, off=off,
                                      k_pack=k_pack, mid_dtype=mid_dtype,
                                      last_relu=last_relu)

    cost = pl.CostEstimate(
        flops=2 * (2 * N * M * 9 * cin * cout),           # two 3x3 convs
        transcendentals=0,
        bytes_accessed=int(x_flat.size * x_flat.dtype.itemsize
                           + w1.size * w1.dtype.itemsize
                           + w2.size * w2.dtype.itemsize
                           + N * M * cout * np.dtype(out_dtype).itemsize))

    return pl.pallas_call(
        kernel,
        out_shape=jax.ShapeDtypeStruct((N, M, cout), out_dtype),
        grid_spec=pltpu.PrefetchScalarGridSpec(
            num_scalar_prefetch=0,
            grid=(N,),
            in_specs=[
                pl.BlockSpec((1, P, cin), lambda n: (n, 0, 0)),   # padded image
                pl.BlockSpec(w1.shape, lambda n: (0, 0, 0)),      # folded w1
                pl.BlockSpec((1, cout), lambda n: (0, 0)),        # folded b1
                pl.BlockSpec(w2.shape, lambda n: (0, 0, 0)),      # folded w2
                pl.BlockSpec((1, cout), lambda n: (0, 0)),        # folded b2
            ],
            out_specs=pl.BlockSpec((1, M, cout), lambda n: (n, 0, 0)),
            scratch_shapes=[pltpu.VMEM((mid_rows, cout), mid_dtype)],
        ),
        compiler_params=pltpu.CompilerParams(
            dimension_semantics=("parallel",)),   # megacore shards over images
        cost_estimate=cost,
    )(x_flat, w1, b1, w2, b2)


# ------------------------------- JAX glue ------------------------------------ #
def _fold_bn(gamma, beta, mean, var, eps=1e-5):
    scale = gamma / jnp.sqrt(var + eps)
    return scale, beta - mean * scale


def _fold_conv_bn_iconv(w_hwio, bn_scale, bn_bias, iconv_q, k_pack):
    """Fold eval-mode BN and the 1x1 IdentityConv2d into the 3x3 conv.

        (conv(x) * s + b) @ Q  ==  conv with w' = w @ (diag(s) Q), bias' = b @ Q
    """
    m = bn_scale[:, None] * iconv_q                      # diag(scale) @ Q
    w = jnp.einsum("hwio,oc->hwic", w_hwio, m)           # (3, 3, Cin, Cout)
    kh, kw, cin, cout = w.shape
    if k_pack:
        w_taps = w.reshape(kh, kw * cin, cout)           # (3, 3*Cin, Cout)
    else:
        w_taps = w.reshape(kh * kw, cin, cout)           # (9, Cin, Cout)
    bias = (bn_bias @ iconv_q).reshape(1, cout).astype(jnp.float32)
    return w_taps, bias


def permutable_basic_block_forward(x_nchw, params, *, compute_dtype=jnp.bfloat16,
                                   last_relu=True, k_pack=None):
    """Forward pass of PermutableBasicBlockImageNet (identity shortcut)."""
    # TODO(synk): in a multi-block network keep the NHWC padded-flat layout
    #             end-to-end; the NCHW<->NHWC transposes only match the
    #             PyTorch interface here.
    x = jnp.transpose(x_nchw, (0, 2, 3, 1)).astype(jnp.float32)   # NCHW -> NHWC
    N, H, W, C = x.shape
    S = W + 1        # flat row stride: single shared zero column between rows

    if k_pack is None:
        k_pack = _mxu_is_256_wide() and (C % 128 == 0)

    s1, b1 = _fold_bn(params["bn1_gamma"], params["bn1_beta"],
                      params["bn1_mean"], params["bn1_var"])
    s2, b2 = _fold_bn(params["bn2_gamma"], params["bn2_beta"],
                      params["bn2_mean"], params["bn2_var"])
    w1, bias1 = _fold_conv_bn_iconv(params["conv1_w"], s1, b1,
                                    params["iconv1_w"], k_pack)
    w2, bias2 = _fold_conv_bn_iconv(params["conv2_w"], s2, b2,
                                    params["iconv2_w"], k_pack)

    cdt = compute_dtype
    # Zero-pad 1 top row, 2 bottom rows, 1 left column; with row stride S = W+1
    # the left zero of row i+1 doubles as the right pad of row i.
    xp = jnp.pad(x.astype(cdt), ((0, 0), (1, 2), (1, 0), (0, 0)))
    x_flat = xp.reshape(N, (H + 3) * S, C)

    out_flat = _fused_block_call(x_flat, w1.astype(cdt), bias1,
                                 w2.astype(cdt), bias2,
                                 H=H, S=S, out_dtype=cdt, k_pack=k_pack,
                                 last_relu=last_relu)

    out = out_flat.reshape(N, H, S, C)[:, :, :W, :].astype(jnp.float32)
    return jnp.transpose(out, (0, 3, 1, 2))                        # NHWC -> NCHW


# ---------------------- deterministic parameter init ------------------------- #
def init_params(key, c_in, c_out):
    ks = jax.random.split(key, 10)
    wstd1 = float(np.sqrt(2.0 / (9 * c_in)))
    wstd2 = float(np.sqrt(2.0 / (9 * c_out)))
    return {
        "conv1_w": jax.random.normal(ks[0], (3, 3, c_in, c_out), jnp.float32) * wstd1,
        "conv2_w": jax.random.normal(ks[1], (3, 3, c_out, c_out), jnp.float32) * wstd2,
        "bn1_gamma": jax.random.uniform(ks[2], (c_out,), jnp.float32, 0.7, 1.3),
        "bn1_beta": jax.random.normal(ks[3], (c_out,), jnp.float32) * 0.1,
        "bn1_mean": jax.random.normal(ks[4], (c_out,), jnp.float32) * 0.1,
        "bn1_var": jax.random.uniform(ks[5], (c_out,), jnp.float32, 0.7, 1.3),
        "bn2_gamma": jax.random.uniform(ks[6], (c_out,), jnp.float32, 0.7, 1.3),
        "bn2_beta": jax.random.normal(ks[7], (c_out,), jnp.float32) * 0.1,
        "bn2_mean": jax.random.normal(ks[8], (c_out,), jnp.float32) * 0.1,
        "bn2_var": jax.random.uniform(ks[9], (c_out,), jnp.float32, 0.7, 1.3),
        # IdentityConv2d: weight = eye(C).view(C, C, 1, 1), stored as the (C, C)
        # right-multiplication matrix used by both the kernel and the reference.
        "iconv1_w": jnp.eye(c_out, dtype=jnp.float32),
        "iconv2_w": jnp.eye(c_out, dtype=jnp.float32),
    }


# ---------------------------- pure-JAX reference ------------------------------ #
def ref_forward(x_nchw, params, last_relu=True):
    x = jnp.transpose(x_nchw, (0, 2, 3, 1)).astype(jnp.float32)

    def conv3x3(h, w):
        return jax.lax.conv_general_dilated(
            h, w, (1, 1), "SAME", dimension_numbers=("NHWC", "HWIO", "NHWC"),
            precision=jax.lax.Precision.HIGHEST)

    def bn(h, g, b, m, v, eps=1e-5):
        return (h - m) / jnp.sqrt(v + eps) * g + b

    def conv1x1(h, q):
        return jnp.einsum("nhwc,cd->nhwd", h, q,
                          precision=jax.lax.Precision.HIGHEST)

    out = conv3x3(x, params["conv1_w"])
    out = bn(out, params["bn1_gamma"], params["bn1_beta"],
             params["bn1_mean"], params["bn1_var"])
    out = conv1x1(out, params["iconv1_w"])
    out = jax.nn.relu(out)
    out = conv3x3(out, params["conv2_w"])
    out = bn(out, params["bn2_gamma"], params["bn2_beta"],
             params["bn2_mean"], params["bn2_var"])
    out = conv1x1(out, params["iconv2_w"])
    out = out + x
    if last_relu:
        out = jax.nn.relu(out)
    return jnp.transpose(out, (0, 3, 1, 2))


if __name__ == "__main__":
    key = jax.random.PRNGKey(0)
    kx, kp = jax.random.split(key)
    N, C, H, W = 2, 128, 16, 16          # small, lane-dense channel count
    x = jax.random.normal(kx, (N, C, H, W), jnp.float32)
    params = init_params(kp, C, C)

    out = permutable_basic_block_forward(x, params)      # fused Pallas block
    out = jax.block_until_ready(out)

    ref = ref_forward(x, params)
    # Tolerance reflects bf16 operand/output rounding over 9*C = 1152-term
    # accumulations (f32 accumulate); structural errors would be O(1).
    np.testing.assert_allclose(np.asarray(out), np.asarray(ref),
                               rtol=5e-2, atol=1e-1)
    print("KERNEL_OK")
</pallas_src>

<mosaic_0001>
module attributes {stable_mosaic.version = 11 : i64} {
  func.func @kernel(%arg0: i32, %arg1: memref<1x323x128xbf16, #tpu.memory_space<vmem>>, %arg2: memref<9x128x128xbf16, #tpu.memory_space<vmem>>, %arg3: memref<1x128xf32, #tpu.memory_space<vmem>>, %arg4: memref<9x128x128xbf16, #tpu.memory_space<vmem>>, %arg5: memref<1x128xf32, #tpu.memory_space<vmem>>, %arg6: memref<1x272x128xbf16, #tpu.memory_space<vmem>>, %arg7: memref<322x128xbf16, #tpu.memory_space<vmem>>) attributes {dimension_semantics = [#tpu.dimension_semantics<parallel>], iteration_bounds = array<i64: 2>, scalar_prefetch = 0 : i64, scratch_operands = 1 : i64, tpu.core_type = #tpu.core_type<tc>, window_params = [{transform_indices = @transform_0, window_bounds = array<i64: 1, 323, 128>}, {pipeline_mode = #tpu.pipeline_mode<synchronous>, transform_indices = @transform_1, window_bounds = array<i64: 9, 128, 128>}, {pipeline_mode = #tpu.pipeline_mode<synchronous>, transform_indices = @transform_2, window_bounds = array<i64: 1, 128>}, {pipeline_mode = #tpu.pipeline_mode<synchronous>, transform_indices = @transform_3, window_bounds = array<i64: 9, 128, 128>}, {pipeline_mode = #tpu.pipeline_mode<synchronous>, transform_indices = @transform_4, window_bounds = array<i64: 1, 128>}, {transform_indices = @transform_5, window_bounds = array<i64: 1, 272, 128>}]} {
    %cst = arith.constant 0.000000e+00 : bf16
    %0 = vector.broadcast %cst : bf16 to vector<322x128xbf16>
    %c0 = arith.constant 0 : index
    %c0_0 = arith.constant 0 : index
    %1 = vector.load %arg7[%c0, %c0_0] : memref<322x128xbf16, #tpu.memory_space<vmem>>, vector<322x128xbf16>
    tpu.vector_store %arg7[%c0, %c0_0], %0 {strides = array<i32>} : memref<322x128xbf16, #tpu.memory_space<vmem>>, vector<322x128xbf16>,
    %2 = tpu.iota {dimensions = array<i32: 0>} : vector<272x1xi32>
    %c17_i32 = arith.constant 17 : i32
    %c0_i32 = arith.constant 0 : i32
    %3 = arith.cmpi eq, %c17_i32, %c0_i32 : i32
    %c1_i32 = arith.constant 1 : i32
    %4 = arith.select %3, %c1_i32, %c17_i32 : i32
    %5 = vector.broadcast %4 : i32 to vector<272x1xi32>
    %6 = arith.remsi %2, %5 : vector<272x1xi32>
    %c0_i32_1 = arith.constant 0 : i32
    %7 = vector.broadcast %c0_i32_1 : i32 to vector<272x1xi32>
    %8 = arith.cmpi ne, %6, %7 : vector<272x1xi32>
    %c0_i32_2 = arith.constant 0 : i32
    %9 = vector.broadcast %c0_i32_2 : i32 to vector<272x1xi32>
    %10 = arith.cmpi slt, %6, %9 : vector<272x1xi32>
    %c0_i32_3 = arith.constant 0 : i32
    %11 = arith.cmpi slt, %4, %c0_i32_3 : i32
    %12 = vector.broadcast %11 : i1 to vector<272x1xi1>
    %13 = vector.broadcast %12 : vector<272x1xi1> to vector<272x1xi1>
    %14 = arith.xori %10, %13 : vector<272x1xi1>
    %15 = arith.andi %14, %8 : vector<272x1xi1>
    %16 = vector.broadcast %4 : i32 to vector<272x1xi32>
    %17 = arith.addi %6, %16 : vector<272x1xi32>
    %18 = arith.select %15, %17, %6 : vector<272x1xi1>, vector<272x1xi32>
    %c16_i32 = arith.constant 16 : i32
    %19 = vector.broadcast %c16_i32 : i32 to vector<272x1xi32>
    %20 = arith.cmpi eq, %18, %19 : vector<272x1xi32>
    %cst_4 = arith.constant 0.000000e+00 : f32
    %21 = vector.broadcast %cst_4 : f32 to vector<272x128xf32>
    %c0_5 = arith.constant 0 : index
    %c0_6 = arith.constant 0 : index
    %c0_7 = arith.constant 0 : index
    %22 = vector.load %arg1[%c0_5, %c0_6, %c0_7] : memref<1x323x128xbf16, #tpu.memory_space<vmem>>, vector<1x272x128xbf16>
    %23 = vector.shape_cast %22 : vector<1x272x128xbf16> to vector<272x128xbf16>
    %c0_8 = arith.constant 0 : index
    %c0_9 = arith.constant 0 : index
    %c0_10 = arith.constant 0 : index
    %24 = vector.load %arg2[%c0_8, %c0_9, %c0_10] : memref<9x128x128xbf16, #tpu.memory_space<vmem>>, vector<1x128x128xbf16>
    %25 = vector.shape_cast %24 : vector<1x128x128xbf16> to vector<128x128xbf16>
    %cst_11 = arith.constant dense<0.000000e+00> : vector<272x128xf32>
    %26 = tpu.matmul %23, %25, %cst_11 {dimension_numbers = #tpu.dot_dimension_numbers<[1], [0], [0], [1], [0, 0, 1, 1], [], []>} : vector<272x128xbf16>, vector<128x128xbf16>, vector<272x128xf32> -> vector<272x128xf32>
    %27 = arith.addf %21, %26 : vector<272x128xf32>
    %c0_12 = arith.constant 0 : index
    %c1 = arith.constant 1 : index
    %c0_13 = arith.constant 0 : index
    %28 = vector.load %arg1[%c0_12, %c1, %c0_13] : memref<1x323x128xbf16, #tpu.memory_space<vmem>>, vector<1x272x128xbf16>
    %29 = vector.shape_cast %28 : vector<1x272x128xbf16> to vector<272x128xbf16>
    %c1_14 = arith.constant 1 : index
    %c0_15 = arith.constant 0 : index
    %c0_16 = arith.constant 0 : index
    %30 = vector.load %arg2[%c1_14, %c0_15, %c0_16] : memref<9x128x128xbf16, #tpu.memory_space<vmem>>, vector<1x128x128xbf16>
    %31 = vector.shape_cast %30 : vector<1x128x128xbf16> to vector<128x128xbf16>
    %cst_17 = arith.constant dense<0.000000e+00> : vector<272x128xf32>
    %32 = tpu.matmul %29, %31, %cst_17 {dimension_numbers = #tpu.dot_dimension_numbers<[1], [0], [0], [1], [0, 0, 1, 1], [], []>} : vector<272x128xbf16>, vector<128x128xbf16>, vector<272x128xf32> -> vector<272x128xf32>
    %33 = arith.addf %27, %32 : vector<272x128xf32>
    %c0_18 = arith.constant 0 : index
    %c2 = arith.constant 2 : index
    %c0_19 = arith.constant 0 : index
    %34 = vector.load %arg1[%c0_18, %c2, %c0_19] : memref<1x323x128xbf16, #tpu.memory_space<vmem>>, vector<1x272x128xbf16>
    %35 = vector.shape_cast %34 : vector<1x272x128xbf16> to vector<272x128xbf16>
    %c2_20 = arith.constant 2 : index
    %c0_21 = arith.constant 0 : index
    %c0_22 = arith.constant 0 : index
    %36 = vector.load %arg2[%c2_20, %c0_21, %c0_22] : memref<9x128x128xbf16, #tpu.memory_space<vmem>>, vector<1x128x128xbf16>
    %37 = vector.shape_cast %36 : vector<1x128x128xbf16> to vector<128x128xbf16>
    %cst_23 = arith.constant dense<0.000000e+00> : vector<272x128xf32>
    %38 = tpu.matmul %35, %37, %cst_23 {dimension_numbers = #tpu.dot_dimension_numbers<[1], [0], [0], [1], [0, 0, 1, 1], [], []>} : vector<272x128xbf16>, vector<128x128xbf16>, vector<272x128xf32> -> vector<272x128xf32>
    %39 = arith.addf %33, %38 : vector<272x128xf32>
    %c0_24 = arith.constant 0 : index
    %c17 = arith.constant 17 : index
    %c0_25 = arith.constant 0 : index
    %40 = vector.load %arg1[%c0_24, %c17, %c0_25] : memref<1x323x128xbf16, #tpu.memory_space<vmem>>, vector<1x272x128xbf16>
    %41 = vector.shape_cast %40 : vector<1x272x128xbf16> to vector<272x128xbf16>
    %c3 = arith.constant 3 : index
    %c0_26 = arith.constant 0 : index
    %c0_27 = arith.constant 0 : index
    %42 = vector.load %arg2[%c3, %c0_26, %c0_27] : memref<9x128x128xbf16, #tpu.memory_space<vmem>>, vector<1x128x128xbf16>
    %43 = vector.shape_cast %42 : vector<1x128x128xbf16> to vector<128x128xbf16>
    %cst_28 = arith.constant dense<0.000000e+00> : vector<272x128xf32>
    %44 = tpu.matmul %41, %43, %cst_28 {dimension_numbers = #tpu.dot_dimension_numbers<[1], [0], [0], [1], [0, 0, 1, 1], [], []>} : vector<272x128xbf16>, vector<128x128xbf16>, vector<272x128xf32> -> vector<272x128xf32>
    %45 = arith.addf %39, %44 : vector<272x128xf32>
    %c0_29 = arith.constant 0 : index
    %c18 = arith.constant 18 : index
    %c0_30 = arith.constant 0 : index
    %46 = vector.load %arg1[%c0_29, %c18, %c0_30] : memref<1x323x128xbf16, #tpu.memory_space<vmem>>, vector<1x272x128xbf16>
    %47 = vector.shape_cast %46 : vector<1x272x128xbf16> to vector<272x128xbf16>
    %c4 = arith.constant 4 : index
    %c0_31 = arith.constant 0 : index
    %c0_32 = arith.constant 0 : index
    %48 = vector.load %arg2[%c4, %c0_31, %c0_32] : memref<9x128x128xbf16, #tpu.memory_space<vmem>>, vector<1x128x128xbf16>
    %49 = vector.shape_cast %48 : vector<1x128x128xbf16> to vector<128x128xbf16>
    %cst_33 = arith.constant dense<0.000000e+00> : vector<272x128xf32>
    %50 = tpu.matmul %47, %49, %cst_33 {dimension_numbers = #tpu.dot_dimension_numbers<[1], [0], [0], [1], [0, 0, 1, 1], [], []>} : vector<272x128xbf16>, vector<128x128xbf16>, vector<272x128xf32> -> vector<272x128xf32>
    %51 = arith.addf %45, %50 : vector<272x128xf32>
    %c0_34 = arith.constant 0 : index
    %c19 = arith.constant 19 : index
    %c0_35 = arith.constant 0 : index
    %52 = vector.load %arg1[%c0_34, %c19, %c0_35] : memref<1x323x128xbf16, #tpu.memory_space<vmem>>, vector<1x272x128xbf16>
    %53 = vector.shape_cast %52 : vector<1x272x128xbf16> to vector<272x128xbf16>
    %c5 = arith.constant 5 : index
    %c0_36 = arith.constant 0 : index
    %c0_37 = arith.constant 0 : index
    %54 = vector.load %arg2[%c5, %c0_36, %c0_37] : memref<9x128x128xbf16, #tpu.memory_space<vmem>>, vector<1x128x128xbf16>
    %55 = vector.shape_cast %54 : vector<1x128x128xbf16> to vector<128x128xbf16>
    %cst_38 = arith.constant dense<0.000000e+00> : vector<272x128xf32>
    %56 = tpu.matmul %53, %55, %cst_38 {dimension_numbers = #tpu.dot_dimension_numbers<[1], [0], [0], [1], [0, 0, 1, 1], [], []>} : vector<272x128xbf16>, vector<128x128xbf16>, vector<272x128xf32> -> vector<272x128xf32>
    %57 = arith.addf %51, %56 : vector<272x128xf32>
    %c0_39 = arith.constant 0 : index
    %c34 = arith.constant 34 : index
    %c0_40 = arith.constant 0 : index
    %58 = vector.load %arg1[%c0_39, %c34, %c0_40] : memref<1x323x128xbf16, #tpu.memory_space<vmem>>, vector<1x272x128xbf16>
    %59 = vector.shape_cast %58 : vector<1x272x128xbf16> to vector<272x128xbf16>
    %c6 = arith.constant 6 : index
    %c0_41 = arith.constant 0 : index
    %c0_42 = arith.constant 0 : index
    %60 = vector.load %arg2[%c6, %c0_41, %c0_42] : memref<9x128x128xbf16, #tpu.memory_space<vmem>>, vector<1x128x128xbf16>
    %61 = vector.shape_cast %60 : vector<1x128x128xbf16> to vector<128x128xbf16>
    %cst_43 = arith.constant dense<0.000000e+00> : vector<272x128xf32>
    %62 = tpu.matmul %59, %61, %cst_43 {dimension_numbers = #tpu.dot_dimension_numbers<[1], [0], [0], [1], [0, 0, 1, 1], [], []>} : vector<272x128xbf16>, vector<128x128xbf16>, vector<272x128xf32> -> vector<272x128xf32>
    %63 = arith.addf %57, %62 : vector<272x128xf32>
    %c0_44 = arith.constant 0 : index
    %c35 = arith.constant 35 : index
    %c0_45 = arith.constant 0 : index
    %64 = vector.load %arg1[%c0_44, %c35, %c0_45] : memref<1x323x128xbf16, #tpu.memory_space<vmem>>, vector<1x272x128xbf16>
    %65 = vector.shape_cast %64 : vector<1x272x128xbf16> to vector<272x128xbf16>
    %c7 = arith.constant 7 : index
    %c0_46 = arith.constant 0 : index
    %c0_47 = arith.constant 0 : index
    %66 = vector.load %arg2[%c7, %c0_46, %c0_47] : memref<9x128x128xbf16, #tpu.memory_space<vmem>>, vector<1x128x128xbf16>
    %67 = vector.shape_cast %66 : vector<1x128x128xbf16> to vector<128x128xbf16>
    %cst_48 = arith.constant dense<0.000000e+00> : vector<272x128xf32>
    %68 = tpu.matmul %65, %67, %cst_48 {dimension_numbers = #tpu.dot_dimension_numbers<[1], [0], [0], [1], [0, 0, 1, 1], [], []>} : vector<272x128xbf16>, vector<128x128xbf16>, vector<272x128xf32> -> vector<272x128xf32>
    %69 = arith.addf %63, %68 : vector<272x128xf32>
    %c0_49 = arith.constant 0 : index
    %c36 = arith.constant 36 : index
    %c0_50 = arith.constant 0 : index
    %70 = vector.load %arg1[%c0_49, %c36, %c0_50] : memref<1x323x128xbf16, #tpu.memory_space<vmem>>, vector<1x272x128xbf16>
    %71 = vector.shape_cast %70 : vector<1x272x128xbf16> to vector<272x128xbf16>
    %c8 = arith.constant 8 : index
    %c0_51 = arith.constant 0 : index
    %c0_52 = arith.constant 0 : index
    %72 = vector.load %arg2[%c8, %c0_51, %c0_52] : memref<9x128x128xbf16, #tpu.memory_space<vmem>>, vector<1x128x128xbf16>
    %73 = vector.shape_cast %72 : vector<1x128x128xbf16> to vector<128x128xbf16>
    %cst_53 = arith.constant dense<0.000000e+00> : vector<272x128xf32>
    %74 = tpu.matmul %71, %73, %cst_53 {dimension_numbers = #tpu.dot_dimension_numbers<[1], [0], [0], [1], [0, 0, 1, 1], [], []>} : vector<272x128xbf16>, vector<128x128xbf16>, vector<272x128xf32> -> vector<272x128xf32>
    %75 = arith.addf %69, %74 : vector<272x128xf32>
    %c0_54 = arith.constant 0 : index
    %c0_55 = arith.constant 0 : index
    %76 = vector.load %arg3[%c0_54, %c0_55] : memref<1x128xf32, #tpu.memory_space<vmem>>, vector<1x128xf32>
    %77 = vector.broadcast %76 : vector<1x128xf32> to vector<272x128xf32>
    %78 = arith.addf %75, %77 : vector<272x128xf32>
    %cst_56 = arith.constant 0.000000e+00 : f32
    %79 = vector.broadcast %cst_56 : f32 to vector<272x128xf32>
    %80 = arith.maximumf %78, %79 : vector<272x128xf32>
    %cst_57 = arith.constant 0.000000e+00 : f32
    %81 = vector.shape_cast %20 : vector<272x1xi1> to vector<272x1xi1>
    %82 = vector.broadcast %81 : vector<272x1xi1> to vector<272x128xi1>
    %83 = vector.broadcast %cst_57 : f32 to vector<272x128xf32>
    %84 = arith.select %82, %83, %80 : vector<272x128xi1>, vector<272x128xf32>
    %85 = arith.truncf %84 : vector<272x128xf32> to vector<272x128xbf16>
    %c32 = arith.constant 32 : index
    %c0_58 = arith.constant 0 : index
    %86 = vector.load %arg7[%c32, %c0_58] : memref<322x128xbf16, #tpu.memory_space<vmem>>, vector<272x128xbf16>
    tpu.vector_store %arg7[%c32, %c0_58], %85 {strides = array<i32>} : memref<322x128xbf16, #tpu.memory_space<vmem>>, vector<272x128xbf16>,
    %cst_59 = arith.constant 0.000000e+00 : f32
    %87 = vector.broadcast %cst_59 : f32 to vector<272x128xf32>
    %c14 = arith.constant 14 : index
    %c0_60 = arith.constant 0 : index
    %88 = vector.load %arg7[%c14, %c0_60] : memref<322x128xbf16, #tpu.memory_space<vmem>>, vector<272x128xbf16>
    %c0_61 = arith.constant 0 : index
    %c0_62 = arith.constant 0 : index
    %c0_63 = arith.constant 0 : index
    %89 = vector.load %arg4[%c0_61, %c0_62, %c0_63] : memref<9x128x128xbf16, #tpu.memory_space<vmem>>, vector<1x128x128xbf16>
    %90 = vector.shape_cast %89 : vector<1x128x128xbf16> to vector<128x128xbf16>
    %cst_64 = arith.constant dense<0.000000e+00> : vector<272x128xf32>
    %91 = tpu.matmul %88, %90, %cst_64 {dimension_numbers = #tpu.dot_dimension_numbers<[1], [0], [0], [1], [0, 0, 1, 1], [], []>} : vector<272x128xbf16>, vector<128x128xbf16>, vector<272x128xf32> -> vector<272x128xf32>
    %92 = arith.addf %87, %91 : vector<272x128xf32>
    %c15 = arith.constant 15 : index
    %c0_65 = arith.constant 0 : index
    %93 = vector.load %arg7[%c15, %c0_65] : memref<322x128xbf16, #tpu.memory_space<vmem>>, vector<272x128xbf16>
    %c1_66 = arith.constant 1 : index
    %c0_67 = arith.constant 0 : index
    %c0_68 = arith.constant 0 : index
    %94 = vector.load %arg4[%c1_66, %c0_67, %c0_68] : memref<9x128x128xbf16, #tpu.memory_space<vmem>>, vector<1x128x128xbf16>
    %95 = vector.shape_cast %94 : vector<1x128x128xbf16> to vector<128x128xbf16>
    %cst_69 = arith.constant dense<0.000000e+00> : vector<272x128xf32>
    %96 = tpu.matmul %93, %95, %cst_69 {dimension_numbers = #tpu.dot_dimension_numbers<[1], [0], [0], [1], [0, 0, 1, 1], [], []>} : vector<272x128xbf16>, vector<128x128xbf16>, vector<272x128xf32> -> vector<272x128xf32>
    %97 = arith.addf %92, %96 : vector<272x128xf32>
    %c16 = arith.constant 16 : index
    %c0_70 = arith.constant 0 : index
    %98 = vector.load %arg7[%c16, %c0_70] : memref<322x128xbf16, #tpu.memory_space<vmem>>, vector<272x128xbf16>
    %c2_71 = arith.constant 2 : index
    %c0_72 = arith.constant 0 : index
    %c0_73 = arith.constant 0 : index
    %99 = vector.load %arg4[%c2_71, %c0_72, %c0_73] : memref<9x128x128xbf16, #tpu.memory_space<vmem>>, vector<1x128x128xbf16>
    %100 = vector.shape_cast %99 : vector<1x128x128xbf16> to vector<128x128xbf16>
    %cst_74 = arith.constant dense<0.000000e+00> : vector<272x128xf32>
    %101 = tpu.matmul %98, %100, %cst_74 {dimension_numbers = #tpu.dot_dimension_numbers<[1], [0], [0], [1], [0, 0, 1, 1], [], []>} : vector<272x128xbf16>, vector<128x128xbf16>, vector<272x128xf32> -> vector<272x128xf32>
    %102 = arith.addf %97, %101 : vector<272x128xf32>
    %c31 = arith.constant 31 : index
    %c0_75 = arith.constant 0 : index
    %103 = vector.load %arg7[%c31, %c0_75] : memref<322x128xbf16, #tpu.memory_space<vmem>>, vector<272x128xbf16>
    %c3_76 = arith.constant 3 : index
    %c0_77 = arith.constant 0 : index
    %c0_78 = arith.constant 0 : index
    %104 = vector.load %arg4[%c3_76, %c0_77, %c0_78] : memref<9x128x128xbf16, #tpu.memory_space<vmem>>, vector<1x128x128xbf16>
    %105 = vector.shape_cast %104 : vector<1x128x128xbf16> to vector<128x128xbf16>
    %cst_79 = arith.constant dense<0.000000e+00> : vector<272x128xf32>
    %106 = tpu.matmul %103, %105, %cst_79 {dimension_numbers = #tpu.dot_dimension_numbers<[1], [0], [0], [1], [0, 0, 1, 1], [], []>} : vector<272x128xbf16>, vector<128x128xbf16>, vector<272x128xf32> -> vector<272x128xf32>
    %107 = arith.addf %102, %106 : vector<272x128xf32>
    %c32_80 = arith.constant 32 : index
    %c0_81 = arith.constant 0 : index
    %108 = vector.load %arg7[%c32_80, %c0_81] : memref<322x128xbf16, #tpu.memory_space<vmem>>, vector<272x128xbf16>
    %c4_82 = arith.constant 4 : index
    %c0_83 = arith.constant 0 : index
    %c0_84 = arith.constant 0 : index
    %109 = vector.load %arg4[%c4_82, %c0_83, %c0_84] : memref<9x128x128xbf16, #tpu.memory_space<vmem>>, vector<1x128x128xbf16>
    %110 = vector.shape_cast %109 : vector<1x128x128xbf16> to vector<128x128xbf16>
    %cst_85 = arith.constant dense<0.000000e+00> : vector<272x128xf32>
    %111 = tpu.matmul %108, %110, %cst_85 {dimension_numbers = #tpu.dot_dimension_numbers<[1], [0], [0], [1], [0, 0, 1, 1], [], []>} : vector<272x128xbf16>, vector<128x128xbf16>, vector<272x128xf32> -> vector<272x128xf32>
    %112 = arith.addf %107, %111 : vector<272x128xf32>
    %c33 = arith.constant 33 : index
    %c0_86 = arith.constant 0 : index
    %113 = vector.load %arg7[%c33, %c0_86] : memref<322x128xbf16, #tpu.memory_space<vmem>>, vector<272x128xbf16>
    %c5_87 = arith.constant 5 : index
    %c0_88 = arith.constant 0 : index
    %c0_89 = arith.constant 0 : index
    %114 = vector.load %arg4[%c5_87, %c0_88, %c0_89] : memref<9x128x128xbf16, #tpu.memory_space<vmem>>, vector<1x128x128xbf16>
    %115 = vector.shape_cast %114 : vector<1x128x128xbf16> to vector<128x128xbf16>
    %cst_90 = arith.constant dense<0.000000e+00> : vector<272x128xf32>
    %116 = tpu.matmul %113, %115, %cst_90 {dimension_numbers = #tpu.dot_dimension_numbers<[1], [0], [0], [1], [0, 0, 1, 1], [], []>} : vector<272x128xbf16>, vector<128x128xbf16>, vector<272x128xf32> -> vector<272x128xf32>
    %117 = arith.addf %112, %116 : vector<272x128xf32>
    %c48 = arith.constant 48 : index
    %c0_91 = arith.constant 0 : index
    %118 = vector.load %arg7[%c48, %c0_91] : memref<322x128xbf16, #tpu.memory_space<vmem>>, vector<272x128xbf16>
    %c6_92 = arith.constant 6 : index
    %c0_93 = arith.constant 0 : index
    %c0_94 = arith.constant 0 : index
    %119 = vector.load %arg4[%c6_92, %c0_93, %c0_94] : memref<9x128x128xbf16, #tpu.memory_space<vmem>>, vector<1x128x128xbf16>
    %120 = vector.shape_cast %119 : vector<1x128x128xbf16> to vector<128x128xbf16>
    %cst_95 = arith.constant dense<0.000000e+00> : vector<272x128xf32>
    %121 = tpu.matmul %118, %120, %cst_95 {dimension_numbers = #tpu.dot_dimension_numbers<[1], [0], [0], [1], [0, 0, 1, 1], [], []>} : vector<272x128xbf16>, vector<128x128xbf16>, vector<272x128xf32> -> vector<272x128xf32>
    %122 = arith.addf %117, %121 : vector<272x128xf32>
    %c49 = arith.constant 49 : index
    %c0_96 = arith.constant 0 : index
    %123 = vector.load %arg7[%c49, %c0_96] : memref<322x128xbf16, #tpu.memory_space<vmem>>, vector<272x128xbf16>
    %c7_97 = arith.constant 7 : index
    %c0_98 = arith.constant 0 : index
    %c0_99 = arith.constant 0 : index
    %124 = vector.load %arg4[%c7_97, %c0_98, %c0_99] : memref<9x128x128xbf16, #tpu.memory_space<vmem>>, vector<1x128x128xbf16>
    %125 = vector.shape_cast %124 : vector<1x128x128xbf16> to vector<128x128xbf16>
    %cst_100 = arith.constant dense<0.000000e+00> : vector<272x128xf32>
    %126 = tpu.matmul %123, %125, %cst_100 {dimension_numbers = #tpu.dot_dimension_numbers<[1], [0], [0], [1], [0, 0, 1, 1], [], []>} : vector<272x128xbf16>, vector<128x128xbf16>, vector<272x128xf32> -> vector<272x128xf32>
    %127 = arith.addf %122, %126 : vector<272x128xf32>
    %c50 = arith.constant 50 : index
    %c0_101 = arith.constant 0 : index
    %128 = vector.load %arg7[%c50, %c0_101] : memref<322x128xbf16, #tpu.memory_space<vmem>>, vector<272x128xbf16>
    %c8_102 = arith.constant 8 : index
    %c0_103 = arith.constant 0 : index
    %c0_104 = arith.constant 0 : index
    %129 = vector.load %arg4[%c8_102, %c0_103, %c0_104] : memref<9x128x128xbf16, #tpu.memory_space<vmem>>, vector<1x128x128xbf16>
    %130 = vector.shape_cast %129 : vector<1x128x128xbf16> to vector<128x128xbf16>
    %cst_105 = arith.constant dense<0.000000e+00> : vector<272x128xf32>
    %131 = tpu.matmul %128, %130, %cst_105 {dimension_numbers = #tpu.dot_dimension_numbers<[1], [0], [0], [1], [0, 0, 1, 1], [], []>} : vector<272x128xbf16>, vector<128x128xbf16>, vector<272x128xf32> -> vector<272x128xf32>
    %132 = arith.addf %127, %131 : vector<272x128xf32>
    %c0_106 = arith.constant 0 : index
    %c0_107 = arith.constant 0 : index
    %133 = vector.load %arg5[%c0_106, %c0_107] : memref<1x128xf32, #tpu.memory_space<vmem>>, vector<1x128xf32>
    %134 = vector.broadcast %133 : vector<1x128xf32> to vector<272x128xf32>
    %135 = arith.addf %132, %134 : vector<272x128xf32>
    %c0_108 = arith.constant 0 : index
    %c18_109 = arith.constant 18 : index
    %c0_110 = arith.constant 0 : index
    %136 = vector.load %arg1[%c0_108, %c18_109, %c0_110] : memref<1x323x128xbf16, #tpu.memory_space<vmem>>, vector<1x272x128xbf16>
    %137 = vector.shape_cast %136 : vector<1x272x128xbf16> to vector<272x128xbf16>
    %138 = arith.extf %137 : vector<272x128xbf16> to vector<272x128xf32>
    %139 = arith.addf %135, %138 : vector<272x128xf32>
    %cst_111 = arith.constant 0.000000e+00 : f32
    %140 = vector.broadcast %cst_111 : f32 to vector<272x128xf32>
    %141 = arith.maximumf %139, %140 : vector<272x128xf32>
    %142 = arith.truncf %141 : vector<272x128xf32> to vector<272x128xbf16>
    %c0_112 = arith.constant 0 : index
    %c0_113 = arith.constant 0 : index
    %c0_114 = arith.constant 0 : index
    %143 = vector.load %arg6[%c0_112, %c0_113, %c0_114] : memref<1x272x128xbf16, #tpu.memory_space<vmem>>, vector<1x272x128xbf16>
    %144 = vector.shape_cast %143 : vector<1x272x128xbf16> to vector<272x128xbf16>
    %145 = vector.shape_cast %142 : vector<272x128xbf16> to vector<1x272x128xbf16>
    tpu.vector_store %arg6[%c0_112, %c0_113, %c0_114], %145 {strides = array<i32>} : memref<1x272x128xbf16, #tpu.memory_space<vmem>>, vector<1x272x128xbf16>,
    return
  }
  func.func @transform_0(%arg0: i32) -> (i32, i32, i32) {
    %c0_i32 = arith.constant 0 : i32
    %c0_i32_0 = arith.constant 0 : i32
    %c0_i32_1 = arith.constant 0 : i32
    return %arg0, %c0_i32, %c0_i32_0 : i32, i32, i32
  }
  func.func @transform_1(%arg0: i32) -> (i32, i32, i32) {
    %c0_i32 = arith.constant 0 : i32
    %c0_i32_0 = arith.constant 0 : i32
    %c0_i32_1 = arith.constant 0 : i32
    %c0_i32_2 = arith.constant 0 : i32
    return %c0_i32, %c0_i32_0, %c0_i32_1 : i32, i32, i32
  }
  func.func @transform_2(%arg0: i32) -> (i32, i32) {
    %c0_i32 = arith.constant 0 : i32
    %c0_i32_0 = arith.constant 0 : i32
    %c0_i32_1 = arith.constant 0 : i32
    return %c0_i32, %c0_i32_0 : i32, i32
  }
  func.func @transform_3(%arg0: i32) -> (i32, i32, i32) {
    %c0_i32 = arith.constant 0 : i32
    %c0_i32_0 = arith.constant 0 : i32
    %c0_i32_1 = arith.constant 0 : i32
    %c0_i32_2 = arith.constant 0 : i32
    return %c0_i32, %c0_i32_0, %c0_i32_1 : i32, i32, i32
  }
  func.func @transform_4(%arg0: i32) -> (i32, i32) {
    %c0_i32 = arith.constant 0 : i32
    %c0_i32_0 = arith.constant 0 : i32
    %c0_i32_1 = arith.constant 0 : i32
    return %c0_i32, %c0_i32_0 : i32, i32
  }
  func.func @transform_5(%arg0: i32) -> (i32, i32, i32) {
    %c0_i32 = arith.constant 0 : i32
    %c0_i32_0 = arith.constant 0 : i32
    %c0_i32_1 = arith.constant 0 : i32
    return %arg0, %c0_i32, %c0_i32_0 : i32, i32, i32
  }
}

</mosaic_0001>

<bundles_post_ra>
// kernel: tpu_custom_call.1
= control target key start
LH: loop header
LB: loop body
LE: loop exit
PB: predicated region body
PF: predicated region fallthrough
CT: control target
= control target key end

     0   :  { %10 = vsyncpa [#allocation4], 0  ;;  %s17314_s0 = inlined_call_operand.vmem [shape: bf16[2,323,128], index: 0, kind: input, shape index: {}]   ;;  %s17315_s1 = inlined_call_operand.vmem [shape: bf16[9,128,128], index: 1, kind: input, shape index: {}]   ;;  %s17316_s2 = inlined_call_operand.vmem [shape: f32[1,128], index: 2, kind: input, shape index: {}]   ;;  %s17317_s3 = inlined_call_operand.hbm [shape: bf16[9,128,128], index: 3, kind: input, shape index: {}]   ;;  %s17318_s4 = inlined_call_operand.vmem [shape: f32[1,128], index: 4, kind: input, shape index: {}]   ;;  %s17319_s5 = inlined_call_operand.hbm [shape: bf16[2,272,128], index: 5, kind: output, shape index: {}]  }
   0x1   :  { %11 = vsyncpa [#allocation5], 0 }
   0x2   :  { %13 = vsyncpa [#allocation5 + $0x1], 0  ;;  %s12669_s18 = smov 0   ;;  %s12671_s19 = smov 0  }
   0x3   :  { %s12673_s20 = smov 0   ;;  %s12675_s21 = smov 0  }
   0x4 LB: > { %s12690_s22 = sadd.s32 4294967295, %s12628_s21   ;;  %s9190_s23 = sadd.s32 4294967294, %s12628_s21   ;;  %s12628_s21 = sphi %s12675_s21, %s17889_s21   ;;  %s12624_s20 = sphi %s12673_s20, %s17888_s20   ;;  %s12620_s19 = sphi %s12671_s19, %s17887_s19   ;;  %s12616_s18 = sphi %s12669_s18, %s17886_s18  }
   0x5   : > { %s12694_s24 = sadd.s32 1, %s12628_s21   ;;  %s136_s25 = sadd.s32 1, %s12624_s20 }
   0x6   : > { %s133_s26 = ssub.s32 %s12628_s21, %s12694_s24  ;;  %p146_p0 = scmp.ne.s32.totalorder %s12624_s20, %s12620_s19 }
   0x7   : > { %p134_p1 = scmp.eq.s32.totalorder %s133_s26, 0  ;;  %p147_p2 = scmp.eq.s32.totalorder %s12690_s22, 1 }
   0x8   : > { %p152_p3 = scmp.ne.s32.totalorder %s12620_s19, %s12616_s18  ;;  %p153_p4 = scmp.eq.s32.totalorder %s9190_s23, 1 }
   0x9   : > { %s12705_s27 = scalar_select %p134_p1, %s12624_s20, %s136_s25  }
   0xa   : > { %p12707_p5 = por %p147_p2, %p146_p0  ;;  %p12711_p6 = por %p153_p4, %p152_p3 }
   0xb   : > { %p9191_p7 = scmp.ge.s32.totalorder %s12628_s21, 1  ;;  %p160_p8 = scmp.lt.s32.totalorder %s12628_s21, 3 }
   0xc   : > { %s17397_s28 = scalar_select %p12707_p5, 1, 0 }
   0xd   : > { %s17398_s29 = scalar_select %p12711_p6, 1, 0 }
   0xe   : > { %p17320_p9 = scmp.eq.s32.totalorder %s12690_s22, 0  ;;  %p12718_p10 = pnand %p9191_p7, %p160_p8 }
   0xf   : > { %s12630_s6 = smov [#allocation3]   ;;  %s12534_s11 = scalar_lea.hbm %s17317_s3, 9216 }
  0x10   : > { %s17399_s30 = scalar_select %p12718_p10, 1, 0 }
  0x11   : > { %s178_s7 = sshll.u32 %s12630_s6, 4  ;;  %p12116_p11 = pneg %p12718_p10  ;;  %s179_s7 = int_to_ptr.vmem [resolvable:$true] %s178_s7 }
  0x12   : > { %p12535_p13 = scmp.ne.s32.totalorder %s17317_s3, %s12534_s11  ;;  %p12541_p3 = scmp.lt.u32.totalorder %s12534_s11, %s17317_s3 }
  0x13   : > { %p12726_p12 = pnand %p17320_p9, %p12116_p11 }
  0x15   : > { %p12536_p0 = pneg %p12726_p12 }
  0x17   : > { %p12537_p1 = pnand %p12536_p0, %p12535_p13 }
  0x19   : > { %p12538_p2 = pneg %p12537_p1 }
  0x1b   : > { %p12543_p4 = pnand %p12541_p3, %p12538_p2 }
  0x1d   : > { %12546 = shalt.err (!%p12543_p4)
}
  0x1e   : > { %s12547_s16 = scalar_lea.vmem %s179_s7, 9216  ;;  %p12555_p9 = scmp.lt.s32.totalorder %s179_s7, %s179_s7 }
  0x1f   : > { %p12548_p7 = scmp.ne.s32.totalorder %s179_s7, %s12547_s16  ;;  %p12556_p6 = scmp.lt.s32.totalorder %s12547_s16, %s12547_s16 }
  0x21   : > { %p12550_p8 = pnand %p12548_p7, %p12536_p0  ;;  %p12557_p5 = por %p12556_p6, %p12555_p9 }
  0x23   : > { %p12551_p11 = pneg %p12550_p8 }
  0x25   : > { %p12558_p10 = pnand %p12557_p5, %p12551_p11 }
  0x27   : > { %12561 = shalt.err (!%p12558_p10)
}
  0x28   : > { %s12631_s17 = smov 64   ;;  %s12632_s23 = smov 4  }
  0x29   : > { %12119 = dma.hbm_to_vmem [thread:$0]  (!%p12726_p12), %s17317_s3, 9216, %s179_s7, [#allocation4], %s12631_s17, %s12631_s17, %s12632_s23  }
  0x2a   : > { %p17401_p13 = scmp.ne.s32.totalorder %s17399_s30, 0 }
  0x2c   : > { %205 = sbr.rel (%p17401_p13) target bundleno = 1791 (0x6ff), region = 40 }
  0x33   : > { %p17402_p1 = scmp.eq.s32.totalorder %s12690_s22, 0 }
  0x35   : > { %12607 = dma.done.wait (%p17402_p1), [#allocation4], 9216   ;;  %p17403_p0 = pmov %p17402_p1 }
  0x36   : > { %v12633_v0 = vmov 0   ;;  %v17343_v1 = vmov 0.0   ;;  %vm17358_vm0 = vmmov 0   ;;  %v12167_v2 = vld [vmem:[%s17315_s1 + $0x40] sm:$0xff]   ;;  %p233_p5 = scmp.lt.s32.totalorder %s12690_s22, 1  ;;  %v12169_v4 = vld [vmem:[%s17315_s1 + $0x48] sm:$0xff]  }
  0x37   : > { %12609 = vsyncadd (%p17403_p0), [#allocation4], 4294958080  ;;  %240 = vst [vmem:[#allocation2 + $0x4] sm:$0xf] %v12633_v0  ;;  %10527 = vmatprep.subr.bf16.mxu0 %v17343_v1  ;;  %10611 = vmatprep.subr.bf16.mxu1 %v17343_v1  ;;  %v12168_v3 = vld [vmem:[%s17315_s1] sm:$0xff]   ;;  %v12170_v5 = vld [vmem:[%s17315_s1 + $0x8] sm:$0xff]  }
  0x38   : > { %241 = vst [vmem:[#allocation2 + $0x8] sm:$0xf] %v12633_v0  ;;  %242 = vst [vmem:[#allocation2 + $0xc] sm:$0xf] %v12633_v0  ;;  %10543 = vmatprep.mubr.msk.bf16.mxu0 %vm17358_vm0, %v17343_v1  ;;  %10627 = vmatprep.mubr.msk.bf16.mxu1 %vm17358_vm0, %v17343_v1  ;;  %s234_s13 = scalar_select %p233_p5, %s12690_s22, 1  ;;  %v12171_v6 = vld [vmem:[%s17315_s1 + $0x50] sm:$0xff]  }
  0x39   : > { %243 = vst [vmem:[#allocation2 + $0x10] sm:$0xf] %v12633_v0  ;;  %244 = vst [vmem:[#allocation2 + $0x14] sm:$0xf] %v12633_v0  ;;  %10528 = vmatpush3.bf16.msra.mxu0 %v12167_v2  ;;  %10612 = vmatpush3.bf16.msra.mxu1 %v12168_v3  ;;  %v12172_v7 = vld [vmem:[%s17315_s1 + $0x10] sm:$0xff]   ;;  %v12173_v8 = vld [vmem:[%s17315_s1 + $0x58] sm:$0xff]  }
  0x3a   : > { %245 = vst [vmem:[#allocation2 + $0x18] sm:$0xf] %v12633_v0  ;;  %246 = vst [vmem:[#allocation2 + $0x1c] sm:$0xf] %v12633_v0  ;;  %10529 = vmatprep.subr.bf16.mxu0 %v17343_v1  ;;  %10613 = vmatprep.subr.bf16.mxu1 %v17343_v1  ;;  %s12040_s23 = smul.u32 164, %s234_s13  ;;  %v12174_v9 = vld [vmem:[%s17315_s1 + $0x18] sm:$0xff]  }
  0x3b   : > { %247 = vst [vmem:[#allocation2 + $0x20] sm:$0xf] %v12633_v0  ;;  %248 = vst [vmem:[#allocation2 + $0x24] sm:$0xf] %v12633_v0  ;;  %v12175_v10 = vld [vmem:[%s17315_s1 + $0x60] sm:$0xff]   ;;  %v12177_v14 = vld [vmem:[%s17315_s1 + $0x68] sm:$0xff]  }
  0x3c   : > { %249 = vst [vmem:[#allocation2 + $0x28] sm:$0xf] %v12633_v0  ;;  %250 = vst [vmem:[#allocation2 + $0x2c] sm:$0xf] %v12633_v0  ;;  %s12793_s9 = scalar_lea.vmem %s17314_s0, %s12040_s23  ;;  %v12176_v11 = vld [vmem:[%s17315_s1 + $0x20] sm:$0xff]   ;;  %v12178_v17 = vld [vmem:[%s17315_s1 + $0x28] sm:$0xff]  }
  0x3d   : > { %251 = vst [vmem:[#allocation2 + $0x30] sm:$0xf] %v12633_v0  ;;  %252 = vst [vmem:[#allocation2 + $0x34] sm:$0xf] %v12633_v0  ;;  %10530 = vmatpush3.bf16.msra.mxu0 %v12169_v4  ;;  %10614 = vmatpush3.bf16.msra.mxu1 %v12170_v5  ;;  %v893_v12 = vld [vmem:[%s12793_s9] sm:$0xf] }
  0x3e   : > { %253 = vst [vmem:[#allocation2 + $0x38] sm:$0xf] %v12633_v0  ;;  %254 = vst [vmem:[#allocation2 + $0x3c] sm:$0xf] %v12633_v0  ;;  %10531 = vmatprep.subr.bf16.mxu0 %v17343_v1  ;;  %10615 = vmatprep.subr.bf16.mxu1 %v17343_v1  ;;  %v12805_v13 = vld [vmem:[%s12793_s9 + $0x4] sm:$0xf] }
  0x3f   : > { %255 = vst [vmem:[#allocation2 + $0x40] sm:$0xf] %v12633_v0  ;;  %256 = vst [vmem:[#allocation2 + $0x44] sm:$0xf] %v12633_v0  ;;  %v9213_v15 = vcombine.low %v893_v12, %v12805_v13  ;;  %v12812_v16 = vld [vmem:[%s12793_s9 + $0x8] sm:$0xff]   ;;  %v12179_v19 = vld [vmem:[%s17315_s1 + $0x70] sm:$0xff]  }
  0x40   : > { %257 = vst [vmem:[#allocation2 + $0x48] sm:$0xf] %v12633_v0  ;;  %258 = vst [vmem:[#allocation2 + $0x4c] sm:$0xf] %v12633_v0  ;;  %v1058_v22 = vshll.u32 %v12812_v16, 16  ;;  %v12180_v23 = vld [vmem:[%s17315_s1 + $0x30] sm:$0xff]  }
  0x41   : > { %259 = vst [vmem:[#allocation2 + $0x50] sm:$0xf] %v12633_v0  ;;  %260 = vst [vmem:[#allocation2 + $0x54] sm:$0xf] %v12633_v0  ;;  %10532 = vmatpush3.bf16.msra.mxu0 %v12171_v6  ;;  %10616 = vmatpush3.bf16.msra.mxu1 %v12172_v7  ;;  %v1053_v18 = vshll.u32 %v9213_v15, 16  ;;  %v1051_v20 = vshrl.u32 %v9213_v15, 16 }
  0x42   : > { %261 = vst [vmem:[#allocation2 + $0x58] sm:$0xf] %v12633_v0  ;;  %262 = vst [vmem:[#allocation2 + $0x5c] sm:$0xf] %v12633_v0  ;;  %10533 = vmatprep.subr.bf16.mxu0 %v17343_v1  ;;  %10617 = vmatprep.subr.bf16.mxu1 %v17343_v1  ;;  %v12181_v24 = vld [vmem:[%s17315_s1 + $0x78] sm:$0xff]   ;;  %v1060_v26 = vrot.slane %v1058_v22, 1 }
  0x43   : > { %263 = vst [vmem:[#allocation2 + $0x60] sm:$0xf] %v12633_v0  ;;  %264 = vst [vmem:[#allocation2 + $0x64] sm:$0xf] %v12633_v0  ;;  %v1055_v21 = vrot.slane %v1053_v18, 1  ;;  %v12832_v27 = vld [vmem:[%s12793_s9 + $0x10] sm:$0xff]  }
  0x44   : > { %265 = vst [vmem:[#allocation2 + $0x68] sm:$0xf] %v12633_v0  ;;  %266 = vst [vmem:[#allocation2 + $0x6c] sm:$0xf] %v12633_v0  ;;  %v12182_v28 = vld [vmem:[%s17315_s1 + $0x38] sm:$0xff]   ;;  %v12185_v29 = vld [vmem:[%s17315_s1 + $0x80] sm:$0xff]  }
  0x45   : > { %267 = vst [vmem:[#allocation2 + $0x70] sm:$0xf] %v12633_v0  ;;  %268 = vst [vmem:[#allocation2 + $0x74] sm:$0xf] %v12633_v0  ;;  %10534 = vmatpush3.bf16.msra.mxu0 %v12173_v8  ;;  %10618 = vmatpush3.bf16.msra.mxu1 %v12174_v9  ;;  %v1056_v25 = vor.u32 %v1055_v21, %v1051_v20  ;;  %vm17356_vm1 = vsmask.f32 7424 }
  0x46   : > { %269 = vst [vmem:[#allocation2 + $0x78] sm:$0xf] %v12633_v0  ;;  %270 = vst [vmem:[#allocation2 + $0x7c] sm:$0xf] %v12633_v0  ;;  %10535 = vmatprep.subr.bf16.mxu0 %v17343_v1  ;;  %10619 = vmatprep.subr.bf16.mxu1 %v17343_v1  ;;  %v1062_v31 = vshrl.u32 %v12812_v16, 16  ;;  %v1066_v32 = vshll.u32 %v12832_v27, 16 }
  0x47   : > { %271 = vst [vmem:[#allocation2 + $0x80] sm:$0xf] %v12633_v0  ;;  %272 = vst [vmem:[#allocation2 + $0x84] sm:$0xf] %v12633_v0  ;;  %v1061_v30 = vsel %vm17356_vm1, %v1056_v25, %v1060_v26  ;;  %v12848_v35 = vld [vmem:[%s12793_s9 + $0x18] sm:$0xff]   ;;  %v12188_v36 = vld [vmem:[%s17315_s1 + $0x88] sm:$0xff]  }
  0x48   : > { %273 = vst [vmem:[#allocation2 + $0x88] sm:$0xf] %v12633_v0  ;;  %274 = vst [vmem:[#allocation2 + $0x8c] sm:$0xf] %v12633_v0  ;;  %v1064_v33 = vor.u32 %v1062_v31, %v1060_v26  ;;  %v1068_v34 = vrot.slane %v1066_v32, 1  ;;  %v1070_v38 = vshrl.u32 %v12832_v27, 16 }
  0x49   : > { %275 = vst [vmem:[#allocation2 + $0x90] sm:$0xf] %v12633_v0  ;;  %276 = vst [vmem:[#allocation2 + $0x94] sm:$0xf] %v12633_v0  ;;  %10536 = vmatpush3.bf16.msra.mxu0 %v12175_v10  ;;  %10620 = vmatpush3.bf16.msra.mxu1 %v12176_v11  ;;  %v1074_v39 = vshll.u32 %v12848_v35, 16  ;;  %v12191_v40 = vld [vmem:[%s17315_s1 + $0x90] sm:$0xff]  }
  0x4a   : > { %277 = vst [vmem:[#allocation2 + $0x98] sm:$0xf] %v12633_v0  ;;  %278 = vst [vmem:[#allocation2 + $0x9c] sm:$0xf] %v12633_v0  ;;  %10537 = vmatprep.subr.bf16.mxu0 %v17343_v1  ;;  %10621 = vmatprep.subr.bf16.mxu1 %v17343_v1  ;;  %v1069_v37 = vsel %vm17356_vm1, %v1064_v33, %v1068_v34  ;;  %v12866_v41 = vld [vmem:[%s12793_s9 + $0x20] sm:$0xff]   ;;  %v1072_v42 = vor.u32 %v1070_v38, %v1068_v34  ;;  %v12194_v44 = vld [vmem:[%s17315_s1 + $0x98] sm:$0xff]  }
  0x4b   : > { %279 = vst [vmem:[#allocation2 + $0xa0] sm:$0x1] %v12633_v0  ;;  %v1076_v43 = vrot.slane %v1074_v39, 1  ;;  %v12205_v45 = vld [vmem:[%s17315_s1 + $0xc0] sm:$0xff]   ;;  %v12206_v46 = vld [vmem:[%s17315_s1 + $0xc8] sm:$0xff]   ;;  %v1078_v48 = vshrl.u32 %v12848_v35, 16 }
  0x4c   : > { %v1082_v49 = vshll.u32 %v12866_v41, 16  ;;  %v12197_v50 = vld [vmem:[%s17315_s1 + $0xa0] sm:$0xff]   ;;  %v12208_v51 = vld [vmem:[%s17315_s1 + $0xd0] sm:$0xff]   ;;  %v12899_v54 = vld [vmem:[%s12793_s9 + $0x28] sm:$0xff]   ;;  %v1086_v57 = vshrl.u32 %v12866_v41, 16  ;;  %v1681_v62 = vrot.slane %v12812_v16, 1 }
  0x4d   : > { %10538 = vmatpush3.bf16.msra.mxu0 %v12177_v14  ;;  %10622 = vmatpush3.bf16.msra.mxu1 %v12178_v17  ;;  %v1077_v47 = vsel %vm17356_vm1, %v1072_v42, %v1076_v43  ;;  %v1080_v52 = vor.u32 %v1078_v48, %v1076_v43  ;;  %v12200_v55 = vld [vmem:[%s17315_s1 + $0xa8] sm:$0xff]   ;;  %v12209_v56 = vld [vmem:[%s17315_s1 + $0xd8] sm:$0xff]   ;;  %v1658_v58 = vld [vmem:[%s12793_s9] sm:$0xe]  ;;  %v1090_v60 = vshll.u32 %v12899_v54, 16  ;;  %vm17357_vm2 = vcmask 1046528  }
  0x4e   : > { %10539 = vmatprep.subr.bf16.mxu0 %v17343_v1  ;;  %10623 = vmatprep.subr.bf16.mxu1 %v17343_v1  ;;  %v1084_v53 = vrot.slane %v1082_v49, 1  ;;  %v9263_v61 = vcombine.low %v1658_v58, %v12805_v13  ;;  %v12918_v63 = vld [vmem:[%s12793_s9 + $0x30] sm:$0xff]   ;;  %v12212_v2 = vld [vmem:[%s17315_s1 + $0xe0] sm:$0xff]   ;;  %v1683_v4 = vrot.slane %v12832_v27, 1  ;;  %v1685_v5 = vrot.slane %v12848_v35, 1  ;;  %v12211_v9 = vld [vmem:[%s17315_s1 + $0xb8] sm:$0xff]  }
  0x4f   : > { %v12203_v0 = vld [vmem:[%s17315_s1 + $0xb0] sm:$0xff]   ;;  %v1092_v7 = vrot.slane %v1090_v60, 1  ;;  %v1098_v12 = vshll.u32 %v12918_v63, 16  ;;  %v12213_v13 = vld [vmem:[%s17315_s1 + $0xe8] sm:$0xff]   ;;  %v1687_v14 = vrot.slane %v12866_v41, 1  ;;  %v12957_v17 = vld [vmem:[%s12793_s9 + $0x38] sm:$0xff]  }
  0x50   : > { %v1085_v59 = vsel %vm17356_vm1, %v1080_v52, %v1084_v53  ;;  %v1680_v3 = vrot.slane %v9263_v61, 1  ;;  %v1088_v6 = vor.u32 %v1086_v57, %v1084_v53  ;;  %v12942_v10 = vsel %vm17357_vm2, %v1681_v62, %v1683_v4  ;;  %v12215_v20 = vld [vmem:[%s17315_s1 + $0xf0] sm:$0xff]   ;;  %v12216_v22 = vld [vmem:[%s17315_s1 + $0xf8] sm:$0xff]   ;;  %s230_s8 = sand.u32 1, %s12620_s19   ;;  %p17884_p9 = scmp.ne.s32.totalorder %s17397_s28, 0 }
  0x51   : > { %10540 = vmatpush3.bf16.msra.mxu0 %v12179_v19  ;;  %10624 = vmatpush3.bf16.msra.mxu1 %v12180_v23  ;;  %v12945_v11 = vsel %vm17357_vm2, %v1683_v4, %v1685_v5  ;;  %v12960_v18 = vsel %vm17357_vm2, %v1685_v5, %v1687_v14  ;;  %v1100_v19 = vrot.slane %v1098_v12, 1  ;;  %v1689_v23 = vrot.slane %v12899_v54, 1  ;;  %s12039_s10 = smul.u32 136, %s230_s8  ;;  %s17273_s16 = scalar_lea.sflag [#allocation5], %s230_s8 }
  0x52   : > { %10541 = vmatprep.subr.bf16.mxu0 %v17343_v1  ;;  %10625 = vmatprep.subr.bf16.mxu1 %v17343_v1  ;;  %v12934_v8 = vsel %vm17357_vm2, %v1680_v3, %v1681_v62  ;;  %v1102_v25 = vshrl.u32 %v12918_v63, 16  ;;  %v1106_v26 = vshll.u32 %v12957_v17, 16  ;;  %v1691_v31 = vrot.slane %v12918_v63, 1 }
  0x53   : > { %v1110_v33 = vshrl.u32 %v12957_v17, 16  ;;  %v1693_v39 = vrot.slane %v12957_v17, 1  ;;  %vm2876_vm3 = vsmask.f32 6400  ;;  %vm17355_vm4 = vcmask 1045504   ;;  %s17138_s11 = scalar_lea.vmem [#allocation6], %s12039_s10 }
  0x54   : > { %v12994_v32 = vsel %vm17357_vm2, %v1689_v23, %v1691_v31  ;;  %s9116_s12 = sshll.u32 %s17138_s11, 4  ;;  %s17263_s12 = int_to_ptr.vmem [resolvable:$true] %s9116_s12 }
  0x55   : > { %10542 = vmatpush3.bf16.msra.mxu0 %v12181_v24  ;;  %10626 = vmatpush3.bf16.msra.mxu1 %v12182_v28  ;;  %v12977_v24 = vsel %vm17357_vm2, %v1687_v14, %v1689_v23  ;;  %v12984_v28 = vld [vmem:[%s12793_s9 + $0x40] sm:$0xff]   ;;  %s12562_s17 = scalar_lea.vmem %s17263_s12, 2176 }
  0x56   : > { %10695 = vmatprep.subr.bf16.mxu0 %v17343_v1  ;;  %10779 = vmatprep.subr.bf16.mxu1 %v17343_v1  ;;  %v1114_v34 = vshll.u32 %v12984_v28, 16  ;;  %v13083_v23 = vld [vmem:[%s12793_s9 + $0x80] sm:$0xff]   ;;  %p12563_p6 = scmp.ne.s32.totalorder %s17263_s12, %s12562_s17 }
  0x58   : > { %10544 = vmatmul.mubr.bf16.vlgmr.msra.gmra.mrb[0].mxu0 %v1061_v30  ;;  %10628 = vmatmul.mubr.bf16.vlgmr.msra.gmra.mrb[0].mxu1 %v9213_v15  ;;  %v1093_v15 = vsel %vm17356_vm1, %v1088_v6, %v1092_v7  ;;  %v1108_v30 = vrot.slane %v1106_v26, 1  ;;  %v1116_v38 = vrot.slane %v1114_v34, 1  ;;  %v13061_v6 = vld [vmem:[%s12793_s9 + $0x70] sm:$0xff]   ;;  %v1983_v34 = vld [vmem:[%s12793_s9 + $0x8] sm:$0xf]  ;;  %p12564_p10 = pnand %p12563_p6, %p17884_p9 }
  0x59   : > { %10696 = vmatpush3.bf16.msra.mxu0 %v12185_v29  ;;  %10547 = vmatprep.mubr.msk.bf16.mxu0 %vm17358_vm0, %v17343_v1  ;;  %v1104_v29 = vor.u32 %v1102_v25, %v1100_v19  ;;  %v1162_v12 = vshll.u32 %v13061_v6, 16 }
  0x5a   : > { %10631 = vmatprep.mubr.msk.bf16.mxu1 %vm17358_vm0, %v17343_v1  ;;  %10697 = vmatprep.subr.bf16.mxu0 %v17343_v1  ;;  %p12565_p12 = pneg %p12564_p10 }
  0x5b   : > { %10780 = vmatpush3.bf16.msra.mxu1 %v12205_v45  ;;  %v1164_v14 = vrot.slane %v1162_v12, 1  ;;  %v12243_v12 = vld [vmem:[%s17315_s1 + $0x150] sm:$0xff]  }
  0x5c   : > { %10781 = vmatprep.subr.bf16.mxu1 %v17343_v1 }
  0x5d   : > { %10698 = vmatpush3.bf16.msra.mxu0 %v12188_v36  ;;  %v13000_v36 = vld [vmem:[%s12793_s9 + $0x48] sm:$0xff]  }
  0x5e   : > { %10699 = vmatprep.subr.bf16.mxu0 %v17343_v1  ;;  %v1122_v42 = vshll.u32 %v13000_v36, 16 }
  0x5f   : > { %10782 = vmatpush3.bf16.msra.mxu1 %v12206_v46 }
  0x60   : > { %10548 = vmatmul.mubr.bf16.gmra.mrb[4].mxu0 %v1069_v37  ;;  %10632 = vmatmul.mubr.bf16.gmra.mrb[4].mxu1 %v12812_v16  ;;  %v1094_v16 = vshrl.u32 %v12899_v54, 16  ;;  %v1112_v37 = vor.u32 %v1110_v33, %v1108_v30  ;;  %v1124_v46 = vrot.slane %v1122_v42, 1 }
  0x61   : > { %10551 = vmatprep.mubr.msk.bf16.mxu0 %vm17358_vm0, %v17343_v1  ;;  %10635 = vmatprep.mubr.msk.bf16.mxu1 %vm17358_vm0, %v17343_v1 }
  0x62   : > { %10700 = vmatpush3.bf16.msra.mxu0 %v12191_v40  ;;  %10783 = vmatprep.subr.bf16.mxu1 %v17343_v1  ;;  %v1096_v21 = vor.u32 %v1094_v16, %v1092_v7  ;;  %v13011_v40 = vsel %vm17357_vm2, %v1691_v31, %v1693_v39  ;;  %v1117_v43 = vsel %vm17356_vm1, %v1112_v37, %v1116_v38  ;;  %v1182_v37 = vshrl.u32 %v13083_v23, 16 }
  0x63   : > { %10701 = vmatprep.subr.bf16.mxu0 %v17343_v1  ;;  %10784 = vmatpush3.bf16.msra.mxu1 %v12208_v51 }
  0x64   : > { %10785 = vmatprep.subr.bf16.mxu1 %v17343_v1 }
  0x66   : > { %10702 = vmatpush3.bf16.msra.mxu0 %v12194_v44  ;;  %v13017_v44 = vld [vmem:[%s12793_s9 + $0x50] sm:$0xff]  }
  0x67   : > { %10703 = vmatprep.subr.bf16.mxu0 %v17343_v1  ;;  %10786 = vmatpush3.bf16.msra.mxu1 %v12209_v56  ;;  %v1130_v48 = vshll.u32 %v13017_v44, 16  ;;  %v1134_v53 = vshrl.u32 %v13017_v44, 16  ;;  %v13039_v56 = vld [vmem:[%s12793_s9 + $0x60] sm:$0xff]  }
  0x68   : > { %10552 = vmatmul.mubr.bf16.gmra.mrb[8].mxu0 %v1077_v47  ;;  %10636 = vmatmul.mubr.bf16.gmra.mrb[8].mxu1 %v12832_v27  ;;  %v1101_v27 = vsel %vm17356_vm1, %v1096_v21, %v1100_v19  ;;  %v1126_v47 = vshrl.u32 %v13000_v36, 16  ;;  %v1146_v60 = vshll.u32 %v13039_v56, 16  ;;  %v1166_v19 = vshrl.u32 %v13061_v6, 16 }
  0x69   : > { %10555 = vmatprep.mubr.msk.bf16.mxu0 %vm17358_vm0, %v17343_v1  ;;  %10639 = vmatprep.mubr.msk.bf16.mxu1 %vm17358_vm0, %v17343_v1  ;;  %v1132_v52 = vrot.slane %v1130_v48, 1 }
  0x6a   : > { %10704 = vmatpush3.bf16.msra.mxu0 %v12197_v50  ;;  %10787 = vmatprep.subr.bf16.mxu1 %v17343_v1  ;;  %v13028_v50 = vld [vmem:[%s12793_s9 + $0x58] sm:$0xff]   ;;  %v1128_v51 = vor.u32 %v1126_v47, %v1124_v46  ;;  %v1148_v62 = vrot.slane %v1146_v60, 1  ;;  %v1168_v25 = vor.u32 %v1166_v19, %v1164_v14 }
  0x6b   : > { %10705 = vmatprep.subr.bf16.mxu0 %v17343_v1  ;;  %10788 = vmatpush3.bf16.msra.mxu1 %v12212_v2  ;;  %v1136_v57 = vor.u32 %v1134_v53, %v1132_v52  ;;  %v1150_v2 = vshrl.u32 %v13039_v56, 16  ;;  %v12244_v19 = vld [vmem:[%s17315_s1 + $0x158] sm:$0xff]  }
  0x6c   : > { %10789 = vmatprep.subr.bf16.mxu1 %v17343_v1 }
  0x6d   : > { %v1152_v7 = vor.u32 %v1150_v2, %v1148_v62 }
  0x6e   : > { %10706 = vmatpush3.bf16.msra.mxu0 %v12200_v55  ;;  %v1133_v55 = vsel %vm17356_vm1, %v1128_v51, %v1132_v52 }
  0x6f   : > { %10707 = vmatprep.subr.bf16.mxu0 %v17343_v1  ;;  %10790 = vmatpush3.bf16.msra.mxu1 %v12213_v13 }
  0x70   : > { %10556 = vmatmul.mubr.bf16.gmra.mrb[12].mxu0 %v1085_v59  ;;  %10640 = vmatmul.mubr.bf16.gmra.mrb[12].mxu1 %v12848_v35  ;;  %v1109_v35 = vsel %vm17356_vm1, %v1104_v29, %v1108_v30  ;;  %v1142_v59 = vshrl.u32 %v13028_v50, 16  ;;  %v13094_v30 = vld [vmem:[%s12793_s9 + $0x88] ss:$0 sps:$4 sm:$0x11]  }
  0x71   : > { %10559 = vmatprep.mubr.msk.bf16.mxu0 %vm17358_vm0, %v17343_v1  ;;  %10643 = vmatprep.mubr.msk.bf16.mxu1 %vm17358_vm0, %v17343_v1 }
  0x72   : > { %10708 = vmatpush3.bf16.msra.mxu0 %v12203_v0  ;;  %10791 = vmatprep.subr.bf16.mxu1 %v17343_v1 }
  0x73   : > { %10709 = vmatprep.subr.bf16.mxu0 %v17343_v1  ;;  %10792 = vmatpush3.bf16.msra.mxu1 %v12215_v20 }
  0x74   : > { %10793 = vmatprep.subr.bf16.mxu1 %v17343_v1 }
  0x76   : > { %10710 = vmatpush3.bf16.msra.mxu0 %v12211_v9 }
  0x77   : > { %10863 = vmatprep.subr.bf16.mxu0 %v17343_v1  ;;  %10794 = vmatpush3.bf16.msra.mxu1 %v12216_v22 }
  0x78   : > { %10560 = vmatmul.mubr.bf16.gmra.mrb[16].mxu0 %v1093_v15  ;;  %10644 = vmatmul.mubr.bf16.gmra.mrb[16].mxu1 %v12866_v41  ;;  %v1118_v41 = vshrl.u32 %v12984_v28, 16  ;;  %v13072_v15 = vld [vmem:[%s12793_s9 + $0x78] sm:$0xff]  }
  0x79   : > { %10563 = vmatprep.mubr.msk.bf16.mxu0 %vm17358_vm0, %v17343_v1  ;;  %10647 = vmatprep.mubr.msk.bf16.mxu1 %vm17358_vm0, %v17343_v1  ;;  %v1170_v20 = vshll.u32 %v13072_v15, 16  ;;  %v1174_v26 = vshrl.u32 %v13072_v15, 16 }
  0x7a   : > { %10947 = vmatprep.subr.bf16.mxu1 %v17343_v1  ;;  %v1120_v45 = vor.u32 %v1118_v41, %v1116_v38  ;;  %v1186_v38 = vshll.u32 %v13094_v30, 16 }
  0x7b   : > { %v1172_v22 = vrot.slane %v1170_v20, 1 }
  0x7c   : > { %v1125_v49 = vsel %vm17356_vm1, %v1120_v45, %v1124_v46  ;;  %v13115_v46 = vld [vmem:[%s12793_s9 + $0x10] sm:$0xff]  }
  0x7d   : > { %v1173_v29 = vsel %vm17356_vm1, %v1168_v25, %v1172_v22  ;;  %v1176_v33 = vor.u32 %v1174_v26, %v1172_v22  ;;  %v2131_v52 = vshll.u32 %v13115_v46, 16  ;;  %v12232_v25 = vld [vmem:[%s17315_s1 + $0x120] sm:$0xff]  }
  0x7e   : > { %v12247_v26 = vld [vmem:[%s17315_s1 + $0x160] sm:$0xff]  }
  0x80   : > { %10564 = vmatmul.mubr.bf16.gmra.mrb[20].mxu0 %v1101_v27  ;;  %10648 = vmatmul.mubr.bf16.gmra.mrb[20].mxu1 %v12899_v54  ;;  %v1138_v54 = vshll.u32 %v13028_v50, 16  ;;  %v1178_v27 = vshll.u32 %v13083_v23, 16 }
  0x81   : > { %10567 = vmatprep.mubr.msk.bf16.mxu0 %vm17358_vm0, %v17343_v1  ;;  %10651 = vmatprep.mubr.msk.bf16.mxu1 %vm17358_vm0, %v17343_v1 }
  0x82   : > { %v1140_v58 = vrot.slane %v1138_v54, 1  ;;  %v1180_v31 = vrot.slane %v1178_v27, 1  ;;  %v2133_v54 = vrot.slane %v2131_v52, 1 }
  0x84   : > { %v1141_v61 = vsel %vm17356_vm1, %v1136_v57, %v1140_v58  ;;  %v1144_v0 = vor.u32 %v1142_v59, %v1140_v58  ;;  %v1181_v41 = vsel %vm17356_vm1, %v1176_v33, %v1180_v31  ;;  %v1184_v45 = vor.u32 %v1182_v37, %v1180_v31  ;;  %v12218_v57 = vld [vmem:[%s17315_s1 + $0x100] sm:$0xff]   ;;  %v13210_v31 = vld [vmem:[%s12793_s9 + $0x30] sm:$0xff]   ;;  %v12248_v33 = vld [vmem:[%s17315_s1 + $0x168] sm:$0xff]  }
  0x85   : > { %v2135_v59 = vshrl.u32 %v13115_v46, 16 }
  0x86   : > { %v1149_v4 = vsel %vm17356_vm1, %v1144_v0, %v1148_v62  ;;  %v13140_v62 = vld [vmem:[%s12793_s9 + $0x20] sm:$0xff]   ;;  %v12223_v0 = vld [vmem:[%s17315_s1 + $0x108] sm:$0xff]  }
  0x87   : > { %v2137_v2 = vor.u32 %v2135_v59, %v2133_v54 }
  0x88   : > { %10568 = vmatmul.mubr.bf16.gmra.mrb[24].mxu0 %v1109_v35  ;;  %10652 = vmatmul.mubr.bf16.gmra.mrb[24].mxu1 %v12918_v63  ;;  %v13050_v63 = vld [vmem:[%s12793_s9 + $0x68] sm:$0xff]  }
  0x89   : > { %10571 = vmatprep.mubr.msk.bf16.mxu0 %vm17358_vm0, %v17343_v1  ;;  %10655 = vmatprep.mubr.msk.bf16.mxu1 %vm17358_vm0, %v17343_v1  ;;  %v1154_v3 = vshll.u32 %v13050_v63, 16  ;;  %v1158_v9 = vshrl.u32 %v13050_v63, 16  ;;  %v13103_v35 = vld [vmem:[%s12793_s9 + $0xc] sm:$0xf] }
  0x8a   : > { %v9288_v42 = vcombine.low %v1983_v34, %v13103_v35 }
  0x8b   : > { %v1156_v5 = vrot.slane %v1154_v3, 1  ;;  %v12241_v3 = vld [vmem:[%s17315_s1 + $0x148] sm:$0xff]  }
  0x8c   : > { %v2126_v47 = vshll.u32 %v9288_v42, 16 }
  0x8d   : > { %v1157_v13 = vsel %vm17356_vm1, %v1152_v7, %v1156_v5  ;;  %v1160_v16 = vor.u32 %v1158_v9, %v1156_v5  ;;  %v12226_v9 = vld [vmem:[%s17315_s1 + $0x110] sm:$0xff]  }
  0x8e   : > { %v2128_v51 = vrot.slane %v2126_v47, 1  ;;  %v13241_v47 = vld [vmem:[%s12793_s9 + $0x38] sm:$0xff]  }
  0x8f   : > { %v1165_v21 = vsel %vm17356_vm1, %v1160_v16, %v1164_v14  ;;  %v12229_v16 = vld [vmem:[%s17315_s1 + $0x118] sm:$0xff]  }
  0x90   : > { %10572 = vmatmul.mubr.bf16.gmra.mrb[28].mxu0 %v1117_v43  ;;  %10656 = vmatmul.mubr.bf16.gmra.mrb[28].mxu1 %v12957_v17  ;;  %v1188_v43 = vrot.slane %v1186_v38, 1  ;;  %v2163_v38 = vshll.u32 %v13210_v31, 16 }
  0x91   : > { %10575 = vmatprep.mubr.msk.bf16.mxu0 %vm17358_vm0, %v17343_v1  ;;  %10659 = vmatprep.mubr.msk.bf16.mxu1 %vm17358_vm0, %v17343_v1 }
  0x92   : > { %v1189_v48 = vsel %vm17356_vm1, %v1184_v45, %v1188_v43  ;;  %v2165_v45 = vrot.slane %v2163_v38, 1 }
  0x98   : > { %10576 = vmatmul.mubr.bf16.gmra.mrb[32].mxu0 %v1125_v49  ;;  %10660 = vmatmul.mubr.bf16.gmra.mrb[32].mxu1 %v12984_v28  ;;  %v2124_v49 = vshrl.u32 %v9288_v42, 16  ;;  %v12250_v42 = vld [vmem:[%s17315_s1 + $0x170] sm:$0xff]  }
  0x99   : > { %10579 = vmatprep.mubr.msk.bf16.mxu0 %vm17358_vm0, %v17343_v1  ;;  %10663 = vmatprep.mubr.msk.bf16.mxu1 %vm17358_vm0, %v17343_v1 }
  0x9a   : > { %v2129_v53 = vor.u32 %v2128_v51, %v2124_v49  ;;  %v2167_v51 = vshrl.u32 %v13210_v31, 16 }
  0x9c   : > { %v2134_v58 = vsel %vm17356_vm1, %v2129_v53, %v2133_v54  ;;  %v2171_v53 = vshll.u32 %v13241_v47, 16  ;;  %v2169_v54 = vor.u32 %v2167_v51, %v2165_v45 }
  0xa0   : > { %10580 = vmatmul.mubr.bf16.gmra.mrb[36].mxu0 %v1133_v55  ;;  %10664 = vmatmul.mubr.bf16.gmra.mrb[36].mxu1 %v13000_v36  ;;  %v13127_v55 = vld [vmem:[%s12793_s9 + $0x18] sm:$0xff]  }
  0xa1   : > { %10583 = vmatprep.mubr.msk.bf16.mxu0 %vm17358_vm0, %v17343_v1  ;;  %10667 = vmatprep.mubr.msk.bf16.mxu1 %vm17358_vm0, %v17343_v1  ;;  %v2139_v60 = vshll.u32 %v13127_v55, 16  ;;  %v2143_v7 = vshrl.u32 %v13127_v55, 16 }
  0xa8   : > { %10584 = vmatmul.mubr.bf16.gmra.mrb[40].mxu0 %v1141_v61  ;;  %10668 = vmatmul.mubr.bf16.gmra.mrb[40].mxu1 %v13017_v44  ;;  %v12240_v61 = vld [vmem:[%s17315_s1 + $0x140] sm:$0xff]  }
  0xa9   : > { %10587 = vmatprep.mubr.msk.bf16.mxu0 %vm17358_vm0, %v17343_v1  ;;  %10671 = vmatprep.mubr.msk.bf16.mxu1 %vm17358_vm0, %v17343_v1 }
  0xb0   : > { %10588 = vmatmul.mubr.bf16.gmra.mrb[44].mxu0 %v1149_v4  ;;  %10672 = vmatmul.mubr.bf16.gmra.mrb[44].mxu1 %v13028_v50  ;;  %v2147_v4 = vshll.u32 %v13140_v62, 16 }
  0xb1   : > { %10591 = vmatprep.mubr.msk.bf16.mxu0 %vm17358_vm0, %v17343_v1  ;;  %10675 = vmatprep.mubr.msk.bf16.mxu1 %vm17358_vm0, %v17343_v1 }
  0xb2   : > { %v2149_v14 = vrot.slane %v2147_v4, 1 }
  0xb8   : > { %10592 = vmatmul.mubr.bf16.gmra.mrb[48].mxu0 %v1157_v13  ;;  %10676 = vmatmul.mubr.bf16.gmra.mrb[48].mxu1 %v13039_v56  ;;  %v13170_v13 = vld [vmem:[%s12793_s9 + $0x28] sm:$0xff]  }
  0xb9   : > { %10595 = vmatprep.mubr.msk.bf16.mxu0 %vm17358_vm0, %v17343_v1  ;;  %10679 = vmatprep.mubr.msk.bf16.mxu1 %vm17358_vm0, %v17343_v1  ;;  %v2155_v22 = vshll.u32 %v13170_v13, 16  ;;  %v2159_v37 = vshrl.u32 %v13170_v13, 16 }
  0xc0   : > { %10596 = vmatmul.mubr.bf16.gmra.mrb[52].mxu0 %v1165_v21  ;;  %10680 = vmatmul.mubr.bf16.gmra.mrb[52].mxu1 %v13050_v63  ;;  %v2151_v21 = vshrl.u32 %v13140_v62, 16 }
  0xc1   : > { %10599 = vmatprep.mubr.msk.bf16.mxu0 %vm17358_vm0, %v17343_v1  ;;  %10683 = vmatprep.mubr.msk.bf16.mxu1 %vm17358_vm0, %v17343_v1 }
  0xc2   : > { %v2153_v27 = vor.u32 %v2151_v21, %v2149_v14 }
  0xc8   : > { %10600 = vmatmul.mubr.bf16.gmra.mrb[56].mxu0 %v1173_v29  ;;  %10684 = vmatmul.mubr.bf16.gmra.mrb[56].mxu1 %v13061_v6  ;;  %v2157_v29 = vrot.slane %v2155_v22, 1 }
  0xc9   : > { %10603 = vmatprep.mubr.msk.bf16.mxu0 %vm17358_vm0, %v17343_v1  ;;  %10687 = vmatprep.mubr.msk.bf16.mxu1 %vm17358_vm0, %v17343_v1 }
  0xca   : > { %v2158_v34 = vsel %vm17356_vm1, %v2153_v27, %v2157_v29  ;;  %v2161_v43 = vor.u32 %v2159_v37, %v2157_v29 }
  0xcc   : > { %v2166_v49 = vsel %vm17356_vm1, %v2161_v43, %v2165_v45 }
  0xd0   : > { %10604 = vmatmul.mubr.bf16.gmra.mrb[60].mxu0 %v1181_v41  ;;  %10688 = vmatmul.mubr.bf16.gmra.mrb[60].mxu1 %v13072_v15  ;;  %v12238_v41 = vld [vmem:[%s17315_s1 + $0x130] sm:$0xff]  }
  0xd1   : > { %10607 = vmatprep.mubr.msk.bf16.mxu0 %vm17358_vm0, %v17343_v1  ;;  %10691 = vmatprep.mubr.msk.bf16.mxu1 %vm17358_vm0, %v17343_v1 }
  0xd8   : > { %10608 = vmatmul.mubr.bf16.gmra.mrb[64].mxu0 %v1189_v48  ;;  %10692 = vmatmul.mubr.bf16.gmra.mrb[64].mxu1 %v13083_v23  ;;  %v12251_v48 = vld [vmem:[%s17315_s1 + $0x178] sm:$0xff]  }
  0xd9   : > { %10711 = vmatprep.mubr.msk.bf16.mxu0 %vm17358_vm0, %v17343_v1  ;;  %10795 = vmatprep.mubr.msk.bf16.mxu1 %vm17358_vm0, %v17343_v1 }
  0xe0   : > { %10712 = vmatmul.mubr.bf16.vlgmr.msra.gmra.mrb[68].mxu0 %v12934_v8  ;;  %10796 = vmatmul.mubr.bf16.vlgmr.msra.gmra.mrb[68].mxu1 %v2134_v58  ;;  %v2141_v8 = vrot.slane %v2139_v60, 1  ;;  %v13266_v58 = vld [vmem:[%s12793_s9 + $0x40] sm:$0xff]  }
  0xe1   : > { %10864 = vmatpush3.bf16.msra.mxu0 %v12218_v57  ;;  %10715 = vmatprep.mubr.msk.bf16.mxu0 %vm17358_vm0, %v17343_v1  ;;  %v2173_v57 = vrot.slane %v2171_v53, 1 }
  0xe2   : > { %10799 = vmatprep.mubr.msk.bf16.mxu1 %vm17358_vm0, %v17343_v1  ;;  %10865 = vmatprep.subr.bf16.mxu0 %v17343_v1  ;;  %v2142_v5 = vsel %vm17356_vm1, %v2137_v2, %v2141_v8 }
  0xe3   : > { %10948 = vmatpush3.bf16.msra.mxu1 %v12240_v61  ;;  %v2175_v61 = vshrl.u32 %v13241_v47, 16 }
  0xe4   : > { %10949 = vmatprep.subr.bf16.mxu1 %v17343_v1 }
  0xe5   : > { %10866 = vmatpush3.bf16.msra.mxu0 %v12223_v0  ;;  %v17340_v0 = vshll.u32 %v13266_v58, 16  ;;  %v2177_v2 = vor.u32 %v2175_v61, %v2173_v57 }
  0xe6   : > { %10867 = vmatprep.subr.bf16.mxu0 %v17343_v1 }
  0xe7   : > { %10950 = vmatpush3.bf16.msra.mxu1 %v12241_v3  ;;  %v13281_v3 = vld [vmem:[%s12793_s9 + $0x48] sm:$0xff]  }
  0xe8   : > { %10716 = vmatmul.mubr.bf16.gmra.mrb[72].mxu0 %v12942_v10  ;;  %10951 = vmatprep.subr.bf16.mxu1 %v17343_v1  ;;  %v2145_v10 = vor.u32 %v2143_v7, %v2141_v8  ;;  %v2181_v8 = vrot.slane %v17340_v0, 1 }
  0xe9   : > { %10800 = vmatmul.mubr.bf16.gmra.mrb[72].mxu1 %v2142_v5  ;;  %10719 = vmatprep.mubr.msk.bf16.mxu0 %vm17358_vm0, %v17343_v1 }
  0xea   : > { %10803 = vmatprep.mubr.msk.bf16.mxu1 %vm17358_vm0, %v17343_v1  ;;  %10868 = vmatpush3.bf16.msra.mxu0 %v12226_v9  ;;  %v2150_v20 = vsel %vm17356_vm1, %v2145_v10, %v2149_v14  ;;  %v2182_v5 = vsel %vm17356_vm1, %v2177_v2, %v2181_v8  ;;  %v17338_v9 = vshll.u32 %v13281_v3, 16  ;;  %v13297_v10 = vld [vmem:[%s12793_s9 + $0x50] sm:$0xff]  }
  0xeb   : > { %10869 = vmatprep.subr.bf16.mxu0 %v17343_v1  ;;  %10952 = vmatpush3.bf16.msra.mxu1 %v12243_v12  ;;  %v1695_v12 = vrot.slane %v12984_v28, 1  ;;  %v17339_v28 = vshrl.u32 %v13281_v3, 16 }
  0xec   : > { %10953 = vmatprep.subr.bf16.mxu1 %v17343_v1 }
  0xee   : > { %10870 = vmatpush3.bf16.msra.mxu0 %v12229_v16  ;;  %v2189_v16 = vrot.slane %v17338_v9, 1 }
  0xef   : > { %10871 = vmatprep.subr.bf16.mxu0 %v17343_v1  ;;  %10954 = vmatpush3.bf16.msra.mxu1 %v12244_v19 }
  0xf0   : > { %10720 = vmatmul.mubr.bf16.gmra.mrb[76].mxu0 %v12945_v11  ;;  %10955 = vmatprep.subr.bf16.mxu1 %v17343_v1  ;;  %v12235_v11 = vld [vmem:[%s17315_s1 + $0x128] sm:$0xff]   ;;  %v2193_v17 = vor.u32 %v17339_v28, %v2189_v16 }
  0xf1   : > { %10804 = vmatmul.mubr.bf16.gmra.mrb[76].mxu1 %v2150_v20  ;;  %10723 = vmatprep.mubr.msk.bf16.mxu0 %vm17358_vm0, %v17343_v1  ;;  %v17334_v20 = vshll.u32 %v13297_v10, 16 }
  0xf2   : > { %10807 = vmatprep.mubr.msk.bf16.mxu1 %vm17358_vm0, %v17343_v1  ;;  %10872 = vmatpush3.bf16.msra.mxu0 %v12232_v25  ;;  %v1697_v25 = vrot.slane %v13000_v36, 1 }
  0xf3   : > { %10873 = vmatprep.subr.bf16.mxu0 %v17343_v1  ;;  %10956 = vmatpush3.bf16.msra.mxu1 %v12247_v26  ;;  %v13315_v26 = vld [vmem:[%s12793_s9 + $0x58] sm:$0xff]  }
  0xf4   : > { %10957 = vmatprep.subr.bf16.mxu1 %v17343_v1  ;;  %v1698_v27 = vsel %vm17357_vm2, %v1695_v12, %v1697_v25  ;;  %v17332_v36 = vshll.u32 %v13315_v26, 16 }
  0xf6   : > { %10874 = vmatpush3.bf16.msra.mxu0 %v12235_v11  ;;  %v17335_v11 = vshrl.u32 %v13297_v10, 16 }
  0xf7   : > { %10875 = vmatprep.subr.bf16.mxu0 %v17343_v1  ;;  %10958 = vmatpush3.bf16.msra.mxu1 %v12248_v33  ;;  %v1699_v33 = vrot.slane %v13017_v44, 1 }
  0xf8   : > { %10724 = vmatmul.mubr.bf16.gmra.mrb[80].mxu0 %v12960_v18  ;;  %10959 = vmatprep.subr.bf16.mxu1 %v17343_v1  ;;  %v12245_v18 = vld [vmem:[%s17315_s1 + $0x138] sm:$0xff]  }
  0xf9   : > { %10808 = vmatmul.mubr.bf16.gmra.mrb[80].mxu1 %v2158_v34  ;;  %10727 = vmatprep.mubr.msk.bf16.mxu0 %vm17358_vm0, %v17343_v1  ;;  %v1700_v43 = vsel %vm17357_vm2, %v1697_v25, %v1699_v33 }
  0xfa   : > { %10811 = vmatprep.mubr.msk.bf16.mxu1 %vm17358_vm0, %v17343_v1  ;;  %10876 = vmatpush3.bf16.msra.mxu0 %v12238_v41  ;;  %v2205_v41 = vrot.slane %v17332_v36, 1 }
  0xfb   : > { %10877 = vmatprep.subr.bf16.mxu0 %v17343_v1  ;;  %10960 = vmatpush3.bf16.msra.mxu1 %v12250_v42  ;;  %v13331_v42 = vld [vmem:[%s12793_s9 + $0x60] sm:$0xff]  }
  0xfc   : > { %10961 = vmatprep.subr.bf16.mxu1 %v17343_v1  ;;  %v17326_v44 = vshll.u32 %v13331_v42, 16  ;;  %v17329_v25 = vshrl.u32 %v13331_v42, 16 }
  0xfe   : > { %10878 = vmatpush3.bf16.msra.mxu0 %v12245_v18  ;;  %v17333_v18 = vshrl.u32 %v13315_v26, 16 }
  0xff   : > { %10962 = vmatpush3.bf16.msra.mxu1 %v12251_v48  ;;  %11031 = vmatprep.subr.bf16.mxu0 %v17343_v1  ;;  %v1701_v48 = vrot.slane %v13028_v50, 1 }
 0x100   : > { %10728 = vmatmul.mubr.bf16.gmra.mrb[84].mxu0 %v12977_v24  ;;  %11115 = vmatprep.subr.bf16.mxu1 %v17343_v1  ;;  %v2174_v24 = vsel %vm17356_vm1, %v2169_v54, %v2173_v57  ;;  %v2213_v54 = vrot.slane %v17326_v44, 1  ;;  %v13347_v57 = vld [vmem:[%s12793_s9 + $0x68] sm:$0xff]  }
 0x101   : > { %10812 = vmatmul.mubr.bf16.gmra.mrb[84].mxu1 %v2166_v49  ;;  %10731 = vmatprep.mubr.msk.bf16.mxu0 %vm17358_vm0, %v17343_v1  ;;  %v2209_v49 = vor.u32 %v17333_v18, %v2205_v41  ;;  %v1702_v50 = vsel %vm17357_vm2, %v1699_v33, %v1701_v48 }
 0x102   : > { %10815 = vmatprep.mubr.msk.bf16.mxu1 %vm17358_vm0, %v17343_v1  ;;  %v2217_v33 = vor.u32 %v17329_v25, %v2213_v54 }
 0x108   : > { %10732 = vmatmul.mubr.bf16.gmra.mrb[88].mxu0 %v12994_v32  ;;  %v17342_v32 = vshrl.u32 %v13266_v58, 16 }
 0x109   : > { %10816 = vmatmul.mubr.bf16.gmra.mrb[88].mxu1 %v2174_v24  ;;  %10735 = vmatprep.mubr.msk.bf16.mxu0 %vm17358_vm0, %v17343_v1 }
 0x10a   : > { %10819 = vmatprep.mubr.msk.bf16.mxu1 %vm17358_vm0, %v17343_v1  ;;  %v2185_v14 = vor.u32 %v17342_v32, %v2181_v8 }
 0x10c   : > { %v2190_v19 = vsel %vm17356_vm1, %v2185_v14, %v2189_v16 }
 0x110   : > { %10736 = vmatmul.mubr.bf16.gmra.mrb[92].mxu0 %v13011_v40  ;;  %v1696_v40 = vsel %vm17357_vm2, %v1693_v39, %v1695_v12  ;;  %v2197_v39 = vrot.slane %v17334_v20, 1 }
 0x111   : > { %10820 = vmatmul.mubr.bf16.gmra.mrb[92].mxu1 %v2182_v5  ;;  %10739 = vmatprep.mubr.msk.bf16.mxu0 %vm17358_vm0, %v17343_v1 }
 0x112   : > { %10823 = vmatprep.mubr.msk.bf16.mxu1 %vm17358_vm0, %v17343_v1  ;;  %v2198_v29 = vsel %vm17356_vm1, %v2193_v17, %v2197_v39  ;;  %v2201_v34 = vor.u32 %v17335_v11, %v2197_v39  ;;  %v17324_v17 = vshll.u32 %v13347_v57, 16 }
 0x114   : > { %v2206_v45 = vsel %vm17356_vm1, %v2201_v34, %v2205_v41  ;;  %v2221_v34 = vrot.slane %v17324_v17, 1  ;;  %v13367_v41 = vld [vmem:[%s12793_s9 + $0x70] sm:$0xff]  }
 0x118   : > { %10740 = vmatmul.mubr.bf16.gmra.mrb[96].mxu0 %v1696_v40 }
 0x119   : > { %10824 = vmatmul.mubr.bf16.gmra.mrb[96].mxu1 %v2190_v19  ;;  %10743 = vmatprep.mubr.msk.bf16.mxu0 %vm17358_vm0, %v17343_v1  ;;  %v2214_v19 = vsel %vm17356_vm1, %v2209_v49, %v2213_v54  ;;  %v17325_v54 = vshrl.u32 %v13347_v57, 16 }
 0x11a   : > { %10827 = vmatprep.mubr.msk.bf16.mxu1 %vm17358_vm0, %v17343_v1 }
 0x120   : > { %10744 = vmatmul.mubr.bf16.gmra.mrb[100].mxu0 %v1698_v27 }
 0x121   : > { %10828 = vmatmul.mubr.bf16.gmra.mrb[100].mxu1 %v2198_v29  ;;  %10747 = vmatprep.mubr.msk.bf16.mxu0 %vm17358_vm0, %v17343_v1  ;;  %v1703_v29 = vrot.slane %v13039_v56, 1 }
 0x122   : > { %10831 = vmatprep.mubr.msk.bf16.mxu1 %vm17358_vm0, %v17343_v1 }
 0x123   : > { %v1704_v56 = vsel %vm17357_vm2, %v1701_v48, %v1703_v29  ;;  %v2225_v48 = vor.u32 %v17325_v54, %v2221_v34 }
 0x128   : > { %10748 = vmatmul.mubr.bf16.gmra.mrb[104].mxu0 %v1700_v43 }
 0x129   : > { %10832 = vmatmul.mubr.bf16.gmra.mrb[104].mxu1 %v2206_v45  ;;  %10751 = vmatprep.mubr.msk.bf16.mxu0 %vm17358_vm0, %v17343_v1 }
 0x12a   : > { %10835 = vmatprep.mubr.msk.bf16.mxu1 %vm17358_vm0, %v17343_v1 }
 0x12b   : > { %v1289_v24 = vpop.f32.mrb[0].mxu0  ;;  %v1523_v2 = vpop.f32.mrb[0].mxu1 }
 0x12c   : > { %v10545_v8 = vpop.f32.mrb[1].mxu0  ;;  %v13349_v5 = vadd.f32 %v1523_v2, %v1289_v24  ;;  %v10629_v12 = vpop.f32.mrb[1].mxu1 }
 0x12d   : > { %v1292_v14 = vpop.f32.mrb[2].mxu0  ;;  %v1526_v16 = vpop.f32.mrb[2].mxu1 }
 0x12e   : > { %v10546_v40 = vpop.f32.mrb[3].mxu0  ;;  %v13355_v39 = vadd.f32 %v1526_v16, %v1292_v14  ;;  %v10630_v27 = vpop.f32.mrb[3].mxu1  ;;  %v17323_v16 = vshll.u32 %v13367_v41, 16 }
 0x12f   : > { %v1705_v27 = vrot.slane %v13050_v63, 1 }
 0x130   : > { %10752 = vmatmul.mubr.bf16.gmra.mrb[108].mxu0 %v1702_v50  ;;  %v2222_v50 = vsel %vm17356_vm1, %v2217_v33, %v2221_v34  ;;  %v2229_v33 = vrot.slane %v17323_v16, 1  ;;  %v17328_v34 = vshrl.u32 %v13367_v41, 16 }
 0x131   : > { %10836 = vmatmul.mubr.bf16.gmra.mrb[108].mxu1 %v2214_v19  ;;  %10755 = vmatprep.mubr.msk.bf16.mxu0 %vm17358_vm0, %v17343_v1  ;;  %v1706_v63 = vsel %vm17357_vm2, %v1703_v29, %v1705_v27 }
 0x132   : > { %10839 = vmatprep.mubr.msk.bf16.mxu1 %vm17358_vm0, %v17343_v1  ;;  %v2233_v29 = vor.u32 %v17328_v34, %v2229_v33 }
 0x133   : > { %v1297_v43 = vpop.f32.mrb[4].mxu0  ;;  %v1531_v45 = vpop.f32.mrb[4].mxu1 }
 0x134   : > { %v10549_v49 = vpop.f32.mrb[5].mxu0  ;;  %v13369_v24 = vadd.f32 %v1531_v45, %v1297_v43  ;;  %v10633_v2 = vpop.f32.mrb[5].mxu1  ;;  %v13387_v43 = vld [vmem:[%s12793_s9 + $0x78] sm:$0xff]  }
 0x135   : > { %v1300_v8 = vpop.f32.mrb[6].mxu0  ;;  %v1534_v12 = vpop.f32.mrb[6].mxu1  ;;  %v17327_v16 = vshll.u32 %v13387_v43, 16 }
 0x136   : > { %v10550_v14 = vpop.f32.mrb[7].mxu0  ;;  %v13375_v40 = vadd.f32 %v1534_v12, %v1300_v8  ;;  %v10634_v19 = vpop.f32.mrb[7].mxu1 }
 0x137   : > { %v2230_v19 = vsel %vm17356_vm1, %v2225_v48, %v2229_v33  ;;  %v2237_v48 = vrot.slane %v17327_v16, 1  ;;  %v17330_v33 = vshrl.u32 %v13387_v43, 16 }
 0x138   : > { %10756 = vmatmul.mubr.bf16.gmra.mrb[112].mxu0 %v1704_v56 }
 0x139   : > { %10840 = vmatmul.mubr.bf16.gmra.mrb[112].mxu1 %v2222_v50  ;;  %10759 = vmatprep.mubr.msk.bf16.mxu0 %vm17358_vm0, %v17343_v1  ;;  %v2238_v44 = vsel %vm17356_vm1, %v2233_v29, %v2237_v48 }
 0x13a   : > { %10843 = vmatprep.mubr.msk.bf16.mxu1 %vm17358_vm0, %v17343_v1 }
 0x13b   : > { %v1305_v45 = vpop.f32.mrb[8].mxu0  ;;  %v1539_v49 = vpop.f32.mrb[8].mxu1 }
 0x13c   : > { %v10553_v2 = vpop.f32.mrb[9].mxu0  ;;  %v13389_v8 = vadd.f32 %v1539_v49, %v1305_v45  ;;  %v10637_v56 = vpop.f32.mrb[9].mxu1  ;;  %v1707_v45 = vrot.slane %v13061_v6, 1  ;;  %v13407_v49 = vld [vmem:[%s12793_s9 + $0x80] sm:$0xff]  }
 0x13d   : > { %v1308_v12 = vpop.f32.mrb[10].mxu0  ;;  %v1542_v14 = vpop.f32.mrb[10].mxu1  ;;  %v17331_v16 = vshll.u32 %v13407_v49, 16 }
 0x13e   : > { %v10554_v50 = vpop.f32.mrb[11].mxu0  ;;  %v13395_v17 = vadd.f32 %v1542_v14, %v1308_v12  ;;  %v10638_v54 = vpop.f32.mrb[11].mxu1  ;;  %v1708_v6 = vsel %vm17357_vm2, %v1705_v27, %v1707_v45  ;;  %v2241_v27 = vor.u32 %v17330_v33, %v2237_v48  ;;  %v17337_v33 = vshrl.u32 %v13407_v49, 16 }
 0x13f   : > { %v2245_v29 = vrot.slane %v17331_v16, 1 }
 0x140   : > { %10760 = vmatmul.mubr.bf16.gmra.mrb[116].mxu0 %v1706_v63 }
 0x141   : > { %10844 = vmatmul.mubr.bf16.gmra.mrb[116].mxu1 %v2230_v19  ;;  %10763 = vmatprep.mubr.msk.bf16.mxu0 %vm17358_vm0, %v17343_v1  ;;  %v2246_v48 = vsel %vm17356_vm1, %v2241_v27, %v2245_v29 }
 0x142   : > { %10847 = vmatprep.mubr.msk.bf16.mxu1 %vm17358_vm0, %v17343_v1 }
 0x143   : > { %v1313_v2 = vpop.f32.mrb[12].mxu0  ;;  %v1547_v54 = vpop.f32.mrb[12].mxu1 }
 0x144   : > { %v10557_v56 = vpop.f32.mrb[13].mxu0  ;;  %v13409_v12 = vadd.f32 %v1547_v54, %v1313_v2  ;;  %v10641_v63 = vpop.f32.mrb[13].mxu1  ;;  %v1709_v2 = vrot.slane %v13072_v15, 1  ;;  %v13427_v54 = vld [vmem:[%s12793_s9 + $0x88] sm:$0xff]  }
 0x145   : > { %v1316_v14 = vpop.f32.mrb[14].mxu0  ;;  %v1550_v50 = vpop.f32.mrb[14].mxu1  ;;  %v17336_v16 = vshll.u32 %v13427_v54, 16 }
 0x146   : > { %v10558_v19 = vpop.f32.mrb[15].mxu0  ;;  %v13415_v34 = vadd.f32 %v1550_v50, %v1316_v14  ;;  %v10642_v25 = vpop.f32.mrb[15].mxu1  ;;  %v1710_v15 = vsel %vm17357_vm2, %v1707_v45, %v1709_v2  ;;  %v2249_v45 = vor.u32 %v17337_v33, %v2245_v29  ;;  %v17341_v29 = vshrl.u32 %v13427_v54, 16 }
 0x147   : > { %v2253_v27 = vrot.slane %v17336_v16, 1 }
 0x148   : > { %10764 = vmatmul.mubr.bf16.gmra.mrb[120].mxu0 %v1708_v6 }
 0x149   : > { %10848 = vmatmul.mubr.bf16.gmra.mrb[120].mxu1 %v2238_v44  ;;  %10767 = vmatprep.mubr.msk.bf16.mxu0 %vm17358_vm0, %v17343_v1  ;;  %v2254_v11 = vsel %vm17356_vm1, %v2249_v45, %v2253_v27 }
 0x14a   : > { %10851 = vmatprep.mubr.msk.bf16.mxu1 %vm17358_vm0, %v17343_v1 }
 0x14b   : > { %v1321_v56 = vpop.f32.mrb[16].mxu0  ;;  %v1555_v25 = vpop.f32.mrb[16].mxu1 }
 0x14c   : > { %v10561_v63 = vpop.f32.mrb[17].mxu0  ;;  %v13429_v44 = vadd.f32 %v1555_v25, %v1321_v56  ;;  %v10645_v14 = vpop.f32.mrb[17].mxu1  ;;  %v1711_v56 = vrot.slane %v13083_v23, 1  ;;  %v13447_v25 = vld [vmem:[%s12793_s9 + $0x90] ss:$0 sps:$4 sm:$0x11]  }
 0x14d   : > { %v1324_v6 = vpop.f32.mrb[18].mxu0  ;;  %v1558_v50 = vpop.f32.mrb[18].mxu1  ;;  %v2259_v16 = vshll.u32 %v13447_v25, 16 }
 0x14e   : > { %v10562_v19 = vpop.f32.mrb[19].mxu0  ;;  %v13435_v36 = vadd.f32 %v1558_v50, %v1324_v6  ;;  %v10646_v18 = vpop.f32.mrb[19].mxu1  ;;  %v1712_v23 = vsel %vm17357_vm2, %v1709_v2, %v1711_v56  ;;  %v1713_v2 = vrot.slane %v13094_v30, 1 }
 0x14f   : > { %v2531_v18 = vld [vmem:[%s12793_s9 + $0x8] sm:$0xe]  ;;  %v2261_v45 = vrot.slane %v2259_v16, 1 }
 0x150   : > { %10768 = vmatmul.mubr.bf16.gmra.mrb[124].mxu0 %v1710_v15  ;;  %v9330_v33 = vcombine.low %v2531_v18, %v13103_v35  ;;  %v1714_v30 = vsel %vm17357_vm2, %v1711_v56, %v1713_v2  ;;  %v2553_v56 = vrot.slane %v13115_v46, 1 }
 0x151   : > { %10852 = vmatmul.mubr.bf16.gmra.mrb[124].mxu1 %v2246_v48  ;;  %10771 = vmatprep.mubr.msk.bf16.mxu0 %vm17358_vm0, %v17343_v1 }
 0x152   : > { %10855 = vmatprep.mubr.msk.bf16.mxu1 %vm17358_vm0, %v17343_v1 }
 0x153   : > { %v1329_v63 = vpop.f32.mrb[20].mxu0  ;;  %v1563_v14 = vpop.f32.mrb[20].mxu1 }
 0x154   : > { %v10565_v6 = vpop.f32.mrb[21].mxu0  ;;  %v13450_v15 = vadd.f32 %v1563_v14, %v1329_v63  ;;  %v10649_v50 = vpop.f32.mrb[21].mxu1  ;;  %v2878_v63 = vshrl.u32 %v9330_v33, 16  ;;  %v2881_v14 = vshll.u32 %v9330_v33, 16 }
 0x155   : > { %v1332_v19 = vpop.f32.mrb[22].mxu0  ;;  %v1566_v48 = vpop.f32.mrb[22].mxu1 }
 0x156   : > { %v10566_v20 = vpop.f32.mrb[23].mxu0  ;;  %v13457_v9 = vadd.f32 %v1566_v48, %v1332_v19  ;;  %v10650_v28 = vpop.f32.mrb[23].mxu1  ;;  %v2883_v16 = vrot.slane %v2881_v14, 2 }
 0x157   : > { %v2257_v20 = vor.u32 %v17341_v29, %v2253_v27  ;;  %v2885_v28 = vrot.slane %v2135_v59, 1  ;;  %v2880_v27 = vrot.slane %v2878_v63, 1  ;;  %v2886_v29 = vrot.slane %v2131_v52, 2 }
 0x158   : > { %10772 = vmatmul.mubr.bf16.gmra.mrb[128].mxu0 %v1712_v23  ;;  %v2552_v59 = vrot.slane %v9330_v33, 1  ;;  %v12253_v33 = vld [vmem:[%s17315_s1 + $0x180] sm:$0xff]  }
 0x159   : > { %10856 = vmatmul.mubr.bf16.gmra.mrb[128].mxu1 %v2254_v11  ;;  %10775 = vmatprep.mubr.msk.bf16.mxu0 %vm17358_vm0, %v17343_v1  ;;  %v2262_v0 = vsel %vm17356_vm1, %v2257_v20, %v2261_v45  ;;  %v2884_v2 = vor.u32 %v2883_v16, %v2880_v27  ;;  %v2887_v20 = vor.u32 %v2886_v29, %v2885_v28  ;;  %v2889_v29 = vrot.slane %v2143_v7, 1  ;;  %v12254_v16 = vld [vmem:[%s17315_s1 + $0x188] sm:$0xff]  }
 0x15a   : > { %10859 = vmatprep.mubr.msk.bf16.mxu1 %vm17358_vm0, %v17343_v1  ;;  %v2890_v28 = vrot.slane %v2139_v60, 2  ;;  %v2555_v27 = vrot.slane %v13127_v55, 1 }
 0x15b   : > { %v1337_v35 = vpop.f32.mrb[24].mxu0  ;;  %v1571_v18 = vpop.f32.mrb[24].mxu1 }
 0x15c   : > { %v10569_v6 = vpop.f32.mrb[25].mxu0  ;;  %v13468_v11 = vadd.f32 %v1571_v18, %v1337_v35  ;;  %v10653_v50 = vpop.f32.mrb[25].mxu1  ;;  %v2891_v60 = vor.u32 %v2890_v28, %v2889_v29  ;;  %v12256_v29 = vld [vmem:[%s17315_s1 + $0x198] sm:$0xff]  }
 0x15d   : > { %v1340_v19 = vpop.f32.mrb[26].mxu0  ;;  %v1574_v23 = vpop.f32.mrb[26].mxu1 }
 0x15e   : > { %v10570_v48 = vpop.f32.mrb[27].mxu0  ;;  %v13474_v32 = vadd.f32 %v1574_v23, %v1340_v19  ;;  %v10654_v6 = vpop.f32.mrb[27].mxu1  ;;  %v2888_v19 = vsel %vm2876_vm3, %v2884_v2, %v2887_v20 }
 0x15f   : > { %v12260_v48 = vld [vmem:[%s17315_s1 + $0x1c0] sm:$0xff]   ;;  %v12261_v6 = vld [vmem:[%s17315_s1 + $0x1c8] sm:$0xff]  }
 0x160   : > { %10776 = vmatmul.mubr.bf16.gmra.mrb[132].mxu0 %v1714_v30 }
 0x161   : > { %10860 = vmatmul.mubr.bf16.gmra.mrb[132].mxu1 %v2262_v0  ;;  %10879 = vmatprep.mubr.msk.bf16.mxu0 %vm17358_vm0, %v17343_v1  ;;  %v2554_v0 = vsel %vm17357_vm2, %v2552_v59, %v2553_v56 }
 0x162   : > { %10963 = vmatprep.mubr.msk.bf16.mxu1 %vm17358_vm0, %v17343_v1 }
 0x163   : > { %v1345_v45 = vpop.f32.mrb[28].mxu0  ;;  %v1579_v63 = vpop.f32.mrb[28].mxu1 }
 0x164   : > { %v10573_v52 = vpop.f32.mrb[29].mxu0  ;;  %v13481_v14 = vadd.f32 %v1579_v63, %v1345_v45  ;;  %v10657_v35 = vpop.f32.mrb[29].mxu1 }
 0x165   : > { %v1348_v18 = vpop.f32.mrb[30].mxu0  ;;  %v1582_v46 = vpop.f32.mrb[30].mxu1  ;;  %v2556_v52 = vsel %vm17357_vm2, %v2553_v56, %v2555_v27 }
 0x166   : > { %v10574_v50 = vpop.f32.mrb[31].mxu0  ;;  %v13492_v30 = vadd.f32 %v1582_v46, %v1348_v18  ;;  %v10658_v23 = vpop.f32.mrb[31].mxu1  ;;  %v2894_v46 = vrot.slane %v2147_v4, 2  ;;  %v2557_v4 = vrot.slane %v13140_v62, 1 }
 0x167   : > { %v12255_v50 = vld [vmem:[%s17315_s1 + $0x190] sm:$0xff]   ;;  %v12263_v23 = vld [vmem:[%s17315_s1 + $0x1d8] sm:$0xff]  }
 0x168   : > { %10880 = vmatmul.mubr.bf16.vlgmr.msra.gmra.mrb[136].mxu0 %v2554_v0  ;;  %v2892_v0 = vsel %vm2876_vm3, %v2887_v20, %v2891_v60  ;;  %v12262_v20 = vld [vmem:[%s17315_s1 + $0x1d0] sm:$0xff]  }
 0x169   : > { %11032 = vmatpush3.bf16.msra.mxu0 %v12253_v33  ;;  %10964 = vmatmul.mubr.bf16.vlgmr.msra.gmra.mrb[136].mxu1 %v2888_v19  ;;  %v2893_v33 = vrot.slane %v2151_v21, 1 }
 0x16a   : > { %10883 = vmatprep.mubr.msk.bf16.mxu0 %vm17358_vm0, %v17343_v1  ;;  %10967 = vmatprep.mubr.msk.bf16.mxu1 %vm17358_vm0, %v17343_v1 }
 0x16b   : > { %v1353_v7 = vpop.f32.mrb[32].mxu0  ;;  %11033 = vmatprep.subr.bf16.mxu0 %v17343_v1  ;;  %11116 = vmatpush3.bf16.msra.mxu1 %v12260_v48  ;;  %v1587_v55 = vpop.f32.mrb[32].mxu1  ;;  %v2895_v21 = vor.u32 %v2894_v46, %v2893_v33 }
 0x16c   : > { %v10577_v59 = vpop.f32.mrb[33].mxu0  ;;  %11117 = vmatprep.subr.bf16.mxu1 %v17343_v1  ;;  %v13510_v2 = vadd.f32 %v1587_v55, %v1353_v7  ;;  %v10661_v45 = vpop.f32.mrb[33].mxu1  ;;  %v2558_v55 = vsel %vm17357_vm2, %v2555_v27, %v2557_v4  ;;  %v12265_v27 = vld [vmem:[%s17315_s1 + $0x1e0] sm:$0xff]  }
 0x16d   : > { %v1356_v63 = vpop.f32.mrb[34].mxu0  ;;  %11034 = vmatpush3.bf16.msra.mxu0 %v12254_v16  ;;  %v1590_v35 = vpop.f32.mrb[34].mxu1 }
 0x16e   : > { %v10578_v18 = vpop.f32.mrb[35].mxu0  ;;  %11035 = vmatprep.subr.bf16.mxu0 %v17343_v1  ;;  %v13522_v19 = vadd.f32 %v1590_v35, %v1356_v63  ;;  %v10662_v56 = vpop.f32.mrb[35].mxu1  ;;  %v2896_v63 = vsel %vm2876_vm3, %v2891_v60, %v2895_v21  ;;  %v2898_v35 = vrot.slane %v2155_v22, 2  ;;  %v2559_v22 = vrot.slane %v13170_v13, 1  ;;  %v12258_v60 = vld [vmem:[%s17315_s1 + $0x1a8] sm:$0xff]  }
 0x16f   : > { %11118 = vmatpush3.bf16.msra.mxu1 %v12261_v6  ;;  %v12257_v18 = vld [vmem:[%s17315_s1 + $0x1a0] sm:$0xff]  }
 0x170   : > { %10884 = vmatmul.mubr.bf16.gmra.mrb[140].mxu0 %v2556_v52  ;;  %11119 = vmatprep.subr.bf16.mxu1 %v17343_v1  ;;  %v2897_v52 = vrot.slane %v2159_v37, 1 }
 0x171   : > { %10968 = vmatmul.mubr.bf16.gmra.mrb[140].mxu1 %v2892_v0  ;;  %10887 = vmatprep.mubr.msk.bf16.mxu0 %vm17358_vm0, %v17343_v1 }
 0x172   : > { %10971 = vmatprep.mubr.msk.bf16.mxu1 %vm17358_vm0, %v17343_v1  ;;  %11036 = vmatpush3.bf16.msra.mxu0 %v12255_v50  ;;  %v2899_v37 = vor.u32 %v2898_v35, %v2897_v52  ;;  %v12266_v50 = vld [vmem:[%s17315_s1 + $0x1e8] sm:$0xff]   ;;  %v12269_v35 = vld [vmem:[%s17315_s1 + $0x1f8] sm:$0xff]  }
 0x173   : > { %v1361_v28 = vpop.f32.mrb[36].mxu0  ;;  %11037 = vmatprep.subr.bf16.mxu0 %v17343_v1  ;;  %11120 = vmatpush3.bf16.msra.mxu1 %v12262_v20  ;;  %v1595_v48 = vpop.f32.mrb[36].mxu1 }
 0x174   : > { %v10581_v16 = vpop.f32.mrb[37].mxu0  ;;  %11121 = vmatprep.subr.bf16.mxu1 %v17343_v1  ;;  %v13541_v62 = vadd.f32 %v1595_v48, %v1361_v28  ;;  %v10665_v7 = vpop.f32.mrb[37].mxu1 }
 0x175   : > { %v1364_v6 = vpop.f32.mrb[38].mxu0  ;;  %v1598_v59 = vpop.f32.mrb[38].mxu1  ;;  %v2900_v7 = vsel %vm2876_vm3, %v2895_v21, %v2899_v37  ;;  %v12264_v21 = vld [vmem:[%s17315_s1 + $0x1b8] sm:$0xff]  }
 0x176   : > { %v10582_v45 = vpop.f32.mrb[39].mxu0  ;;  %11038 = vmatpush3.bf16.msra.mxu0 %v12256_v29  ;;  %v13552_v0 = vadd.f32 %v1598_v59, %v1364_v6  ;;  %v10666_v33 = vpop.f32.mrb[39].mxu1  ;;  %v2901_v6 = vrot.slane %v2167_v51, 1  ;;  %v12259_v59 = vld [vmem:[%s17315_s1 + $0x1b0] sm:$0xff]  }
 0x177   : > { %11039 = vmatprep.subr.bf16.mxu0 %v17343_v1  ;;  %11122 = vmatpush3.bf16.msra.mxu1 %v12263_v23  ;;  %v2560_v23 = vsel %vm17357_vm2, %v2557_v4, %v2559_v22  ;;  %v12268_v4 = vld [vmem:[%s17315_s1 + $0x1f0] sm:$0xff]  }
 0x178   : > { %10888 = vmatmul.mubr.bf16.gmra.mrb[144].mxu0 %v2558_v55  ;;  %11123 = vmatprep.subr.bf16.mxu1 %v17343_v1  ;;  %v2902_v55 = vrot.slane %v2163_v38, 2  ;;  %v2561_v38 = vrot.slane %v13210_v31, 1 }
 0x179   : > { %10972 = vmatmul.mubr.bf16.gmra.mrb[144].mxu1 %v2896_v63  ;;  %10891 = vmatprep.mubr.msk.bf16.mxu0 %vm17358_vm0, %v17343_v1 }
 0x17a   : > { %10975 = vmatprep.mubr.msk.bf16.mxu1 %vm17358_vm0, %v17343_v1  ;;  %11040 = vmatpush3.bf16.msra.mxu0 %v12257_v18  ;;  %v2903_v51 = vor.u32 %v2902_v55, %v2901_v6 }
 0x17b   : > { %v1369_v46 = vpop.f32.mrb[40].mxu0  ;;  %11041 = vmatprep.subr.bf16.mxu0 %v17343_v1  ;;  %11124 = vmatpush3.bf16.msra.mxu1 %v12265_v27  ;;  %v1603_v56 = vpop.f32.mrb[40].mxu1 }
 0x17c   : > { %v10585_v20 = vpop.f32.mrb[41].mxu0  ;;  %11125 = vmatprep.subr.bf16.mxu1 %v17343_v1  ;;  %v13572_v13 = vadd.f32 %v1603_v56, %v1369_v46  ;;  %v10669_v29 = vpop.f32.mrb[41].mxu1  ;;  %v2562_v46 = vsel %vm17357_vm2, %v2559_v22, %v2561_v38  ;;  %v2563_v22 = vrot.slane %v13241_v47, 1 }
 0x17d   : > { %v1372_v28 = vpop.f32.mrb[42].mxu0  ;;  %v1606_v48 = vpop.f32.mrb[42].mxu1  ;;  %v2904_v20 = vsel %vm2876_vm3, %v2899_v37, %v2903_v51  ;;  %v2905_v29 = vrot.slane %v2175_v61, 1 }
 0x17e   : > { %v10586_v16 = vpop.f32.mrb[43].mxu0  ;;  %11042 = vmatpush3.bf16.msra.mxu0 %v12258_v60  ;;  %v13583_v45 = vadd.f32 %v1606_v48, %v1372_v28  ;;  %v10670_v63 = vpop.f32.mrb[43].mxu1  ;;  %v2906_v28 = vrot.slane %v2171_v53, 2 }
 0x17f   : > { %11043 = vmatprep.subr.bf16.mxu0 %v17343_v1  ;;  %11126 = vmatpush3.bf16.msra.mxu1 %v12266_v50 }
 0x180   : > { %10892 = vmatmul.mubr.bf16.gmra.mrb[148].mxu0 %v2560_v23  ;;  %11127 = vmatprep.subr.bf16.mxu1 %v17343_v1  ;;  %v2907_v53 = vor.u32 %v2906_v28, %v2905_v29 }
 0x181   : > { %10976 = vmatmul.mubr.bf16.gmra.mrb[148].mxu1 %v2900_v7  ;;  %10895 = vmatprep.mubr.msk.bf16.mxu0 %vm17358_vm0, %v17343_v1 }
 0x182   : > { %10979 = vmatprep.mubr.msk.bf16.mxu1 %vm17358_vm0, %v17343_v1  ;;  %11044 = vmatpush3.bf16.msra.mxu0 %v12259_v59  ;;  %v2564_v59 = vsel %vm17357_vm2, %v2561_v38, %v2563_v22  ;;  %v2565_v38 = vrot.slane %v13266_v58, 1 }
 0x183   : > { %v1377_v52 = vpop.f32.mrb[44].mxu0  ;;  %11045 = vmatprep.subr.bf16.mxu0 %v17343_v1  ;;  %11128 = vmatpush3.bf16.msra.mxu1 %v12268_v4  ;;  %v1611_v18 = vpop.f32.mrb[44].mxu1 }
 0x184   : > { %v10589_v33 = vpop.f32.mrb[45].mxu0  ;;  %11129 = vmatprep.subr.bf16.mxu1 %v17343_v1  ;;  %v13603_v31 = vadd.f32 %v1611_v18, %v1377_v52  ;;  %v10673_v27 = vpop.f32.mrb[45].mxu1  ;;  %v17404_v52 = vshrl.u32 %v13266_v58, 16  ;;  %v2566_v28 = vsel %vm17357_vm2, %v2563_v22, %v2565_v38  ;;  %v2567_v22 = vrot.slane %v13281_v3, 1 }
 0x185   : > { %v1380_v60 = vpop.f32.mrb[46].mxu0  ;;  %v1614_v50 = vpop.f32.mrb[46].mxu1 }
 0x186   : > { %v10590_v56 = vpop.f32.mrb[47].mxu0  ;;  %11046 = vmatpush3.bf16.msra.mxu0 %v12264_v21  ;;  %v13611_v23 = vadd.f32 %v1614_v50, %v1380_v60  ;;  %v10674_v48 = vpop.f32.mrb[47].mxu1  ;;  %v2908_v21 = vsel %vm2876_vm3, %v2903_v51, %v2907_v53  ;;  %v2909_v47 = vrot.slane %v17404_v52, 1 }
 0x187   : > { %11130 = vmatpush3.bf16.msra.mxu1 %v12269_v35  ;;  %11199 = vmatprep.subr.bf16.mxu0 %v17343_v1  ;;  %v17405_v35 = vshll.u32 %v13266_v58, 16 }
 0x188   : > { %10896 = vmatmul.mubr.bf16.gmra.mrb[152].mxu0 %v2562_v46  ;;  %11283 = vmatprep.subr.bf16.mxu1 %v17343_v1 }
 0x189   : > { %10980 = vmatmul.mubr.bf16.gmra.mrb[152].mxu1 %v2904_v20  ;;  %10899 = vmatprep.mubr.msk.bf16.mxu0 %vm17358_vm0, %v17343_v1  ;;  %v2910_v18 = vrot.slane %v17405_v35, 2 }
 0x18a   : > { %10983 = vmatprep.mubr.msk.bf16.mxu1 %vm17358_vm0, %v17343_v1 }
 0x18b   : > { %v1385_v61 = vpop.f32.mrb[48].mxu0  ;;  %v1619_v37 = vpop.f32.mrb[48].mxu1  ;;  %v2911_v51 = vor.u32 %v2910_v18, %v2909_v47 }
 0x18c   : > { %v10593_v16 = vpop.f32.mrb[49].mxu0  ;;  %v13620_v7 = vadd.f32 %v1619_v37, %v1385_v61  ;;  %v10677_v6 = vpop.f32.mrb[49].mxu1 }
 0x18d   : > { %v1388_v55 = vpop.f32.mrb[50].mxu0  ;;  %v1622_v63 = vpop.f32.mrb[50].mxu1  ;;  %v2912_v37 = vsel %vm2876_vm3, %v2907_v53, %v2911_v51  ;;  %v17406_v16 = vshrl.u32 %v13281_v3, 16  ;;  %v17407_v6 = vshll.u32 %v13281_v3, 16 }
 0x18e   : > { %v10594_v4 = vpop.f32.mrb[51].mxu0  ;;  %v13628_v33 = vadd.f32 %v1622_v63, %v1388_v55  ;;  %v10678_v27 = vpop.f32.mrb[51].mxu1 }
 0x18f   : > { %v2913_v58 = vrot.slane %v17406_v16, 1  ;;  %v2914_v55 = vrot.slane %v17407_v6, 2  ;;  %v2568_v27 = vsel %vm17357_vm2, %v2565_v38, %v2567_v22  ;;  %v2569_v38 = vrot.slane %v13297_v10, 1 }
 0x190   : > { %10900 = vmatmul.mubr.bf16.gmra.mrb[156].mxu0 %v2564_v59 }
 0x191   : > { %10984 = vmatmul.mubr.bf16.gmra.mrb[156].mxu1 %v2908_v21  ;;  %10903 = vmatprep.mubr.msk.bf16.mxu0 %vm17358_vm0, %v17343_v1  ;;  %v2915_v53 = vor.u32 %v2914_v55, %v2913_v58 }
 0x192   : > { %10987 = vmatprep.mubr.msk.bf16.mxu1 %vm17358_vm0, %v17343_v1 }
 0x193   : > { %v1393_v60 = vpop.f32.mrb[52].mxu0  ;;  %v1627_v46 = vpop.f32.mrb[52].mxu1 }
 0x194   : > { %v10597_v50 = vpop.f32.mrb[53].mxu0  ;;  %v13635_v56 = vadd.f32 %v1627_v46, %v1393_v60  ;;  %v10681_v20 = vpop.f32.mrb[53].mxu1 }
 0x195   : > { %v1396_v29 = vpop.f32.mrb[54].mxu0  ;;  %v1630_v48 = vpop.f32.mrb[54].mxu1  ;;  %v2916_v50 = vsel %vm2876_vm3, %v2911_v51, %v2915_v53  ;;  %v17408_v20 = vshrl.u32 %v13297_v10, 16 }
 0x196   : > { %v10598_v61 = vpop.f32.mrb[55].mxu0  ;;  %v13643_v59 = vadd.f32 %v1630_v48, %v1396_v29  ;;  %v10682_v63 = vpop.f32.mrb[55].mxu1  ;;  %v17409_v29 = vshll.u32 %v13297_v10, 16 }
 0x197   : > { %v2917_v3 = vrot.slane %v17408_v20, 1 }
 0x198   : > { %10904 = vmatmul.mubr.bf16.gmra.mrb[160].mxu0 %v2566_v28  ;;  %v2918_v28 = vrot.slane %v17409_v29, 2 }
 0x199   : > { %10988 = vmatmul.mubr.bf16.gmra.mrb[160].mxu1 %v2912_v37  ;;  %10907 = vmatprep.mubr.msk.bf16.mxu0 %vm17358_vm0, %v17343_v1 }
 0x19a   : > { %10991 = vmatprep.mubr.msk.bf16.mxu1 %vm17358_vm0, %v17343_v1  ;;  %v2919_v51 = vor.u32 %v2918_v28, %v2917_v3 }
 0x19b   : > { %v1401_v4 = vpop.f32.mrb[56].mxu0  ;;  %v1635_v21 = vpop.f32.mrb[56].mxu1 }
 0x19c   : > { %v10601_v52 = vpop.f32.mrb[57].mxu0  ;;  %v13650_v47 = vadd.f32 %v1635_v21, %v1401_v4  ;;  %v10685_v35 = vpop.f32.mrb[57].mxu1  ;;  %v2570_v4 = vsel %vm17357_vm2, %v2567_v22, %v2569_v38  ;;  %v2571_v22 = vrot.slane %v13315_v26, 1 }
 0x19d   : > { %v1404_v18 = vpop.f32.mrb[58].mxu0  ;;  %v1638_v60 = vpop.f32.mrb[58].mxu1  ;;  %v2920_v35 = vsel %vm2876_vm3, %v2915_v53, %v2919_v51 }
 0x19e   : > { %v10602_v46 = vpop.f32.mrb[59].mxu0  ;;  %v13658_v48 = vadd.f32 %v1638_v60, %v1404_v18  ;;  %v10686_v61 = vpop.f32.mrb[59].mxu1  ;;  %v17410_v18 = vshrl.u32 %v13315_v26, 16 }
 0x1a0   : > { %10908 = vmatmul.mubr.bf16.gmra.mrb[164].mxu0 %v2568_v27  ;;  %v2921_v10 = vrot.slane %v17410_v18, 1  ;;  %v17411_v27 = vshll.u32 %v13315_v26, 16 }
 0x1a1   : > { %10992 = vmatmul.mubr.bf16.gmra.mrb[164].mxu1 %v2916_v50  ;;  %10911 = vmatprep.mubr.msk.bf16.mxu0 %vm17358_vm0, %v17343_v1 }
 0x1a2   : > { %10995 = vmatprep.mubr.msk.bf16.mxu1 %vm17358_vm0, %v17343_v1  ;;  %v2922_v60 = vrot.slane %v17411_v27, 2 }
 0x1a3   : > { %v1409_v37 = vpop.f32.mrb[60].mxu0  ;;  %v1643_v16 = vpop.f32.mrb[60].mxu1 }
 0x1a4   : > { %v10605_v58 = vpop.f32.mrb[61].mxu0  ;;  %v13665_v6 = vadd.f32 %v1643_v16, %v1409_v37  ;;  %v10689_v55 = vpop.f32.mrb[61].mxu1  ;;  %v2923_v53 = vor.u32 %v2922_v60, %v2921_v10  ;;  %v2572_v16 = vsel %vm17357_vm2, %v2569_v38, %v2571_v22  ;;  %v2573_v38 = vrot.slane %v13331_v42, 1 }
 0x1a5   : > { %v1412_v63 = vpop.f32.mrb[62].mxu0  ;;  %v1646_v21 = vpop.f32.mrb[62].mxu1  ;;  %v17412_v58 = vshrl.u32 %v13331_v42, 16 }
 0x1a6   : > { %v10606_v52 = vpop.f32.mrb[63].mxu0  ;;  %v13673_v46 = vadd.f32 %v1646_v21, %v1412_v63  ;;  %v10690_v50 = vpop.f32.mrb[63].mxu1  ;;  %v17413_v63 = vshll.u32 %v13331_v42, 16 }
 0x1a7   : > { %v2925_v55 = vrot.slane %v17412_v58, 1  ;;  %v2924_v52 = vsel %vm2876_vm3, %v2919_v51, %v2923_v53 }
 0x1a8   : > { %10912 = vmatmul.mubr.bf16.gmra.mrb[168].mxu0 %v2570_v4  ;;  %v2926_v4 = vrot.slane %v17413_v63, 2 }
 0x1a9   : > { %10996 = vmatmul.mubr.bf16.gmra.mrb[168].mxu1 %v2920_v35  ;;  %10915 = vmatprep.mubr.msk.bf16.mxu0 %vm17358_vm0, %v17343_v1 }
 0x1aa   : > { %10999 = vmatprep.mubr.msk.bf16.mxu1 %vm17358_vm0, %v17343_v1  ;;  %v2927_v10 = vor.u32 %v2926_v4, %v2925_v55  ;;  %v17414_v55 = vshrl.u32 %v13347_v57, 16  ;;  %v17415_v4 = vshll.u32 %v13347_v57, 16 }
 0x1ab   : > { %v1417_v20 = vpop.f32.mrb[64].mxu0  ;;  %v1651_v3 = vpop.f32.mrb[64].mxu1 }
 0x1ac   : > { %v10609_v29 = vpop.f32.mrb[65].mxu0  ;;  %v13680_v28 = vadd.f32 %v1651_v3, %v1417_v20  ;;  %v10693_v61 = vpop.f32.mrb[65].mxu1  ;;  %v2929_v63 = vrot.slane %v17414_v55, 1 }
 0x1ad   : > { %v1420_v37 = vpop.f32.mrb[66].mxu0  ;;  %v1654_v26 = vpop.f32.mrb[66].mxu1  ;;  %v2574_v29 = vsel %vm17357_vm2, %v2571_v22, %v2573_v38  ;;  %v2928_v61 = vsel %vm2876_vm3, %v2923_v53, %v2927_v10 }
 0x1ae   : > { %v10610_v21 = vpop.f32.mrb[67].mxu0  ;;  %v13688_v35 = vadd.f32 %v1654_v26, %v1420_v37  ;;  %v10694_v18 = vpop.f32.mrb[67].mxu1 }
 0x1b0   : > { %10916 = vmatmul.mubr.bf16.gmra.mrb[172].mxu0 %v2572_v16 }
 0x1b1   : > { %11000 = vmatmul.mubr.bf16.gmra.mrb[172].mxu1 %v2924_v52  ;;  %10919 = vmatprep.mubr.msk.bf16.mxu0 %vm17358_vm0, %v17343_v1 }
 0x1b2   : > { %11003 = vmatprep.mubr.msk.bf16.mxu1 %vm17358_vm0, %v17343_v1 }
 0x1b3   : > { %v1814_v27 = vpop.f32.mrb[68].mxu0  ;;  %v2362_v20 = vpop.f32.mrb[68].mxu1 }
 0x1b4   : > { %v1949_v60 = vadd.f32 %v1814_v27, %v13349_v5  ;;  %v10713_v50 = vpop.f32.mrb[69].mxu0  ;;  %v10797_v3 = vpop.f32.mrb[69].mxu1  ;;  %v2930_v5 = vrot.slane %v17415_v4, 2 }
 0x1b5   : > { %v1817_v51 = vpop.f32.mrb[70].mxu0  ;;  %v2365_v58 = vpop.f32.mrb[70].mxu1 }
 0x1b6   : > { %v1950_v37 = vadd.f32 %v1817_v51, %v13355_v39  ;;  %v13699_v16 = vadd.f32 %v2362_v20, %v1949_v60  ;;  %v10714_v42 = vpop.f32.mrb[71].mxu0  ;;  %v10798_v26 = vpop.f32.mrb[71].mxu1  ;;  %v2575_v39 = vrot.slane %v13347_v57, 1  ;;  %v2931_v22 = vor.u32 %v2930_v5, %v2929_v63 }
 0x1b7   : > { %v17416_v51 = vshrl.u32 %v13367_v41, 16 }
 0x1b8   : > { %v13705_v21 = vadd.f32 %v2365_v58, %v1950_v37  ;;  %10920 = vmatmul.mubr.bf16.gmra.mrb[176].mxu0 %v2574_v29  ;;  %v2576_v20 = vsel %vm17357_vm2, %v2573_v38, %v2575_v39  ;;  %v17417_v29 = vshll.u32 %v13367_v41, 16  ;;  %v2577_v38 = vrot.slane %v13367_v41, 1 }
 0x1b9   : > { %11004 = vmatmul.mubr.bf16.gmra.mrb[176].mxu1 %v2928_v61  ;;  %10923 = vmatprep.mubr.msk.bf16.mxu0 %vm17358_vm0, %v17343_v1  ;;  %v2933_v3 = vrot.slane %v17416_v51, 1  ;;  %v17418_v51 = vshrl.u32 %v13387_v43, 16 }
 0x1ba   : > { %11007 = vmatprep.mubr.msk.bf16.mxu1 %vm17358_vm0, %v17343_v1  ;;  %v2934_v61 = vrot.slane %v17417_v29, 2  ;;  %v17419_v29 = vshll.u32 %v13387_v43, 16 }
 0x1bb   : > { %v1822_v53 = vpop.f32.mrb[72].mxu0 }
 0x1bc   : > { %v1951_v52 = vadd.f32 %v1822_v53, %v13369_v24  ;;  %v10717_v18 = vpop.f32.mrb[73].mxu0  ;;  %v2370_v27 = vpop.f32.mrb[72].mxu1  ;;  %v2932_v24 = vsel %vm2876_vm3, %v2927_v10, %v2931_v22  ;;  %v2935_v4 = vor.u32 %v2934_v61, %v2933_v3  ;;  %v2937_v3 = vrot.slane %v17418_v51, 1 }
 0x1bd   : > { %v1825_v60 = vpop.f32.mrb[74].mxu0  ;;  %v10801_v50 = vpop.f32.mrb[73].mxu1  ;;  %v2578_v18 = vsel %vm17357_vm2, %v2575_v39, %v2577_v38 }
 0x1be   : > { %v1952_v57 = vadd.f32 %v1825_v60, %v13375_v40  ;;  %v13719_v37 = vadd.f32 %v2370_v27, %v1951_v52  ;;  %v10718_v42 = vpop.f32.mrb[75].mxu0  ;;  %v2373_v58 = vpop.f32.mrb[74].mxu1  ;;  %v2936_v27 = vsel %vm2876_vm3, %v2931_v22, %v2935_v4 }
 0x1bf   : > { %v10802_v55 = vpop.f32.mrb[75].mxu1 }
 0x1c0   : > { %v13722_v63 = vadd.f32 %v2373_v58, %v1952_v57  ;;  %10924 = vmatmul.mubr.bf16.gmra.mrb[180].mxu0 %v2576_v20 }
 0x1c1   : > { %11008 = vmatmul.mubr.bf16.gmra.mrb[180].mxu1 %v2932_v24  ;;  %10927 = vmatprep.mubr.msk.bf16.mxu0 %vm17358_vm0, %v17343_v1 }
 0x1c2   : > { %11011 = vmatprep.mubr.msk.bf16.mxu1 %vm17358_vm0, %v17343_v1 }
 0x1c3   : > { %v1830_v40 = vpop.f32.mrb[76].mxu0 }
 0x1c4   : > { %v1953_v5 = vadd.f32 %v1830_v40, %v13389_v8  ;;  %v10721_v26 = vpop.f32.mrb[77].mxu0  ;;  %v2378_v53 = vpop.f32.mrb[76].mxu1  ;;  %v2938_v8 = vrot.slane %v17419_v29, 2 }
 0x1c5   : > { %v1833_v10 = vpop.f32.mrb[78].mxu0  ;;  %v10805_v52 = vpop.f32.mrb[77].mxu1  ;;  %v17420_v26 = vshrl.u32 %v13407_v49, 16 }
 0x1c6   : > { %v1954_v60 = vadd.f32 %v1833_v10, %v13395_v17  ;;  %v13733_v50 = vadd.f32 %v2378_v53, %v1953_v5  ;;  %v10722_v41 = vpop.f32.mrb[79].mxu0  ;;  %v2381_v20 = vpop.f32.mrb[78].mxu1  ;;  %v2579_v17 = vrot.slane %v13387_v43, 1  ;;  %v2939_v39 = vor.u32 %v2938_v8, %v2937_v3 }
 0x1c7   : > { %v10806_v61 = vpop.f32.mrb[79].mxu1  ;;  %v2941_v53 = vrot.slane %v17420_v26, 1  ;;  %v17421_v10 = vshll.u32 %v13407_v49, 16  ;;  %v17423_v26 = vshll.u32 %v13427_v54, 16 }
 0x1c8   : > { %v13739_v57 = vadd.f32 %v2381_v20, %v1954_v60  ;;  %10928 = vmatmul.mubr.bf16.gmra.mrb[184].mxu0 %v2578_v18  ;;  %v2580_v5 = vsel %vm17357_vm2, %v2577_v38, %v2579_v17  ;;  %v2581_v38 = vrot.slane %v13407_v49, 1 }
 0x1c9   : > { %11012 = vmatmul.mubr.bf16.gmra.mrb[184].mxu1 %v2936_v27  ;;  %10931 = vmatprep.mubr.msk.bf16.mxu0 %vm17358_vm0, %v17343_v1  ;;  %v2942_v52 = vrot.slane %v17421_v10, 2 }
 0x1ca   : > { %11015 = vmatprep.mubr.msk.bf16.mxu1 %vm17358_vm0, %v17343_v1 }
 0x1cb   : > { %v1838_v22 = vpop.f32.mrb[80].mxu0  ;;  %v2943_v51 = vor.u32 %v2942_v52, %v2941_v53  ;;  %v2946_v53 = vrot.slane %v17423_v26, 2 }
 0x1cc   : > { %v1955_v42 = vadd.f32 %v1838_v22, %v13409_v12  ;;  %v10725_v58 = vpop.f32.mrb[81].mxu0  ;;  %v2386_v24 = vpop.f32.mrb[80].mxu1  ;;  %v2940_v12 = vsel %vm2876_vm3, %v2935_v4, %v2939_v39  ;;  %v2582_v22 = vsel %vm17357_vm2, %v2579_v17, %v2581_v38 }
 0x1cd   : > { %v1841_v55 = vpop.f32.mrb[82].mxu0  ;;  %v10809_v40 = vpop.f32.mrb[81].mxu1  ;;  %v12267_v58 = vld [vmem:[%s12793_s9 + $0x90] ss:$0 sps:$4 sm:$0x33]  }
 0x1ce   : > { %v1956_v43 = vadd.f32 %v1841_v55, %v13415_v34  ;;  %v13753_v18 = vadd.f32 %v2386_v24, %v1955_v42  ;;  %v10726_v27 = vpop.f32.mrb[83].mxu0  ;;  %v2389_v60 = vpop.f32.mrb[82].mxu1  ;;  %v2944_v42 = vsel %vm2876_vm3, %v2939_v39, %v2943_v51  ;;  %v2950_v17 = vshrl.u32 %v12267_v58, 16 }
 0x1cf   : > { %v10810_v41 = vpop.f32.mrb[83].mxu1  ;;  %v2953_v39 = vshll.u32 %v12267_v58, 16  ;;  %v3226_v27 = vld [vmem:[%s12793_s9 + $0x10] sm:$0xe] }
 0x1d0   : > { %v13756_v20 = vadd.f32 %v2389_v60, %v1956_v43  ;;  %10932 = vmatmul.mubr.bf16.gmra.mrb[188].mxu0 %v2580_v5  ;;  %v17422_v5 = vshrl.u32 %v13427_v54, 16  ;;  %v13783_v60 = vld [vmem:[%s12793_s9 + $0x14] sm:$0xf] }
 0x1d1   : > { %11016 = vmatmul.mubr.bf16.gmra.mrb[188].mxu1 %v2940_v12  ;;  %10935 = vmatprep.mubr.msk.bf16.mxu0 %vm17358_vm0, %v17343_v1 }
 0x1d2   : > { %11019 = vmatprep.mubr.msk.bf16.mxu1 %vm17358_vm0, %v17343_v1 }
 0x1d3   : > { %v1846_v34 = vpop.f32.mrb[84].mxu0 }
 0x1d4   : > { %v1957_v3 = vadd.f32 %v1846_v34, %v13429_v44  ;;  %v10729_v29 = vpop.f32.mrb[85].mxu0  ;;  %v2394_v4 = vpop.f32.mrb[84].mxu1  ;;  %v2945_v44 = vrot.slane %v17422_v5, 1  ;;  %v13793_v5 = vld [vmem:[%s12793_s9 + $0x18] sm:$0xff]  }
 0x1d5   : > { %v1849_v8 = vpop.f32.mrb[86].mxu0  ;;  %v10813_v61 = vpop.f32.mrb[85].mxu1 }
 0x1d6   : > { %v1958_v24 = vadd.f32 %v1849_v8, %v13435_v36  ;;  %v13768_v49 = vadd.f32 %v2394_v4, %v1957_v3  ;;  %v10730_v55 = vpop.f32.mrb[87].mxu0  ;;  %v2397_v40 = vpop.f32.mrb[86].mxu1  ;;  %v2583_v36 = vrot.slane %v13427_v54, 1  ;;  %v2947_v43 = vor.u32 %v2946_v53, %v2945_v44 }
 0x1d7   : > { %v10814_v10 = vpop.f32.mrb[87].mxu1  ;;  %v2952_v54 = vrot.slane %v2950_v17, 1  ;;  %v2955_v61 = vrot.slane %v2953_v39, 2 }
 0x1d8   : > { %v13774_v52 = vadd.f32 %v2397_v40, %v1958_v24  ;;  %10936 = vmatmul.mubr.bf16.gmra.mrb[192].mxu0 %v2582_v22  ;;  %v2584_v8 = vsel %vm17357_vm2, %v2581_v38, %v2583_v36  ;;  %v9380_v22 = vcombine.low %v3226_v27, %v13783_v60  ;;  %v2948_v40 = vsel %vm2876_vm3, %v2943_v51, %v2947_v43 }
 0x1d9   : > { %11020 = vmatmul.mubr.bf16.gmra.mrb[192].mxu1 %v2944_v42  ;;  %10939 = vmatprep.mubr.msk.bf16.mxu0 %vm17358_vm0, %v17343_v1  ;;  %v2585_v38 = vrot.slane %v13447_v25, 1  ;;  %v2956_v26 = vor.u32 %v2955_v61, %v2952_v54  ;;  %v3699_v51 = vshrl.u32 %v13793_v5, 16  ;;  %v3702_v10 = vshll.u32 %v13793_v5, 16 }
 0x1da   : > { %11023 = vmatprep.mubr.msk.bf16.mxu1 %vm17358_vm0, %v17343_v1  ;;  %v3694_v53 = vshll.u32 %v9380_v22, 16 }
 0x1db   : > { %v1854_v12 = vpop.f32.mrb[88].mxu0  ;;  %v2586_v25 = vsel %vm17357_vm2, %v2583_v36, %v2585_v38  ;;  %v3366_v36 = vrot.slane %v9380_v22, 1 }
 0x1dc   : > { %v1959_v41 = vadd.f32 %v1854_v12, %v13450_v15  ;;  %v10733_v34 = vpop.f32.mrb[89].mxu0  ;;  %v2402_v3 = vpop.f32.mrb[88].mxu1 }
 0x1dd   : > { %v1857_v29 = vpop.f32.mrb[90].mxu0  ;;  %v10817_v4 = vpop.f32.mrb[89].mxu1 }
 0x1de   : > { %v1960_v42 = vadd.f32 %v1857_v29, %v13457_v9  ;;  %v13789_v58 = vadd.f32 %v2402_v3, %v1959_v41  ;;  %v10734_v24 = vpop.f32.mrb[91].mxu0  ;;  %v2405_v55 = vpop.f32.mrb[90].mxu1  ;;  %v3691_v9 = vshrl.u32 %v9380_v22, 16  ;;  %v2957_v3 = vsel %vm2876_vm3, %v2947_v43, %v2956_v26 }
 0x1df   : > { %v10818_v15 = vpop.f32.mrb[91].mxu1  ;;  %v3696_v4 = vrot.slane %v3694_v53, 2  ;;  %v3367_v43 = vrot.slane %v13793_v5, 1 }
 0x1e0   : > { %v13795_v44 = vadd.f32 %v2405_v55, %v1960_v42  ;;  %10940 = vmatmul.mubr.bf16.gmra.mrb[196].mxu0 %v2584_v8  ;;  %v3693_v29 = vrot.slane %v3691_v9, 1  ;;  %v13808_v8 = vld [vmem:[%s12793_s9 + $0x20] sm:$0xff]   ;;  %v3701_v55 = vrot.slane %v3699_v51, 1 }
 0x1e1   : > { %11024 = vmatmul.mubr.bf16.gmra.mrb[196].mxu1 %v2948_v40  ;;  %10943 = vmatprep.mubr.msk.bf16.mxu0 %vm17358_vm0, %v17343_v1  ;;  %v3708_v38 = vshrl.u32 %v13808_v8, 16  ;;  %v3368_v22 = vsel %vm17357_vm2, %v3366_v36, %v3367_v43 }
 0x1e2   : > { %11027 = vmatprep.mubr.msk.bf16.mxu1 %vm17358_vm0, %v17343_v1  ;;  %v3697_v26 = vor.u32 %v3696_v4, %v3693_v29 }
 0x1e3   : > { %v1862_v17 = vpop.f32.mrb[92].mxu0 }
 0x1e4   : > { %v1961_v39 = vadd.f32 %v1862_v17, %v13468_v11  ;;  %v10737_v27 = vpop.f32.mrb[93].mxu0  ;;  %v2410_v12 = vpop.f32.mrb[92].mxu1  ;;  %v3704_v11 = vrot.slane %v3702_v10, 2 }
 0x1e5   : > { %v1865_v41 = vpop.f32.mrb[94].mxu0  ;;  %v10821_v34 = vpop.f32.mrb[93].mxu1 }
 0x1e6   : > { %v1962_v54 = vadd.f32 %v1865_v41, %v13474_v32  ;;  %v13811_v61 = vadd.f32 %v2410_v12, %v1961_v39  ;;  %v10738_v42 = vpop.f32.mrb[95].mxu0  ;;  %v2413_v24 = vpop.f32.mrb[94].mxu1  ;;  %v3711_v32 = vshll.u32 %v13808_v8, 16  ;;  %v3705_v9 = vor.u32 %v3704_v11, %v3701_v55  ;;  %v12273_v12 = vld [vmem:[%s17315_s1 + $0x200] sm:$0xff]  }
 0x1e7   : > { %v10822_v40 = vpop.f32.mrb[95].mxu1  ;;  %v3710_v41 = vrot.slane %v3708_v38, 1  ;;  %v3369_v55 = vrot.slane %v13808_v8, 1 }
 0x1e8   : > { %v13813_v15 = vadd.f32 %v2413_v24, %v1962_v54  ;;  %10944 = vmatmul.mubr.bf16.gmra.mrb[200].mxu0 %v2586_v25  ;;  %v3713_v34 = vrot.slane %v3711_v32, 2  ;;  %v13832_v54 = vld [vmem:[%s12793_s9 + $0x28] sm:$0xff]  }
 0x1e9   : > { %11028 = vmatmul.mubr.bf16.gmra.mrb[200].mxu1 %v2957_v3  ;;  %11047 = vmatprep.mubr.msk.bf16.mxu0 %vm17358_vm0, %v17343_v1  ;;  %v3717_v40 = vshrl.u32 %v13832_v54, 16  ;;  %v3720_v36 = vshll.u32 %v13832_v54, 16 }
 0x1ea   : > { %11131 = vmatprep.mubr.msk.bf16.mxu1 %vm17358_vm0, %v17343_v1  ;;  %v3714_v11 = vor.u32 %v3713_v34, %v3710_v41 }
 0x1eb   : > { %v1870_v53 = vpop.f32.mrb[96].mxu0 }
 0x1ec   : > { %v1963_v51 = vadd.f32 %v1870_v53, %v13481_v14  ;;  %v10741_v10 = vpop.f32.mrb[97].mxu0  ;;  %v2418_v17 = vpop.f32.mrb[96].mxu1  ;;  %v3706_v14 = vsel %vm2876_vm3, %v3697_v26, %v3705_v9 }
 0x1ed   : > { %v1873_v39 = vpop.f32.mrb[98].mxu0  ;;  %v10825_v27 = vpop.f32.mrb[97].mxu1 }
 0x1ee   : > { %v1964_v25 = vadd.f32 %v1873_v39, %v13492_v30  ;;  %v13828_v3 = vadd.f32 %v2418_v17, %v1963_v51  ;;  %v10742_v29 = vpop.f32.mrb[99].mxu0  ;;  %v2421_v4 = vpop.f32.mrb[98].mxu1  ;;  %v12276_v30 = vld [vmem:[%s17315_s1 + $0x208] sm:$0xff]   ;;  %v3370_v17 = vsel %vm17357_vm2, %v3367_v43, %v3369_v55  ;;  %v3715_v39 = vsel %vm2876_vm3, %v3705_v9, %v3714_v11  ;;  %v13851_v27 = vld [vmem:[%s12793_s9 + $0x30] sm:$0xff]  }
 0x1ef   : > { %v10826_v42 = vpop.f32.mrb[99].mxu1  ;;  %v3722_v29 = vrot.slane %v3720_v36, 2  ;;  %v3726_v9 = vshrl.u32 %v13851_v27, 16 }
 0x1f0   : > { %v13834_v24 = vadd.f32 %v2421_v4, %v1964_v25  ;;  %11048 = vmatmul.mubr.bf16.vlgmr.msra.gmra.mrb[204].mxu0 %v3368_v22  ;;  %v3719_v25 = vrot.slane %v3717_v40, 1 }
 0x1f1   : > { %11200 = vmatpush3.bf16.msra.mxu0 %v12273_v12  ;;  %11132 = vmatmul.mubr.bf16.vlgmr.msra.gmra.mrb[204].mxu1 %v3706_v14  ;;  %v3729_v14 = vshll.u32 %v13851_v27, 16 }
 0x1f2   : > { %11051 = vmatprep.mubr.msk.bf16.mxu0 %vm17358_vm0, %v17343_v1  ;;  %11135 = vmatprep.mubr.msk.bf16.mxu1 %vm17358_vm0, %v17343_v1  ;;  %v3723_v42 = vor.u32 %v3722_v29, %v3719_v25  ;;  %v13880_v29 = vld [vmem:[%s12793_s9 + $0x38] sm:$0xff]  }
 0x1f3   : > { %v1878_v38 = vpop.f32.mrb[100].mxu0  ;;  %11201 = vmatprep.subr.bf16.mxu0 %v17343_v1 }
 0x1f4   : > { %v1965_v32 = vadd.f32 %v1878_v38, %v13510_v2  ;;  %v10745_v26 = vpop.f32.mrb[101].mxu0  ;;  %v2426_v53 = vpop.f32.mrb[100].mxu1  ;;  %v12279_v2 = vld [vmem:[%s17315_s1 + $0x210] sm:$0xff]   ;;  %v3724_v25 = vsel %vm2876_vm3, %v3714_v11, %v3723_v42 }
 0x1f5   : > { %v1881_v51 = vpop.f32.mrb[102].mxu0  ;;  %v10829_v10 = vpop.f32.mrb[101].mxu1  ;;  %11202 = vmatpush3.bf16.msra.mxu0 %v12276_v30  ;;  %v12282_v30 = vld [vmem:[%s17315_s1 + $0x218] sm:$0xff]  }
 0x1f6   : > { %v1966_v22 = vadd.f32 %v1881_v51, %v13522_v19  ;;  %v13854_v12 = vadd.f32 %v2426_v53, %v1965_v32  ;;  %v10746_v41 = vpop.f32.mrb[103].mxu0  ;;  %v2429_v34 = vpop.f32.mrb[102].mxu1  ;;  %11203 = vmatprep.subr.bf16.mxu0 %v17343_v1  ;;  %v3371_v19 = vrot.slane %v13832_v54, 1  ;;  %v3728_v10 = vrot.slane %v3726_v9, 1 }
 0x1f7   : > { %v10830_v43 = vpop.f32.mrb[103].mxu1  ;;  %v3738_v9 = vshll.u32 %v13880_v29, 16 }
 0x1f8   : > { %v13860_v4 = vadd.f32 %v2429_v34, %v1966_v22  ;;  %11052 = vmatmul.mubr.bf16.gmra.mrb[208].mxu0 %v3370_v17  ;;  %v3372_v51 = vsel %vm17357_vm2, %v3369_v55, %v3371_v19  ;;  %v3731_v17 = vrot.slane %v3729_v14, 2  ;;  %v3735_v43 = vshrl.u32 %v13880_v29, 16  ;;  %v12288_v14 = vld [vmem:[%s17315_s1 + $0x228] sm:$0xff]  }
 0x1f9   : > { %11136 = vmatmul.mubr.bf16.gmra.mrb[208].mxu1 %v3715_v39  ;;  %11055 = vmatprep.mubr.msk.bf16.mxu0 %vm17358_vm0, %v17343_v1 }
 0x1fa   : > { %11139 = vmatprep.mubr.msk.bf16.mxu1 %vm17358_vm0, %v17343_v1  ;;  %11204 = vmatpush3.bf16.msra.mxu0 %v12279_v2  ;;  %v3732_v11 = vor.u32 %v3731_v17, %v3728_v10  ;;  %v13903_v10 = vld [vmem:[%s12793_s9 + $0x40] sm:$0xff]  }
 0x1fb   : > { %v1886_v40 = vpop.f32.mrb[104].mxu0  ;;  %11205 = vmatprep.subr.bf16.mxu0 %v17343_v1 }
 0x1fc   : > { %v1967_v36 = vadd.f32 %v1886_v40, %v13541_v62  ;;  %v10749_v38 = vpop.f32.mrb[105].mxu0  ;;  %v2434_v32 = vpop.f32.mrb[104].mxu1  ;;  %v12285_v62 = vld [vmem:[%s17315_s1 + $0x220] sm:$0xff]  }
 0x1fd   : > { %v1889_v26 = vpop.f32.mrb[106].mxu0  ;;  %v10833_v53 = vpop.f32.mrb[105].mxu1 }
 0x1fe   : > { %v1968_v39 = vadd.f32 %v1889_v26, %v13552_v0  ;;  %v13876_v22 = vadd.f32 %v2434_v32, %v1967_v36  ;;  %v10750_v41 = vpop.f32.mrb[107].mxu0  ;;  %v2437_v34 = vpop.f32.mrb[106].mxu1  ;;  %11206 = vmatpush3.bf16.msra.mxu0 %v12282_v30  ;;  %v3373_v0 = vrot.slane %v13851_v27, 1 }
 0x1ff   : > { %v10834_v2 = vpop.f32.mrb[107].mxu1  ;;  %11207 = vmatprep.subr.bf16.mxu0 %v17343_v1 }
 0x200   : > { %v13886_v55 = vadd.f32 %v2437_v34, %v1968_v39  ;;  %11056 = vmatmul.mubr.bf16.gmra.mrb[212].mxu0 %v3372_v51  ;;  %v3374_v53 = vsel %vm17357_vm2, %v3371_v19, %v3373_v0  ;;  %v3733_v51 = vsel %vm2876_vm3, %v3723_v42, %v3732_v11  ;;  %v3744_v42 = vshrl.u32 %v13903_v10, 16 }
 0x201   : > { %11140 = vmatmul.mubr.bf16.gmra.mrb[212].mxu1 %v3724_v25  ;;  %11059 = vmatprep.mubr.msk.bf16.mxu0 %vm17358_vm0, %v17343_v1  ;;  %v3737_v25 = vrot.slane %v3735_v43, 1  ;;  %v3747_v43 = vshll.u32 %v13903_v10, 16 }
 0x202   : > { %11143 = vmatprep.mubr.msk.bf16.mxu1 %vm17358_vm0, %v17343_v1  ;;  %11208 = vmatpush3.bf16.msra.mxu0 %v12285_v62  ;;  %v3740_v62 = vrot.slane %v3738_v9, 2 }
 0x203   : > { %v1894_v30 = vpop.f32.mrb[108].mxu0  ;;  %11209 = vmatprep.subr.bf16.mxu0 %v17343_v1 }
 0x204   : > { %v1969_v40 = vadd.f32 %v1894_v30, %v13572_v13  ;;  %v10753_v36 = vpop.f32.mrb[109].mxu0  ;;  %v2442_v38 = vpop.f32.mrb[108].mxu1  ;;  %v12292_v13 = vld [vmem:[%s17315_s1 + $0x230] sm:$0xff]   ;;  %v3741_v9 = vor.u32 %v3740_v62, %v3737_v25 }
 0x205   : > { %v1897_v32 = vpop.f32.mrb[110].mxu0  ;;  %v10837_v26 = vpop.f32.mrb[109].mxu1 }
 0x206   : > { %v1970_v17 = vadd.f32 %v1897_v32, %v13583_v45  ;;  %v13906_v39 = vadd.f32 %v2442_v38, %v1969_v40  ;;  %v10754_v41 = vpop.f32.mrb[111].mxu0  ;;  %v2445_v34 = vpop.f32.mrb[110].mxu1  ;;  %11210 = vmatpush3.bf16.msra.mxu0 %v12288_v14  ;;  %v3375_v45 = vrot.slane %v13880_v29, 1  ;;  %v12295_v14 = vld [vmem:[%s17315_s1 + $0x238] sm:$0xff]  }
 0x207   : > { %v10838_v2 = vpop.f32.mrb[111].mxu1  ;;  %11211 = vmatprep.subr.bf16.mxu0 %v17343_v1 }
 0x208   : > { %v13912_v19 = vadd.f32 %v2445_v34, %v1970_v17  ;;  %11060 = vmatmul.mubr.bf16.gmra.mrb[216].mxu0 %v3374_v53  ;;  %v3376_v53 = vsel %vm17357_vm2, %v3373_v0, %v3375_v45  ;;  %v3749_v17 = vrot.slane %v3747_v43, 2  ;;  %v13932_v2 = vld [vmem:[%s12793_s9 + $0x48] sm:$0xff]  }
 0x209   : > { %11144 = vmatmul.mubr.bf16.gmra.mrb[216].mxu1 %v3733_v51  ;;  %11063 = vmatprep.mubr.msk.bf16.mxu0 %vm17358_vm0, %v17343_v1  ;;  %v3746_v51 = vrot.slane %v3744_v42, 1  ;;  %17424 = vst [vmem:[#allocation9_spill] sm:$0xff] %v13932_v2  ;;  %v3756_v42 = vshll.u32 %v13932_v2, 16 }
 0x20a   : > { %11147 = vmatprep.mubr.msk.bf16.mxu1 %vm17358_vm0, %v17343_v1  ;;  %11212 = vmatpush3.bf16.msra.mxu0 %v12292_v13  ;;  %v3742_v13 = vsel %vm2876_vm3, %v3732_v11, %v3741_v9  ;;  %v3753_v11 = vshrl.u32 %v13932_v2, 16 }
 0x20b   : > { %v1902_v30 = vpop.f32.mrb[112].mxu0  ;;  %11213 = vmatprep.subr.bf16.mxu0 %v17343_v1  ;;  %v3750_v0 = vor.u32 %v3749_v17, %v3746_v51 }
 0x20c   : > { %v1971_v40 = vadd.f32 %v1902_v30, %v13603_v31  ;;  %v10757_v36 = vpop.f32.mrb[113].mxu0  ;;  %v2450_v38 = vpop.f32.mrb[112].mxu1 }
 0x20d   : > { %v1905_v32 = vpop.f32.mrb[114].mxu0  ;;  %v10841_v26 = vpop.f32.mrb[113].mxu1 }
 0x20e   : > { %v1972_v41 = vadd.f32 %v1905_v32, %v13611_v23  ;;  %v13928_v34 = vadd.f32 %v2450_v38, %v1971_v40  ;;  %v10758_v25 = vpop.f32.mrb[115].mxu0  ;;  %v2453_v62 = vpop.f32.mrb[114].mxu1  ;;  %11214 = vmatpush3.bf16.msra.mxu0 %v12295_v14  ;;  %v3377_v23 = vrot.slane %v13903_v10, 1 }
 0x20f   : > { %v10842_v31 = vpop.f32.mrb[115].mxu1  ;;  %11367 = vmatprep.subr.bf16.mxu0 %v17343_v1 }
 0x210   : > { %v13935_v30 = vadd.f32 %v2453_v62, %v1972_v41  ;;  %11064 = vmatmul.mubr.bf16.gmra.mrb[220].mxu0 %v3376_v53  ;;  %v3378_v26 = vsel %vm17357_vm2, %v3375_v45, %v3377_v23  ;;  %v3751_v53 = vsel %vm2876_vm3, %v3741_v9, %v3750_v0  ;;  %v13948_v41 = vld [vmem:[%s12793_s9 + $0x50] sm:$0xff]   ;;  %v3758_v31 = vrot.slane %v3756_v42, 2 }
 0x211   : > { %11148 = vmatmul.mubr.bf16.gmra.mrb[220].mxu1 %v3742_v13  ;;  %11067 = vmatprep.mubr.msk.bf16.mxu0 %vm17358_vm0, %v17343_v1  ;;  %17425 = vst [vmem:[#allocation10_spill] sm:$0xff] %v13948_v41  ;;  %v3755_v13 = vrot.slane %v3753_v11, 1  ;;  %v3379_v45 = vrot.slane %v13932_v2, 1  ;;  %v3762_v9 = vshrl.u32 %v13948_v41, 16 }
 0x212   : > { %11151 = vmatprep.mubr.msk.bf16.mxu1 %vm17358_vm0, %v17343_v1 }
 0x213   : > { %v1910_v43 = vpop.f32.mrb[116].mxu0  ;;  %v3759_v11 = vor.u32 %v3758_v31, %v3755_v13  ;;  %v13969_v13 = vld [vmem:[%s12793_s9 + $0x58] sm:$0xff]  }
 0x214   : > { %v1973_v14 = vadd.f32 %v1910_v43, %v13620_v7  ;;  %v10761_v40 = vpop.f32.mrb[117].mxu0  ;;  %v2458_v36 = vpop.f32.mrb[116].mxu1  ;;  %v17427_v43 = vmov 0.0   ;;  %17428 = vst [vmem:[#allocation12_spill] sm:$0xff] %v13969_v13 }
 0x215   : > { %v1913_v38 = vpop.f32.mrb[118].mxu0  ;;  %v10845_v32 = vpop.f32.mrb[117].mxu1 }
 0x216   : > { %v1974_v51 = vadd.f32 %v1913_v38, %v13628_v33  ;;  %v13951_v17 = vadd.f32 %v2458_v36, %v1973_v14  ;;  %v10762_v25 = vpop.f32.mrb[119].mxu0  ;;  %v2461_v62 = vpop.f32.mrb[118].mxu1  ;;  %v3765_v33 = vshll.u32 %v13948_v41, 16  ;;  %v3380_v32 = vsel %vm17357_vm2, %v3377_v23, %v3379_v45 }
 0x217   : > { %v10846_v1 = vpop.f32.mrb[119].mxu1  ;;  %v3381_v23 = vrot.slane %v13948_v41, 1 }
 0x218   : > { %v13953_v7 = vadd.f32 %v2461_v62, %v1974_v51  ;;  %11068 = vmatmul.mubr.bf16.gmra.mrb[224].mxu0 %v3378_v26  ;;  %v3764_v26 = vrot.slane %v3762_v9, 1  ;;  %v3771_v9 = vshrl.u32 %v13969_v13, 16 }
 0x219   : > { %11152 = vmatmul.mubr.bf16.gmra.mrb[224].mxu1 %v3751_v53  ;;  %11071 = vmatprep.mubr.msk.bf16.mxu0 %vm17358_vm0, %v17427_v43  ;;  %v3767_v53 = vrot.slane %v3765_v33, 2 }
 0x21a   : > { %17426 = vst [vmem:[#allocation11_spill] sm:$0xff] %v13953_v7  ;;  %11155 = vmatprep.mubr.msk.bf16.mxu1 %vm17358_vm0, %v17427_v43  ;;  %v3760_v7 = vsel %vm2876_vm3, %v3750_v0, %v3759_v11  ;;  %v3774_v0 = vshll.u32 %v13969_v13, 16 }
 0x21b   : > { %v1918_v42 = vpop.f32.mrb[120].mxu0 }
 0x21c   : > { %v1975_v1 = vadd.f32 %v1918_v42, %v13635_v56  ;;  %v10765_v14 = vpop.f32.mrb[121].mxu0  ;;  %v2466_v40 = vpop.f32.mrb[120].mxu1 }
 0x21d   : > { %v1921_v36 = vpop.f32.mrb[122].mxu0  ;;  %v10849_v38 = vpop.f32.mrb[121].mxu1 }
 0x21e   : > { %v1976_v51 = vadd.f32 %v1921_v36, %v13643_v59  ;;  %v13965_v25 = vadd.f32 %v2466_v40, %v1975_v1  ;;  %v10766_v62 = vpop.f32.mrb[123].mxu0  ;;  %v2469_v2 = vpop.f32.mrb[122].mxu1  ;;  %v3768_v59 = vor.u32 %v3767_v53, %v3764_v26  ;;  %v3382_v40 = vsel %vm17357_vm2, %v3379_v45, %v3381_v23  ;;  %v13984_v38 = vld [vmem:[%s12793_s9 + $0x60] sm:$0xff]  }
 0x21f   : > { %v10850_v31 = vpop.f32.mrb[123].mxu1  ;;  %17429 = vst [vmem:[#allocation13_spill] sm:$0xff] %v13984_v38  ;;  %v3773_v62 = vrot.slane %v3771_v9, 1  ;;  %v3383_v45 = vrot.slane %v13969_v13, 1 }
 0x220   : > { %v13971_v56 = vadd.f32 %v2469_v2, %v1976_v51  ;;  %11072 = vmatmul.mubr.bf16.gmra.mrb[228].mxu0 %v3380_v32  ;;  %v3769_v36 = vsel %vm2876_vm3, %v3759_v11, %v3768_v59  ;;  %v3776_v31 = vrot.slane %v3774_v0, 2  ;;  %v3780_v11 = vshrl.u32 %v13984_v38, 16 }
 0x221   : > { %11156 = vmatmul.mubr.bf16.gmra.mrb[228].mxu1 %v3760_v7  ;;  %11075 = vmatprep.mubr.msk.bf16.mxu0 %vm17358_vm0, %v17427_v43 }
 0x222   : > { %11159 = vmatprep.mubr.msk.bf16.mxu1 %vm17358_vm0, %v17427_v43  ;;  %v3777_v9 = vor.u32 %v3776_v31, %v3773_v62  ;;  %v14005_v62 = vld [vmem:[%s12793_s9 + $0x68] sm:$0xff]  }
 0x223   : > { %v1926_v33 = vpop.f32.mrb[124].mxu0  ;;  %17430 = vst [vmem:[#allocation14_spill] sm:$0xff] %v14005_v62 }
 0x224   : > { %v1977_v2 = vadd.f32 %v1926_v33, %v13650_v47  ;;  %v10769_v42 = vpop.f32.mrb[125].mxu0  ;;  %v2474_v1 = vpop.f32.mrb[124].mxu1  ;;  %v3778_v13 = vsel %vm2876_vm3, %v3768_v59, %v3777_v9  ;;  %v3792_v59 = vshll.u32 %v14005_v62, 16 }
 0x225   : > { %v1929_v14 = vpop.f32.mrb[126].mxu0  ;;  %v10853_v7 = vpop.f32.mrb[125].mxu1 }
 0x226   : > { %v1978_v32 = vadd.f32 %v1929_v14, %v13658_v48  ;;  %v13987_v26 = vadd.f32 %v2474_v1, %v1977_v2  ;;  %v10770_v53 = vpop.f32.mrb[127].mxu0  ;;  %v2477_v51 = vpop.f32.mrb[126].mxu1  ;;  %v3783_v48 = vshll.u32 %v13984_v38, 16  ;;  %v3384_v14 = vsel %vm17357_vm2, %v3381_v23, %v3383_v45 }
 0x227   : > { %v10854_v41 = vpop.f32.mrb[127].mxu1  ;;  %v3782_v7 = vrot.slane %v3780_v11, 1  ;;  %v3385_v23 = vrot.slane %v13984_v38, 1  ;;  %v3789_v11 = vshrl.u32 %v14005_v62, 16 }
 0x228   : > { %v13989_v47 = vadd.f32 %v2477_v51, %v1978_v32  ;;  %11076 = vmatmul.mubr.bf16.gmra.mrb[232].mxu0 %v3382_v40  ;;  %v3785_v40 = vrot.slane %v3783_v48, 2 }
 0x229   : > { %11160 = vmatmul.mubr.bf16.gmra.mrb[232].mxu1 %v3769_v36  ;;  %11079 = vmatprep.mubr.msk.bf16.mxu0 %vm17358_vm0, %v17427_v43 }
 0x22a   : > { %11163 = vmatprep.mubr.msk.bf16.mxu1 %vm17358_vm0, %v17427_v43 }
 0x22b   : > { %v1934_v0 = vpop.f32.mrb[128].mxu0 }
 0x22c   : > { %v1979_v41 = vadd.f32 %v1934_v0, %v13665_v6  ;;  %v10773_v33 = vpop.f32.mrb[129].mxu0  ;;  %v2482_v2 = vpop.f32.mrb[128].mxu1 }
 0x22d   : > { %v1937_v42 = vpop.f32.mrb[130].mxu0  ;;  %v10857_v1 = vpop.f32.mrb[129].mxu1 }
 0x22e   : > { %v1980_v36 = vadd.f32 %v1937_v42, %v13673_v46  ;;  %v14001_v32 = vadd.f32 %v2482_v2, %v1979_v41  ;;  %v10774_v53 = vpop.f32.mrb[131].mxu0  ;;  %v2485_v51 = vpop.f32.mrb[130].mxu1  ;;  %v3786_v46 = vor.u32 %v3785_v40, %v3782_v7  ;;  %v3386_v42 = vsel %vm17357_vm2, %v3383_v45, %v3385_v23 }
 0x22f   : > { %v10858_v31 = vpop.f32.mrb[131].mxu1  ;;  %v3387_v45 = vrot.slane %v14005_v62, 1 }
 0x230   : > { %v14007_v6 = vadd.f32 %v2485_v51, %v1980_v36  ;;  %11080 = vmatmul.mubr.bf16.gmra.mrb[236].mxu0 %v3384_v14  ;;  %v3787_v1 = vsel %vm2876_vm3, %v3777_v9, %v3786_v46  ;;  %v14020_v14 = vld [vmem:[%s12793_s9 + $0x70] sm:$0xff]   ;;  %v3791_v51 = vrot.slane %v3789_v11, 1  ;;  %v3794_v31 = vrot.slane %v3792_v59, 2 }
 0x231   : > { %11164 = vmatmul.mubr.bf16.gmra.mrb[236].mxu1 %v3778_v13  ;;  %11083 = vmatprep.mubr.msk.bf16.mxu0 %vm17358_vm0, %v17427_v43  ;;  %17431 = vst [vmem:[#allocation15_spill] sm:$0xff] %v14020_v14  ;;  %v3798_v9 = vshrl.u32 %v14020_v14, 16 }
 0x232   : > { %11167 = vmatprep.mubr.msk.bf16.mxu1 %vm17358_vm0, %v17427_v43  ;;  %v3795_v11 = vor.u32 %v3794_v31, %v3791_v51  ;;  %v14041_v51 = vld [vmem:[%s12793_s9 + $0x78] sm:$0xff]  }
 0x233   : > { %v1942_v48 = vpop.f32.mrb[132].mxu0  ;;  %17432 = vst [vmem:[#allocation16_spill] sm:$0xff] %v14041_v51 }
 0x234   : > { %v1981_v0 = vadd.f32 %v1942_v48, %v13680_v28  ;;  %v10777_v41 = vpop.f32.mrb[133].mxu0  ;;  %v2490_v33 = vpop.f32.mrb[132].mxu1  ;;  %v3796_v62 = vsel %vm2876_vm3, %v3786_v46, %v3795_v11  ;;  %v3810_v46 = vshll.u32 %v14041_v51, 16 }
 0x235   : > { %v1945_v2 = vpop.f32.mrb[134].mxu0  ;;  %v10861_v13 = vpop.f32.mrb[133].mxu1 }
 0x236   : > { %v1982_v7 = vadd.f32 %v1945_v2, %v13688_v35  ;;  %v14023_v40 = vadd.f32 %v2490_v33, %v1981_v0  ;;  %v10778_v36 = vpop.f32.mrb[135].mxu0  ;;  %v2493_v53 = vpop.f32.mrb[134].mxu1  ;;  %v3801_v35 = vshll.u32 %v14020_v14, 16  ;;  %v3388_v2 = vsel %vm17357_vm2, %v3385_v23, %v3387_v45 }
 0x237   : > { %v10862_v38 = vpop.f32.mrb[135].mxu1  ;;  %v3800_v13 = vrot.slane %v3798_v9, 1  ;;  %v3389_v23 = vrot.slane %v14020_v14, 1  ;;  %v3807_v9 = vshrl.u32 %v14041_v51, 16 }
 0x238   : > { %v14025_v28 = vadd.f32 %v2493_v53, %v1982_v7  ;;  %11084 = vmatmul.mubr.bf16.gmra.mrb[240].mxu0 %v3386_v42  ;;  %v3803_v42 = vrot.slane %v3801_v35, 2 }
 0x239   : > { %11168 = vmatmul.mubr.bf16.gmra.mrb[240].mxu1 %v3787_v1  ;;  %11087 = vmatprep.mubr.msk.bf16.mxu0 %vm17358_vm0, %v17427_v43 }
 0x23a   : > { %11171 = vmatprep.mubr.msk.bf16.mxu1 %vm17358_vm0, %v17427_v43 }
 0x23b   : > { %v2686_v59 = vpop.f32.mrb[136].mxu0 }
 0x23c   : > { %v2821_v38 = vadd.f32 %v2686_v59, %v13699_v16  ;;  %v10881_v48 = vpop.f32.mrb[137].mxu0  ;;  %v3057_v0 = vpop.f32.mrb[136].mxu1 }
 0x23d   : > { %v2689_v41 = vpop.f32.mrb[138].mxu0  ;;  %v10965_v33 = vpop.f32.mrb[137].mxu1 }
 0x23e   : > { %v2822_v1 = vadd.f32 %v2689_v41, %v13705_v21  ;;  %v14037_v7 = vadd.f32 %v3057_v0, %v2821_v38  ;;  %v10882_v36 = vpop.f32.mrb[139].mxu0  ;;  %v3060_v53 = vpop.f32.mrb[138].mxu1  ;;  %v3804_v21 = vor.u32 %v3803_v42, %v3800_v13  ;;  %v3390_v41 = vsel %vm17357_vm2, %v3387_v45, %v3389_v23 }
 0x23f   : > { %v10966_v31 = vpop.f32.mrb[139].mxu1  ;;  %v3391_v45 = vrot.slane %v14041_v51, 1 }
 0x240   : > { %v14043_v16 = vadd.f32 %v3060_v53, %v2822_v1  ;;  %11088 = vmatmul.mubr.bf16.gmra.mrb[244].mxu0 %v3388_v2  ;;  %v3805_v33 = vsel %vm2876_vm3, %v3795_v11, %v3804_v21  ;;  %v14056_v2 = vld [vmem:[%s12793_s9 + $0x80] sm:$0xff]   ;;  %v3809_v53 = vrot.slane %v3807_v9, 1  ;;  %v3812_v31 = vrot.slane %v3810_v46, 2 }
 0x241   : > { %11172 = vmatmul.mubr.bf16.gmra.mrb[244].mxu1 %v3796_v62  ;;  %11091 = vmatprep.mubr.msk.bf16.mxu0 %vm17358_vm0, %v17427_v43  ;;  %17433 = vst [vmem:[#allocation17_spill] sm:$0xff] %v14056_v2  ;;  %v3816_v11 = vshrl.u32 %v14056_v2, 16 }
 0x242   : > { %11175 = vmatprep.mubr.msk.bf16.mxu1 %vm17358_vm0, %v17427_v43  ;;  %v3813_v9 = vor.u32 %v3812_v31, %v3809_v53  ;;  %v14077_v53 = vld [vmem:[%s12793_s9 + $0x88] sm:$0xff]  }
 0x243   : > { %v2694_v35 = vpop.f32.mrb[140].mxu0  ;;  %17434 = vst [vmem:[#allocation18_spill] sm:$0xff] %v14077_v53 }
 0x244   : > { %v2823_v59 = vadd.f32 %v2694_v35, %v13719_v37  ;;  %v10885_v38 = vpop.f32.mrb[141].mxu0  ;;  %v3065_v48 = vpop.f32.mrb[140].mxu1  ;;  %v3814_v51 = vsel %vm2876_vm3, %v3804_v21, %v3813_v9  ;;  %v3828_v21 = vshll.u32 %v14077_v53, 16 }
 0x245   : > { %v2697_v0 = vpop.f32.mrb[142].mxu0  ;;  %v10969_v62 = vpop.f32.mrb[141].mxu1 }
 0x246   : > { %v2824_v13 = vadd.f32 %v2697_v0, %v13722_v63  ;;  %v14059_v42 = vadd.f32 %v3065_v48, %v2823_v59  ;;  %v10886_v1 = vpop.f32.mrb[143].mxu0  ;;  %v3068_v36 = vpop.f32.mrb[142].mxu1  ;;  %v3819_v63 = vshll.u32 %v14056_v2, 16  ;;  %v3392_v0 = vsel %vm17357_vm2, %v3389_v23, %v3391_v45 }
 0x247   : > { %v10970_v14 = vpop.f32.mrb[143].mxu1  ;;  %v3818_v62 = vrot.slane %v3816_v11, 1 }
 0x248   : > { %v14061_v37 = vadd.f32 %v3068_v36, %v2824_v13  ;;  %11092 = vmatmul.mubr.bf16.gmra.mrb[248].mxu0 %v3390_v41  ;;  %v3821_v41 = vrot.slane %v3819_v63, 2 }
 0x249   : > { %11176 = vmatmul.mubr.bf16.gmra.mrb[248].mxu1 %v3805_v33  ;;  %11095 = vmatprep.mubr.msk.bf16.mxu0 %vm17358_vm0, %v17427_v43 }
 0x24a   : > { %11179 = vmatprep.mubr.msk.bf16.mxu1 %vm17358_vm0, %v17427_v43  ;;  %v3822_v23 = vor.u32 %v3821_v41, %v3818_v62 }
 0x24b   : > { %v2702_v46 = vpop.f32.mrb[144].mxu0 }
 0x24c   : > { %v2825_v14 = vadd.f32 %v2702_v46, %v13733_v50  ;;  %v10889_v35 = vpop.f32.mrb[145].mxu0  ;;  %v3073_v59 = vpop.f32.mrb[144].mxu1  ;;  %v3393_v46 = vrot.slane %v14056_v2, 1 }
 0x24d   : > { %v2705_v38 = vpop.f32.mrb[146].mxu0  ;;  %v10973_v48 = vpop.f32.mrb[145].mxu1 }
 0x24e   : > { %v2826_v33 = vadd.f32 %v2705_v38, %v13739_v57  ;;  %v14073_v13 = vadd.f32 %v3073_v59, %v2825_v14  ;;  %v10890_v1 = vpop.f32.mrb[147].mxu0  ;;  %v3076_v36 = vpop.f32.mrb[146].mxu1  ;;  %v3825_v57 = vshrl.u32 %v14077_v53, 16  ;;  %v3394_v59 = vsel %vm17357_vm2, %v3391_v45, %v3393_v46 }
 0x24f   : > { %v10974_v31 = vpop.f32.mrb[147].mxu1  ;;  %v3823_v38 = vsel %vm2876_vm3, %v3813_v9, %v3822_v23  ;;  %v3395_v45 = vrot.slane %v14077_v53, 1 }
 0x250   : > { %v14079_v50 = vadd.f32 %v3076_v36, %v2826_v33  ;;  %11096 = vmatmul.mubr.bf16.gmra.mrb[252].mxu0 %v3392_v0  ;;  %v14092_v0 = vld [vmem:[%s12793_s9 + $0x90] sm:$0xff]   ;;  %v3827_v36 = vrot.slane %v3825_v57, 1  ;;  %v3830_v31 = vrot.slane %v3828_v21, 2 }
 0x251   : > { %11180 = vmatmul.mubr.bf16.gmra.mrb[252].mxu1 %v3814_v51  ;;  %11099 = vmatprep.mubr.msk.bf16.mxu0 %vm17358_vm0, %v17427_v43  ;;  %v3834_v9 = vshrl.u32 %v14092_v0, 16 }
 0x252   : > { %11183 = vmatprep.mubr.msk.bf16.mxu1 %vm17358_vm0, %v17427_v43  ;;  %v3831_v57 = vor.u32 %v3830_v31, %v3827_v36  ;;  %v14113_v36 = vld [vmem:[%s12793_s9 + $0x98] ss:$0 sps:$4 sm:$0x33]  }
 0x253   : > { %v2710_v11 = vpop.f32.mrb[148].mxu0  ;;  %17435 = vst [vmem:[#allocation19_spill] sm:$0xff] %v14113_v36 }
 0x254   : > { %v2827_v63 = vadd.f32 %v2710_v11, %v13753_v18  ;;  %v10893_v14 = vpop.f32.mrb[149].mxu0  ;;  %v3081_v35 = vpop.f32.mrb[148].mxu1  ;;  %v3832_v53 = vsel %vm2876_vm3, %v3822_v23, %v3831_v57  ;;  %v3843_v23 = vshrl.u32 %v14113_v36, 16 }
 0x255   : > { %v2713_v51 = vpop.f32.mrb[150].mxu0  ;;  %v10977_v48 = vpop.f32.mrb[149].mxu1 }
 0x256   : > { %v2828_v62 = vadd.f32 %v2713_v51, %v13756_v20  ;;  %v14095_v41 = vadd.f32 %v3081_v35, %v2827_v63  ;;  %v10894_v33 = vpop.f32.mrb[151].mxu0  ;;  %v3084_v1 = vpop.f32.mrb[150].mxu1  ;;  %v3837_v20 = vshll.u32 %v14092_v0, 16 }
 0x257   : > { %v10978_v2 = vpop.f32.mrb[151].mxu1 }
 0x258   : > { %v14097_v18 = vadd.f32 %v3084_v1, %v2828_v62  ;;  %11100 = vmatmul.mubr.bf16.gmra.mrb[0].mxu0 %v3394_v59  ;;  %v3396_v59 = vsel %vm17357_vm2, %v3393_v46, %v3395_v45  ;;  %v3839_v51 = vrot.slane %v3837_v20, 2 }
 0x259   : > { %11184 = vmatmul.mubr.bf16.gmra.mrb[0].mxu1 %v3823_v38  ;;  %11103 = vmatprep.mubr.msk.bf16.mxu0 %vm17358_vm0, %v17427_v43  ;;  %v3836_v38 = vrot.slane %v3834_v9, 1  ;;  %v3846_v9 = vshll.u32 %v14113_v36, 16 }
 0x25a   : > { %11187 = vmatprep.mubr.msk.bf16.mxu1 %vm17358_vm0, %v17427_v43 }
 0x25b   : > { %v2718_v21 = vpop.f32.mrb[152].mxu0  ;;  %v3840_v46 = vor.u32 %v3839_v51, %v3836_v38  ;;  %v12296_v38 = vld [vmem:[%s12793_s9 + $0x98] ss:$0 sps:$4 sm:$0x11]  }
 0x25c   : > { %v2829_v2 = vadd.f32 %v2718_v21, %v13768_v49  ;;  %v10897_v11 = vpop.f32.mrb[153].mxu0  ;;  %v3089_v63 = vpop.f32.mrb[152].mxu1  ;;  %v12298_v21 = vld [vmem:[#allocation3 + $0x40] sm:$0xff]  }
 0x25d   : > { %v2721_v14 = vpop.f32.mrb[154].mxu0  ;;  %v10981_v35 = vpop.f32.mrb[153].mxu1  ;;  %11284 = vmatpush3.bf16.msra.mxu1 %v12298_v21  ;;  %v3848_v21 = vrot.slane %v3846_v9, 2 }
 0x25e   : > { %v2830_v48 = vadd.f32 %v2721_v14, %v13774_v52  ;;  %v14109_v62 = vadd.f32 %v3089_v63, %v2829_v2  ;;  %v10898_v33 = vpop.f32.mrb[155].mxu0  ;;  %v3092_v1 = vpop.f32.mrb[154].mxu1  ;;  %v3397_v52 = vrot.slane %v14092_v0, 1  ;;  %11285 = vmatprep.subr.bf16.mxu1 %v17427_v43 }
 0x25f   : > { %v10982_v31 = vpop.f32.mrb[155].mxu1 }
 0x260   : > { %v14115_v49 = vadd.f32 %v3092_v1, %v2830_v48  ;;  %11104 = vmatmul.mubr.bf16.gmra.mrb[4].mxu0 %v3396_v59  ;;  %v3398_v35 = vsel %vm17357_vm2, %v3395_v45, %v3397_v52  ;;  %v3841_v59 = vsel %vm2876_vm3, %v3831_v57, %v3840_v46  ;;  %v3845_v31 = vrot.slane %v3843_v23, 1 }
 0x261   : > { %11188 = vmatmul.mubr.bf16.gmra.mrb[4].mxu1 %v3832_v53  ;;  %11107 = vmatprep.mubr.msk.bf16.mxu0 %vm17358_vm0, %v17427_v43  ;;  %v3399_v45 = vrot.slane %v12296_v38, 1 }
 0x262   : > { %11191 = vmatprep.mubr.msk.bf16.mxu1 %vm17358_vm0, %v17427_v43 }
 0x263   : > { %v2726_v20 = vpop.f32.mrb[156].mxu0 }
 0x264   : > { %v2831_v53 = vadd.f32 %v2726_v20, %v13789_v58  ;;  %v10901_v2 = vpop.f32.mrb[157].mxu0  ;;  %v3097_v11 = vpop.f32.mrb[156].mxu1  ;;  %v4119_v20 = vld [vmem:[%s12793_s9 + $0x10] sm:$0xc] }
 0x265   : > { %v2729_v63 = vpop.f32.mrb[158].mxu0  ;;  %v10985_v14 = vpop.f32.mrb[157].mxu1 }
 0x266   : > { %v2832_v51 = vadd.f32 %v2729_v63, %v13795_v44  ;;  %v14130_v48 = vadd.f32 %v3097_v11, %v2831_v53  ;;  %v10902_v33 = vpop.f32.mrb[159].mxu0  ;;  %v3100_v1 = vpop.f32.mrb[158].mxu1  ;;  %v3849_v44 = vor.u32 %v3848_v21, %v3845_v31  ;;  %v3400_v63 = vsel %vm17357_vm2, %v3397_v52, %v3399_v45 }
 0x267   : > { %v10986_v36 = vpop.f32.mrb[159].mxu1 }
 0x268   : > { %v14132_v58 = vadd.f32 %v3100_v1, %v2832_v51  ;;  %11108 = vmatmul.mubr.bf16.gmra.mrb[8].mxu0 %v3398_v35  ;;  %v9447_v36 = vcombine.low %v4119_v20, %v13783_v60  ;;  %v3850_v51 = vsel %vm2876_vm3, %v3840_v46, %v3849_v44  ;;  %v4142_v60 = vrot.slane %v13793_v5, 2 }
 0x269   : > { %11192 = vmatmul.mubr.bf16.gmra.mrb[8].mxu1 %v3841_v59  ;;  %11111 = vmatprep.mubr.msk.bf16.mxu0 %vm17358_vm0, %v17427_v43 }
 0x26a   : > { %11195 = vmatprep.mubr.msk.bf16.mxu1 %vm17358_vm0, %v17427_v43  ;;  %v4141_v31 = vrot.slane %v9447_v36, 2 }
 0x26b   : > { %v2734_v57 = vpop.f32.mrb[160].mxu0 }
 0x26c   : > { %v2833_v53 = vadd.f32 %v2734_v57, %v13811_v61  ;;  %v10905_v2 = vpop.f32.mrb[161].mxu0  ;;  %v3105_v23 = vpop.f32.mrb[160].mxu1  ;;  %v12299_v61 = vld [vmem:[#allocation3 + $0x48] sm:$0xff]   ;;  %v4143_v44 = vsel %vm17355_vm4, %v4141_v31, %v4142_v60 }
 0x26d   : > { %v2737_v9 = vpop.f32.mrb[162].mxu0  ;;  %v10989_v11 = vpop.f32.mrb[161].mxu1  ;;  %11286 = vmatpush3.bf16.msra.mxu1 %v12299_v61 }
 0x26e   : > { %v2834_v14 = vadd.f32 %v2737_v9, %v13813_v15  ;;  %v14143_v35 = vadd.f32 %v3105_v23, %v2833_v53  ;;  %v10906_v59 = vpop.f32.mrb[163].mxu0  ;;  %v3108_v38 = vpop.f32.mrb[162].mxu1  ;;  %11287 = vmatprep.subr.bf16.mxu1 %v17427_v43 }
 0x26f   : > { %v10990_v33 = vpop.f32.mrb[163].mxu1 }
 0x270   : > { %v14146_v1 = vadd.f32 %v3108_v38, %v2834_v14  ;;  %11112 = vmatmul.mubr.bf16.gmra.mrb[12].mxu0 %v3400_v63 }
 0x271   : > { %11196 = vmatmul.mubr.bf16.gmra.mrb[12].mxu1 %v3850_v51  ;;  %11215 = vmatprep.mubr.msk.bf16.mxu0 %vm17358_vm0, %v17427_v43 }
 0x272   : > { %11299 = vmatprep.mubr.msk.bf16.mxu1 %vm17358_vm0, %v17427_v43 }
 0x273   : > { %v2742_v15 = vpop.f32.mrb[164].mxu0 }
 0x274   : > { %v2835_v52 = vadd.f32 %v2742_v15, %v13828_v3  ;;  %v10909_v46 = vpop.f32.mrb[165].mxu0  ;;  %v3113_v21 = vpop.f32.mrb[164].mxu1  ;;  %v4144_v3 = vrot.slane %v13808_v8, 2  ;;  %v4146_v8 = vrot.slane %v13832_v54, 2 }
 0x275   : > { %v2745_v45 = vpop.f32.mrb[166].mxu0  ;;  %v10993_v20 = vpop.f32.mrb[165].mxu1 }
 0x276   : > { %v2836_v57 = vadd.f32 %v2745_v45, %v13834_v24  ;;  %v14157_v53 = vadd.f32 %v3113_v21, %v2835_v52  ;;  %v10910_v5 = vpop.f32.mrb[167].mxu0  ;;  %v3116_v2 = vpop.f32.mrb[166].mxu1  ;;  %v4145_v38 = vsel %vm17355_vm4, %v4142_v60, %v4144_v3  ;;  %v12300_v45 = vld [vmem:[#allocation3 + $0x50] sm:$0xff]  }
 0x277   : > { %v10994_v23 = vpop.f32.mrb[167].mxu1  ;;  %11288 = vmatpush3.bf16.msra.mxu1 %v12300_v45 }
 0x278   : > { %v14159_v36 = vadd.f32 %v3116_v2, %v2836_v57  ;;  %11216 = vmatmul.mubr.bf16.vlgmr.msra.gmra.mrb[16].mxu0 %v4143_v44  ;;  %v4147_v44 = vsel %vm17355_vm4, %v4144_v3, %v4146_v8  ;;  %11289 = vmatprep.subr.bf16.mxu1 %v17427_v43 }
 0x279   : > { %11219 = vmatprep.mubr.msk.bf16.mxu0 %vm17358_vm0, %v17427_v43 }
 0x27b   : > { %v2750_v9 = vpop.f32.mrb[168].mxu0 }
 0x27c   : > { %v2837_v11 = vadd.f32 %v2750_v9, %v13854_v12  ;;  %v10913_v63 = vpop.f32.mrb[169].mxu0  ;;  %v3121_v14 = vpop.f32.mrb[168].mxu1 }
 0x27d   : > { %v2753_v59 = vpop.f32.mrb[170].mxu0  ;;  %v10997_v24 = vpop.f32.mrb[169].mxu1 }
 0x27e   : > { %v2838_v51 = vadd.f32 %v2753_v59, %v13860_v4  ;;  %v14167_v33 = vadd.f32 %v3121_v14, %v2837_v11  ;;  %v10914_v61 = vpop.f32.mrb[171].mxu0  ;;  %v3124_v31 = vpop.f32.mrb[170].mxu1 }
 0x27f   : > { %v10998_v15 = vpop.f32.mrb[171].mxu1 }
 0x280   : > { %v14169_v52 = vadd.f32 %v3124_v31, %v2838_v51  ;;  %11220 = vmatmul.mubr.bf16.gmra.mrb[20].mxu0 %v4145_v38 }
 0x281   : > { %11223 = vmatprep.mubr.msk.bf16.mxu0 %vm17358_vm0, %v17427_v43 }
 0x283   : > { %v2758_v12 = vpop.f32.mrb[172].mxu0 }
 0x284   : > { %v2839_v46 = vadd.f32 %v2758_v12, %v13876_v22  ;;  %v10917_v21 = vpop.f32.mrb[173].mxu0  ;;  %v3129_v60 = vpop.f32.mrb[172].mxu1  ;;  %v4148_v22 = vrot.slane %v13851_v27, 2  ;;  %v4150_v27 = vrot.slane %v13880_v29, 2 }
 0x285   : > { %v2761_v4 = vpop.f32.mrb[174].mxu0  ;;  %v11001_v20 = vpop.f32.mrb[173].mxu1 }
 0x286   : > { %v2840_v57 = vadd.f32 %v2761_v4, %v13886_v55  ;;  %v14177_v5 = vadd.f32 %v3129_v60, %v2839_v46  ;;  %v10918_v2 = vpop.f32.mrb[175].mxu0  ;;  %v3132_v23 = vpop.f32.mrb[174].mxu1  ;;  %v4149_v24 = vsel %vm17355_vm4, %v4146_v8, %v4148_v22  ;;  %v12301_v60 = vld [vmem:[#allocation3 + $0x58] sm:$0xff]   ;;  %v4151_v4 = vsel %vm17355_vm4, %v4148_v22, %v4150_v27 }
 0x287   : > { %v11002_v9 = vpop.f32.mrb[175].mxu1  ;;  %11290 = vmatpush3.bf16.msra.mxu1 %v12301_v60 }
 0x288   : > { %v14180_v54 = vadd.f32 %v3132_v23, %v2840_v57  ;;  %11224 = vmatmul.mubr.bf16.gmra.mrb[24].mxu0 %v4147_v44  ;;  %11291 = vmatprep.subr.bf16.mxu1 %v17427_v43 }
 0x289   : > { %11227 = vmatprep.mubr.msk.bf16.mxu0 %vm17358_vm0, %v17427_v43 }
 0x28b   : > { %v2766_v11 = vpop.f32.mrb[176].mxu0 }
 0x28c   : > { %v2841_v3 = vadd.f32 %v2766_v11, %v13906_v39  ;;  %v10921_v55 = vpop.f32.mrb[177].mxu0  ;;  %v3137_v63 = vpop.f32.mrb[176].mxu1 }
 0x28d   : > { %v2769_v14 = vpop.f32.mrb[178].mxu0  ;;  %v11005_v59 = vpop.f32.mrb[177].mxu1 }
 0x28e   : > { %v2842_v38 = vadd.f32 %v2769_v14, %v13912_v19  ;;  %v14188_v51 = vadd.f32 %v3137_v63, %v2841_v3  ;;  %v10922_v61 = vpop.f32.mrb[179].mxu0  ;;  %v3140_v31 = vpop.f32.mrb[178].mxu1  ;;  %v17436_v14 = vld [vmem:[#allocation11_spill] sm:$0xff] }
 0x28f   : > { %v11006_v15 = vpop.f32.mrb[179].mxu1 }
 0x290   : > { %v14190_v12 = vadd.f32 %v3140_v31, %v2842_v38  ;;  %11228 = vmatmul.mubr.bf16.gmra.mrb[28].mxu0 %v4149_v24 }
 0x291   : > { %11231 = vmatprep.mubr.msk.bf16.mxu0 %vm17358_vm0, %v17427_v43 }
 0x293   : > { %v2774_v39 = vpop.f32.mrb[180].mxu0 }
 0x294   : > { %v2843_v46 = vadd.f32 %v2774_v39, %v13928_v34  ;;  %v10925_v21 = vpop.f32.mrb[181].mxu0  ;;  %v3145_v8 = vpop.f32.mrb[180].mxu1  ;;  %v4152_v34 = vrot.slane %v13903_v10, 2  ;;  %v17437_v10 = vld [vmem:[#allocation9_spill] sm:$0xff] }
 0x295   : > { %v2777_v19 = vpop.f32.mrb[182].mxu0  ;;  %v11009_v45 = vpop.f32.mrb[181].mxu1 }
 0x296   : > { %v2844_v20 = vadd.f32 %v2777_v19, %v13935_v30  ;;  %v14198_v44 = vadd.f32 %v3145_v8, %v2843_v46  ;;  %v10926_v57 = vpop.f32.mrb[183].mxu0  ;;  %v3148_v2 = vpop.f32.mrb[182].mxu1  ;;  %v4153_v63 = vsel %vm17355_vm4, %v4150_v27, %v4152_v34 }
 0x297   : > { %v11010_v23 = vpop.f32.mrb[183].mxu1 }
 0x298   : > { %v14201_v29 = vadd.f32 %v3148_v2, %v2844_v20  ;;  %11232 = vmatmul.mubr.bf16.gmra.mrb[32].mxu0 %v4151_v4  ;;  %v12302_v2 = vld [vmem:[#allocation3 + $0x60] sm:$0xff]  }
 0x299   : > { %11235 = vmatprep.mubr.msk.bf16.mxu0 %vm17358_vm0, %v17427_v43  ;;  %11292 = vmatpush3.bf16.msra.mxu1 %v12302_v2  ;;  %v12303_v2 = vld [vmem:[#allocation3 + $0x68] sm:$0xff]  }
 0x29a   : > { %11293 = vmatprep.subr.bf16.mxu1 %v17427_v43 }
 0x29b   : > { %v2782_v9 = vpop.f32.mrb[184].mxu0 }
 0x29c   : > { %v2845_v22 = vadd.f32 %v2782_v9, %v13951_v17  ;;  %v10929_v30 = vpop.f32.mrb[185].mxu0  ;;  %v3153_v11 = vpop.f32.mrb[184].mxu1  ;;  %v4154_v17 = vrot.slane %v17437_v10, 2 }
 0x29d   : > { %v2785_v3 = vpop.f32.mrb[186].mxu0  ;;  %v11013_v55 = vpop.f32.mrb[185].mxu1  ;;  %11294 = vmatpush3.bf16.msra.mxu1 %v12303_v2 }
 0x29e   : > { %v2846_v59 = vadd.f32 %v2785_v3, %v17436_v14  ;;  %v14209_v24 = vadd.f32 %v3153_v11, %v2845_v22  ;;  %v10930_v38 = vpop.f32.mrb[187].mxu0  ;;  %v3156_v61 = vpop.f32.mrb[186].mxu1  ;;  %v4155_v19 = vsel %vm17355_vm4, %v4152_v34, %v4154_v17  ;;  %11295 = vmatprep.subr.bf16.mxu1 %v17427_v43 }
 0x29f   : > { %v11014_v31 = vpop.f32.mrb[187].mxu1 }
 0x2a0   : > { %v14211_v15 = vadd.f32 %v3156_v61, %v2846_v59  ;;  %11236 = vmatmul.mubr.bf16.gmra.mrb[36].mxu0 %v4153_v63 }
 0x2a1   : > { %11239 = vmatprep.mubr.msk.bf16.mxu0 %vm17358_vm0, %v17427_v43 }
 0x2a3   : > { %v2790_v39 = vpop.f32.mrb[188].mxu0 }
 0x2a4   : > { %v2847_v46 = vadd.f32 %v2790_v39, %v13965_v25  ;;  %v10933_v21 = vpop.f32.mrb[189].mxu0  ;;  %v3161_v27 = vpop.f32.mrb[188].mxu1  ;;  %v17438_v25 = vld [vmem:[#allocation10_spill] sm:$0xff] }
 0x2a5   : > { %v2793_v8 = vpop.f32.mrb[190].mxu0  ;;  %v11017_v60 = vpop.f32.mrb[189].mxu1  ;;  %v4156_v22 = vrot.slane %v17438_v25, 2 }
 0x2a6   : > { %v2848_v45 = vadd.f32 %v2793_v8, %v13971_v56  ;;  %v14219_v4 = vadd.f32 %v3161_v27, %v2847_v46  ;;  %v10934_v20 = vpop.f32.mrb[191].mxu0  ;;  %v3164_v57 = vpop.f32.mrb[190].mxu1 }
 0x2a7   : > { %v11018_v23 = vpop.f32.mrb[191].mxu1  ;;  %v4157_v63 = vsel %vm17355_vm4, %v4154_v17, %v4156_v22 }
 0x2a8   : > { %v14221_v9 = vadd.f32 %v3164_v57, %v2848_v45  ;;  %11240 = vmatmul.mubr.bf16.gmra.mrb[40].mxu0 %v4155_v19 }
 0x2a9   : > { %11243 = vmatprep.mubr.msk.bf16.mxu0 %vm17358_vm0, %v17427_v43 }
 0x2ab   : > { %v2798_v34 = vpop.f32.mrb[192].mxu0 }
 0x2ac   : > { %v2849_v56 = vadd.f32 %v2798_v34, %v13987_v26  ;;  %v10937_v30 = vpop.f32.mrb[193].mxu0  ;;  %v3169_v11 = vpop.f32.mrb[192].mxu1  ;;  %v17439_v26 = vld [vmem:[#allocation12_spill] sm:$0xff] }
 0x2ad   : > { %v2801_v3 = vpop.f32.mrb[194].mxu0  ;;  %v11021_v55 = vpop.f32.mrb[193].mxu1  ;;  %v4158_v39 = vrot.slane %v17439_v26, 2 }
 0x2ae   : > { %v2850_v14 = vadd.f32 %v2801_v3, %v13989_v47  ;;  %v14230_v59 = vadd.f32 %v3169_v11, %v2849_v56  ;;  %v10938_v38 = vpop.f32.mrb[195].mxu0  ;;  %v3172_v61 = vpop.f32.mrb[194].mxu1 }
 0x2af   : > { %v11022_v31 = vpop.f32.mrb[195].mxu1  ;;  %v4159_v60 = vsel %vm17355_vm4, %v4156_v22, %v4158_v39 }
 0x2b0   : > { %v14232_v10 = vadd.f32 %v3172_v61, %v2850_v14  ;;  %11244 = vmatmul.mubr.bf16.gmra.mrb[44].mxu0 %v4157_v63 }
 0x2b1   : > { %11247 = vmatprep.mubr.msk.bf16.mxu0 %vm17358_vm0, %v17427_v43 }
 0x2b3   : > { %v2806_v46 = vpop.f32.mrb[196].mxu0 }
 0x2b4   : > { %v2851_v21 = vadd.f32 %v2806_v46, %v14001_v32  ;;  %v10941_v27 = vpop.f32.mrb[197].mxu0  ;;  %v3177_v17 = vpop.f32.mrb[196].mxu1  ;;  %v17440_v32 = vld [vmem:[#allocation13_spill] sm:$0xff] }
 0x2b5   : > { %v2809_v8 = vpop.f32.mrb[198].mxu0  ;;  %v11025_v47 = vpop.f32.mrb[197].mxu1  ;;  %v4160_v34 = vrot.slane %v17440_v32, 2 }
 0x2b6   : > { %v2852_v19 = vadd.f32 %v2809_v8, %v14007_v6  ;;  %v14240_v45 = vadd.f32 %v3177_v17, %v2851_v21  ;;  %v10942_v20 = vpop.f32.mrb[199].mxu0  ;;  %v3180_v57 = vpop.f32.mrb[198].mxu1  ;;  %v12304_v8 = vld [vmem:[#allocation3] sm:$0xff]  }
 0x2b7   : > { %v11026_v23 = vpop.f32.mrb[199].mxu1  ;;  %v4161_v55 = vsel %vm17355_vm4, %v4158_v39, %v4160_v34  ;;  %11368 = vmatpush3.bf16.msra.mxu0 %v12304_v8 }
 0x2b8   : > { %v14242_v25 = vadd.f32 %v3180_v57, %v2852_v19  ;;  %11248 = vmatmul.mubr.bf16.gmra.mrb[48].mxu0 %v4159_v60  ;;  %11369 = vmatprep.subr.bf16.mxu0 %v17427_v43 }
 0x2b9   : > { %11251 = vmatprep.mubr.msk.bf16.mxu0 %vm17358_vm0, %v17427_v43 }
 0x2bb   : > { %v2814_v22 = vpop.f32.mrb[200].mxu0 }
 0x2bc   : > { %v2853_v6 = vadd.f32 %v2814_v22, %v14023_v40  ;;  %v10945_v56 = vpop.f32.mrb[201].mxu0  ;;  %v3185_v30 = vpop.f32.mrb[200].mxu1  ;;  %v17441_v40 = vld [vmem:[#allocation14_spill] sm:$0xff]  ;;  %v12306_v22 = vld [vmem:[#allocation3 + $0x8] sm:$0xff]  }
 0x2bd   : > { %v2817_v11 = vpop.f32.mrb[202].mxu0  ;;  %v11029_v3 = vpop.f32.mrb[201].mxu1  ;;  %v4162_v46 = vrot.slane %v17441_v40, 2  ;;  %11370 = vmatpush3.bf16.msra.mxu0 %v12306_v22 }
 0x2be   : > { %v2854_v63 = vadd.f32 %v2817_v11, %v14025_v28  ;;  %v14251_v14 = vadd.f32 %v3185_v30, %v2853_v6  ;;  %v10946_v38 = vpop.f32.mrb[203].mxu0  ;;  %v3188_v61 = vpop.f32.mrb[202].mxu1  ;;  %v17442_v6 = vld [vmem:[#allocation15_spill] sm:$0xff]  ;;  %11371 = vmatprep.subr.bf16.mxu0 %v17427_v43  ;;  %v12307_v3 = vld [vmem:[#allocation3 + $0x10] sm:$0xff]  }
 0x2bf   : > { %v11030_v31 = vpop.f32.mrb[203].mxu1  ;;  %v4163_v60 = vsel %vm17355_vm4, %v4160_v34, %v4162_v46  ;;  %v4164_v34 = vrot.slane %v17442_v6, 2 }
 0x2c0   : > { %v14253_v26 = vadd.f32 %v3188_v61, %v2854_v63  ;;  %11252 = vmatmul.mubr.bf16.gmra.mrb[52].mxu0 %v4161_v55 }
 0x2c1   : > { %11255 = vmatprep.mubr.msk.bf16.mxu0 %vm17358_vm0, %v17427_v43  ;;  %v4165_v38 = vsel %vm17355_vm4, %v4162_v46, %v4164_v34  ;;  %11372 = vmatpush3.bf16.msra.mxu0 %v12307_v3 }
 0x2c2   : > { %11373 = vmatprep.subr.bf16.mxu0 %v17427_v43 }
 0x2c3   : > { %v3500_v21 = vpop.f32.mrb[204].mxu0 }
 0x2c4   : > { %v3635_v27 = vadd.f32 %v3500_v21, %v14037_v7  ;;  %v11049_v17 = vpop.f32.mrb[205].mxu0  ;;  %v3950_v39 = vpop.f32.mrb[204].mxu1  ;;  %v12305_v7 = vld [vmem:[#allocation3 + $0x70] sm:$0xff]  }
 0x2c5   : > { %v3503_v28 = vpop.f32.mrb[206].mxu0  ;;  %v11133_v47 = vpop.f32.mrb[205].mxu1  ;;  %11296 = vmatpush3.bf16.msra.mxu1 %v12305_v7 }
 0x2c6   : > { %v3636_v19 = vadd.f32 %v3503_v28, %v14043_v16  ;;  %v14261_v20 = vadd.f32 %v3950_v39, %v3635_v27  ;;  %v11050_v57 = vpop.f32.mrb[207].mxu0  ;;  %v3953_v2 = vpop.f32.mrb[206].mxu1  ;;  %11297 = vmatprep.subr.bf16.mxu1 %v17427_v43  ;;  %v17443_v39 = vld [vmem:[#allocation16_spill] sm:$0xff] }
 0x2c7   : > { %v11134_v23 = vpop.f32.mrb[207].mxu1  ;;  %v4166_v8 = vrot.slane %v17443_v39, 2 }
 0x2c8   : > { %v14264_v32 = vadd.f32 %v3953_v2, %v3636_v19  ;;  %11256 = vmatmul.mubr.bf16.gmra.mrb[56].mxu0 %v4163_v60  ;;  %v12309_v60 = vld [vmem:[#allocation3 + $0x20] sm:$0xff]  }
 0x2c9   : > { %11259 = vmatprep.mubr.msk.bf16.mxu0 %vm17358_vm0, %v17427_v43  ;;  %v4167_v2 = vsel %vm17355_vm4, %v4164_v34, %v4166_v8 }
 0x2cb   : > { %v3508_v16 = vpop.f32.mrb[208].mxu0 }
 0x2cc   : > { %v3637_v56 = vadd.f32 %v3508_v16, %v14059_v42  ;;  %v11053_v30 = vpop.f32.mrb[209].mxu0  ;;  %v3958_v11 = vpop.f32.mrb[208].mxu1  ;;  %v12308_v42 = vld [vmem:[#allocation3 + $0x18] sm:$0xff]  }
 0x2cd   : > { %v3511_v55 = vpop.f32.mrb[210].mxu0  ;;  %v11137_v63 = vpop.f32.mrb[209].mxu1  ;;  %11374 = vmatpush3.bf16.msra.mxu0 %v12308_v42  ;;  %v17444_v30 = vld [vmem:[#allocation17_spill] sm:$0xff] }
 0x2ce   : > { %v3638_v61 = vadd.f32 %v3511_v55, %v14061_v37  ;;  %v14274_v31 = vadd.f32 %v3958_v11, %v3637_v56  ;;  %v11054_v40 = vpop.f32.mrb[211].mxu0  ;;  %v3961_v21 = vpop.f32.mrb[210].mxu1  ;;  %11375 = vmatprep.subr.bf16.mxu0 %v17427_v43  ;;  %v4168_v11 = vrot.slane %v17444_v30, 2  ;;  %v12312_v63 = vld [vmem:[#allocation3 + $0x30] sm:$0xff]  }
 0x2cf   : > { %v11138_v27 = vpop.f32.mrb[211].mxu1 }
 0x2d0   : > { %v14277_v17 = vadd.f32 %v3961_v21, %v3638_v61  ;;  %11260 = vmatmul.mubr.bf16.gmra.mrb[60].mxu0 %v4165_v38  ;;  %v4169_v40 = vsel %vm17355_vm4, %v4166_v8, %v4168_v11 }
 0x2d1   : > { %11263 = vmatprep.mubr.msk.bf16.mxu0 %vm17358_vm0, %v17427_v43  ;;  %11376 = vmatpush3.bf16.msra.mxu0 %v12309_v60 }
 0x2d2   : > { %11377 = vmatprep.subr.bf16.mxu0 %v17427_v43 }
 0x2d3   : > { %v3516_v46 = vpop.f32.mrb[212].mxu0 }
 0x2d4   : > { %v3639_v37 = vadd.f32 %v3516_v46, %v14073_v13  ;;  %v11057_v28 = vpop.f32.mrb[213].mxu0  ;;  %v3966_v47 = vpop.f32.mrb[212].mxu1  ;;  %v12311_v13 = vld [vmem:[#allocation3 + $0x28] sm:$0xff]  }
 0x2d5   : > { %v3519_v19 = vpop.f32.mrb[214].mxu0  ;;  %v11141_v57 = vpop.f32.mrb[213].mxu1  ;;  %11378 = vmatpush3.bf16.msra.mxu0 %v12311_v13 }
 0x2d6   : > { %v3640_v23 = vadd.f32 %v3519_v19, %v14079_v50  ;;  %v14286_v7 = vadd.f32 %v3966_v47, %v3639_v37  ;;  %v11058_v22 = vpop.f32.mrb[215].mxu0  ;;  %v3969_v6 = vpop.f32.mrb[214].mxu1  ;;  %11379 = vmatprep.subr.bf16.mxu0 %v17427_v43  ;;  %v12310_v37 = vld [vmem:[#allocation3 + $0x78] sm:$0xff]  }
 0x2d7   : > { %v11142_v16 = vpop.f32.mrb[215].mxu1  ;;  %v17445_v47 = vld [vmem:[#allocation18_spill] sm:$0xff]  ;;  %11298 = vmatpush3.bf16.msra.mxu1 %v12310_v37 }
 0x2d8   : > { %v14289_v56 = vadd.f32 %v3969_v6, %v3640_v23  ;;  %11264 = vmatmul.mubr.bf16.gmra.mrb[64].mxu0 %v4167_v2  ;;  %v4170_v8 = vrot.slane %v17445_v47, 2  ;;  %11451 = vmatprep.subr.bf16.mxu1 %v17427_v43 }
 0x2d9   : > { %11267 = vmatprep.mubr.msk.bf16.mxu0 %vm17358_vm0, %v17427_v43  ;;  %11380 = vmatpush3.bf16.msra.mxu0 %v12312_v63 }
 0x2da   : > { %11381 = vmatprep.subr.bf16.mxu0 %v17427_v43  ;;  %v4171_v22 = vsel %vm17355_vm4, %v4168_v11, %v4170_v8 }
 0x2db   : > { %v3524_v34 = vpop.f32.mrb[216].mxu0 }
 0x2dc   : > { %v3641_v50 = vadd.f32 %v3524_v34, %v14095_v41  ;;  %v11061_v3 = vpop.f32.mrb[217].mxu0  ;;  %v3974_v55 = vpop.f32.mrb[216].mxu1  ;;  %v12313_v41 = vld [vmem:[#allocation3 + $0x38] sm:$0xff]  }
 0x2dd   : > { %v3527_v38 = vpop.f32.mrb[218].mxu0  ;;  %v11145_v61 = vpop.f32.mrb[217].mxu1  ;;  %11382 = vmatpush3.bf16.msra.mxu0 %v12313_v41 }
 0x2de   : > { %v3642_v21 = vadd.f32 %v3527_v38, %v14097_v18  ;;  %v14298_v27 = vadd.f32 %v3974_v55, %v3641_v50  ;;  %v11062_v42 = vpop.f32.mrb[219].mxu0  ;;  %v3977_v39 = vpop.f32.mrb[218].mxu1  ;;  %11535 = vmatprep.subr.bf16.mxu0 %v17427_v43 }
 0x2df   : > { %v11146_v46 = vpop.f32.mrb[219].mxu1 }
 0x2e0   : > { %v14301_v28 = vadd.f32 %v3977_v39, %v3642_v21  ;;  %11268 = vmatmul.mubr.bf16.gmra.mrb[68].mxu0 %v4169_v40 }
 0x2e1   : > { %11271 = vmatprep.mubr.msk.bf16.mxu0 %vm17358_vm0, %v17427_v43 }
 0x2e3   : > { %v3532_v18 = vpop.f32.mrb[220].mxu0 }
 0x2e4   : > { %v3643_v60 = vadd.f32 %v3532_v18, %v14109_v62  ;;  %v11065_v19 = vpop.f32.mrb[221].mxu0  ;;  %v3982_v57 = vpop.f32.mrb[220].mxu1  ;;  %v4172_v62 = vrot.slane %v14092_v0, 2  ;;  %v17446_v0 = vld [vmem:[#allocation19_spill] sm:$0xff] }
 0x2e5   : > { %v3535_v2 = vpop.f32.mrb[222].mxu0  ;;  %v11149_v23 = vpop.f32.mrb[221].mxu1 }
 0x2e6   : > { %v3644_v6 = vadd.f32 %v3535_v2, %v14115_v49  ;;  %v14311_v16 = vadd.f32 %v3982_v57, %v3643_v60  ;;  %v11066_v13 = vpop.f32.mrb[223].mxu0  ;;  %v3985_v30 = vpop.f32.mrb[222].mxu1  ;;  %v4173_v61 = vsel %vm17355_vm4, %v4170_v8, %v4172_v62 }
 0x2e7   : > { %v11150_v34 = vpop.f32.mrb[223].mxu1 }
 0x2e8   : > { %v14313_v50 = vadd.f32 %v3985_v30, %v3644_v6  ;;  %11272 = vmatmul.mubr.bf16.gmra.mrb[72].mxu0 %v4171_v22 }
 0x2e9   : > { %11275 = vmatprep.mubr.msk.bf16.mxu0 %vm17358_vm0, %v17427_v43 }
 0x2eb   : > { %v3540_v3 = vpop.f32.mrb[224].mxu0 }
 0x2ec   : > { %v3645_v55 = vadd.f32 %v3540_v3, %v14130_v48  ;;  %v11069_v63 = vpop.f32.mrb[225].mxu0  ;;  %v3990_v11 = vpop.f32.mrb[224].mxu1  ;;  %v4174_v48 = vrot.slane %v17446_v0, 2 }
 0x2ed   : > { %v3543_v38 = vpop.f32.mrb[226].mxu0  ;;  %v11153_v49 = vpop.f32.mrb[225].mxu1 }
 0x2ee   : > { %v3646_v40 = vadd.f32 %v3543_v38, %v14132_v58  ;;  %v14321_v21 = vadd.f32 %v3990_v11, %v3645_v55  ;;  %v11070_v42 = vpop.f32.mrb[227].mxu0  ;;  %v3993_v39 = vpop.f32.mrb[226].mxu1  ;;  %v4175_v19 = vsel %vm17355_vm4, %v4172_v62, %v4174_v48 }
 0x2ef   : > { %v11154_v46 = vpop.f32.mrb[227].mxu1 }
 0x2f0   : > { %v14323_v37 = vadd.f32 %v3993_v39, %v3646_v40  ;;  %11276 = vmatmul.mubr.bf16.gmra.mrb[76].mxu0 %v4173_v61 }
 0x2f1   : > { %11279 = vmatprep.mubr.msk.bf16.mxu0 %vm17358_vm0, %v17427_v43 }
 0x2f3   : > { %v3548_v41 = vpop.f32.mrb[228].mxu0 }
 0x2f4   : > { %v3647_v47 = vadd.f32 %v3548_v41, %v14143_v35  ;;  %v11073_v18 = vpop.f32.mrb[229].mxu0  ;;  %v3998_v8 = vpop.f32.mrb[228].mxu1 }
 0x2f5   : > { %v3551_v60 = vpop.f32.mrb[230].mxu0  ;;  %v11157_v58 = vpop.f32.mrb[229].mxu1 }
 0x2f6   : > { %v3648_v57 = vadd.f32 %v3551_v60, %v14146_v1  ;;  %v14331_v2 = vadd.f32 %v3998_v8, %v3647_v47  ;;  %v11074_v23 = vpop.f32.mrb[231].mxu0  ;;  %v4001_v22 = vpop.f32.mrb[230].mxu1 }
 0x2f7   : > { %v11158_v6 = vpop.f32.mrb[231].mxu1 }
 0x2f8   : > { %17447 = vst [vmem:[#allocation11_spill] sm:$0xff] %v14331_v2  ;;  %v14333_v13 = vadd.f32 %v4001_v22, %v3648_v57  ;;  %11280 = vmatmul.mubr.bf16.gmra.mrb[80].mxu0 %v4175_v19 }
 0x2f9   : > { %11383 = vmatprep.mubr.msk.bf16.mxu0 %vm17358_vm0, %v17427_v43 }
 0x2fa   : > { %17448 = vst [vmem:[#allocation9_spill] sm:$0xff] %v14333_v13 }
 0x2fb   : > { %v3556_v35 = vpop.f32.mrb[232].mxu0 }
 0x2fc   : > { %v3649_v30 = vadd.f32 %v3556_v35, %v14157_v53  ;;  %v11077_v34 = vpop.f32.mrb[233].mxu0  ;;  %v4006_v3 = vpop.f32.mrb[232].mxu1 }
 0x2fd   : > { %v3559_v55 = vpop.f32.mrb[234].mxu0  ;;  %v11161_v62 = vpop.f32.mrb[233].mxu1 }
 0x2fe   : > { %v3650_v1 = vadd.f32 %v3559_v55, %v14159_v36  ;;  %v14339_v63 = vadd.f32 %v4006_v3, %v3649_v30  ;;  %v11078_v11 = vpop.f32.mrb[235].mxu0  ;;  %v4009_v38 = vpop.f32.mrb[234].mxu1  ;;  %v280_v55 = vlaneseq }
 0x2ff   : > { %v11162_v49 = vpop.f32.mrb[235].mxu1 }
 0x300   : > { %17449 = vst [vmem:[#allocation10_spill] sm:$0xff] %v14339_v63  ;;  %v14341_v61 = vadd.f32 %v4009_v38, %v3650_v1 }
 0x302   : > { %17450 = vst [vmem:[#allocation12_spill] sm:$0xff] %v14341_v61 }
 0x303   : > { %v3564_v40 = vpop.f32.mrb[236].mxu0 }
 0x304   : > { %v3651_v42 = vadd.f32 %v3564_v40, %v14167_v33  ;;  %v11081_v39 = vpop.f32.mrb[237].mxu0  ;;  %v4014_v46 = vpop.f32.mrb[236].mxu1 }
 0x305   : > { %v3567_v0 = vpop.f32.mrb[238].mxu0  ;;  %v11165_v53 = vpop.f32.mrb[237].mxu1 }
 0x306   : > { %v3652_v48 = vadd.f32 %v3567_v0, %v14169_v52  ;;  %v14345_v41 = vadd.f32 %v4014_v46, %v3651_v42  ;;  %v11082_v47 = vpop.f32.mrb[239].mxu0  ;;  %v4017_v36 = vpop.f32.mrb[238].mxu1  ;;  %v14359_v46 = vshrl.u32 %v280_v55, 7 }
 0x307   : > { %v11166_v18 = vpop.f32.mrb[239].mxu1 }
 0x308   : > { %17451 = vst [vmem:[#allocation13_spill] sm:$0xff] %v14345_v41  ;;  %v14347_v8 = vadd.f32 %v4017_v36, %v3652_v48  ;;  %v282_v48 = vadd.s32 8, %v14359_v46 }
 0x30a   : > { %17452 = vst [vmem:[#allocation14_spill] sm:$0xff] %v14347_v8 }
 0x30b   : > { %v3572_v60 = vpop.f32.mrb[240].mxu0 }
 0x30c   : > { %v3653_v58 = vadd.f32 %v3572_v60, %v14177_v5  ;;  %v11085_v19 = vpop.f32.mrb[241].mxu0  ;;  %v4022_v57 = vpop.f32.mrb[240].mxu1 }
 0x30d   : > { %v3575_v23 = vpop.f32.mrb[242].mxu0  ;;  %v11169_v33 = vpop.f32.mrb[241].mxu1 }
 0x30e   : > { %v3654_v22 = vadd.f32 %v3575_v23, %v14180_v54  ;;  %v14351_v6 = vadd.f32 %v4022_v57, %v3653_v58  ;;  %v11086_v35 = vpop.f32.mrb[243].mxu0  ;;  %v4025_v52 = vpop.f32.mrb[242].mxu1 }
 0x30f   : > { %v11170_v30 = vpop.f32.mrb[243].mxu1 }
 0x310   : > { %17453 = vst [vmem:[#allocation15_spill] sm:$0xff] %v14351_v6  ;;  %v14353_v34 = vadd.f32 %v4025_v52, %v3654_v22  ;;  %v14372_v35 = vmul.u32.u64.low 4042322161, %v282_v48  ;;  %v14373_v52 = vmul.u32.u64.high 4042322161, %v282_v48, %v14372_v35 }
 0x311   : > { %v14410_v35 = vadd.s32 48, %v14359_v46 }
 0x312   : > { %17454 = vst [vmem:[#allocation16_spill] sm:$0xff] %v14353_v34 }
 0x313   : > { %v3580_v3 = vpop.f32.mrb[244].mxu0 }
 0x314   : > { %v3655_v62 = vadd.f32 %v3580_v3, %v14188_v51  ;;  %v11089_v1 = vpop.f32.mrb[245].mxu0  ;;  %v4030_v11 = vpop.f32.mrb[244].mxu1  ;;  %v14381_v3 = vadd.s32 24, %v14359_v46 }
 0x315   : > { %v3583_v5 = vpop.f32.mrb[246].mxu0  ;;  %v11173_v38 = vpop.f32.mrb[245].mxu1 }
 0x316   : > { %v3656_v49 = vadd.f32 %v3583_v5, %v14190_v12  ;;  %v14357_v40 = vadd.f32 %v4030_v11, %v3655_v62  ;;  %v11090_v54 = vpop.f32.mrb[247].mxu0  ;;  %v4033_v42 = vpop.f32.mrb[246].mxu1  ;;  %v14366_v12 = vmul.u32.u64.low 4042322161, %v14359_v46  ;;  %v14367_v58 = vmul.u32.u64.high 4042322161, %v14359_v46, %v14366_v12 }
 0x317   : > { %v11174_v39 = vpop.f32.mrb[247].mxu1 }
 0x318   : > { %17455 = vst [vmem:[#allocation17_spill] sm:$0xff] %v14357_v40  ;;  %v14361_v0 = vadd.f32 %v4033_v42, %v3656_v49  ;;  %v321_v38 = vshrl.u32 %v14367_v58, 4 }
 0x31a   : > { %17456 = vst [vmem:[#allocation18_spill] sm:$0xff] %v14361_v0  ;;  %v322_v58 = vmul.u32 17, %v321_v38 }
 0x31b   : > { %v3588_v53 = vpop.f32.mrb[248].mxu0 }
 0x31c   : > { %v3657_v51 = vadd.f32 %v3588_v53, %v14198_v44  ;;  %v11093_v47 = vpop.f32.mrb[249].mxu0  ;;  %v4038_v36 = vpop.f32.mrb[248].mxu1  ;;  %v14378_v44 = vadd.s32 16, %v14359_v46 }
 0x31d   : > { %v3591_v18 = vpop.f32.mrb[250].mxu0  ;;  %v11177_v60 = vpop.f32.mrb[249].mxu1 }
 0x31e   : > { %v3658_v19 = vadd.f32 %v3591_v18, %v14201_v29  ;;  %v14370_v57 = vadd.f32 %v4038_v36, %v3657_v51  ;;  %v11094_v23 = vpop.f32.mrb[251].mxu0  ;;  %v4041_v33 = vpop.f32.mrb[250].mxu1  ;;  %v14386_v49 = vmul.u32.u64.low 4042322161, %v14378_v44  ;;  %v14387_v54 = vmul.u32.u64.high 4042322161, %v14378_v44, %v14386_v49 }
 0x31f   : > { %v11178_v22 = vpop.f32.mrb[251].mxu1  ;;  %v14393_v47 = vmul.u32.u64.low 4042322161, %v14381_v3  ;;  %v14394_v36 = vmul.u32.u64.high 4042322161, %v14381_v3, %v14393_v47  ;;  %v332_v18 = vshrl.u32 %v14373_v52, 4  ;;  %v14398_v60 = vadd.s32 32, %v14359_v46 }
 0x320   : > { %17457 = vst [vmem:[#allocation19_spill] sm:$0xff] %v14370_v57  ;;  %v14375_v30 = vadd.f32 %v4041_v33, %v3658_v19  ;;  %v14403_v19 = vadd.s32 40, %v14359_v46 }
 0x321   : > { %v333_v23 = vmul.u32 17, %v332_v18  ;;  %v14406_v33 = vmul.u32.u64.low 4042322161, %v14398_v60  ;;  %v14407_v22 = vmul.u32.u64.high 4042322161, %v14398_v60, %v14406_v33 }
 0x322   : > { %17458 = vst [vmem:[#allocation20_spill] sm:$0xff] %v14375_v30  ;;  %v14418_v38 = vmul.u32.u64.low 4042322161, %v14403_v19  ;;  %v14419_v49 = vmul.u32.u64.high 4042322161, %v14403_v19, %v14418_v38 }
 0x323   : > { %v3596_v55 = vpop.f32.mrb[252].mxu0 }
 0x324   : > { %v3659_v62 = vadd.f32 %v3596_v55, %v14209_v24  ;;  %v11097_v29 = vpop.f32.mrb[253].mxu0  ;;  %v4046_v1 = vpop.f32.mrb[252].mxu1 }
 0x325   : > { %v3599_v11 = vpop.f32.mrb[254].mxu0  ;;  %v11181_v5 = vpop.f32.mrb[253].mxu1 }
 0x326   : > { %v3660_v42 = vadd.f32 %v3599_v11, %v14211_v15  ;;  %v14390_v39 = vadd.f32 %v4046_v1, %v3659_v62  ;;  %v11098_v53 = vpop.f32.mrb[255].mxu0  ;;  %v4049_v51 = vpop.f32.mrb[254].mxu1  ;;  %v14414_v11 = vsub.s32 %v14359_v46, %v322_v58  ;;  %v343_v5 = vshrl.u32 %v14387_v54, 4 }
 0x327   : > { %v11182_v24 = vpop.f32.mrb[255].mxu1  ;;  %v14428_v58 = vsub.s32 %v282_v48, %v333_v23  ;;  %v365_v48 = vshrl.u32 %v14407_v22, 4 }
 0x328   : > { %17459 = vst [vmem:[#allocation21_spill] sm:$0xff] %v14390_v39  ;;  %v14400_v12 = vadd.f32 %v4049_v51, %v3660_v42  ;;  %v14426_v24 = vadd.s32 56, %v14359_v46  ;;  %vm689_vm5 = vcmp.ne.s32.totalorder %v14414_v11, 0  ;;  %vm723_vm6 = vcmp.lt.s32.totalorder %v14414_v11, 0 }
 0x329   : > { %vm690_vm7 = vcmp.ne.s32.totalorder %v14428_v58, 0  ;;  %vm724_vm8 = vcmp.lt.s32.totalorder %v14428_v58, 0  ;;  %vm14453_vm9 = vmand %vm723_vm6, %vm689_vm5 }
 0x32a   : > { %17460 = vst [vmem:[#allocation22_spill] sm:$0xff] %v14400_v12  ;;  %vm14470_vm10 = vmand %vm724_vm8, %vm690_vm7 }
 0x32b   : > { %v3604_v15 = vpop.f32.mrb[0].mxu0 }
 0x32c   : > { %v3661_v52 = vadd.f32 %v3604_v15, %v14219_v4  ;;  %v11101_v55 = vpop.f32.mrb[1].mxu0  ;;  %v4054_v62 = vpop.f32.mrb[0].mxu1  ;;  %v354_v4 = vshrl.u32 %v14394_v36, 4  ;;  %v14431_v54 = vmul.u32.u64.low 4042322161, %v14410_v35  ;;  %v14432_v15 = vmul.u32.u64.high 4042322161, %v14410_v35, %v14431_v54 }
 0x32d   : > { %v3607_v29 = vpop.f32.mrb[2].mxu0  ;;  %v11185_v1 = vpop.f32.mrb[1].mxu1  ;;  %v14439_v36 = vmul.u32.u64.low 4042322161, %v14426_v24  ;;  %v14440_v55 = vmul.u32.u64.high 4042322161, %v14426_v24, %v14439_v36 }
 0x32e   : > { %v3662_v42 = vadd.f32 %v3607_v29, %v14221_v9  ;;  %v14422_v53 = vadd.f32 %v4054_v62, %v3661_v52  ;;  %v11102_v51 = vpop.f32.mrb[3].mxu0  ;;  %v4057_v47 = vpop.f32.mrb[2].mxu1  ;;  %v344_v9 = vmul.u32 17, %v343_v5  ;;  %v355_v52 = vmul.u32 17, %v354_v4 }
 0x32f   : > { %v11186_v18 = vpop.f32.mrb[3].mxu1  ;;  %v14447_v5 = vadd.s32 17, %v14414_v11 }
 0x330   : > { %17461 = vst [vmem:[#allocation23_spill] sm:$0xff] %v14422_v53  ;;  %v14434_v33 = vadd.f32 %v4057_v47, %v3662_v42  ;;  %v14458_v47 = vadd.s32 17, %v14428_v58 }
 0x332   : > { %17462 = vst [vmem:[#allocation24_spill] sm:$0xff] %v14434_v33 }
 0x333   : > { %v3612_v62 = vpop.f32.mrb[4].mxu0 }
 0x334   : > { %v3663_v23 = vadd.f32 %v3612_v62, %v14230_v59  ;;  %v11105_v29 = vpop.f32.mrb[5].mxu0  ;;  %v4062_v1 = vpop.f32.mrb[4].mxu1  ;;  %v14461_v59 = vsub.s32 %v14378_v44, %v344_v9  ;;  %v14475_v62 = vsub.s32 %v14381_v3, %v355_v52  ;;  %v376_v44 = vshrl.u32 %v14419_v49, 4 }
 0x335   : > { %v3615_v38 = vpop.f32.mrb[6].mxu0  ;;  %v11189_v42 = vpop.f32.mrb[5].mxu1  ;;  %v366_v29 = vmul.u32 17, %v365_v48  ;;  %v14495_v49 = vadd.s32 72, %v14359_v46  ;;  %v398_v48 = vshrl.u32 %v14440_v55, 4 }
 0x336   : > { %v3664_v22 = vadd.f32 %v3615_v38, %v14232_v10  ;;  %v14464_v4 = vadd.f32 %v4062_v1, %v3663_v23  ;;  %v11106_v18 = vpop.f32.mrb[7].mxu0  ;;  %v4065_v54 = vpop.f32.mrb[6].mxu1  ;;  %v387_v10 = vshrl.u32 %v14432_v15, 4  ;;  %v4791_v38 = vld [vmem:[#allocation2 + $0x4] sm:$0x8]  ;;  %vm691_vm11 = vcmp.ne.s32.totalorder %v14461_v59, 0 }
 0x337   : > { %v11190_v9 = vpop.f32.mrb[7].mxu1  ;;  %v4792_v42 = vld [vmem:[#allocation2 + $0x8] sm:$0xf]  ;;  %v14486_v18 = vadd.s32 64, %v14359_v46  ;;  %vm725_vm12 = vcmp.lt.s32.totalorder %v14461_v59, 0  ;;  %v14498_v15 = vadd.s32 17, %v14461_v59 }
 0x338   : > { %17465 = vst [vmem:[#allocation25_spill] sm:$0xff] %v14464_v4  ;;  %v14479_v23 = vadd.f32 %v4065_v54, %v3664_v22  ;;  %vm692_vm13 = vcmp.ne.s32.totalorder %v14475_v62, 0  ;;  %v377_v52 = vmul.u32 17, %v376_v44  ;;  %vm726_vm14 = vcmp.lt.s32.totalorder %v14475_v62, 0  ;;  %vm14578_vm7 = vmand %vm725_vm12, %vm691_vm11 }
 0x339   : > { %v14504_v54 = vsub.s32 %v14398_v60, %v366_v29  ;;  %v388_v9 = vmul.u32 17, %v387_v10  ;;  %v14506_v3 = vcombine.low %v4791_v38, %v4792_v42  ;;  %v14514_v44 = vadd.s32 80, %v14359_v46  ;;  %vm14589_vm1 = vmand %vm726_vm14, %vm692_vm13 }
 0x33a   : > { %17468 = vst [vmem:[#allocation26_spill] sm:$0xff] %v14479_v23  ;;  %v14510_v33 = vmul.u32.u64.low 4042322161, %v14486_v18  ;;  %v14511_v53 = vmul.u32.u64.high 4042322161, %v14486_v18, %v14510_v33  ;;  %v14517_v39 = vadd.s32 17, %v14475_v62  ;;  %v14530_v42 = vsub.s32 %v14403_v19, %v377_v52 }
 0x33b   : > { %v3620_v22 = vpop.f32.mrb[8].mxu0  ;;  %v14520_v60 = vmul.u32.u64.low 4042322161, %v14495_v49  ;;  %v14521_v29 = vmul.u32.u64.high 4042322161, %v14495_v49, %v14520_v60  ;;  %vm693_vm15 = vcmp.ne.s32.totalorder %v14504_v54, 0  ;;  %vm727_vm3 = vcmp.lt.s32.totalorder %v14504_v54, 0 }
 0x33c   : > { %v3665_v1 = vadd.f32 %v3620_v22, %v14240_v45  ;;  %v11109_v23 = vpop.f32.mrb[9].mxu0  ;;  %v4070_v4 = vpop.f32.mrb[8].mxu1  ;;  %v14524_v45 = vadd.s32 88, %v14359_v46  ;;  %v4950_v60 = vshrl.u32 %v14506_v3, 16  ;;  %v4953_v30 = vshll.u32 %v14506_v3, 16  ;;  %vm14608_vm11 = vmand %vm727_vm3, %vm693_vm15 }
 0x33d   : > { %v3623_v55 = vpop.f32.mrb[10].mxu0  ;;  %v11193_v12 = vpop.f32.mrb[9].mxu1  ;;  %v14546_v19 = vadd.s32 17, %v14504_v54  ;;  %vm694_vm5 = vcmp.ne.s32.totalorder %v14530_v42, 0  ;;  %vm728_vm6 = vcmp.lt.s32.totalorder %v14530_v42, 0  ;;  %v827_v51 = vsel %vm14578_vm7, %v14498_v15, %v14461_v59 }
 0x33e   : > { %v3666_v10 = vadd.f32 %v3623_v55, %v14242_v25  ;;  %v14527_v23 = vadd.f32 %v4070_v4, %v3665_v1  ;;  %v11110_v33 = vpop.f32.mrb[11].mxu0  ;;  %v4073_v38 = vpop.f32.mrb[10].mxu1  ;;  %v399_v12 = vmul.u32 17, %v398_v48  ;;  %v14539_v25 = vsub.s32 %v14410_v35, %v388_v9  ;;  %vm14618_vm14 = vmand %vm728_vm6, %vm694_vm5 }
 0x33f   : > { %v11194_v22 = vpop.f32.mrb[11].mxu1  ;;  %v14542_v4 = vmul.u32.u64.low 4042322161, %v14514_v44  ;;  %v14543_v1 = vmul.u32.u64.high 4042322161, %v14514_v44, %v14542_v4  ;;  %v14549_v52 = vmul.u32.u64.low 4042322161, %v14524_v45  ;;  %v14550_v48 = vmul.u32.u64.high 4042322161, %v14524_v45, %v14549_v52 }
 0x340   : > { %17469 = vst [vmem:[#allocation27_spill] sm:$0xff] %v14527_v23  ;;  %v14536_v57 = vadd.f32 %v4073_v38, %v3666_v10  ;;  %v14553_v55 = vadd.s32 96, %v14359_v46  ;;  %v14558_v35 = vadd.s32 17, %v14530_v42  ;;  %v14561_v9 = vsub.s32 %v14426_v24, %v399_v12 }
 0x341   : > { %v14563_v33 = vrot.slane %v4950_v60, 3  ;;  %v14565_v38 = vrot.slane %v4953_v30, 4  ;;  %v14568_v22 = vadd.s32 104, %v14359_v46  ;;  %v14571_v4 = vadd.s32 112, %v14359_v46 }
 0x342   : > { %17470 = vst [vmem:[#allocation28_spill] sm:$0xff] %v14536_v57  ;;  %vm695_vm8 = vcmp.ne.s32.totalorder %v14539_v25, 0  ;;  %vm729_vm4 = vcmp.lt.s32.totalorder %v14539_v25, 0  ;;  %v409_v30 = vshrl.u32 %v14511_v53, 4  ;;  %vm696_vm12 = vcmp.ne.s32.totalorder %v14561_v9, 0 }
 0x343   : > { %v3628_v10 = vpop.f32.mrb[12].mxu0  ;;  %v14598_v0 = vmul.u32.u64.low 4042322161, %v14553_v55  ;;  %v14599_v40 = vmul.u32.u64.high 4042322161, %v14553_v55, %v14598_v0  ;;  %vm730_vm13 = vcmp.lt.s32.totalorder %v14561_v9, 0  ;;  %vm14636_vm15 = vmand %vm729_vm4, %vm695_vm8  ;;  %v14641_v41 = vadd.s32 17, %v14561_v9 }
 0x344   : > { %v3667_v52 = vadd.f32 %v3628_v10, %v14251_v14  ;;  %v11113_v57 = vpop.f32.mrb[13].mxu0  ;;  %v4078_v23 = vpop.f32.mrb[12].mxu1  ;;  %v420_v10 = vshrl.u32 %v14521_v29, 4  ;;  %v410_v61 = vmul.u32 17, %v409_v30  ;;  %vm14665_vm5 = vmand %vm730_vm13, %vm696_vm12  ;;  %v431_v30 = vshrl.u32 %v14543_v1, 4 }
 0x345   : > { %v3631_v12 = vpop.f32.mrb[14].mxu0  ;;  %v11197_v60 = vpop.f32.mrb[13].mxu1  ;;  %v14594_v57 = vadd.s32 17, %v14539_v25  ;;  %v442_v36 = vshrl.u32 %v14550_v48, 4  ;;  %v14681_v15 = vadd.s32 120, %v14359_v46  ;;  %v14699_v14 = vadd.s32 128, %v14359_v46 }
 0x346   : > { %v3668_v53 = vadd.f32 %v3631_v12, %v14253_v26  ;;  %v14602_v60 = vadd.f32 %v4078_v23, %v3667_v52  ;;  %v11114_v34 = vpop.f32.mrb[15].mxu0  ;;  %v4081_v6 = vpop.f32.mrb[14].mxu1  ;;  %v14627_v29 = vmul.u32.u64.low 4042322161, %v14571_v4  ;;  %v14628_v23 = vmul.u32.u64.high 4042322161, %v14571_v4, %v14627_v29  ;;  %v14686_v1 = vld [vmem:[%s17316_s2] ss:$0 sm:$0xff] }
 0x347   : > { %v14623_v34 = vmul.u32.u64.low 4042322161, %v14568_v22  ;;  %v14624_v0 = vmul.u32.u64.high 4042322161, %v14568_v22, %v14623_v34  ;;  %v11198_v52 = vpop.f32.mrb[15].mxu1  ;;  %v14710_v59 = vadd.s32 136, %v14359_v46  ;;  %vm5347_vm13 = vcmask 1044480  }
 0x348   : > { %17475 = vst [vmem:[#allocation29_spill] sm:$0xff] %v14602_v60  ;;  %v14630_v12 = vadd.f32 %v4081_v6, %v3668_v53  ;;  %v17483_v34 = vsel %vm14453_vm9, %v14447_v5, %v14414_v11  ;;  %v17486_v53 = vsel %vm14470_vm10, %v14458_v47, %v14428_v58  ;;  %v421_v5 = vmul.u32 17, %v420_v10 }
 0x349   : > { %vm14648_vm3 = vcmp.eq.s32.totalorder %v17483_v34, 16  ;;  %vm14657_vm4 = vcmp.eq.s32.totalorder %v17486_v53, 16  ;;  %v828_v58 = vsel %vm14589_vm1, %v14517_v39, %v14475_v62  ;;  %v14707_v53 = vsub.s32 %v14486_v18, %v410_v61 }
 0x34a   : > { %17480 = vst [vmem:[#allocation30_spill] sm:$0xff] %v14630_v12  ;;  %v14713_v48 = vsub.s32 %v14495_v49, %v421_v5  ;;  %v432_v39 = vmul.u32 17, %v431_v30  ;;  %v443_v47 = vmul.u32 17, %v442_v36  ;;  %v464_v18 = vshrl.u32 %v14624_v0, 4 }
 0x34b   : > { %v4275_v24 = vpop.f32.mrb[16].mxu0  ;;  %v14719_v34 = vmul.u32.u64.low 4042322161, %v14681_v15  ;;  %v14720_v61 = vmul.u32.u64.high 4042322161, %v14681_v15, %v14719_v34  ;;  %v475_v63 = vshrl.u32 %v14628_v23, 4  ;;  %vm14733_vm1 = vcmp.eq.s32.totalorder %v827_v51, 16 }
 0x34c   : > { %v4410_v10 = vadd.f32 %v4275_v24, %v14261_v20  ;;  %v11217_v52 = vpop.f32.mrb[17].mxu0  ;;  %v453_v20 = vshrl.u32 %v14599_v40, 4  ;;  %v14725_v49 = vmul.u32.u64.low 4042322161, %v14699_v14  ;;  %v14726_v5 = vmul.u32.u64.high 4042322161, %v14699_v14, %v14725_v49 }
 0x34d   : > { %v4278_v62 = vpop.f32.mrb[18].mxu0  ;;  %vm14737_vm9 = vcmp.eq.s32.totalorder %v828_v58, 16  ;;  %vm697_vm10 = vcmp.ne.s32.totalorder %v14707_v53, 0  ;;  %vm731_vm6 = vcmp.lt.s32.totalorder %v14707_v53, 0  ;;  %v14744_v0 = vadd.s32 17, %v14707_v53 }
 0x34e   : > { %v4451_v24 = vadd.f32 %v14686_v1, %v4410_v10  ;;  %v4411_v52 = vadd.f32 %v4278_v62, %v14264_v32  ;;  %v11218_v12 = vpop.f32.mrb[19].mxu0  ;;  %v14730_v36 = vmul.u32.u64.low 4042322161, %v14710_v59  ;;  %v14731_v10 = vmul.u32.u64.high 4042322161, %v14710_v59, %v14730_v36  ;;  %vm14766_vm12 = vmand %vm731_vm6, %vm697_vm10 }
 0x34f   : > { %v14747_v23 = vadd.s32 144, %v14359_v46  ;;  %vm698_vm7 = vcmp.ne.s32.totalorder %v14713_v48, 0  ;;  %vm732_vm8 = vcmp.lt.s32.totalorder %v14713_v48, 0  ;;  %v454_v51 = vmul.u32 17, %v453_v20  ;;  %v12322_v20 = vld [vmem:[#allocation3 + $0x88] sm:$0xff]  }
 0x350   : > { %v4485_v30 = vmax.f32 %v4451_v24, 0.0  ;;  %v4452_v40 = vadd.f32 %v14686_v1, %v4411_v52  ;;  %v14752_v34 = vadd.s32 17, %v14713_v48  ;;  %v14755_v24 = vsub.s32 %v14514_v44, %v432_v39 }
 0x351   : > { %v465_v52 = vmul.u32 17, %v464_v18  ;;  %v476_v49 = vmul.u32 17, %v475_v63  ;;  %v14771_v44 = vsub.s32 %v14524_v45, %v443_v47  ;;  %v486_v45 = vshrl.u32 %v14720_v61, 4 }
 0x352   : > { %v4486_v62 = vmax.f32 %v4452_v40, 0.0  ;;  %v4587_v36 = vsel %vm14648_vm3, 0.0, %v4485_v30  ;;  %v14774_v39 = vmul.u32.u64.low 4042322161, %v14747_v23  ;;  %v14775_v29 = vmul.u32.u64.high 4042322161, %v14747_v23, %v14774_v39 }
 0x353   : > { %v4283_v58 = vpop.f32.mrb[20].mxu0  ;;  %vm699_vm3 = vcmp.ne.s32.totalorder %v14755_v24, 0  ;;  %v14801_v61 = vadd.s32 17, %v14755_v24  ;;  %vm700_vm2 = vcmp.ne.s32.totalorder %v14771_v44, 0  ;;  %vm734_vm0 = vcmp.lt.s32.totalorder %v14771_v44, 0 }
 0x354   : > { %v4588_v40 = vsel %vm14657_vm4, 0.0, %v4486_v62  ;;  %v4412_v13 = vadd.f32 %v4283_v58, %v14274_v31  ;;  %v11221_v2 = vpop.f32.mrb[21].mxu0  ;;  %v14778_v31 = vadd.s32 152, %v14359_v46  ;;  %v14783_v62 = vsub.s32 %v14553_v55, %v454_v51 }
 0x355   : > { %v9797_v63 = vpack.c.bf16 %v4588_v40, %v4587_v36  ;;  %v4286_v6 = vpop.f32.mrb[22].mxu0  ;;  %v14791_v58 = vsub.s32 %v14568_v22, %v465_v52  ;;  %v14794_v36 = vsub.s32 %v14571_v4, %v476_v49  ;;  %vm733_vm4 = vcmp.lt.s32.totalorder %v14755_v24, 0  ;;  %v12317_v52 = vld [vmem:[#allocation3 + $0x80] sm:$0xff]  }
 0x356   : > { %v4453_v2 = vadd.f32 %v14686_v1, %v4412_v13  ;;  %v4413_v18 = vadd.f32 %v4286_v6, %v14277_v17  ;;  %v11222_v30 = vpop.f32.mrb[23].mxu0  ;;  %v497_v17 = vshrl.u32 %v14726_v5, 4  ;;  %v508_v51 = vshrl.u32 %v14731_v10, 4 }
 0x357   : > { %10028 = vst [vmem:[#allocation2 + $0x10] sm:$0xff] %v9797_v63   ;;  %v17497_v22 = vsel %vm14608_vm11, %v14546_v19, %v14504_v54  ;;  %v17500_v5 = vsel %vm14618_vm14, %v14558_v35, %v14530_v42  ;;  %v14825_v8 = vadd.s32 17, %v14771_v44  ;;  %v14832_v26 = vadd.s32 160, %v14359_v46  ;;  %vm14854_vm11 = vmand %vm732_vm8, %vm698_vm7 }
 0x358   : > { %v4487_v13 = vmax.f32 %v4453_v2, 0.0  ;;  %v4454_v55 = vadd.f32 %v14686_v1, %v4413_v18  ;;  %vm14809_vm10 = vcmp.eq.s32.totalorder %v17497_v22, 16  ;;  %vm14818_vm6 = vcmp.eq.s32.totalorder %v17500_v5, 16 }
 0x359   : > { %v14828_v54 = vmul.u32.u64.low 4042322161, %v14778_v31  ;;  %v14829_v19 = vmul.u32.u64.high 4042322161, %v14778_v31, %v14828_v54  ;;  %v487_v42 = vmul.u32 17, %v486_v45  ;;  %v14837_v49 = vadd.s32 17, %v14783_v62  ;;  %v4793_v45 = vld [vmem:[#allocation2 + $0xc] sm:$0xf] }
 0x35a   : > { %v4488_v10 = vmax.f32 %v4454_v55, 0.0  ;;  %v14840_v40 = vadd.s32 17, %v14791_v58  ;;  %v14843_v63 = vadd.s32 17, %v14794_v36  ;;  %v498_v6 = vmul.u32 17, %v497_v17 }
 0x35b   : > { %v4291_v35 = vpop.f32.mrb[24].mxu0  ;;  %v4589_v39 = vsel %vm14733_vm1, 0.0, %v4487_v13  ;;  %vm4948_vm14 = vsmask.f32 4352  ;;  %v509_v17 = vmul.u32 17, %v508_v51  ;;  %v519_v13 = vshrl.u32 %v14775_v29, 4  ;;  %vm14938_vm1 = vmand %vm733_vm4, %vm699_vm3 }
 0x35c   : > { %v4590_v2 = vsel %vm14737_vm9, 0.0, %v4488_v10  ;;  %v4414_v18 = vadd.f32 %v4291_v35, %v14286_v7  ;;  %v11225_v30 = vpop.f32.mrb[25].mxu0  ;;  %v14860_v12 = vmul.u32.u64.low 4042322161, %v14832_v26  ;;  %v14861_v5 = vmul.u32.u64.high 4042322161, %v14832_v26, %v14860_v12  ;;  %vm14954_vm3 = vmand %vm734_vm0, %vm700_vm2 }
 0x35d   : > { %v9802_v22 = vpack.c.bf16 %v4590_v2, %v4589_v39  ;;  %v4294_v32 = vpop.f32.mrb[26].mxu0  ;;  %v14870_v47 = vsub.s32 %v14681_v15, %v487_v42  ;;  %v14873_v51 = vadd.s32 168, %v14359_v46  ;;  %v14885_v2 = vsub.s32 %v14699_v14, %v498_v6 }
 0x35e   : > { %v4455_v7 = vadd.f32 %v14686_v1, %v4414_v18  ;;  %v4415_v54 = vadd.f32 %v4294_v32, %v14289_v56  ;;  %v11226_v10 = vpop.f32.mrb[27].mxu0  ;;  %v14865_v35 = vld [vmem:[#allocation2 + $0x10] sm:$0xf]  ;;  %v14867_v30 = vld [vmem:[#allocation2 + $0x14] sm:$0xf]  ;;  %v17507_v14 = vsel %vm14636_vm15, %v14594_v57, %v14539_v25  ;;  %vm703_vm15 = vcmp.ne.s32.totalorder %v14794_v36, 0 }
 0x35f   : > { %10029 = vst [vmem:[#allocation2 + $0x18] sm:$0xff] %v9802_v22   ;;  %v14876_v29 = vcombine.low %v4793_v45, %v14865_v35  ;;  %v14887_v15 = vld [vmem:[#allocation2 + $0x10] sm:$0xf]  ;;  %v14889_v42 = vld [vmem:[#allocation2 + $0x14] sm:$0xf]  ;;  %v14895_v45 = vsub.s32 %v14710_v59, %v509_v17  ;;  %vm14904_vm7 = vcmp.eq.s32.totalorder %v17507_v14, 16  ;;  %v17510_v59 = vsel %vm14665_vm5, %v14641_v41, %v14561_v9 }
 0x360   : > { %17505 = vst [vmem:[#allocation31_spill] sm:$0xff] %v14887_v15  ;;  %17506 = vst [vmem:[#allocation32_spill] sm:$0xff] %v14889_v42  ;;  %v4489_v18 = vmax.f32 %v4455_v7, 0.0  ;;  %v4456_v22 = vadd.f32 %v14686_v1, %v4415_v54  ;;  %vm14914_vm8 = vcmp.eq.s32.totalorder %v17510_v59, 16  ;;  %vm737_vm9 = vcmp.lt.s32.totalorder %v14794_v36, 0  ;;  %v12349_v57 = vld [vmem:[#allocation3 + $0xc0] sm:$0xff]  }
 0x361   : > { %v17360_v12 = vrot.slane %v14876_v29, 3  ;;  %v4958_v60 = vshrl.u32 %v14876_v29, 16  ;;  %v4961_v7 = vshll.u32 %v14876_v29, 16  ;;  %v530_v25 = vshrl.u32 %v14829_v19, 4  ;;  %v12327_v17 = vld [vmem:[#allocation3 + $0x90] sm:$0xff]  }
 0x362   : > { %v4490_v54 = vmax.f32 %v4456_v22, 0.0  ;;  %v520_v41 = vmul.u32 17, %v519_v13  ;;  %v14926_v9 = vmul.u32.u64.low 4042322161, %v14873_v51  ;;  %v14927_v11 = vmul.u32.u64.high 4042322161, %v14873_v51, %v14926_v9  ;;  %v12334_v22 = vld [vmem:[#allocation3 + $0x98] sm:$0xff]  }
 0x363   : > { %v4299_v10 = vpop.f32.mrb[28].mxu0  ;;  %v17513_v14 = vrot.slane %v14506_v3, 3  ;;  %v4960_v32 = vrot.slane %v4958_v60, 3  ;;  %v4963_v19 = vrot.slane %v4961_v7, 4  ;;  %v14943_v13 = vadd.s32 17, %v14870_v47 }
 0x364   : > { %v4591_v9 = vsel %vm14809_vm10, 0.0, %v4489_v18  ;;  %v4592_v3 = vsel %vm14818_vm6, 0.0, %v4490_v54  ;;  %v4416_v60 = vadd.f32 %v4299_v10, %v14298_v27  ;;  %v11229_v7 = vpop.f32.mrb[29].mxu0  ;;  %v14959_v39 = vadd.s32 17, %v14885_v2  ;;  %v12344_v27 = vld [vmem:[#allocation3 + $0xa8] sm:$0xff]  }
 0x365   : > { %v5350_v59 = vsel %vm5347_vm13, %v17513_v14, %v17360_v12  ;;  %v9807_v4 = vpack.c.bf16 %v4592_v3, %v4591_v9  ;;  %v4302_v18 = vpop.f32.mrb[30].mxu0  ;;  %v14961_v12 = vor.u32 %v4963_v19, %v4960_v32  ;;  %vm17518_vm4 = vmmov 0  }
 0x366   : > { %11384 = vmatmul.mubr.bf16.vlgmr.msra.gmra.mrb[84].mxu0 %v5350_v59  ;;  %vm17519_vm10 = vcmp.ne.s32.totalorder %v14783_v62, 0  ;;  %vm17520_vm6 = vcmp.lt.s32.totalorder %v14783_v62, 0  ;;  %v14974_v54 = vadd.s32 17, %v14895_v45  ;;  %v14976_v10 = vmul.u32 17, %v530_v25  ;;  %v11230_v19 = vpop.f32.mrb[31].mxu0  ;;  %v12351_v25 = vld [vmem:[#allocation3 + $0xc8] sm:$0xff]  }
 0x367   : > { %11387 = vmatprep.mubr.msk.bf16.mxu0 %vm17518_vm4, %v17427_v43  ;;  %vm14969_vm5 = vmand %vm17520_vm6, %vm17519_vm10  ;;  %11536 = vmatpush3.bf16.msra.mxu0 %v12349_v57  ;;  %v4457_v32 = vadd.f32 %v14686_v1, %v4416_v60  ;;  %v4417_v59 = vadd.f32 %v4302_v18, %v14301_v28  ;;  %v14980_v9 = vld [vmem:[#allocation2 + $0x18] sm:$0xf]  ;;  %v14986_v7 = vld [vmem:[#allocation2 + $0x1c] sm:$0xf]  ;;  %v14989_v56 = vsub.s32 %v14747_v23, %v520_v41  ;;  %v15043_v55 = vadd.s32 176, %v14359_v46 }
 0x368   : > { %11537 = vmatprep.subr.bf16.mxu0 %v17427_v43  ;;  %10030 = vst [vmem:[#allocation2 + $0x20] sm:$0xff] %v9807_v4   ;;  %v17523_v28 = vor.u32 %v14565_v38, %v14563_v33  ;;  %v14999_v60 = vcombine.low %v14867_v30, %v14980_v9  ;;  %v15007_v41 = vld [vmem:[#allocation2 + $0x18] sm:$0xf]  ;;  %v15009_v4 = vld [vmem:[#allocation2 + $0x1c] sm:$0xf]  ;;  %v541_v38 = vshrl.u32 %v14861_v5, 4  ;;  %v17526_v18 = vsel %vm14766_vm12, %v14744_v0, %v14707_v53 }
 0x369   : > { %17524 = vst [vmem:[#allocation33_spill] sm:$0xff] %v15007_v41  ;;  %17525 = vst [vmem:[#allocation34_spill] sm:$0xff] %v15009_v4  ;;  %v4491_v19 = vmax.f32 %v4457_v32, 0.0  ;;  %v4458_v33 = vadd.f32 %v14686_v1, %v4417_v59  ;;  %vm15022_vm10 = vcmp.eq.s32.totalorder %v17526_v18, 16  ;;  %v17529_v5 = vsel %vm14854_vm11, %v14752_v34, %v14713_v48  ;;  %v12359_v18 = vld [vmem:[#allocation3 + $0xb8] sm:$0xff]  }
 0x36a   : > { %v4965_v57 = vsel %vm4948_vm14, %v17523_v28, %v14961_v12  ;;  %v17362_v59 = vrot.slane %v14999_v60, 3  ;;  %vm15032_vm6 = vcmp.eq.s32.totalorder %v17529_v5, 16  ;;  %v4967_v53 = vshrl.u32 %v14999_v60, 16  ;;  %v12354_v5 = vld [vmem:[#allocation3 + $0xd0] sm:$0xff]  }
 0x36b   : > { %11300 = vmatmul.mubr.bf16.vlgmr.msra.gmra.mrb[16].mxu1 %v4965_v57  ;;  %v4970_v0 = vshll.u32 %v14999_v60, 16  ;;  %vm706_vm12 = vcmp.ne.s32.totalorder %v14895_v45, 0  ;;  %v4492_v48 = vmax.f32 %v4458_v33, 0.0  ;;  %11538 = vmatpush3.bf16.msra.mxu0 %v12351_v25  ;;  %v4307_v28 = vpop.f32.mrb[32].mxu0  ;;  %v17532_v33 = vrot.slane %v14876_v29, 3 }
 0x36c   : > { %11452 = vmatpush3.bf16.msra.mxu1 %v12317_v52  ;;  %11303 = vmatprep.mubr.msk.bf16.mxu1 %vm17518_vm4, %v17427_v43  ;;  %v15053_v52 = vadd.s32 17, %v14989_v56  ;;  %v4969_v3 = vrot.slane %v4967_v53, 3  ;;  %vm17533_vm11 = vcmp.ne.s32.totalorder %v14791_v58, 0  ;;  %vm17534_vm0 = vcmp.lt.s32.totalorder %v14791_v58, 0 }
 0x36d   : > { %11453 = vmatprep.subr.bf16.mxu1 %v17427_v43  ;;  %v5352_v23 = vsel %vm5347_vm13, %v17532_v33, %v17362_v59  ;;  %v4972_v34 = vrot.slane %v4970_v0, 4  ;;  %vm15065_vm2 = vmand %vm17534_vm0, %vm17533_vm11  ;;  %v15070_v25 = vadd.s32 184, %v14359_v46  ;;  %11539 = vmatprep.subr.bf16.mxu0 %v17427_v43  ;;  %v4593_v29 = vsel %vm14904_vm7, 0.0, %v4491_v19  ;;  %v11233_v33 = vpop.f32.mrb[33].mxu0 }
 0x36e   : > { %v4594_v53 = vsel %vm14914_vm8, 0.0, %v4492_v48  ;;  %v4418_v0 = vadd.f32 %v4307_v28, %v14311_v16  ;;  %11388 = vmatmul.mubr.bf16.gmra.mrb[88].mxu0 %v5352_v23  ;;  %vm15082_vm0 = vmand %vm737_vm9, %vm703_vm15  ;;  %v15086_v59 = vmul.u32 17, %v541_v38  ;;  %v4310_v6 = vpop.f32.mrb[34].mxu0  ;;  %vm17539_vm7 = vcmp.ne.s32.totalorder %v14870_v47, 0 }
 0x36f   : > { %v9812_v41 = vpack.c.bf16 %v4594_v53, %v4593_v29  ;;  %v15088_v19 = vor.u32 %v4972_v34, %v4969_v3  ;;  %11391 = vmatprep.mubr.msk.bf16.mxu0 %vm17518_vm4, %v17427_v43  ;;  %vm17540_vm8 = vcmp.lt.s32.totalorder %v14870_v47, 0  ;;  %v4419_v28 = vadd.f32 %v4310_v6, %v14313_v50  ;;  %v11234_v48 = vpop.f32.mrb[35].mxu0  ;;  %v15106_v34 = vld [vmem:[#allocation2 + $0x20] sm:$0xf]  ;;  %11540 = vmatpush3.bf16.msra.mxu0 %v12354_v5 }
 0x370   : > { %11454 = vmatpush3.bf16.msra.mxu1 %v12322_v20  ;;  %vm15096_vm11 = vmand %vm17540_vm8, %vm17539_vm7  ;;  %v15101_v23 = vmul.u32.u64.low 4042322161, %v15043_v55  ;;  %v15102_v38 = vmul.u32.u64.high 4042322161, %v15043_v55, %v15101_v23  ;;  %v4459_v3 = vadd.f32 %v14686_v1, %v4418_v0  ;;  %v15108_v20 = vld [vmem:[#allocation2 + $0x24] sm:$0xf]  ;;  %v15113_v29 = vsub.s32 %v14778_v31, %v14976_v10  ;;  %v12355_v53 = vld [vmem:[#allocation3 + $0xd8] sm:$0xff]   ;;  %11541 = vmatprep.subr.bf16.mxu0 %v17427_v43 }
 0x371   : > { %11455 = vmatprep.subr.bf16.mxu1 %v17427_v43  ;;  %10031 = vst [vmem:[#allocation2 + $0x28] sm:$0xff] %v9812_v41   ;;  %v4974_v0 = vsel %vm4948_vm14, %v14961_v12, %v15088_v19  ;;  %v15120_v50 = vcombine.low %v14986_v7, %v15106_v34  ;;  %v15129_v10 = vld [vmem:[#allocation2 + $0x20] sm:$0xf]  ;;  %v15131_v41 = vld [vmem:[#allocation2 + $0x24] sm:$0xf]  ;;  %v4460_v12 = vadd.f32 %v14686_v1, %v4419_v28  ;;  %v15139_v23 = vadd.s32 192, %v14359_v46 }
 0x372   : > { %17543 = vst [vmem:[#allocation35_spill] sm:$0xff] %v15129_v10  ;;  %17544 = vst [vmem:[#allocation36_spill] sm:$0xff] %v15131_v41  ;;  %v4493_v5 = vmax.f32 %v4459_v3, 0.0  ;;  %v17545_v48 = vsel %vm14938_vm1, %v14801_v61, %v14755_v24  ;;  %v17548_v28 = vsel %vm14954_vm3, %v14825_v8, %v14771_v44  ;;  %vm17552_vm7 = vcmp.ne.s32.totalorder %v14885_v2, 0 }
 0x373   : > { %11304 = vmatmul.mubr.bf16.gmra.mrb[20].mxu1 %v4974_v0  ;;  %vm15146_vm9 = vcmp.eq.s32.totalorder %v17545_v48, 16  ;;  %v17365_v3 = vrot.slane %v15120_v50, 3  ;;  %vm15156_vm15 = vcmp.eq.s32.totalorder %v17548_v28, 16  ;;  %v4976_v24 = vshrl.u32 %v15120_v50, 16  ;;  %11542 = vmatpush3.bf16.msra.mxu0 %v12355_v53  ;;  %v4315_v6 = vpop.f32.mrb[36].mxu0 }
 0x374   : > { %11307 = vmatprep.mubr.msk.bf16.mxu1 %vm17518_vm4, %v17427_v43  ;;  %v4979_v61 = vshll.u32 %v15120_v50, 16  ;;  %11456 = vmatpush3.bf16.msra.mxu1 %v12327_v17  ;;  %v4494_v14 = vmax.f32 %v4460_v12, 0.0  ;;  %v15174_v8 = vmul.u32.u64.low 4042322161, %v15070_v25  ;;  %v15175_v28 = vmul.u32.u64.high 4042322161, %v15070_v25, %v15174_v8  ;;  %v12358_v17 = vld [vmem:[#allocation3 + $0xe0] sm:$0xff]  }
 0x375   : > { %11457 = vmatprep.subr.bf16.mxu1 %v17427_v43  ;;  %v17551_v12 = vrot.slane %v14999_v60, 3  ;;  %v4978_v44 = vrot.slane %v4976_v24, 3  ;;  %vm17553_vm8 = vcmp.lt.s32.totalorder %v14885_v2, 0  ;;  %v17556_v53 = vshrl.u32 %v14927_v11, 4  ;;  %11543 = vmatprep.subr.bf16.mxu0 %v17427_v43 }
 0x376   : > { %v4981_v31 = vrot.slane %v4979_v61, 4  ;;  %vm15186_vm3 = vmand %vm17553_vm8, %vm17552_vm7  ;;  %v4595_v60 = vsel %vm15022_vm10, 0.0, %v4493_v5  ;;  %v4596_v24 = vsel %vm15032_vm6, 0.0, %v4494_v14  ;;  %v4420_v61 = vadd.f32 %v4315_v6, %v14321_v21 }
 0x377   : > { %v5354_v48 = vsel %vm5347_vm13, %v17551_v12, %v17365_v3  ;;  %v15192_v8 = vmul.u32 17, %v17556_v53  ;;  %v11237_v12 = vpop.f32.mrb[37].mxu0  ;;  %vm17557_vm7 = vcmp.lt.s32.totalorder %v14895_v45, 0  ;;  %v15209_v53 = vadd.s32 200, %v14359_v46  ;;  %11544 = vmatpush3.bf16.msra.mxu0 %v12358_v17 }
 0x378   : > { %11392 = vmatmul.mubr.bf16.gmra.mrb[92].mxu0 %v5354_v48  ;;  %vm15204_vm8 = vmand %vm17557_vm7, %vm706_vm12  ;;  %v9817_v32 = vpack.c.bf16 %v4596_v24, %v4595_v60  ;;  %v4318_v5 = vpop.f32.mrb[38].mxu0  ;;  %v15211_v3 = vor.u32 %v4981_v31, %v4978_v44  ;;  %vm17560_vm10 = vcmp.ne.s32.totalorder %v14989_v56, 0  ;;  %vm17561_vm6 = vcmp.lt.s32.totalorder %v14989_v56, 0  ;;  %11458 = vmatpush3.bf16.msra.mxu1 %v12334_v22  ;;  %v12339_v48 = vld [vmem:[#allocation3 + $0xa0] sm:$0xff]   ;;  %v15231_v24 = vld [vmem:[#allocation2 + $0x2c] sm:$0xf] }
 0x379   : > { %11395 = vmatprep.mubr.msk.bf16.mxu0 %vm17518_vm4, %v17427_v43  ;;  %vm15219_vm1 = vmand %vm17561_vm6, %vm17560_vm10  ;;  %v15224_v57 = vmul.u32.u64.low 4042322161, %v15139_v23  ;;  %v15225_v6 = vmul.u32.u64.high 4042322161, %v15139_v23, %v15224_v57  ;;  %v4461_v31 = vadd.f32 %v14686_v1, %v4420_v61  ;;  %v4421_v14 = vadd.f32 %v4318_v5, %v14323_v37  ;;  %v11238_v44 = vpop.f32.mrb[39].mxu0  ;;  %v15229_v60 = vld [vmem:[#allocation2 + $0x28] sm:$0xf]  ;;  %11459 = vmatprep.subr.bf16.mxu1 %v17427_v43  ;;  %v12360_v22 = vld [vmem:[#allocation3 + $0xe8] sm:$0xff]  }
 0x37a   : > { %10032 = vst [vmem:[#allocation2 + $0x30] sm:$0xff] %v9817_v32   ;;  %v4983_v61 = vsel %vm4948_vm14, %v15088_v19, %v15211_v3  ;;  %v15243_v37 = vcombine.low %v15108_v20, %v15229_v60  ;;  %11545 = vmatprep.subr.bf16.mxu0 %v17427_v43  ;;  %v15252_v17 = vld [vmem:[#allocation2 + $0x28] sm:$0xf]  ;;  %v15254_v32 = vld [vmem:[#allocation2 + $0x2c] sm:$0xf]  ;;  %v15259_v12 = vsub.s32 %v14832_v26, %v15086_v59  ;;  %v563_v5 = vshrl.u32 %v15102_v38, 4 }
 0x37b   : > { %17564 = vst [vmem:[#allocation37_spill] sm:$0xff] %v15252_v17  ;;  %17565 = vst [vmem:[#allocation38_spill] sm:$0xff] %v15254_v32  ;;  %v4495_v44 = vmax.f32 %v4461_v31, 0.0  ;;  %v4462_v19 = vadd.f32 %v14686_v1, %v4421_v14  ;;  %11308 = vmatmul.mubr.bf16.gmra.mrb[24].mxu1 %v4983_v61  ;;  %v17566_v57 = vsel %vm14969_vm5, %v14837_v49, %v14783_v62  ;;  %11546 = vmatpush3.bf16.msra.mxu0 %v12360_v22  ;;  %v12362_v61 = vld [vmem:[#allocation3 + $0xf0] sm:$0xff]   ;;  %v17588_v26 = vld [vmem:[#allocation12_spill] sm:$0xff] }
 0x37c   : > { %vm15267_vm12 = vcmp.eq.s32.totalorder %v17566_v57, 16  ;;  %v5355_v31 = vrot.slane %v15243_v37, 3  ;;  %v17569_v14 = vsel %vm15065_vm2, %v14840_v40, %v14791_v58  ;;  %11311 = vmatprep.mubr.msk.bf16.mxu1 %vm17518_vm4, %v17427_v43  ;;  %v4985_v62 = vshrl.u32 %v15243_v37, 16  ;;  %11460 = vmatpush3.bf16.msra.mxu1 %v12339_v48  ;;  %v4323_v57 = vpop.f32.mrb[40].mxu0  ;;  %v17573_v58 = vld [vmem:[#allocation11_spill] sm:$0xff] }
 0x37d   : > { %vm15277_vm7 = vcmp.eq.s32.totalorder %v17569_v14, 16  ;;  %v4988_v49 = vshll.u32 %v15243_v37, 16  ;;  %v4496_v4 = vmax.f32 %v4462_v19, 0.0  ;;  %11461 = vmatprep.subr.bf16.mxu1 %v17427_v43  ;;  %v17572_v48 = vrot.slane %v15120_v50, 3  ;;  %11547 = vmatprep.subr.bf16.mxu0 %v17427_v43  ;;  %v11241_v42 = vpop.f32.mrb[41].mxu0 }
 0x37e   : > { %v15292_v40 = vmul.u32.u64.low 4042322161, %v15209_v53  ;;  %v15293_v38 = vmul.u32.u64.high 4042322161, %v15209_v53, %v15292_v40  ;;  %v4987_v14 = vrot.slane %v4985_v62, 3  ;;  %v15302_v32 = vadd.s32 17, %v15113_v29 }
 0x37f   : > { %v5356_v19 = vsel %vm5347_vm13, %v17572_v48, %v5355_v31  ;;  %v4990_v59 = vrot.slane %v4988_v49, 4  ;;  %v4597_v40 = vsel %vm15146_vm9, 0.0, %v4495_v44  ;;  %v4598_v22 = vsel %vm15156_vm15, 0.0, %v4496_v4  ;;  %v4326_v49 = vpop.f32.mrb[42].mxu0  ;;  %v12350_v44 = vld [vmem:[#allocation3 + $0xb0] sm:$0xff]   ;;  %11548 = vmatpush3.bf16.msra.mxu0 %v12362_v61 }
 0x380   : > { %v4422_v17 = vadd.f32 %v4323_v57, %v17573_v58  ;;  %11396 = vmatmul.mubr.bf16.gmra.mrb[96].mxu0 %v5356_v19  ;;  %v15311_v50 = vadd.s32 17, %v15259_v12  ;;  %v9822_v62 = vpack.c.bf16 %v4598_v22, %v4597_v40  ;;  %vm17574_vm5 = vcmp.ne.s32.totalorder %v15113_v29, 0  ;;  %11462 = vmatpush3.bf16.msra.mxu1 %v12344_v27  ;;  %v11242_v57 = vpop.f32.mrb[43].mxu0 }
 0x381   : > { %v15313_v48 = vor.u32 %v4990_v59, %v4987_v14  ;;  %11399 = vmatprep.mubr.msk.bf16.mxu0 %vm17518_vm4, %v17427_v43  ;;  %vm17575_vm2 = vcmp.lt.s32.totalorder %v15113_v29, 0  ;;  %v564_v42 = vmul.u32 17, %v563_v5  ;;  %v574_v0 = vshrl.u32 %v15175_v28, 4  ;;  %v17578_v59 = vld [vmem:[#allocation9_spill] sm:$0xff]  ;;  %v15328_v19 = vld [vmem:[#allocation2 + $0x30] sm:$0xf]  ;;  %11463 = vmatprep.subr.bf16.mxu1 %v17427_v43 }
 0x382   : > { %vm15321_vm9 = vmand %vm17575_vm2, %vm17574_vm5  ;;  %v4463_v4 = vadd.f32 %v14686_v1, %v4422_v17  ;;  %v4423_v58 = vadd.f32 %v4326_v49, %v17578_v59  ;;  %v15330_v14 = vld [vmem:[#allocation2 + $0x34] sm:$0xf]  ;;  %v15334_v40 = vsub.s32 %v14873_v51, %v15192_v8  ;;  %v12365_v5 = vld [vmem:[#allocation3 + $0xf8] sm:$0xff]   ;;  %10033 = vst [vmem:[#allocation2 + $0x38] sm:$0xff] %v9822_v62   ;;  %v15342_v17 = vcombine.low %v15231_v24, %v15328_v19 }
 0x383   : > { %v4992_v28 = vsel %vm4948_vm14, %v15211_v3, %v15313_v48  ;;  %v585_v22 = vshrl.u32 %v15225_v6, 4  ;;  %11549 = vmatprep.subr.bf16.mxu0 %v17427_v43  ;;  %v15348_v51 = vld [vmem:[#allocation2 + $0x30] sm:$0xf]  ;;  %v15350_v8 = vld [vmem:[#allocation2 + $0x34] sm:$0xf]  ;;  %v15358_v49 = vadd.s32 208, %v14359_v46  ;;  %v17581_v6 = vsel %vm15082_vm0, %v14843_v63, %v14794_v36 }
 0x384   : > { %17579 = vst [vmem:[#allocation11_spill] sm:$0xff] %v15348_v51  ;;  %17580 = vst [vmem:[#allocation9_spill] sm:$0xff] %v15350_v8  ;;  %v4497_v61 = vmax.f32 %v4463_v4, 0.0  ;;  %v4464_v62 = vadd.f32 %v14686_v1, %v4423_v58  ;;  %11312 = vmatmul.mubr.bf16.gmra.mrb[28].mxu1 %v4992_v28  ;;  %vm15365_vm15 = vcmp.eq.s32.totalorder %v17581_v6, 16  ;;  %v5357_v4 = vrot.slane %v15342_v17, 3  ;;  %11550 = vmatpush3.bf16.msra.mxu0 %v12365_v5  ;;  %v4331_v6 = vpop.f32.mrb[44].mxu0 }
 0x385   : > { %v17584_v58 = vsel %vm15096_vm11, %v14943_v13, %v14870_v47  ;;  %11315 = vmatprep.mubr.msk.bf16.mxu1 %vm17518_vm4, %v17427_v43  ;;  %v4994_v36 = vshrl.u32 %v15342_v17, 16  ;;  %v4997_v63 = vshll.u32 %v15342_v17, 16  ;;  %vm709_vm0 = vcmp.ne.s32.totalorder %v15259_v12, 0  ;;  %11464 = vmatpush3.bf16.msra.mxu1 %v12350_v44  ;;  %v11245_v27 = vpop.f32.mrb[45].mxu0 }
 0x386   : > { %vm15375_vm10 = vcmp.eq.s32.totalorder %v17584_v58, 16  ;;  %vm743_vm6 = vcmp.lt.s32.totalorder %v15259_v12, 0  ;;  %v4498_v13 = vmax.f32 %v4464_v62, 0.0  ;;  %vm710_vm11 = vcmp.ne.s32.totalorder %v15334_v40, 0  ;;  %11465 = vmatprep.subr.bf16.mxu1 %v17427_v43  ;;  %11703 = vmatprep.subr.bf16.mxu0 %v17427_v43  ;;  %v4334_v8 = vpop.f32.mrb[46].mxu0 }
 0x387   : > { %vm744_vm5 = vcmp.lt.s32.totalorder %v15334_v40, 0  ;;  %v15390_v16 = vsub.s32 %v15043_v55, %v564_v42  ;;  %v575_v28 = vmul.u32 17, %v574_v0  ;;  %v5358_v44 = vsel %vm5347_vm13, %v5355_v31, %v5357_v4  ;;  %v17587_v0 = vld [vmem:[#allocation10_spill] sm:$0xff] }
 0x388   : > { %v4996_v58 = vrot.slane %v4994_v36, 3  ;;  %v4999_v62 = vrot.slane %v4997_v63, 4  ;;  %v596_v47 = vshrl.u32 %v15293_v38, 4  ;;  %v4599_v55 = vsel %vm15267_vm12, 0.0, %v4497_v61  ;;  %11400 = vmatmul.mubr.bf16.gmra.mrb[100].mxu0 %v5358_v44  ;;  %v11246_v63 = vpop.f32.mrb[47].mxu0 }
 0x389   : > { %v4600_v42 = vsel %vm15277_vm7, 0.0, %v4498_v13  ;;  %v4424_v5 = vadd.f32 %v4331_v6, %v17587_v0  ;;  %v586_v3 = vmul.u32 17, %v585_v22  ;;  %11403 = vmatprep.mubr.msk.bf16.mxu0 %vm17518_vm4, %v17427_v43  ;;  %11466 = vmatpush3.bf16.msra.mxu1 %v12359_v18  ;;  %v4425_v61 = vadd.f32 %v4334_v8, %v17588_v26  ;;  %v15415_v27 = vld [vmem:[#allocation2 + $0x38] sm:$0xf]  ;;  %v15417_v22 = vld [vmem:[#allocation2 + $0x3c] sm:$0xf] }
 0x38a   : > { %v9827_v37 = vpack.c.bf16 %v4600_v42, %v4599_v55  ;;  %v15405_v31 = vor.u32 %v4999_v62, %v4996_v58  ;;  %v15410_v38 = vmul.u32.u64.low 4042322161, %v15358_v49  ;;  %v15411_v36 = vmul.u32.u64.high 4042322161, %v15358_v49, %v15410_v38  ;;  %11619 = vmatprep.subr.bf16.mxu1 %v17427_v43  ;;  %v15440_v58 = vld [vmem:[#allocation2 + $0x3c] sm:$0xf] }
 0x38b   : > { %v4465_v10 = vadd.f32 %v14686_v1, %v4424_v5  ;;  %v15420_v13 = vsub.s32 %v15070_v25, %v575_v28  ;;  %v15423_v6 = vadd.s32 216, %v14359_v46  ;;  %v15431_v8 = vcombine.low %v15330_v14, %v15415_v27  ;;  %v15438_v28 = vld [vmem:[#allocation2 + $0x38] sm:$0xf]  ;;  %17590 = vst [vmem:[#allocation12_spill] sm:$0xff] %v15440_v58 }
 0x38c   : > { %10034 = vst [vmem:[#allocation2 + $0x40] sm:$0xff] %v9827_v37   ;;  %v5001_v18 = vsel %vm4948_vm14, %v15313_v48, %v15405_v31  ;;  %v15436_v25 = vadd.s32 17, %v15334_v40  ;;  %17589 = vst [vmem:[#allocation10_spill] sm:$0xff] %v15438_v28  ;;  %v4466_v55 = vadd.f32 %v14686_v1, %v4425_v61  ;;  %vm711_vm12 = vcmp.ne.s32.totalorder %v15390_v16, 0  ;;  %v17666_v58 = vld [vmem:[#allocation25_spill] sm:$0xff] }
 0x38d   : > { %v4499_v62 = vmax.f32 %v4465_v10, 0.0  ;;  %11316 = vmatmul.mubr.bf16.gmra.mrb[32].mxu1 %v5001_v18  ;;  %v15446_v48 = vadd.s32 17, %v15390_v16  ;;  %v15449_v42 = vsub.s32 %v15139_v23, %v586_v3  ;;  %v17591_v0 = vsel %vm15186_vm3, %v14959_v39, %v14885_v2  ;;  %v4339_v3 = vpop.f32.mrb[48].mxu0  ;;  %vm15496_vm3 = vmand %vm743_vm6, %vm709_vm0 }
 0x38e   : > { %vm15456_vm2 = vcmp.eq.s32.totalorder %v17591_v0, 16  ;;  %v5359_v37 = vrot.slane %v15431_v8, 3  ;;  %v17594_v38 = vsel %vm15204_vm8, %v14974_v54, %v14895_v45  ;;  %11319 = vmatprep.mubr.msk.bf16.mxu1 %vm17518_vm4, %v17427_v43  ;;  %v5003_v39 = vshrl.u32 %v15431_v8, 16 }
 0x38f   : > { %vm15466_vm7 = vcmp.eq.s32.totalorder %v17594_v38, 16  ;;  %v5006_v2 = vshll.u32 %v15431_v8, 16  ;;  %v4500_v23 = vmax.f32 %v4466_v55, 0.0  ;;  %v597_v11 = vmul.u32 17, %v596_v47  ;;  %v17597_v55 = vld [vmem:[#allocation13_spill] sm:$0xff]  ;;  %v11249_v38 = vpop.f32.mrb[49].mxu0 }
 0x390   : > { %v15478_v45 = vmul.u32.u64.low 4042322161, %v15423_v6  ;;  %v15479_v54 = vmul.u32.u64.high 4042322161, %v15423_v6, %v15478_v45  ;;  %v5360_v26 = vsel %vm5347_vm13, %v5357_v4, %v5359_v37  ;;  %v5005_v61 = vrot.slane %v5003_v39, 3  ;;  %v17614_v8 = vld [vmem:[#allocation15_spill] sm:$0xff] }
 0x391   : > { %v5008_v63 = vrot.slane %v5006_v2, 4  ;;  %vm746_vm8 = vcmp.lt.s32.totalorder %v15420_v13, 0  ;;  %v4601_v18 = vsel %vm15365_vm15, 0.0, %v4499_v62  ;;  %v4602_v47 = vsel %vm15375_vm10, 0.0, %v4500_v23  ;;  %11404 = vmatmul.mubr.bf16.gmra.mrb[104].mxu0 %v5360_v26  ;;  %v4342_v62 = vpop.f32.mrb[50].mxu0  ;;  %vm15511_vm15 = vmand %vm744_vm5, %vm710_vm11 }
 0x392   : > { %v4426_v0 = vadd.f32 %v4339_v3, %v17597_v55  ;;  %v15501_v4 = vadd.s32 17, %v15420_v13  ;;  %v9832_v59 = vpack.c.bf16 %v4602_v47, %v4601_v18  ;;  %11407 = vmatprep.mubr.msk.bf16.mxu0 %vm17518_vm4, %v17427_v43  ;;  %v15516_v2 = vadd.s32 17, %v15449_v42  ;;  %v17602_v3 = vld [vmem:[#allocation14_spill] sm:$0xff] }
 0x393   : > { %v15503_v39 = vor.u32 %v5008_v63, %v5005_v61  ;;  %v607_v23 = vshrl.u32 %v15411_v36, 4  ;;  %v4427_v26 = vadd.f32 %v4342_v62, %v17602_v3  ;;  %v11250_v61 = vpop.f32.mrb[51].mxu0  ;;  %v15521_v63 = vld [vmem:[#allocation2 + $0x40] sm:$0xf]  ;;  %v15523_v18 = vld [vmem:[#allocation2 + $0x44] sm:$0xf]  ;;  %v15526_v47 = vsub.s32 %v15209_v53, %v597_v11 }
 0x394   : > { %v4467_v45 = vadd.f32 %v14686_v1, %v4426_v0  ;;  %v15529_v55 = vadd.s32 224, %v14359_v46  ;;  %10035 = vst [vmem:[#allocation2 + $0x48] sm:$0xff] %v9832_v59   ;;  %v15536_v0 = vcombine.low %v15417_v22, %v15521_v63  ;;  %v845_v38 = vsel %vm15496_vm3, %v15311_v50, %v15259_v12  ;;  %v15544_v11 = vld [vmem:[#allocation2 + $0x40] sm:$0xf]  ;;  %v15546_v62 = vld [vmem:[#allocation2 + $0x44] sm:$0xf] }
 0x395   : > { %v5010_v36 = vsel %vm4948_vm14, %v15405_v31, %v15503_v39  ;;  %17603 = vst [vmem:[#allocation13_spill] sm:$0xff] %v15544_v11  ;;  %17604 = vst [vmem:[#allocation14_spill] sm:$0xff] %v15546_v62  ;;  %v4468_v3 = vadd.f32 %v14686_v1, %v4427_v26  ;;  %v846_v31 = vsel %vm15511_vm15, %v15436_v25, %v15334_v40  ;;  %v15554_v61 = vadd.s32 232, %v14359_v46  ;;  %v4347_v57 = vpop.f32.mrb[52].mxu0 }
 0x396   : > { %v4501_v59 = vmax.f32 %v4467_v45, 0.0  ;;  %11320 = vmatmul.mubr.bf16.gmra.mrb[36].mxu1 %v5010_v36  ;;  %v17605_v12 = vsel %vm15219_vm1, %v15053_v52, %v14989_v56  ;;  %v5361_v1 = vrot.slane %v15536_v0, 3  ;;  %v17608_v17 = vsel %vm15321_vm9, %v15302_v32, %v15113_v29 }
 0x397   : > { %vm15561_vm10 = vcmp.eq.s32.totalorder %v17605_v12, 16  ;;  %vm15571_vm0 = vcmp.eq.s32.totalorder %v17608_v17, 16  ;;  %11323 = vmatprep.mubr.msk.bf16.mxu1 %vm17518_vm4, %v17427_v43  ;;  %v5012_v56 = vshrl.u32 %v15536_v0, 16  ;;  %v5015_v52 = vshll.u32 %v15536_v0, 16 }
 0x398   : > { %vm713_vm1 = vcmp.ne.s32.totalorder %v15449_v42, 0  ;;  %vm747_vm6 = vcmp.lt.s32.totalorder %v15449_v42, 0  ;;  %v4502_v33 = vmax.f32 %v4468_v3, 0.0  ;;  %vm714_vm9 = vcmp.ne.s32.totalorder %v15526_v47, 0 }
 0x399   : > { %vm748_vm11 = vcmp.lt.s32.totalorder %v15526_v47, 0  ;;  %v15586_v29 = vadd.s32 17, %v15526_v47  ;;  %v15589_v32 = vmul.u32.u64.low 4042322161, %v15529_v55  ;;  %v15590_v25 = vmul.u32.u64.high 4042322161, %v15529_v55, %v15589_v32 }
 0x39a   : > { %v5362_v45 = vsel %vm5347_vm13, %v5359_v37, %v5361_v1  ;;  %v5014_v26 = vrot.slane %v5012_v56, 3  ;;  %v5017_v36 = vrot.slane %v5015_v52, 4  ;;  %vm17611_vm5 = vcmp.lt.s32.totalorder %v15390_v16, 0  ;;  %v11253_v37 = vpop.f32.mrb[53].mxu0 }
 0x39b   : > { %vm15601_vm3 = vmand %vm17611_vm5, %vm711_vm12  ;;  %v608_v12 = vmul.u32 17, %v607_v23  ;;  %v4603_v17 = vsel %vm15456_vm2, 0.0, %v4501_v59  ;;  %v4604_v32 = vsel %vm15466_vm7, 0.0, %v4502_v33  ;;  %v4428_v21 = vadd.f32 %v4347_v57, %v17614_v8  ;;  %11408 = vmatmul.mubr.bf16.gmra.mrb[108].mxu0 %v5362_v45  ;;  %v4350_v41 = vpop.f32.mrb[54].mxu0  ;;  %v17618_v33 = vld [vmem:[#allocation16_spill] sm:$0xff] }
 0x39c   : > { %v618_v56 = vshrl.u32 %v15479_v54, 4  ;;  %v9837_v52 = vpack.c.bf16 %v4604_v32, %v4603_v17  ;;  %v5018_v53 = vor.u32 %v5017_v36, %v5014_v26  ;;  %11411 = vmatprep.mubr.msk.bf16.mxu0 %vm17518_vm4, %v17427_v43  ;;  %vm17615_vm12 = vcmp.ne.s32.totalorder %v15420_v13, 0  ;;  %v15629_v54 = vld [vmem:[%s17316_s2] ss:$0 sm:$0xff]  ;;  %v11254_v45 = vpop.f32.mrb[55].mxu0  ;;  %vm15701_vm5 = vmand %vm747_vm6, %vm713_vm1 }
 0x39d   : > { %vm15617_vm2 = vmand %vm746_vm8, %vm17615_vm12  ;;  %v15622_v10 = vmul.u32.u64.low 4042322161, %v15554_v61  ;;  %v15623_v23 = vmul.u32.u64.high 4042322161, %v15554_v61, %v15622_v10  ;;  %v4469_v59 = vadd.f32 %v15629_v54, %v4428_v21  ;;  %v4429_v57 = vadd.f32 %v4350_v41, %v17618_v33  ;;  %v15633_v26 = vld [vmem:[#allocation2 + $0x48] sm:$0xf]  ;;  %v15639_v17 = vld [vmem:[#allocation2 + $0x4c] sm:$0xf] }
 0x39e   : > { %v15642_v32 = vadd.s32 240, %v14359_v46  ;;  %10036 = vst [vmem:[#allocation2 + $0x50] sm:$0xff] %v9837_v52   ;;  %v5019_v8 = vsel %vm4948_vm14, %v15503_v39, %v5018_v53  ;;  %v15648_v41 = vcombine.low %v15523_v18, %v15633_v26  ;;  %v15653_v37 = vsub.s32 %v15358_v49, %v608_v12  ;;  %v15655_v10 = vld [vmem:[#allocation2 + $0x48] sm:$0xf]  ;;  %v15657_v33 = vld [vmem:[#allocation2 + $0x4c] sm:$0xf] }
 0x39f   : > { %17619 = vst [vmem:[#allocation15_spill] sm:$0xff] %v15655_v10  ;;  %17620 = vst [vmem:[#allocation16_spill] sm:$0xff] %v15657_v33  ;;  %v4503_v45 = vmax.f32 %v4469_v59, 0.0  ;;  %v4470_v52 = vadd.f32 %v15629_v54, %v4429_v57  ;;  %11324 = vmatmul.mubr.bf16.gmra.mrb[40].mxu1 %v5019_v8  ;;  %v848_v39 = vsel %vm15617_vm2, %v15501_v4, %v15420_v13  ;;  %v15665_v44 = vadd.s32 248, %v14359_v46 }
 0x3a0   : > { %vm15667_vm7 = vcmp.eq.s32.totalorder %v845_v38, 16  ;;  %v5363_v49 = vrot.slane %v15648_v41, 3  ;;  %vm15672_vm8 = vcmp.eq.s32.totalorder %v846_v31, 16  ;;  %11327 = vmatprep.mubr.msk.bf16.mxu1 %vm17518_vm4, %v17427_v43  ;;  %v5021_v59 = vshrl.u32 %v15648_v41, 16  ;;  %v4355_v31 = vpop.f32.mrb[56].mxu0 }
 0x3a1   : > { %v5024_v13 = vshll.u32 %v15648_v41, 16  ;;  %v4504_v38 = vmax.f32 %v4470_v52, 0.0  ;;  %v619_v5 = vmul.u32 17, %v618_v56  ;;  %vm715_vm15 = vcmp.ne.s32.totalorder %v15653_v37, 0  ;;  %v17625_v52 = vld [vmem:[#allocation17_spill] sm:$0xff]  ;;  %v17640_v41 = vld [vmem:[#allocation19_spill] sm:$0xff] }
 0x3a2   : > { %v15683_v57 = vmul.u32.u64.low 4042322161, %v15642_v32  ;;  %v15684_v8 = vmul.u32.u64.high 4042322161, %v15642_v32, %v15683_v57  ;;  %v5364_v36 = vsel %vm5347_vm13, %v5361_v1, %v5363_v49  ;;  %v5023_v62 = vrot.slane %v5021_v59, 3 }
 0x3a3   : > { %v5026_v11 = vrot.slane %v5024_v13, 4  ;;  %v4605_v4 = vsel %vm15561_vm10, 0.0, %v4503_v45  ;;  %v4606_v56 = vsel %vm15571_vm0, 0.0, %v4504_v38  ;;  %v4430_v33 = vadd.f32 %v4355_v31, %v17625_v52  ;;  %v11257_v57 = vpop.f32.mrb[57].mxu0  ;;  %11412 = vmatmul.mubr.bf16.gmra.mrb[112].mxu0 %v5364_v36  ;;  %vm15714_vm10 = vmand %vm748_vm11, %vm714_vm9 }
 0x3a4   : > { %vm749_vm12 = vcmp.lt.s32.totalorder %v15653_v37, 0  ;;  %v9842_v1 = vpack.c.bf16 %v4606_v56, %v4605_v4  ;;  %v4358_v50 = vpop.f32.mrb[58].mxu0  ;;  %11415 = vmatprep.mubr.msk.bf16.mxu0 %vm17518_vm4, %v17427_v43  ;;  %v15719_v36 = vmul.u32.u64.low 4042322161, %v15665_v44  ;;  %v15720_v59 = vmul.u32.u64.high 4042322161, %v15665_v44, %v15719_v36  ;;  %v17630_v4 = vld [vmem:[#allocation18_spill] sm:$0xff] }
 0x3a5   : > { %v15706_v45 = vor.u32 %v5026_v11, %v5023_v62  ;;  %v4471_v13 = vadd.f32 %v15629_v54, %v4430_v33  ;;  %v4431_v11 = vadd.f32 %v4358_v50, %v17630_v4  ;;  %v11258_v62 = vpop.f32.mrb[59].mxu0  ;;  %v15724_v38 = vld [vmem:[#allocation2 + $0x50] sm:$0xf]  ;;  %v15726_v31 = vld [vmem:[#allocation2 + $0x54] sm:$0xf]  ;;  %v15729_v56 = vsub.s32 %v15423_v6, %v619_v5  ;;  %vm15788_vm11 = vmand %vm749_vm12, %vm715_vm15 }
 0x3a6   : > { %v629_v52 = vshrl.u32 %v15590_v25, 4  ;;  %10037 = vst [vmem:[#allocation2 + $0x58] sm:$0xff] %v9842_v1   ;;  %v15736_v36 = vcombine.low %v15639_v17, %v15724_v38  ;;  %v849_v33 = vsel %vm15701_vm5, %v15516_v2, %v15449_v42  ;;  %v15744_v6 = vld [vmem:[#allocation2 + $0x50] sm:$0xf]  ;;  %v15746_v5 = vld [vmem:[#allocation2 + $0x54] sm:$0xf]  ;;  %v17633_v42 = vsel %vm15601_vm3, %v15446_v48, %v15390_v16 }
 0x3a7   : > { %v5028_v57 = vsel %vm4948_vm14, %v5018_v53, %v15706_v45  ;;  %17631 = vst [vmem:[#allocation17_spill] sm:$0xff] %v15744_v6  ;;  %17632 = vst [vmem:[#allocation18_spill] sm:$0xff] %v15746_v5  ;;  %v4505_v25 = vmax.f32 %v4471_v13, 0.0  ;;  %v4472_v1 = vadd.f32 %v15629_v54, %v4431_v11  ;;  %v850_v53 = vsel %vm15714_vm10, %v15586_v29, %v15526_v47 }
 0x3a8   : > { %11328 = vmatmul.mubr.bf16.gmra.mrb[44].mxu1 %v5028_v57  ;;  %v15754_v4 = vadd.s32 17, %v15653_v37  ;;  %vm15761_vm0 = vcmp.eq.s32.totalorder %v17633_v42, 16  ;;  %v5365_v0 = vrot.slane %v15736_v36, 3  ;;  %vm15766_vm1 = vcmp.eq.s32.totalorder %v848_v39, 16  ;;  %v4363_v39 = vpop.f32.mrb[60].mxu0 }
 0x3a9   : > { %11331 = vmatprep.mubr.msk.bf16.mxu1 %vm17518_vm4, %v17427_v43  ;;  %v5030_v47 = vshrl.u32 %v15736_v36, 16  ;;  %v5033_v29 = vshll.u32 %v15736_v36, 16  ;;  %v4506_v48 = vmax.f32 %v4472_v1, 0.0  ;;  %vm716_vm6 = vcmp.ne.s32.totalorder %v15729_v56, 0 }
 0x3aa   : > { %vm750_vm9 = vcmp.lt.s32.totalorder %v15729_v56, 0  ;;  %v15779_v3 = vadd.s32 17, %v15729_v56  ;;  %v5366_v40 = vsel %vm5347_vm13, %v5363_v49, %v5365_v0  ;;  %v630_v36 = vmul.u32 17, %v629_v52  ;;  %v11261_v49 = vpop.f32.mrb[61].mxu0 }
 0x3ab   : > { %v5032_v11 = vrot.slane %v5030_v47, 3  ;;  %v5035_v62 = vrot.slane %v5033_v29, 4  ;;  %v4607_v1 = vsel %vm15667_vm7, 0.0, %v4505_v25  ;;  %v4608_v42 = vsel %vm15672_vm8, 0.0, %v4506_v48  ;;  %11416 = vmatmul.mubr.bf16.gmra.mrb[116].mxu0 %v5366_v40  ;;  %v4366_v50 = vpop.f32.mrb[62].mxu0  ;;  %vm15804_vm3 = vmand %vm750_vm9, %vm716_vm6  ;;  %v17643_v25 = vld [vmem:[#allocation20_spill] sm:$0xff] }
 0x3ac   : > { %v4432_v16 = vadd.f32 %v4363_v39, %v17640_v41  ;;  %v640_v47 = vshrl.u32 %v15623_v23, 4  ;;  %v9847_v29 = vpack.c.bf16 %v4608_v42, %v4607_v1  ;;  %11419 = vmatprep.mubr.msk.bf16.mxu0 %vm17518_vm4, %v17427_v43  ;;  %v651_v12 = vshrl.u32 %v15684_v8, 4  ;;  %v11262_v39 = vpop.f32.mrb[63].mxu0 }
 0x3ad   : > { %v5036_v5 = vor.u32 %v5035_v62, %v5032_v11  ;;  %v15810_v52 = vadd.s32 256, %v14359_v46  ;;  %v4433_v48 = vadd.f32 %v4366_v50, %v17643_v25  ;;  %v15814_v40 = vld [vmem:[#allocation2 + $0x58] sm:$0xf]  ;;  %v851_v11 = vsel %vm15788_vm11, %v15754_v4, %v15653_v37  ;;  %v15820_v62 = vld [vmem:[#allocation2 + $0x5c] sm:$0xf] }
 0x3ae   : > { %v4473_v23 = vadd.f32 %v15629_v54, %v4432_v16  ;;  %v662_v1 = vshrl.u32 %v15720_v59, 4  ;;  %10038 = vst [vmem:[#allocation2 + $0x60] sm:$0xff] %v9847_v29   ;;  %v15827_v16 = vcombine.low %v15726_v31, %v15814_v40  ;;  %v15832_v42 = vsub.s32 %v15529_v55, %v630_v36  ;;  %v15834_v57 = vld [vmem:[#allocation2 + $0x58] sm:$0xf]  ;;  %v15836_v37 = vld [vmem:[#allocation2 + $0x5c] sm:$0xf] }
 0x3af   : > { %v5037_v8 = vsel %vm4948_vm14, %v15706_v45, %v5036_v5  ;;  %17644 = vst [vmem:[#allocation19_spill] sm:$0xff] %v15834_v57  ;;  %17645 = vst [vmem:[#allocation20_spill] sm:$0xff] %v15836_v37  ;;  %v4474_v59 = vadd.f32 %v15629_v54, %v4433_v48  ;;  %v852_v45 = vsel %vm15804_vm3, %v15779_v3, %v15729_v56  ;;  %v15844_v41 = vadd.s32 264, %v14359_v46  ;;  %v17657_v36 = vld [vmem:[#allocation24_spill] sm:$0xff] }
 0x3b0   : > { %v4507_v4 = vmax.f32 %v4473_v23, 0.0  ;;  %11332 = vmatmul.mubr.bf16.gmra.mrb[48].mxu1 %v5037_v8  ;;  %vm15846_vm2 = vcmp.eq.s32.totalorder %v849_v33, 16  ;;  %v5367_v55 = vrot.slane %v15827_v16, 3  ;;  %vm15851_vm7 = vcmp.eq.s32.totalorder %v850_v53, 16  ;;  %v4371_v53 = vpop.f32.mrb[64].mxu0 }
 0x3b1   : > { %11335 = vmatprep.mubr.msk.bf16.mxu1 %vm17518_vm4, %v17427_v43  ;;  %v5039_v29 = vshrl.u32 %v15827_v16, 16  ;;  %v5042_v56 = vshll.u32 %v15827_v16, 16  ;;  %v4508_v33 = vmax.f32 %v4474_v59, 0.0  ;;  %v641_v3 = vmul.u32 17, %v640_v47  ;;  %v17650_v59 = vld [vmem:[#allocation21_spill] sm:$0xff]  ;;  %v11265_v50 = vpop.f32.mrb[65].mxu0 }
 0x3b2   : > { %v15862_v21 = vmul.u32.u64.low 4042322161, %v15810_v52  ;;  %v15863_v23 = vmul.u32.u64.high 4042322161, %v15810_v52, %v15862_v21  ;;  %v5368_v25 = vsel %vm5347_vm13, %v5365_v0, %v5367_v55  ;;  %vm717_vm8 = vcmp.ne.s32.totalorder %v15832_v42, 0  ;;  %v4374_v57 = vpop.f32.mrb[66].mxu0 }
 0x3b3   : > { %v5041_v48 = vrot.slane %v5039_v29, 3  ;;  %v5044_v39 = vrot.slane %v5042_v56, 4  ;;  %v652_v8 = vmul.u32 17, %v651_v12  ;;  %v4609_v16 = vsel %vm15761_vm0, 0.0, %v4507_v4  ;;  %11420 = vmatmul.mubr.bf16.gmra.mrb[120].mxu0 %v5368_v25  ;;  %v17651_v4 = vld [vmem:[#allocation22_spill] sm:$0xff]  ;;  %v11266_v29 = vpop.f32.mrb[67].mxu0 }
 0x3b4   : > { %v4610_v46 = vsel %vm15766_vm1, 0.0, %v4508_v33  ;;  %v4434_v47 = vadd.f32 %v4371_v53, %v17650_v59  ;;  %v663_v37 = vmul.u32 17, %v662_v1  ;;  %11423 = vmatprep.mubr.msk.bf16.mxu0 %vm17518_vm4, %v17427_v43  ;;  %v4435_v13 = vadd.f32 %v4374_v57, %v17651_v4  ;;  %v17656_v29 = vld [vmem:[#allocation23_spill] sm:$0xff] }
 0x3b5   : > { %v9852_v21 = vpack.c.bf16 %v4610_v46, %v4609_v16  ;;  %v5045_v6 = vor.u32 %v5044_v39, %v5041_v48  ;;  %v15875_v0 = vmul.u32.u64.low 4042322161, %v15844_v41  ;;  %v15876_v12 = vmul.u32.u64.high 4042322161, %v15844_v41, %v15875_v0  ;;  %v15880_v56 = vld [vmem:[#allocation2 + $0x60] sm:$0xf]  ;;  %v15883_v1 = vld [vmem:[#allocation2 + $0x64] sm:$0xf] }
 0x3b6   : > { %v4475_v2 = vadd.f32 %v15629_v54, %v4434_v47  ;;  %vm751_vm15 = vcmp.lt.s32.totalorder %v15832_v42, 0  ;;  %v15886_v50 = vsub.s32 %v15554_v61, %v641_v3  ;;  %v15891_v33 = vcombine.low %v15820_v62, %v15880_v56  ;;  %v15898_v25 = vld [vmem:[#allocation2 + $0x60] sm:$0xf]  ;;  %v15900_v48 = vld [vmem:[#allocation2 + $0x64] sm:$0xf] }
 0x3b7   : > { %10039 = vst [vmem:[#allocation2 + $0x68] sm:$0xff] %v9852_v21   ;;  %v5046_v46 = vsel %vm4948_vm14, %v5036_v5, %v5045_v6  ;;  %v15896_v53 = vsub.s32 %v15642_v32, %v652_v8  ;;  %v4476_v61 = vadd.f32 %v15629_v54, %v4435_v13  ;;  %v15904_v5 = vadd.s32 17, %v15832_v42  ;;  %vm15947_vm11 = vmand %vm751_vm15, %vm717_vm8  ;;  %v17669_v8 = vld [vmem:[#allocation26_spill] sm:$0xff] }
 0x3b8   : > { %v4509_v39 = vmax.f32 %v4475_v2, 0.0  ;;  %11336 = vmatmul.mubr.bf16.gmra.mrb[52].mxu1 %v5046_v46  ;;  %v15907_v3 = vsub.s32 %v15665_v44, %v663_v37  ;;  %vm15909_vm5 = vcmp.eq.s32.totalorder %v851_v11, 16  ;;  %v5369_v32 = vrot.slane %v15891_v33, 3 }
 0x3b9   : > { %vm15914_vm12 = vcmp.eq.s32.totalorder %v852_v45, 16  ;;  %11339 = vmatprep.mubr.msk.bf16.mxu1 %vm17518_vm4, %v17427_v43  ;;  %v5048_v59 = vshrl.u32 %v15891_v33, 16  ;;  %v5051_v47 = vshll.u32 %v15891_v33, 16  ;;  %v4510_v11 = vmax.f32 %v4476_v61, 0.0  ;;  %v4379_v45 = vpop.f32.mrb[68].mxu0 }
 0x3ba   : > { %vm718_vm10 = vcmp.ne.s32.totalorder %v15886_v50, 0  ;;  %vm752_vm0 = vcmp.lt.s32.totalorder %v15886_v50, 0  ;;  %v15927_v37 = vadd.s32 17, %v15886_v50  ;;  %v5370_v21 = vsel %vm5347_vm13, %v5367_v55, %v5369_v32  ;;  %v11269_v33 = vpop.f32.mrb[69].mxu0 }
 0x3bb   : > { %v5050_v0 = vrot.slane %v5048_v59, 3  ;;  %v5053_v2 = vrot.slane %v5051_v47, 4  ;;  %vm719_vm1 = vcmp.ne.s32.totalorder %v15896_v53, 0  ;;  %v4611_v4 = vsel %vm15846_vm2, 0.0, %v4509_v39  ;;  %11424 = vmatmul.mubr.bf16.gmra.mrb[124].mxu0 %v5370_v21  ;;  %v4382_v44 = vpop.f32.mrb[70].mxu0  ;;  %vm15974_vm2 = vmand %vm752_vm0, %vm718_vm10 }
 0x3bc   : > { %v4612_v13 = vsel %vm15851_vm7, 0.0, %v4510_v11  ;;  %v4436_v46 = vadd.f32 %v4379_v45, %v17656_v29  ;;  %vm753_vm6 = vcmp.lt.s32.totalorder %v15896_v53, 0  ;;  %11427 = vmatprep.mubr.msk.bf16.mxu0 %vm17518_vm4, %v17427_v43  ;;  %vm720_vm9 = vcmp.ne.s32.totalorder %v15907_v3, 0  ;;  %v11270_v59 = vpop.f32.mrb[71].mxu0 }
 0x3bd   : > { %v9857_v61 = vpack.c.bf16 %v4612_v13, %v4611_v4  ;;  %v5054_v57 = vor.u32 %v5053_v2, %v5050_v0  ;;  %v673_v49 = vshrl.u32 %v15863_v23, 4  ;;  %v4437_v39 = vadd.f32 %v4382_v44, %v17657_v36  ;;  %vm15992_vm7 = vmand %vm753_vm6, %vm719_vm1 }
 0x3be   : > { %v4477_v55 = vadd.f32 %v15629_v54, %v4436_v46  ;;  %v15951_v11 = vld [vmem:[#allocation2 + $0x68] sm:$0xf]  ;;  %v15953_v45 = vld [vmem:[#allocation2 + $0x6c] sm:$0xf]  ;;  %vm754_vm3 = vcmp.lt.s32.totalorder %v15907_v3, 0  ;;  %v684_v29 = vshrl.u32 %v15876_v12, 4  ;;  %v853_v36 = vsel %vm15947_vm11, %v15904_v5, %v15832_v42 }
 0x3bf   : > { %10040 = vst [vmem:[#allocation2 + $0x70] sm:$0xff] %v9857_v61   ;;  %v5055_v23 = vsel %vm4948_vm14, %v5045_v6, %v5054_v57  ;;  %v15959_v44 = vcombine.low %v15883_v1, %v15951_v11  ;;  %v15963_v0 = vld [vmem:[#allocation2 + $0x68] sm:$0xf]  ;;  %v15965_v2 = vld [vmem:[#allocation2 + $0x6c] sm:$0xf]  ;;  %v4478_v13 = vadd.f32 %v15629_v54, %v4437_v39  ;;  %v821_v59 = vadd.s32 17, %v15896_v53  ;;  %vm16003_vm8 = vmand %vm754_vm3, %vm720_vm9 }
 0x3c0   : > { %v4511_v4 = vmax.f32 %v4477_v55, 0.0  ;;  %11340 = vmatmul.mubr.bf16.gmra.mrb[56].mxu1 %v5055_v23  ;;  %v822_v23 = vadd.s32 17, %v15907_v3  ;;  %v674_v5 = vmul.u32 17, %v673_v49  ;;  %vm16012_vm15 = vcmp.eq.s32.totalorder %v853_v36, 16  ;;  %v17686_v42 = vld [vmem:[#allocation29_spill] sm:$0xff] }
 0x3c1   : > { %v5371_v46 = vrot.slane %v15959_v44, 3  ;;  %11343 = vmatprep.mubr.msk.bf16.mxu1 %vm17518_vm4, %v17427_v43  ;;  %v5057_v33 = vshrl.u32 %v15959_v44, 16  ;;  %v5060_v61 = vshll.u32 %v15959_v44, 16  ;;  %v4512_v55 = vmax.f32 %v4478_v13, 0.0  ;;  %v4387_v44 = vpop.f32.mrb[72].mxu0 }
 0x3c2   : > { %v4613_v47 = vsel %vm15909_vm5, 0.0, %v4511_v4  ;;  %v4438_v28 = vadd.f32 %v4387_v44, %v17666_v58  ;;  %v854_v49 = vsel %vm15974_vm2, %v15927_v37, %v15886_v50  ;;  %v856_v50 = vsel %vm16003_vm8, %v822_v23, %v15907_v3 }
 0x3c3   : > { %v5372_v13 = vsel %vm5347_vm13, %v5369_v32, %v5371_v46  ;;  %v5059_v12 = vrot.slane %v5057_v33, 3  ;;  %v5062_v21 = vrot.slane %v5060_v61, 4  ;;  %v4614_v10 = vsel %vm15914_vm12, 0.0, %v4512_v55  ;;  %v11273_v32 = vpop.f32.mrb[73].mxu0 }
 0x3c4   : > { %11428 = vmatmul.mubr.bf16.gmra.mrb[128].mxu0 %v5372_v13  ;;  %v685_v33 = vmul.u32 17, %v684_v29  ;;  %v9862_v61 = vpack.c.bf16 %v4614_v10, %v4613_v47  ;;  %v4390_v16 = vpop.f32.mrb[74].mxu0  ;;  %v4479_v58 = vadd.f32 %v15629_v54, %v4438_v28  ;;  %v855_v10 = vsel %vm15992_vm7, %v821_v59, %v15896_v53 }
 0x3c5   : > { %v5063_v4 = vor.u32 %v5062_v21, %v5059_v12  ;;  %11431 = vmatprep.mubr.msk.bf16.mxu0 %vm17518_vm4, %v17427_v43  ;;  %v4439_v55 = vadd.f32 %v4390_v16, %v17669_v8  ;;  %v11274_v29 = vpop.f32.mrb[75].mxu0  ;;  %v16040_v6 = vsub.s32 %v15810_v52, %v674_v5  ;;  %vm16048_vm5 = vcmp.eq.s32.totalorder %v854_v49, 16  ;;  %v17678_v8 = vld [vmem:[#allocation27_spill] sm:$0xff] }
 0x3c6   : > { %v16027_v36 = vld [vmem:[#allocation2 + $0x70] sm:$0xf]  ;;  %v16032_v37 = vld [vmem:[#allocation2 + $0x74] sm:$0xf]  ;;  %10041 = vst [vmem:[#allocation2 + $0x78] sm:$0xff] %v9862_v61   ;;  %v4513_v3 = vmax.f32 %v4479_v58, 0.0  ;;  %v16054_v23 = vsub.s32 %v15844_v41, %v685_v33 }
 0x3c7   : > { %17670 = vst [vmem:[#allocation21_spill] sm:$0xff] %v16027_v36  ;;  %17671 = vst [vmem:[#allocation22_spill] sm:$0xff] %v16032_v37  ;;  %v5064_v21 = vsel %vm4948_vm14, %v5054_v57, %v5063_v4  ;;  %v16037_v28 = vcombine.low %v15953_v45, %v16027_v36  ;;  %v16044_v12 = vld [vmem:[#allocation2 + $0x70] sm:$0xf]  ;;  %v16046_v39 = vld [vmem:[#allocation2 + $0x74] sm:$0xf]  ;;  %v4480_v57 = vadd.f32 %v15629_v54, %v4439_v55 }
 0x3c8   : > { %11344 = vmatmul.mubr.bf16.gmra.mrb[60].mxu1 %v5064_v21  ;;  %vm16063_vm12 = vcmp.eq.s32.totalorder %v855_v10, 16  ;;  %vm16067_vm10 = vcmp.eq.s32.totalorder %v856_v50, 16  ;;  %v4395_v32 = vpop.f32.mrb[76].mxu0  ;;  %vm721_vm0 = vcmp.ne.s32.totalorder %v16040_v6, 0  ;;  %v4615_v16 = vsel %vm16012_vm15, 0.0, %v4513_v3  ;;  %v17689_v41 = vld [vmem:[#allocation30_spill] sm:$0xff] }
 0x3c9   : > { %v5373_v52 = vrot.slane %v16037_v28, 3  ;;  %11347 = vmatprep.mubr.msk.bf16.mxu1 %vm17518_vm4, %v17427_v43  ;;  %v5066_v44 = vshrl.u32 %v16037_v28, 16  ;;  %v5069_v13 = vshll.u32 %v16037_v28, 16  ;;  %v4514_v5 = vmax.f32 %v4480_v57, 0.0  ;;  %v11277_v29 = vpop.f32.mrb[77].mxu0  ;;  %v17679_v28 = vld [vmem:[#allocation28_spill] sm:$0xff] }
 0x3ca   : > { %v4440_v55 = vadd.f32 %v4395_v32, %v17678_v8  ;;  %vm755_vm1 = vcmp.lt.s32.totalorder %v16040_v6, 0  ;;  %v4398_v50 = vpop.f32.mrb[78].mxu0  ;;  %vm722_vm6 = vcmp.ne.s32.totalorder %v16054_v23, 0  ;;  %vm756_vm9 = vcmp.lt.s32.totalorder %v16054_v23, 0 }
 0x3cb   : > { %v5374_v33 = vsel %vm5347_vm13, %v5371_v46, %v5373_v52  ;;  %v5068_v61 = vrot.slane %v5066_v44, 3  ;;  %v5071_v49 = vrot.slane %v5069_v13, 4  ;;  %v4616_v58 = vsel %vm16048_vm5, 0.0, %v4514_v5  ;;  %v11278_v59 = vpop.f32.mrb[79].mxu0  ;;  %vm16104_vm11 = vmand %vm755_vm1, %vm721_vm0 }
 0x3cc   : > { %11432 = vmatmul.mubr.bf16.gmra.mrb[132].mxu0 %v5374_v33  ;;  %v9867_v10 = vpack.c.bf16 %v4616_v58, %v4615_v16  ;;  %v823_v46 = vadd.s32 17, %v16040_v6  ;;  %v4481_v51 = vadd.f32 %v15629_v54, %v4440_v55  ;;  %v4441_v3 = vadd.f32 %v4398_v50, %v17679_v28  ;;  %vm16117_vm3 = vmand %vm756_vm9, %vm722_vm6 }
 0x3cd   : > { %v5072_v21 = vor.u32 %v5071_v49, %v5068_v61  ;;  %11435 = vmatprep.mubr.msk.bf16.mxu0 %vm17518_vm4, %v17427_v43  ;;  %v16085_v57 = vld [vmem:[#allocation2 + $0x78] sm:$0xf]  ;;  %v16088_v44 = vld [vmem:[#allocation2 + $0x7c] sm:$0xf]  ;;  %v824_v58 = vadd.s32 17, %v16054_v23 }
 0x3ce   : > { %17680 = vst [vmem:[#allocation23_spill] sm:$0xff] %v16085_v57  ;;  %17681 = vst [vmem:[#allocation24_spill] sm:$0xff] %v16088_v44  ;;  %v9505_v5 = vcombine.low %v16032_v37, %v16085_v57  ;;  %v16095_v33 = vld [vmem:[#allocation2 + $0x78] sm:$0xf]  ;;  %v16097_v61 = vld [vmem:[#allocation2 + $0x7c] sm:$0xf]  ;;  %v4482_v16 = vadd.f32 %v15629_v54, %v4441_v3  ;;  %v857_v28 = vsel %vm16104_vm11, %v823_v46, %v16040_v6 }
 0x3cf   : > { %10042 = vst [vmem:[#allocation2 + $0x80] sm:$0xff] %v9867_v10   ;;  %v5073_v13 = vsel %vm4948_vm14, %v5063_v4, %v5072_v21  ;;  %v4515_v49 = vmax.f32 %v4481_v51, 0.0  ;;  %v4403_v3 = vpop.f32.mrb[80].mxu0  ;;  %v858_v6 = vsel %vm16117_vm3, %v824_v58, %v16054_v23  ;;  %vm16135_vm2 = vcmp.eq.s32.totalorder %v857_v28, 16 }
 0x3d0   : > { %11348 = vmatmul.mubr.bf16.gmra.mrb[64].mxu1 %v5073_v13  ;;  %v5375_v8 = vrot.slane %v9505_v5, 3  ;;  %v5075_v55 = vshrl.u32 %v9505_v5, 16  ;;  %v5078_v29 = vshll.u32 %v9505_v5, 16  ;;  %v4516_v50 = vmax.f32 %v4482_v16, 0.0  ;;  %v11281_v53 = vpop.f32.mrb[81].mxu0 }
 0x3d1   : > { %11351 = vmatprep.mubr.msk.bf16.mxu1 %vm17518_vm4, %v17427_v43  ;;  %v4617_v16 = vsel %vm16063_vm12, 0.0, %v4515_v49  ;;  %v4442_v32 = vadd.f32 %v4403_v3, %v17686_v42  ;;  %v4406_v46 = vpop.f32.mrb[82].mxu0  ;;  %vm892_vm7 = vcmp.eq.s32.totalorder %v858_v6, 16 }
 0x3d2   : > { %v5376_v59 = vsel %vm5347_vm13, %v5373_v52, %v5375_v8  ;;  %v5077_v13 = vrot.slane %v5075_v55, 3  ;;  %v5080_v5 = vrot.slane %v5078_v29, 4  ;;  %v4618_v10 = vsel %vm16067_vm10, 0.0, %v4516_v50  ;;  %v11282_v55 = vpop.f32.mrb[83].mxu0 }
 0x3d3   : > { %v9872_v15 = vpack.c.bf16 %v4618_v10, %v4617_v16  ;;  %v4483_v47 = vadd.f32 %v15629_v54, %v4442_v32  ;;  %v4443_v42 = vadd.f32 %v4406_v46, %v17689_v41 }
 0x3d4   : > { %11436 = vmatmul.mubr.bf16.gmra.mrb[136].mxu0 %v5376_v59  ;;  %v5081_v4 = vor.u32 %v5080_v5, %v5077_v13 }
 0x3d5   : > { %11439 = vmatprep.mubr.msk.bf16.mxu0 %vm17518_vm4, %v17427_v43  ;;  %10043 = vst [vmem:[#allocation2 + $0x88] sm:$0xff] %v9872_v15   ;;  %v4517_v32 = vmax.f32 %v4483_v47, 0.0  ;;  %v4484_v51 = vadd.f32 %v15629_v54, %v4443_v42 }
 0x3d6   : > { %v16141_v53 = vld [vmem:[#allocation2 + $0x80] sm:$0xf]  ;;  %v16143_v49 = vld [vmem:[#allocation2 + $0x84] sm:$0xf]  ;;  %v5082_v23 = vsel %vm4948_vm14, %v5072_v21, %v5081_v4 }
 0x3d7   : > { %17690 = vst [vmem:[#allocation25_spill] sm:$0xff] %v16141_v53  ;;  %17691 = vst [vmem:[#allocation26_spill] sm:$0xff] %v16143_v49  ;;  %v9506_v58 = vcombine.low %v16088_v44, %v16141_v53  ;;  %v16150_v10 = vld [vmem:[#allocation2 + $0x80] sm:$0xf]  ;;  %v16152_v50 = vld [vmem:[#allocation2 + $0x84] sm:$0xf] }
 0x3d8   : > { %11352 = vmatmul.mubr.bf16.gmra.mrb[68].mxu1 %v5082_v23  ;;  %v4518_v59 = vmax.f32 %v4484_v51, 0.0  ;;  %v4619_v6 = vsel %vm16135_vm2, 0.0, %v4517_v32  ;;  %v12496_v51 = vld [vmem:[#allocation2 + $0x14] sm:$0xf]  ;;  %v12498_v23 = vld [vmem:[#allocation2 + $0x10] sm:$0xf] }
 0x3d9   : > { %v5377_v28 = vrot.slane %v9506_v58, 3  ;;  %11355 = vmatprep.mubr.msk.bf16.mxu1 %vm17518_vm4, %v17427_v43  ;;  %v5084_v15 = vshrl.u32 %v9506_v58, 16  ;;  %v5087_v21 = vshll.u32 %v9506_v58, 16  ;;  %v5919_v58 = vld [vmem:[#allocation2 + $0xc] sm:$0x8] }
 0x3da   : > { %v4620_v46 = vsel %vm892_vm7, 0.0, %v4518_v59  ;;  %v9551_v29 = vcombine.low %v5919_v58, %v12498_v23 }
 0x3db   : > { %v5378_v13 = vsel %vm5347_vm13, %v5375_v8, %v5377_v28  ;;  %v5086_v5 = vrot.slane %v5084_v15, 3  ;;  %v5089_v16 = vrot.slane %v5087_v21, 4  ;;  %v9877_v54 = vpack.c.bf16 %v4620_v46, %v4619_v6  ;;  %v12497_v15 = vld [vmem:[#allocation2 + $0x18] sm:$0xf] }
 0x3dc   : > { %11440 = vmatmul.mubr.bf16.gmra.mrb[140].mxu0 %v5378_v13  ;;  %v16164_v41 = vld [vmem:[#allocation2 + $0x88] sm:$0xf]  ;;  %v16166_v42 = vld [vmem:[#allocation2 + $0x8c] sm:$0xf]  ;;  %v9552_v21 = vcombine.low %v12496_v51, %v12497_v15  ;;  %v6063_v58 = vshll.u32 %v9551_v29, 16 }
 0x3dd   : > { %v5090_v47 = vor.u32 %v5089_v16, %v5086_v5  ;;  %11443 = vmatprep.mubr.msk.bf16.mxu0 %vm17518_vm4, %v17427_v43  ;;  %17692 = vst [vmem:[#allocation27_spill] sm:$0xff] %v16164_v41  ;;  %17693 = vst [vmem:[#allocation28_spill] sm:$0xff] %v16166_v42  ;;  %v9507_v8 = vcombine.low %v16143_v49, %v16164_v41  ;;  %v9508_v52 = vcombine.low %v16166_v42, %v16166_v42  ;;  %v12361_v32 = vld [vmem:[#allocation2 + $0x8c] ss:$0 sps:$4 sm:$0x77]  }
 0x3de   : > { %10044 = vst [vmem:[#allocation2 + $0x90] sm:$0xff] %v9877_v54   ;;  %v16177_v5 = vld [vmem:[#allocation2 + $0x88] sm:$0xf]  ;;  %v16179_v46 = vld [vmem:[#allocation2 + $0x8c] sm:$0xf]  ;;  %v6068_v51 = vshrl.u32 %v9552_v21, 16 }
 0x3df   : > { %v5091_v55 = vsel %vm4948_vm14, %v5081_v4, %v5090_v47  ;;  %v5379_v59 = vrot.slane %v9507_v8, 3  ;;  %v5093_v4 = vshrl.u32 %v9507_v8, 16  ;;  %v5096_v13 = vshll.u32 %v9507_v8, 16  ;;  %17694 = vst [vmem:[#allocation29_spill] sm:$0xff] %v16179_v46  ;;  %v12482_v46 = vld [vmem:[#allocation2 + $0x80] sm:$0xff]  }
 0x3e0   : > { %11356 = vmatmul.mubr.bf16.gmra.mrb[72].mxu1 %v5091_v55  ;;  %v5102_v16 = vshrl.u32 %v9508_v52, 16  ;;  %v5105_v6 = vshll.u32 %v9508_v52, 16  ;;  %v5381_v42 = vrot.slane %v12361_v32, 3  ;;  %v6071_v8 = vshll.u32 %v9552_v21, 16  ;;  %v12499_v32 = vld [vmem:[#allocation2 + $0x1c] sm:$0xf] }
 0x3e1   : > { %11359 = vmatprep.mubr.msk.bf16.mxu1 %vm17518_vm4, %v17427_v43  ;;  %v5380_v54 = vsel %vm5347_vm13, %v5377_v28, %v5379_v59  ;;  %v5095_v3 = vrot.slane %v5093_v4, 3  ;;  %v5098_v55 = vrot.slane %v5096_v13, 4  ;;  %v12500_v21 = vld [vmem:[#allocation2 + $0x20] sm:$0xf]  ;;  %v6065_v23 = vrot.slane %v6063_v58, 4 }
 0x3e2   : > { %v5104_v52 = vrot.slane %v5102_v16, 3  ;;  %v5107_v49 = vrot.slane %v5105_v6, 4  ;;  %v9553_v13 = vcombine.low %v12499_v32, %v12500_v21  ;;  %v5382_v16 = vsel %vm5347_vm13, %v5379_v59, %v5381_v42  ;;  %v12401_v42 = vld [vmem:[#allocation3 + $0x140] sm:$0xff]   ;;  %v12504_v58 = vld [vmem:[#allocation2 + $0xc] sm:$0xf] }
 0x3e3   : > { %v5099_v15 = vor.u32 %v5098_v55, %v5095_v3  ;;  %v6060_v3 = vshrl.u32 %v9551_v29, 16  ;;  %v6073_v55 = vrot.slane %v6071_v8, 4  ;;  %v12501_v8 = vld [vmem:[#allocation2 + $0x24] sm:$0xf]  ;;  %vm17697_vm13 = vcmask 1046528  }
 0x3e4   : > { %11444 = vmatmul.mubr.bf16.gmra.mrb[144].mxu0 %v5380_v54  ;;  %v5108_v6 = vor.u32 %v5107_v49, %v5104_v52  ;;  %v6070_v54 = vrot.slane %v6068_v51, 3  ;;  %v6080_v41 = vshll.u32 %v9553_v13, 16  ;;  %v12502_v52 = vld [vmem:[#allocation2 + $0x28] sm:$0xf]  ;;  %vm17699_vm8 = vmmov %vm17697_vm13 }
 0x3e5   : > { %11447 = vmatprep.mubr.msk.bf16.mxu0 %vm17518_vm4, %v17427_v43  ;;  %v16186_v53 = vld [vmem:[#allocation2 + $0x90] sm:$0xf]  ;;  %v16188_v28 = vld [vmem:[#allocation2 + $0x94] sm:$0xf]  ;;  %v5100_v4 = vsel %vm4948_vm14, %v5090_v47, %v5099_v15  ;;  %v6062_v47 = vrot.slane %v6060_v3, 3  ;;  %v9554_v32 = vcombine.low %v12501_v8, %v12502_v52  ;;  %vm17701_vm15 = vmmov %vm17699_vm8 }
 0x3e6   : > { %17695 = vst [vmem:[#allocation30_spill] sm:$0xff] %v16188_v28  ;;  %v5109_v44 = vsel %vm4948_vm14, %v5099_v15, %v5108_v6  ;;  %v6074_v57 = vor.u32 %v6073_v55, %v6070_v54  ;;  %v6082_v59 = vrot.slane %v6080_v41, 4  ;;  %v12503_v3 = vld [vmem:[#allocation2 + $0x8] sm:$0xf]  ;;  %v12403_v15 = vld [vmem:[#allocation3 + $0x148] sm:$0xff]   ;;  %v12379_v52 = vld [vmem:[#allocation3 + $0x110] sm:$0xff]  }
 0x3e7   : > { %v6066_v29 = vor.u32 %v6065_v23, %v6062_v47  ;;  %v9526_v21 = vcombine.low %v12503_v3, %v12504_v58  ;;  %v6086_v23 = vshrl.u32 %v9554_v32, 16  ;;  %v6089_v41 = vshll.u32 %v9554_v32, 16  ;;  %v12506_v6 = vld [vmem:[#allocation2 + $0x30] sm:$0xf]  ;;  %v8290_v8 = vld [vmem:[#allocation2 + $0x18] sm:$0xe]  ;;  %vm17703_vm5 = vmmov %vm17699_vm8 }
 0x3e8   : > { %11360 = vmatmul.mubr.bf16.gmra.mrb[76].mxu1 %v5100_v4  ;;  %v6077_v4 = vshrl.u32 %v9553_v13, 16  ;;  %v12369_v13 = vld [vmem:[#allocation3 + $0x100] sm:$0xff]   ;;  %v12374_v55 = vld [vmem:[#allocation3 + $0x108] sm:$0xff]   ;;  %v12479_v28 = vld [vmem:[#allocation2 + $0x78] sm:$0xff]  }
 0x3e9   : > { %11363 = vmatprep.mubr.msk.bf16.mxu1 %vm17518_vm4, %v17427_v43  ;;  %v6075_v51 = vsel %vm4948_vm14, %v6066_v29, %v6074_v57  ;;  %v7743_v29 = vld [vmem:[#allocation2 + $0x1c] sm:$0xf]  ;;  %v12452_v32 = vld [vmem:[#allocation2 + $0x20] sm:$0xff]   ;;  %v12455_v3 = vld [vmem:[#allocation2 + $0x28] sm:$0xff]  }
 0x3ea   : > { %v6079_v49 = vrot.slane %v6077_v4, 3  ;;  %v12406_v4 = vld [vmem:[#allocation3 + $0x150] sm:$0xff]   ;;  %v9679_v58 = vcombine.low %v8290_v8, %v7743_v29  ;;  %v12465_v29 = vld [vmem:[#allocation2 + $0x48] sm:$0xff]   ;;  %v8314_v8 = vrot.slane %v12455_v3, 1  ;;  %vm17706_vm12 = vmmov %vm17703_vm5 }
 0x3eb   : > { %vm17708_vm10 = vmmov %vm17703_vm5 }
 0x3ec   : > { %11448 = vmatmul.mubr.bf16.gmra.mrb[148].mxu0 %v5382_v16  ;;  %v12505_v16 = vld [vmem:[#allocation2 + $0x2c] sm:$0xf]  ;;  %vm17711_vm0 = vmmov %vm17703_vm5 }
 0x3ed   : > { %11551 = vmatprep.mubr.msk.bf16.mxu0 %vm17518_vm4, %v17427_v43  ;;  %v9555_v54 = vcombine.low %v12505_v16, %v12506_v6  ;;  %v17696_v16 = vcombine.low %v14865_v35, %v14867_v30  ;;  %v12507_v6 = vld [vmem:[#allocation2 + $0x34] sm:$0xf]  ;;  %v8311_v35 = vrot.slane %v9679_v58, 1  ;;  %v8312_v30 = vrot.slane %v12452_v32, 1  ;;  %vm17713_vm1 = vmmov %vm17711_vm0 }
 0x3ee   : > { %vm17715_vm6 = vmmov %vm17711_vm0 }
 0x3ef   : > { %v16231_v58 = vsel %vm17697_vm13, %v8311_v35, %v8312_v30  ;;  %v16234_v32 = vsel %vm17699_vm8, %v8312_v30, %v8314_v8  ;;  %v8322_v35 = vrot.slane %v12465_v29, 1  ;;  %v12412_v30 = vld [vmem:[#allocation3 + $0x168] sm:$0xff]   ;;  %v8334_v29 = vrot.slane %v12479_v28, 1  ;;  %vm17717_vm9 = vmmov %vm17711_vm0 }
 0x3f0   : > { %11364 = vmatmul.mubr.bf16.gmra.mrb[80].mxu1 %v5109_v44  ;;  %v6083_v44 = vor.u32 %v6082_v59, %v6079_v49  ;;  %v6091_v49 = vrot.slane %v6089_v41, 4  ;;  %v6095_v59 = vshrl.u32 %v9555_v54, 16  ;;  %v12460_v41 = vld [vmem:[#allocation2 + $0x38] sm:$0xff]   ;;  %17698 = vst [vmem:[#allocation39_spill] sm:$0xff] %v16231_v58  ;;  %17700 = vst [vmem:[#allocation40_spill] sm:$0xff] %v16234_v32  ;;  %v17785_v58 = vld [vmem:[#allocation16_spill] sm:$0xff] }
 0x3f1   : > { %11467 = vmatprep.mubr.msk.bf16.mxu1 %vm17518_vm4, %v17427_v43  ;;  %v8318_v36 = vrot.slane %v12460_v41, 1  ;;  %vm17719_vm11 = vmmov %vm17711_vm0 }
 0x3f2   : > { %v6084_v47 = vsel %vm4948_vm14, %v6074_v57, %v6083_v44  ;;  %v12407_v57 = vld [vmem:[#allocation3 + $0x158] sm:$0xff]   ;;  %vm17721_vm3 = vmmov %vm17711_vm0 }
 0x3f3   : > { %vm17723_vm2 = vmmov %vm17711_vm0 }
 0x3f4   : > { %11552 = vmatmul.mubr.bf16.vlgmr.msra.gmra.mrb[152].mxu0 %v6075_v51  ;;  %v6098_v51 = vshll.u32 %v9555_v54, 16  ;;  %v12508_v54 = vld [vmem:[#allocation2 + $0x38] sm:$0xf]  ;;  %vm17725_vm7 = vmmov %vm17711_vm0 }
 0x3f5   : > { %11555 = vmatprep.mubr.msk.bf16.mxu0 %vm17518_vm4, %v17427_v43  ;;  %11704 = vmatpush3.bf16.msra.mxu0 %v12401_v42  ;;  %v6088_v42 = vrot.slane %v6086_v23, 3  ;;  %v12457_v23 = vld [vmem:[#allocation2 + $0x30] sm:$0xff]   ;;  %vm17727_vm13 = vmmov %vm17711_vm0 }
 0x3f6   : > { %11705 = vmatprep.subr.bf16.mxu0 %v17427_v43  ;;  %v8316_v37 = vrot.slane %v12457_v23, 1 }
 0x3f8   : > { %11468 = vmatmul.mubr.bf16.vlgmr.msra.gmra.mrb[84].mxu1 %v9526_v21  ;;  %v16213_v21 = vor.u32 %v6091_v49, %v6088_v42  ;;  %v12467_v42 = vld [vmem:[#allocation2 + $0x50] sm:$0xff]   ;;  %v12410_v49 = vld [vmem:[#allocation3 + $0x160] sm:$0xff]   ;;  %v16240_v23 = vsel %vm17701_vm15, %v8314_v8, %v8316_v37  ;;  %v16243_v41 = vsel %vm17703_vm5, %v8316_v37, %v8318_v36 }
 0x3f9   : > { %11620 = vmatpush3.bf16.msra.mxu1 %v12369_v13  ;;  %11471 = vmatprep.mubr.msk.bf16.mxu1 %vm17518_vm4, %v17427_v43  ;;  %v6097_v13 = vrot.slane %v6095_v59, 3  ;;  %v12469_v59 = vld [vmem:[#allocation2 + $0x58] sm:$0xff]   ;;  %17702 = vst [vmem:[#allocation41_spill] sm:$0xff] %v16240_v23  ;;  %17704 = vst [vmem:[#allocation42_spill] sm:$0xff] %v16243_v41 }
 0x3fa   : > { %11621 = vmatprep.subr.bf16.mxu1 %v17427_v43  ;;  %11706 = vmatpush3.bf16.msra.mxu0 %v12403_v15  ;;  %v6100_v15 = vrot.slane %v6098_v51, 4  ;;  %v12472_v51 = vld [vmem:[#allocation2 + $0x60] sm:$0xff]  }
 0x3fb   : > { %11707 = vmatprep.subr.bf16.mxu0 %v17427_v43  ;;  %v8328_v32 = vrot.slane %v12472_v51, 1  ;;  %v12396_v51 = vld [vmem:[#allocation3 + $0x128] sm:$0xff]  }
 0x3fc   : > { %11556 = vmatmul.mubr.bf16.gmra.mrb[156].mxu0 %v6084_v47  ;;  %v12462_v47 = vld [vmem:[#allocation2 + $0x40] sm:$0xff]  }
 0x3fd   : > { %11559 = vmatprep.mubr.msk.bf16.mxu0 %vm17518_vm4, %v17427_v43  ;;  %11622 = vmatpush3.bf16.msra.mxu1 %v12374_v55  ;;  %v16219_v55 = vcombine.low %v12507_v6, %v12508_v54  ;;  %v16226_v6 = vor.u32 %v6100_v15, %v6097_v13  ;;  %v12477_v54 = vld [vmem:[#allocation2 + $0x70] sm:$0xff]   ;;  %v12391_v13 = vld [vmem:[#allocation3 + $0x120] sm:$0xff]  }
 0x3fe   : > { %11623 = vmatprep.subr.bf16.mxu1 %v17427_v43  ;;  %11708 = vmatpush3.bf16.msra.mxu0 %v12406_v4  ;;  %v12386_v4 = vld [vmem:[#allocation3 + $0x118] sm:$0xff]   ;;  %v12484_v15 = vld [vmem:[#allocation2 + $0x88] sm:$0xff]   ;;  %v8332_v41 = vrot.slane %v12477_v54, 1 }
 0x3ff   : > { %11709 = vmatprep.subr.bf16.mxu0 %v17427_v43  ;;  %v6107_v3 = vshll.u32 %v16219_v55, 16  ;;  %v6102_v54 = vsel %vm4948_vm14, %v16213_v21, %v16226_v6 }
 0x400   : > { %11472 = vmatmul.mubr.bf16.gmra.mrb[88].mxu1 %v17696_v16  ;;  %v6093_v16 = vsel %vm4948_vm14, %v6083_v44, %v16213_v21  ;;  %v8320_v44 = vrot.slane %v12462_v47, 1  ;;  %v16246_v47 = vld [vmem:[#allocation2 + $0x90] sm:$0xff]  }
 0x401   : > { %11475 = vmatprep.mubr.msk.bf16.mxu1 %vm17518_vm4, %v17427_v43  ;;  %11624 = vmatpush3.bf16.msra.mxu1 %v12379_v52  ;;  %v12474_v52 = vld [vmem:[#allocation2 + $0x68] sm:$0xff]   ;;  %17705 = vst [vmem:[#allocation43_spill] sm:$0xff] %v16246_v47 }
 0x402   : > { %11625 = vmatprep.subr.bf16.mxu1 %v17427_v43  ;;  %11710 = vmatpush3.bf16.msra.mxu0 %v12407_v57  ;;  %v6104_v57 = vshrl.u32 %v16219_v55, 16  ;;  %v8324_v55 = vrot.slane %v12467_v42, 1  ;;  %v16253_v8 = vsel %vm17708_vm10, %v8320_v44, %v8322_v35  ;;  %v8330_v37 = vrot.slane %v12474_v52, 1 }
 0x403   : > { %11711 = vmatprep.subr.bf16.mxu0 %v17427_v43  ;;  %17709 = vst [vmem:[#allocation45_spill] sm:$0xff] %v16253_v8  ;;  %v8338_v52 = vrot.slane %v12484_v15, 1  ;;  %v17779_v8 = vld [vmem:[#allocation14_spill] sm:$0xff] }
 0x404   : > { %11560 = vmatmul.mubr.bf16.gmra.mrb[160].mxu0 %v6093_v16  ;;  %v16249_v16 = vsel %vm17706_vm12, %v8318_v36, %v8320_v44  ;;  %v16259_v23 = vsel %vm17711_vm0, %v8322_v35, %v8324_v55  ;;  %v16270_v28 = vsel %vm17717_vm9, %v8328_v32, %v8330_v37  ;;  %v6109_v35 = vrot.slane %v6107_v3, 4  ;;  %v12416_v3 = vld [vmem:[#allocation3 + $0x178] sm:$0xff]  }
 0x405   : > { %11563 = vmatprep.mubr.msk.bf16.mxu0 %vm17518_vm4, %v17427_v43  ;;  %11626 = vmatpush3.bf16.msra.mxu1 %v12386_v4  ;;  %17707 = vst [vmem:[#allocation44_spill] sm:$0xff] %v16249_v16  ;;  %v8326_v4 = vrot.slane %v12469_v59, 1  ;;  %17712 = vst [vmem:[#allocation46_spill] sm:$0xff] %v16259_v23  ;;  %v8336_v59 = vrot.slane %v12482_v46, 1  ;;  %v12415_v46 = vld [vmem:[#allocation3 + $0x170] sm:$0xff]   ;;  %v17784_v16 = vld [vmem:[#allocation15_spill] sm:$0xff] }
 0x406   : > { %11627 = vmatprep.subr.bf16.mxu1 %v17427_v43  ;;  %11712 = vmatpush3.bf16.msra.mxu0 %v12410_v49  ;;  %v17710_v49 = vcombine.low %v14980_v9, %v14986_v7  ;;  %17718 = vst [vmem:[#allocation49_spill] sm:$0xff] %v16270_v28  ;;  %v16273_v9 = vsel %vm17719_vm11, %v8330_v37, %v8332_v41  ;;  %v17778_v23 = vld [vmem:[#allocation13_spill] sm:$0xff] }
 0x407   : > { %11713 = vmatprep.subr.bf16.mxu0 %v17427_v43  ;;  %v16262_v36 = vsel %vm17713_vm1, %v8324_v55, %v8326_v4  ;;  %v16265_v42 = vsel %vm17715_vm6, %v8326_v4, %v8328_v32  ;;  %17720 = vst [vmem:[#allocation50_spill] sm:$0xff] %v16273_v9  ;;  %v16276_v7 = vsel %vm17721_vm3, %v8332_v41, %v8334_v29  ;;  %v17395_v32 = vrot.slane %v16246_v47, 1  ;;  %v12509_v55 = vld [vmem:[#allocation2 + $0x3c] sm:$0xf]  ;;  %v12510_v4 = vld [vmem:[#allocation2 + $0x40] sm:$0xf] }
 0x408   : > { %11476 = vmatmul.mubr.bf16.gmra.mrb[92].mxu1 %v17710_v49  ;;  %17714 = vst [vmem:[#allocation47_spill] sm:$0xff] %v16262_v36  ;;  %17716 = vst [vmem:[#allocation48_spill] sm:$0xff] %v16265_v42  ;;  %v16283_v44 = vsel %vm17723_vm2, %v8334_v29, %v8336_v59  ;;  %v9557_v41 = vcombine.low %v12509_v55, %v12510_v4  ;;  %v16288_v15 = vsel %vm17725_vm7, %v8336_v59, %v8338_v52  ;;  %v12411_v59 = vld [vmem:[#allocation3 + $0x138] sm:$0xff]   ;;  %v17775_v36 = vld [vmem:[#allocation12_spill] sm:$0xff] }
 0x409   : > { %11479 = vmatprep.mubr.msk.bf16.mxu1 %vm17518_vm4, %v17427_v43  ;;  %11628 = vmatpush3.bf16.msra.mxu1 %v12391_v13  ;;  %17722 = vst [vmem:[#allocation51_spill] sm:$0xff] %v16276_v7  ;;  %17724 = vst [vmem:[#allocation52_spill] sm:$0xff] %v16283_v44  ;;  %v6106_v13 = vrot.slane %v6104_v57, 3  ;;  %v16293_v21 = vsel %vm17727_vm13, %v8338_v52, %v17395_v32  ;;  %v12402_v57 = vld [vmem:[#allocation3 + $0x130] sm:$0xff]   ;;  %v17729_v49 = vcombine.low %v15106_v34, %v15108_v20  ;;  %v17767_v44 = vld [vmem:[#allocation38_spill] sm:$0xff] }
 0x40a   : > { %11629 = vmatprep.subr.bf16.mxu1 %v17427_v43  ;;  %11714 = vmatpush3.bf16.msra.mxu0 %v12412_v30  ;;  %17726 = vst [vmem:[#allocation53_spill] sm:$0xff] %v16288_v15  ;;  %17728 = vst [vmem:[#allocation54_spill] sm:$0xff] %v16293_v21  ;;  %v6113_v37 = vshrl.u32 %v9557_v41, 16  ;;  %v6116_v29 = vshll.u32 %v9557_v41, 16  ;;  %v17763_v21 = vld [vmem:[#allocation36_spill] sm:$0xff]  ;;  %v17774_v42 = vld [vmem:[#allocation10_spill] sm:$0xff] }
 0x40b   : > { %11715 = vmatprep.subr.bf16.mxu0 %v17427_v43  ;;  %v6110_v30 = vor.u32 %v6109_v35, %v6106_v13  ;;  %v12512_v13 = vld [vmem:[#allocation2 + $0x48] sm:$0xf] }
 0x40c   : > { %11564 = vmatmul.mubr.bf16.gmra.mrb[164].mxu0 %v6102_v54  ;;  %v6115_v52 = vrot.slane %v6113_v37, 3  ;;  %v6118_v54 = vrot.slane %v6116_v29, 4  ;;  %v12514_v37 = vld [vmem:[#allocation2 + $0x50] sm:$0xf] }
 0x40d   : > { %11567 = vmatprep.mubr.msk.bf16.mxu0 %vm17518_vm4, %v17427_v43  ;;  %11630 = vmatpush3.bf16.msra.mxu1 %v12396_v51  ;;  %v6111_v51 = vsel %vm4948_vm14, %v16226_v6, %v6110_v30  ;;  %v17730_v6 = vcombine.low %v15229_v60, %v15231_v24  ;;  %v17731_v60 = vcombine.low %v15328_v19, %v15330_v14 }
 0x40e   : > { %11631 = vmatprep.subr.bf16.mxu1 %v17427_v43  ;;  %11716 = vmatpush3.bf16.msra.mxu0 %v12415_v46  ;;  %v12511_v46 = vld [vmem:[#allocation2 + $0x44] sm:$0xf]  ;;  %v6119_v34 = vor.u32 %v6118_v54, %v6115_v52  ;;  %v12515_v54 = vld [vmem:[#allocation2 + $0x54] sm:$0xf]  ;;  %v17732_v19 = vcombine.low %v15415_v27, %v15417_v22  ;;  %v17733_v27 = vcombine.low %v15521_v63, %v15523_v18 }
 0x40f   : > { %11717 = vmatprep.subr.bf16.mxu0 %v17427_v43  ;;  %v9558_v35 = vcombine.low %v12511_v46, %v12512_v13  ;;  %v12516_v46 = vld [vmem:[#allocation2 + $0x58] sm:$0xf]  ;;  %v17734_v63 = vcombine.low %v15633_v26, %v15639_v17  ;;  %v17735_v17 = vcombine.low %v15724_v38, %v15726_v31 }
 0x410   : > { %11480 = vmatmul.mubr.bf16.gmra.mrb[96].mxu1 %v17729_v49  ;;  %v6120_v4 = vsel %vm4948_vm14, %v6110_v30, %v6119_v34  ;;  %v9560_v13 = vcombine.low %v12515_v54, %v12516_v46  ;;  %v9563_v54 = vcombine.low %v15965_v2, %v16044_v12 }
 0x411   : > { %11483 = vmatprep.mubr.msk.bf16.mxu1 %vm17518_vm4, %v17427_v43  ;;  %11632 = vmatpush3.bf16.msra.mxu1 %v12402_v57  ;;  %v6122_v20 = vshrl.u32 %v9558_v35, 16  ;;  %v6125_v55 = vshll.u32 %v9558_v35, 16 }
 0x412   : > { %11633 = vmatprep.subr.bf16.mxu1 %v17427_v43  ;;  %11718 = vmatpush3.bf16.msra.mxu0 %v12416_v3  ;;  %v12513_v3 = vld [vmem:[#allocation2 + $0x4c] sm:$0xf] }
 0x413   : > { %11871 = vmatprep.subr.bf16.mxu0 %v17427_v43  ;;  %v6124_v41 = vrot.slane %v6122_v20, 3  ;;  %v6127_v57 = vrot.slane %v6125_v55, 4  ;;  %v9559_v29 = vcombine.low %v12513_v3, %v12514_v37  ;;  %v6140_v20 = vshrl.u32 %v9560_v13, 16 }
 0x414   : > { %11568 = vmatmul.mubr.bf16.gmra.mrb[168].mxu0 %v6111_v51  ;;  %v6143_v55 = vshll.u32 %v9560_v13, 16 }
 0x415   : > { %11571 = vmatprep.mubr.msk.bf16.mxu0 %vm17518_vm4, %v17427_v43  ;;  %11634 = vmatpush3.bf16.msra.mxu1 %v12411_v59  ;;  %v6128_v49 = vor.u32 %v6127_v57, %v6124_v41  ;;  %v6131_v59 = vshrl.u32 %v9559_v29, 16  ;;  %v6134_v51 = vshll.u32 %v9559_v29, 16 }
 0x416   : > { %11787 = vmatprep.subr.bf16.mxu1 %v17427_v43 }
 0x417   : > { %v6129_v24 = vsel %vm4948_vm14, %v6119_v34, %v6128_v49  ;;  %v6133_v30 = vrot.slane %v6131_v59, 3  ;;  %v6136_v52 = vrot.slane %v6134_v51, 4  ;;  %v6142_v34 = vrot.slane %v6140_v20, 3 }
 0x418   : > { %11484 = vmatmul.mubr.bf16.gmra.mrb[100].mxu1 %v17730_v6  ;;  %v6145_v6 = vrot.slane %v6143_v55, 4  ;;  %v9562_v59 = vcombine.low %v15900_v48, %v15963_v0  ;;  %v6170_v20 = vshll.u32 %v9563_v54, 16 }
 0x419   : > { %11487 = vmatprep.mubr.msk.bf16.mxu1 %vm17518_vm4, %v17427_v43  ;;  %v6137_v35 = vor.u32 %v6136_v52, %v6133_v30 }
 0x41a   : > { %v6146_v57 = vor.u32 %v6145_v6, %v6142_v34 }
 0x41b   : > { %v6138_v14 = vsel %vm4948_vm14, %v6128_v49, %v6137_v35 }
 0x41c   : > { %11572 = vmatmul.mubr.bf16.gmra.mrb[172].mxu0 %v6120_v4  ;;  %v12517_v4 = vld [vmem:[#allocation2 + $0x5c] sm:$0xf]  ;;  %v6147_v22 = vsel %vm4948_vm14, %v6137_v35, %v6146_v57  ;;  %v6167_v35 = vshrl.u32 %v9563_v54, 16  ;;  %v9565_v54 = vcombine.low %v16097_v61, %v16150_v10 }
 0x41d   : > { %11575 = vmatprep.mubr.msk.bf16.mxu0 %vm17518_vm4, %v17427_v43  ;;  %v9561_v41 = vcombine.low %v12517_v4, %v15898_v25  ;;  %v6172_v4 = vrot.slane %v6170_v20, 4 }
 0x41e   : > { %v6169_v6 = vrot.slane %v6167_v35, 3 }
 0x41f   : > { %v6149_v3 = vshrl.u32 %v9561_v41, 16  ;;  %v6152_v37 = vshll.u32 %v9561_v41, 16  ;;  %v9564_v41 = vcombine.low %v16046_v39, %v16095_v33 }
 0x420   : > { %11488 = vmatmul.mubr.bf16.gmra.mrb[104].mxu1 %v17731_v60  ;;  %v6158_v60 = vshrl.u32 %v9562_v59, 16 }
 0x421   : > { %11491 = vmatprep.mubr.msk.bf16.mxu1 %vm17518_vm4, %v17427_v43  ;;  %v6151_v29 = vrot.slane %v6149_v3, 3  ;;  %v6154_v49 = vrot.slane %v6152_v37, 4 }
 0x422   : > { %v6160_v30 = vrot.slane %v6158_v60, 3 }
 0x423   : > { %v6155_v51 = vor.u32 %v6154_v49, %v6151_v29  ;;  %v6176_v29 = vshrl.u32 %v9564_v41, 16  ;;  %v6179_v49 = vshll.u32 %v9564_v41, 16 }
 0x424   : > { %11576 = vmatmul.mubr.bf16.gmra.mrb[176].mxu0 %v6129_v24  ;;  %v6161_v24 = vshll.u32 %v9562_v59, 16 }
 0x425   : > { %11579 = vmatprep.mubr.msk.bf16.mxu0 %vm17518_vm4, %v17427_v43  ;;  %v6156_v18 = vsel %vm4948_vm14, %v6146_v57, %v6155_v51 }
 0x426   : > { %v6163_v52 = vrot.slane %v6161_v24, 4 }
 0x428   : > { %11492 = vmatmul.mubr.bf16.gmra.mrb[108].mxu1 %v17732_v19  ;;  %v6164_v13 = vor.u32 %v6163_v52, %v6160_v30  ;;  %v6178_v30 = vrot.slane %v6176_v29, 3  ;;  %v6181_v52 = vrot.slane %v6179_v49, 4 }
 0x429   : > { %11495 = vmatprep.mubr.msk.bf16.mxu1 %vm17518_vm4, %v17427_v43 }
 0x42a   : > { %v6165_v34 = vsel %vm4948_vm14, %v6155_v51, %v6164_v13  ;;  %v17736_v51 = vcombine.low %v15814_v40, %v15820_v62 }
 0x42c   : > { %11580 = vmatmul.mubr.bf16.gmra.mrb[180].mxu0 %v6138_v14 }
 0x42d   : > { %11583 = vmatprep.mubr.msk.bf16.mxu0 %vm17518_vm4, %v17427_v43 }
 0x430   : > { %11496 = vmatmul.mubr.bf16.gmra.mrb[112].mxu1 %v17733_v27 }
 0x431   : > { %11499 = vmatprep.mubr.msk.bf16.mxu1 %vm17518_vm4, %v17427_v43 }
 0x434   : > { %11584 = vmatmul.mubr.bf16.gmra.mrb[184].mxu0 %v6147_v22  ;;  %v6173_v22 = vor.u32 %v6172_v4, %v6169_v6 }
 0x435   : > { %11587 = vmatprep.mubr.msk.bf16.mxu0 %vm17518_vm4, %v17427_v43 }
 0x438   : > { %11500 = vmatmul.mubr.bf16.gmra.mrb[116].mxu1 %v17734_v63 }
 0x439   : > { %11503 = vmatprep.mubr.msk.bf16.mxu1 %vm17518_vm4, %v17427_v43  ;;  %v5482_v46 = vpop.f32.mrb[84].mxu0 }
 0x43a   : > { %v11385_v26 = vpop.f32.mrb[85].mxu0 }
 0x43b   : > { %v5485_v55 = vpop.f32.mrb[86].mxu0 }
 0x43c   : > { %11588 = vmatmul.mubr.bf16.gmra.mrb[188].mxu0 %v6156_v18  ;;  %v11386_v19 = vpop.f32.mrb[87].mxu0  ;;  %v6174_v18 = vsel %vm4948_vm14, %v6164_v13, %v6173_v22  ;;  %v6188_v13 = vshll.u32 %v9565_v54, 16 }
 0x43d   : > { %11591 = vmatprep.mubr.msk.bf16.mxu0 %vm17518_vm4, %v17427_v43 }
 0x43e   : > { %v5209_v14 = vpop.f32.mrb[16].mxu1 }
 0x43f   : > { %v16364_v57 = vadd.f32 %v5482_v46, %v5209_v14  ;;  %v11301_v3 = vpop.f32.mrb[17].mxu1  ;;  %v17737_v14 = vcombine.low %v15880_v56, %v15883_v1 }
 0x440   : > { %11504 = vmatmul.mubr.bf16.gmra.mrb[120].mxu1 %v17735_v17  ;;  %v5212_v37 = vpop.f32.mrb[18].mxu1  ;;  %v6182_v17 = vor.u32 %v6181_v52, %v6178_v30 }
 0x441   : > { %11507 = vmatprep.mubr.msk.bf16.mxu1 %vm17518_vm4, %v17427_v43  ;;  %v16368_v38 = vadd.f32 %v5485_v55, %v5212_v37  ;;  %v11302_v31 = vpop.f32.mrb[19].mxu1  ;;  %v5490_v27 = vpop.f32.mrb[88].mxu0  ;;  %v6185_v55 = vshrl.u32 %v9565_v54, 16  ;;  %v6190_v37 = vrot.slane %v6188_v13, 4 }
 0x442   : > { %v11389_v59 = vpop.f32.mrb[89].mxu0  ;;  %v6183_v41 = vsel %vm4948_vm14, %v6173_v22, %v6182_v17  ;;  %v9566_v31 = vcombine.low %v16152_v50, %v16177_v5 }
 0x443   : > { %v5493_v60 = vpop.f32.mrb[90].mxu0  ;;  %v6187_v3 = vrot.slane %v6185_v55, 3 }
 0x444   : > { %11592 = vmatmul.mubr.bf16.gmra.mrb[192].mxu0 %v6165_v34  ;;  %v11390_v24 = vpop.f32.mrb[91].mxu0  ;;  %v6197_v22 = vshll.u32 %v9566_v31, 16 }
 0x445   : > { %11595 = vmatprep.mubr.msk.bf16.mxu0 %vm17518_vm4, %v17427_v43 }
 0x446   : > { %v5217_v63 = vpop.f32.mrb[20].mxu1 }
 0x447   : > { %v16378_v46 = vadd.f32 %v5490_v27, %v5217_v63  ;;  %v11305_v35 = vpop.f32.mrb[21].mxu1  ;;  %v17738_v63 = vcombine.low %v15951_v11, %v15953_v45 }
 0x448   : > { %11508 = vmatmul.mubr.bf16.gmra.mrb[124].mxu1 %v17736_v51  ;;  %v5220_v20 = vpop.f32.mrb[22].mxu1  ;;  %v6191_v51 = vor.u32 %v6190_v37, %v6187_v3  ;;  %v17741_v3 = vld [vmem:[#allocation22_spill] sm:$0xff] }
 0x449   : > { %11511 = vmatprep.mubr.msk.bf16.mxu1 %vm17518_vm4, %v17427_v43  ;;  %v16382_v40 = vadd.f32 %v5493_v60, %v5220_v20  ;;  %v11306_v62 = vpop.f32.mrb[23].mxu1  ;;  %v6194_v60 = vshrl.u32 %v9566_v31, 16  ;;  %v6199_v20 = vrot.slane %v6197_v22, 4  ;;  %v17743_v22 = vld [vmem:[#allocation30_spill] sm:$0xff] }
 0x44a   : > { %v6192_v54 = vsel %vm4948_vm14, %v6182_v17, %v6191_v51  ;;  %v17739_v62 = vld [vmem:[#allocation29_spill] sm:$0xff] }
 0x44b   : > { %v5498_v26 = vpop.f32.mrb[92].mxu0  ;;  %v6196_v35 = vrot.slane %v6194_v60, 3 }
 0x44c   : > { %11596 = vmatmul.mubr.bf16.gmra.mrb[196].mxu0 %v6174_v18  ;;  %v11393_v19 = vpop.f32.mrb[93].mxu0 }
 0x44d   : > { %11599 = vmatprep.mubr.msk.bf16.mxu0 %vm17518_vm4, %v17427_v43  ;;  %v5501_v34 = vpop.f32.mrb[94].mxu0 }
 0x44e   : > { %v11394_v6 = vpop.f32.mrb[95].mxu0  ;;  %v5225_v4 = vpop.f32.mrb[24].mxu1 }
 0x44f   : > { %v16392_v27 = vadd.f32 %v5498_v26, %v5225_v4  ;;  %v11309_v29 = vpop.f32.mrb[25].mxu1  ;;  %v9567_v26 = vcombine.low %v17739_v62, %v16186_v53 }
 0x450   : > { %11512 = vmatmul.mubr.bf16.gmra.mrb[128].mxu1 %v17737_v14  ;;  %v5228_v49 = vpop.f32.mrb[26].mxu1 }
 0x451   : > { %11515 = vmatprep.mubr.msk.bf16.mxu1 %vm17518_vm4, %v17427_v43  ;;  %v16396_v56 = vadd.f32 %v5501_v34, %v5228_v49  ;;  %v11310_v1 = vpop.f32.mrb[27].mxu1  ;;  %v6200_v34 = vor.u32 %v6199_v20, %v6196_v35  ;;  %v6203_v6 = vshrl.u32 %v9567_v26, 16  ;;  %v6206_v17 = vshll.u32 %v9567_v26, 16 }
 0x453   : > { %v5506_v59 = vpop.f32.mrb[96].mxu0  ;;  %v6201_v1 = vsel %vm4948_vm14, %v6191_v51, %v6200_v34  ;;  %v6208_v60 = vrot.slane %v6206_v17, 4 }
 0x454   : > { %11600 = vmatmul.mubr.bf16.gmra.mrb[200].mxu0 %v6183_v41  ;;  %v11397_v24 = vpop.f32.mrb[97].mxu0  ;;  %v17740_v41 = vld [vmem:[#allocation21_spill] sm:$0xff] }
 0x455   : > { %11603 = vmatprep.mubr.msk.bf16.mxu0 %vm17518_vm4, %v17427_v43  ;;  %v5509_v18 = vpop.f32.mrb[98].mxu0  ;;  %v17742_v37 = vcombine.low %v17740_v41, %v17741_v3  ;;  %v9568_v24 = vcombine.low %v17743_v22, %v17743_v22 }
 0x456   : > { %v11398_v30 = vpop.f32.mrb[99].mxu0 }
 0x457   : > { %v5233_v52 = vpop.f32.mrb[28].mxu1  ;;  %v6212_v26 = vshrl.u32 %v9568_v24, 16  ;;  %v6215_v51 = vshll.u32 %v9568_v24, 16 }
 0x458   : > { %11516 = vmatmul.mubr.bf16.gmra.mrb[132].mxu1 %v17738_v63  ;;  %v16406_v55 = vadd.f32 %v5506_v59, %v5233_v52  ;;  %v11313_v13 = vpop.f32.mrb[29].mxu1  ;;  %v6205_v59 = vrot.slane %v6203_v6, 3 }
 0x459   : > { %11519 = vmatprep.mubr.msk.bf16.mxu1 %vm17518_vm4, %v17427_v43  ;;  %v5236_v19 = vpop.f32.mrb[30].mxu1  ;;  %v6214_v3 = vrot.slane %v6212_v26, 3 }
 0x45a   : > { %v16410_v11 = vadd.f32 %v5509_v18, %v5236_v19  ;;  %v11314_v45 = vpop.f32.mrb[31].mxu1  ;;  %v6209_v20 = vor.u32 %v6208_v60, %v6205_v59  ;;  %v17744_v19 = vld [vmem:[#allocation23_spill] sm:$0xff] }
 0x45b   : > { %v5514_v14 = vpop.f32.mrb[100].mxu0  ;;  %v17745_v45 = vld [vmem:[#allocation24_spill] sm:$0xff] }
 0x45c   : > { %11604 = vmatmul.mubr.bf16.gmra.mrb[204].mxu0 %v6192_v54  ;;  %v11401_v4 = vpop.f32.mrb[101].mxu0  ;;  %v17746_v6 = vcombine.low %v17744_v19, %v17745_v45  ;;  %v6210_v41 = vsel %vm4948_vm14, %v6200_v34, %v6209_v20  ;;  %v17748_v34 = vld [vmem:[#allocation26_spill] sm:$0xff] }
 0x45d   : > { %11607 = vmatprep.mubr.msk.bf16.mxu0 %vm17518_vm4, %v17427_v43  ;;  %v5517_v31 = vpop.f32.mrb[102].mxu0 }
 0x45e   : > { %v11402_v29 = vpop.f32.mrb[103].mxu0 }
 0x460   : > { %11520 = vmatmul.mubr.bf16.gmra.mrb[136].mxu1 %v17742_v37  ;;  %v5241_v49 = vpop.f32.mrb[32].mxu1  ;;  %v6217_v37 = vrot.slane %v6215_v51, 4 }
 0x461   : > { %11523 = vmatprep.mubr.msk.bf16.mxu1 %vm17518_vm4, %v17427_v43  ;;  %v11317_v63 = vpop.f32.mrb[33].mxu1  ;;  %v16420_v18 = vadd.f32 %v5514_v14, %v5241_v49 }
 0x462   : > { %v5244_v30 = vpop.f32.mrb[34].mxu1  ;;  %v6218_v63 = vor.u32 %v6217_v37, %v6214_v3 }
 0x463   : > { %v11318_v52 = vpop.f32.mrb[35].mxu1  ;;  %v16424_v54 = vadd.f32 %v5517_v31, %v5244_v30  ;;  %v12418_v30 = vld [vmem:[#allocation2 + $0x18] sm:$0xff]  }
 0x464   : > { %11608 = vmatmul.mubr.bf16.gmra.mrb[208].mxu0 %v6201_v1  ;;  %v5522_v35 = vpop.f32.mrb[104].mxu0  ;;  %v12417_v1 = vld [vmem:[#allocation2 + $0x10] sm:$0xff]  }
 0x465   : > { %11611 = vmatprep.mubr.msk.bf16.mxu0 %vm17518_vm4, %v17427_v43  ;;  %v11405_v13 = vpop.f32.mrb[105].mxu0 }
 0x466   : > { %v5525_v17 = vpop.f32.mrb[106].mxu0  ;;  %v17747_v13 = vld [vmem:[#allocation25_spill] sm:$0xff] }
 0x467   : > { %v11406_v14 = vpop.f32.mrb[107].mxu0  ;;  %v17749_v26 = vcombine.low %v17747_v13, %v17748_v34  ;;  %v12420_v13 = vld [vmem:[#allocation2 + $0x20] sm:$0xff]  }
 0x468   : > { %11524 = vmatmul.mubr.bf16.gmra.mrb[140].mxu1 %v17746_v6  ;;  %v6219_v6 = vsel %vm4948_vm14, %v6209_v20, %v6218_v63  ;;  %v6938_v14 = vshll.u32 %v12418_v30, 16  ;;  %v17751_v20 = vld [vmem:[#allocation28_spill] sm:$0xff]  ;;  %vm17753_vm14 = vsmask.f32 7424 }
 0x469   : > { %11527 = vmatprep.mubr.msk.bf16.mxu1 %vm17518_vm4, %v17427_v43  ;;  %v5249_v4 = vpop.f32.mrb[36].mxu1  ;;  %vm17757_vm8 = vmmov %vm17753_vm14 }
 0x46a   : > { %v11321_v31 = vpop.f32.mrb[37].mxu1  ;;  %v16432_v29 = vadd.f32 %v5522_v35, %v5249_v4  ;;  %v6933_v35 = vshll.u32 %v12417_v1, 16  ;;  %vm17761_vm15 = vmmov %vm17757_vm8 }
 0x46b   : > { %v5252_v49 = vpop.f32.mrb[38].mxu1  ;;  %vm17765_vm5 = vmmov %vm17757_vm8 }
 0x46c   : > { %11612 = vmatmul.mubr.bf16.gmra.mrb[212].mxu0 %v6210_v41  ;;  %v11322_v59 = vpop.f32.mrb[39].mxu1  ;;  %v16436_v60 = vadd.f32 %v5525_v17, %v5252_v49  ;;  %v6935_v3 = vrot.slane %v6933_v35, 1  ;;  %vm17769_vm12 = vmmov %vm17765_vm5 }
 0x46d   : > { %11615 = vmatprep.mubr.msk.bf16.mxu0 %vm17518_vm4, %v17427_v43  ;;  %v6931_v59 = vshrl.u32 %v12417_v1, 16  ;;  %vm17773_vm10 = vmmov %vm17765_vm5 }
 0x46e   : > { %v5530_v24 = vpop.f32.mrb[108].mxu0  ;;  %vm17777_vm0 = vmmov %vm17765_vm5 }
 0x46f   : > { %v11409_v52 = vpop.f32.mrb[109].mxu0  ;;  %vm17781_vm1 = vmmov %vm17777_vm0 }
 0x470   : > { %11528 = vmatmul.mubr.bf16.gmra.mrb[144].mxu1 %v17749_v26  ;;  %v5533_v51 = vpop.f32.mrb[110].mxu0  ;;  %v6940_v52 = vrot.slane %v6938_v14, 1  ;;  %v17750_v26 = vld [vmem:[#allocation27_spill] sm:$0xff]  ;;  %vm17787_vm6 = vmmov %vm17777_vm0 }
 0x471   : > { %11531 = vmatprep.mubr.msk.bf16.mxu1 %vm17518_vm4, %v17427_v43  ;;  %v11410_v19 = vpop.f32.mrb[111].mxu0  ;;  %v17752_v63 = vcombine.low %v17750_v26, %v17751_v20  ;;  %v6942_v20 = vshrl.u32 %v12418_v30, 16  ;;  %v12442_v30 = vld [vmem:[#allocation3 + $0x1d0] sm:$0xff]   ;;  %vm17793_vm9 = vmmov %vm17777_vm0 }
 0x472   : > { %v5257_v45 = vpop.f32.mrb[40].mxu1  ;;  %vm17798_vm11 = vmmov %vm17777_vm0 }
 0x473   : > { %v11325_v17 = vpop.f32.mrb[41].mxu1  ;;  %v16444_v4 = vadd.f32 %v5530_v24, %v5257_v45  ;;  %v6936_v24 = vor.u32 %v6935_v3, %v6931_v59  ;;  %v12438_v45 = vld [vmem:[#allocation3 + $0x1c0] sm:$0xff]   ;;  %v12440_v59 = vld [vmem:[#allocation3 + $0x1c8] sm:$0xff]   ;;  %v6944_v32 = vor.u32 %v6942_v20, %v6940_v52  ;;  %v12425_v20 = vld [vmem:[#allocation3 + $0x190] sm:$0xff]  }
 0x474   : > { %11616 = vmatmul.mubr.bf16.gmra.mrb[216].mxu0 %v6219_v6  ;;  %v5260_v41 = vpop.f32.mrb[42].mxu1  ;;  %v6946_v17 = vshll.u32 %v12420_v13, 16  ;;  %vm17800_vm3 = vmmov %vm17777_vm0 }
 0x475   : > { %11719 = vmatprep.mubr.msk.bf16.mxu0 %vm17518_vm4, %v17427_v43  ;;  %v11326_v37 = vpop.f32.mrb[43].mxu1  ;;  %v16448_v31 = vadd.f32 %v5533_v51, %v5260_v41  ;;  %v6941_v51 = vsel %vm17753_vm14, %v6936_v24, %v6940_v52  ;;  %v16463_v24 = vld [vmem:[#allocation2 + $0x28] sm:$0xff]   ;;  %vm17802_vm2 = vmmov %vm17777_vm0 }
 0x476   : > { %v5538_v49 = vpop.f32.mrb[112].mxu0  ;;  %v12419_v37 = vld [vmem:[#allocation3 + $0x180] sm:$0xff]   ;;  %vm17804_vm7 = vmmov %vm17777_vm0 }
 0x477   : > { %v11413_v34 = vpop.f32.mrb[113].mxu0  ;;  %vm17806_vm13 = vmmov %vm17777_vm0 }
 0x478   : > { %11532 = vmatmul.mubr.bf16.gmra.mrb[148].mxu1 %v17752_v63  ;;  %v5541_v19 = vpop.f32.mrb[114].mxu0  ;;  %v6948_v63 = vrot.slane %v6946_v17, 1  ;;  %vm17808_vm14 = vmmov %vm17777_vm0 }
 0x479   : > { %11635 = vmatprep.mubr.msk.bf16.mxu1 %vm17518_vm4, %v17427_v43  ;;  %v11414_v6 = vpop.f32.mrb[115].mxu0 }
 0x47a   : > { %v6949_v17 = vsel %vm17757_vm8, %v6944_v32, %v6948_v63  ;;  %vm17810_vm8 = vmmov %vm17777_vm0 }
 0x47b   : > { %v5265_v35 = vpop.f32.mrb[44].mxu1 }
 0x47c   : > { %v11329_v41 = vpop.f32.mrb[45].mxu1  ;;  %11720 = vmatmul.mubr.bf16.vlgmr.msra.gmra.mrb[220].mxu0 %v6941_v51  ;;  %v16456_v1 = vadd.f32 %v5538_v49, %v5265_v35  ;;  %v17754_v49 = vld [vmem:[#allocation31_spill] sm:$0xff]  ;;  %v17755_v35 = vld [vmem:[#allocation32_spill] sm:$0xff] }
 0x47d   : > { %v5268_v14 = vpop.f32.mrb[46].mxu1  ;;  %11723 = vmatprep.mubr.msk.bf16.mxu0 %vm17518_vm4, %v17427_v43  ;;  %11872 = vmatpush3.bf16.msra.mxu0 %v12438_v45  ;;  %v17756_v51 = vcombine.low %v17754_v49, %v17755_v35  ;;  %v12422_v45 = vld [vmem:[#allocation3 + $0x188] sm:$0xff]  }
 0x47e   : > { %v11330_v3 = vpop.f32.mrb[47].mxu1  ;;  %11873 = vmatprep.subr.bf16.mxu0 %v17427_v43  ;;  %v16461_v34 = vadd.f32 %v5541_v19, %v5268_v14  ;;  %v5546_v26 = vpop.f32.mrb[116].mxu0  ;;  %v6954_v14 = vshll.u32 %v16463_v24, 16 }
 0x47f   : > { %v11417_v6 = vpop.f32.mrb[117].mxu0 }
 0x480   : > { %11636 = vmatmul.mubr.bf16.vlgmr.msra.gmra.mrb[152].mxu1 %v17756_v51  ;;  %v5549_v41 = vpop.f32.mrb[118].mxu0  ;;  %v6950_v51 = vshrl.u32 %v12420_v13, 16  ;;  %v12445_v13 = vld [vmem:[#allocation3 + $0x1e0] sm:$0xff]  }
 0x481   : > { %11788 = vmatpush3.bf16.msra.mxu1 %v12419_v37  ;;  %11639 = vmatprep.mubr.msk.bf16.mxu1 %vm17518_vm4, %v17427_v43  ;;  %v11418_v3 = vpop.f32.mrb[119].mxu0 }
 0x482   : > { %11789 = vmatprep.subr.bf16.mxu1 %v17427_v43  ;;  %11874 = vmatpush3.bf16.msra.mxu0 %v12440_v59  ;;  %v12443_v59 = vld [vmem:[#allocation3 + $0x1d8] sm:$0xff]   ;;  %v6956_v3 = vrot.slane %v6954_v14, 1 }
 0x483   : > { %v5273_v19 = vpop.f32.mrb[48].mxu1  ;;  %11875 = vmatprep.subr.bf16.mxu0 %v17427_v43 }
 0x484   : > { %v11333_v6 = vpop.f32.mrb[49].mxu1  ;;  %11724 = vmatmul.mubr.bf16.gmra.mrb[224].mxu0 %v6949_v17  ;;  %v16474_v37 = vadd.f32 %v5546_v26, %v5273_v19  ;;  %v17758_v19 = vld [vmem:[#allocation33_spill] sm:$0xff]  ;;  %v17759_v17 = vld [vmem:[#allocation34_spill] sm:$0xff] }
 0x485   : > { %v5276_v52 = vpop.f32.mrb[50].mxu1  ;;  %11727 = vmatprep.mubr.msk.bf16.mxu0 %vm17518_vm4, %v17427_v43  ;;  %11790 = vmatpush3.bf16.msra.mxu1 %v12422_v45  ;;  %v16481_v6 = vld [vmem:[#allocation2 + $0x30] sm:$0xff]   ;;  %v17760_v47 = vcombine.low %v17758_v19, %v17759_v17 }
 0x486   : > { %v11334_v49 = vpop.f32.mrb[51].mxu1  ;;  %11791 = vmatprep.subr.bf16.mxu1 %v17427_v43  ;;  %11876 = vmatpush3.bf16.msra.mxu0 %v12442_v30  ;;  %v16479_v32 = vadd.f32 %v5549_v41, %v5276_v52  ;;  %v5554_v35 = vpop.f32.mrb[120].mxu0  ;;  %v12429_v41 = vld [vmem:[#allocation3 + $0x198] sm:$0xff]  }
 0x487   : > { %11877 = vmatprep.subr.bf16.mxu0 %v17427_v43  ;;  %v11421_v26 = vpop.f32.mrb[121].mxu0  ;;  %v6952_v49 = vor.u32 %v6950_v51, %v6948_v63 }
 0x488   : > { %11640 = vmatmul.mubr.bf16.gmra.mrb[156].mxu1 %v17760_v47  ;;  %v5557_v45 = vpop.f32.mrb[122].mxu0  ;;  %v6962_v26 = vshll.u32 %v16481_v6, 16 }
 0x489   : > { %11643 = vmatprep.mubr.msk.bf16.mxu1 %vm17518_vm4, %v17427_v43  ;;  %11792 = vmatpush3.bf16.msra.mxu1 %v12425_v20  ;;  %v11422_v30 = vpop.f32.mrb[123].mxu0  ;;  %v6957_v52 = vsel %vm17761_vm15, %v6952_v49, %v6956_v3  ;;  %v12432_v20 = vld [vmem:[#allocation3 + $0x1a0] sm:$0xff]   ;;  %vm17812_vm15 = vmmov %vm17777_vm0 }
 0x48a   : > { %11793 = vmatprep.subr.bf16.mxu1 %v17427_v43  ;;  %11878 = vmatpush3.bf16.msra.mxu0 %v12443_v59  ;;  %v12447_v59 = vld [vmem:[#allocation3 + $0x1e8] sm:$0xff]   ;;  %v6958_v30 = vshrl.u32 %v16463_v24, 16  ;;  %v12449_v24 = vld [vmem:[#allocation3 + $0x1f0] sm:$0xff]  }
 0x48b   : > { %v5281_v14 = vpop.f32.mrb[52].mxu1  ;;  %11879 = vmatprep.subr.bf16.mxu0 %v17427_v43 }
 0x48c   : > { %v11337_v47 = vpop.f32.mrb[53].mxu1  ;;  %11728 = vmatmul.mubr.bf16.gmra.mrb[228].mxu0 %v6957_v52  ;;  %v16493_v63 = vadd.f32 %v5554_v35, %v5281_v14  ;;  %v16501_v52 = vld [vmem:[#allocation2 + $0x38] sm:$0xff]   ;;  %v17762_v14 = vld [vmem:[#allocation35_spill] sm:$0xff]  ;;  %v6960_v15 = vor.u32 %v6958_v30, %v6956_v3 }
 0x48d   : > { %v5284_v51 = vpop.f32.mrb[54].mxu1  ;;  %11731 = vmatprep.mubr.msk.bf16.mxu0 %vm17518_vm4, %v17427_v43  ;;  %11794 = vmatpush3.bf16.msra.mxu1 %v12429_v41  ;;  %v6964_v47 = vrot.slane %v6962_v26, 1  ;;  %v17764_v41 = vcombine.low %v17762_v14, %v17763_v21 }
 0x48e   : > { %v11338_v19 = vpop.f32.mrb[55].mxu1  ;;  %11795 = vmatprep.subr.bf16.mxu1 %v17427_v43  ;;  %11880 = vmatpush3.bf16.msra.mxu0 %v12445_v13  ;;  %v16498_v17 = vadd.f32 %v5557_v45, %v5284_v51  ;;  %v5562_v49 = vpop.f32.mrb[124].mxu0  ;;  %v12435_v45 = vld [vmem:[#allocation3 + $0x1a8] sm:$0xff]  }
 0x48f   : > { %11881 = vmatprep.subr.bf16.mxu0 %v17427_v43  ;;  %v11425_v35 = vpop.f32.mrb[125].mxu0  ;;  %v6965_v51 = vsel %vm17765_vm5, %v6960_v15, %v6964_v47  ;;  %vm17813_vm5 = vmmov %vm17777_vm0 }
 0x490   : > { %11644 = vmatmul.mubr.bf16.gmra.mrb[160].mxu1 %v17764_v41  ;;  %v5565_v19 = vpop.f32.mrb[126].mxu0  ;;  %v6970_v35 = vshll.u32 %v16501_v52, 16 }
 0x491   : > { %11647 = vmatprep.mubr.msk.bf16.mxu1 %vm17518_vm4, %v17427_v43  ;;  %11796 = vmatpush3.bf16.msra.mxu1 %v12432_v20  ;;  %v11426_v13 = vpop.f32.mrb[127].mxu0  ;;  %v12439_v20 = vld [vmem:[#allocation3 + $0x1b0] sm:$0xff]  }
 0x492   : > { %11797 = vmatprep.subr.bf16.mxu1 %v17427_v43  ;;  %11882 = vmatpush3.bf16.msra.mxu0 %v12447_v59  ;;  %v12450_v59 = vld [vmem:[#allocation3 + $0x1f8] sm:$0xff]   ;;  %v6966_v13 = vshrl.u32 %v16481_v6, 16 }
 0x493   : > { %v5289_v26 = vpop.f32.mrb[56].mxu1  ;;  %11883 = vmatprep.subr.bf16.mxu0 %v17427_v43 }
 0x494   : > { %v11341_v21 = vpop.f32.mrb[57].mxu1  ;;  %11732 = vmatmul.mubr.bf16.gmra.mrb[232].mxu0 %v6965_v51  ;;  %v16513_v3 = vadd.f32 %v5562_v49, %v5289_v26  ;;  %v12426_v51 = vld [vmem:[#allocation2 + $0x40] sm:$0xff]   ;;  %v17766_v26 = vld [vmem:[#allocation37_spill] sm:$0xff] }
 0x495   : > { %v5292_v30 = vpop.f32.mrb[58].mxu1  ;;  %11735 = vmatprep.mubr.msk.bf16.mxu0 %vm17518_vm4, %v17427_v43  ;;  %11798 = vmatpush3.bf16.msra.mxu1 %v12435_v45  ;;  %v6972_v21 = vrot.slane %v6970_v35, 1  ;;  %v17768_v7 = vcombine.low %v17766_v26, %v17767_v44  ;;  %v12427_v26 = vld [vmem:[#allocation2 + $0x48] sm:$0xff]  }
 0x496   : > { %v11342_v14 = vpop.f32.mrb[59].mxu1  ;;  %11799 = vmatprep.subr.bf16.mxu1 %v17427_v43  ;;  %11884 = vmatpush3.bf16.msra.mxu0 %v12449_v24  ;;  %v16518_v15 = vadd.f32 %v5565_v19, %v5292_v30  ;;  %v12446_v19 = vld [vmem:[#allocation3 + $0x1b8] sm:$0xff]   ;;  %v6978_v30 = vshll.u32 %v12426_v51, 16 }
 0x497   : > { %v5570_v41 = vpop.f32.mrb[128].mxu0  ;;  %11885 = vmatprep.subr.bf16.mxu0 %v17427_v43  ;;  %v6968_v14 = vor.u32 %v6966_v13, %v6964_v47 }
 0x498   : > { %v11429_v49 = vpop.f32.mrb[129].mxu0  ;;  %11648 = vmatmul.mubr.bf16.gmra.mrb[164].mxu1 %v17768_v7  ;;  %v6980_v13 = vrot.slane %v6978_v30, 1 }
 0x499   : > { %v5573_v45 = vpop.f32.mrb[130].mxu0  ;;  %11651 = vmatprep.mubr.msk.bf16.mxu1 %vm17518_vm4, %v17427_v43  ;;  %11800 = vmatpush3.bf16.msra.mxu1 %v12439_v20  ;;  %v6973_v35 = vsel %vm17769_vm12, %v6968_v14, %v6972_v21  ;;  %vm17814_vm12 = vmmov %vm17777_vm0 }
 0x49a   : > { %v11430_v24 = vpop.f32.mrb[131].mxu0  ;;  %11801 = vmatprep.subr.bf16.mxu1 %v17427_v43  ;;  %11886 = vmatpush3.bf16.msra.mxu0 %v12450_v59  ;;  %v6974_v59 = vshrl.u32 %v16501_v52, 16 }
 0x49b   : > { %v5297_v6 = vpop.f32.mrb[60].mxu1  ;;  %v17770_v24 = vld [vmem:[#allocation11_spill] sm:$0xff] }
 0x49c   : > { %v11345_v49 = vpop.f32.mrb[61].mxu1  ;;  %11736 = vmatmul.mubr.bf16.gmra.mrb[236].mxu0 %v6973_v35  ;;  %v16529_v9 = vadd.f32 %v5570_v41, %v5297_v6  ;;  %v17771_v35 = vld [vmem:[#allocation9_spill] sm:$0xff] }
 0x49d   : > { %v5300_v7 = vpop.f32.mrb[62].mxu1  ;;  %11739 = vmatprep.mubr.msk.bf16.mxu0 %vm17518_vm4, %v17427_v43  ;;  %11802 = vmatpush3.bf16.msra.mxu1 %v12446_v19  ;;  %v17772_v41 = vcombine.low %v17770_v24, %v17771_v35  ;;  %v6976_v49 = vor.u32 %v6974_v59, %v6972_v21  ;;  %v6982_v59 = vshrl.u32 %v12426_v51, 16 }
 0x49e   : > { %v11346_v44 = vpop.f32.mrb[63].mxu1  ;;  %11955 = vmatprep.subr.bf16.mxu1 %v17427_v43  ;;  %v16534_v47 = vadd.f32 %v5573_v45, %v5300_v7  ;;  %v6986_v7 = vshll.u32 %v12427_v26, 16 }
 0x49f   : > { %v5578_v20 = vpop.f32.mrb[132].mxu0  ;;  %v6981_v45 = vsel %vm17773_vm10, %v6976_v49, %v6980_v13  ;;  %v17776_v49 = vcombine.low %v17774_v42, %v17775_v36  ;;  %vm17815_vm10 = vmmov %vm17777_vm0 }
 0x4a0   : > { %v11433_v14 = vpop.f32.mrb[133].mxu0  ;;  %11652 = vmatmul.mubr.bf16.gmra.mrb[168].mxu1 %v17772_v41  ;;  %v6988_v35 = vrot.slane %v6986_v7, 1  ;;  %v12428_v41 = vld [vmem:[#allocation2 + $0x50] sm:$0xff]  }
 0x4a1   : > { %v5581_v6 = vpop.f32.mrb[134].mxu0  ;;  %11655 = vmatprep.mubr.msk.bf16.mxu1 %vm17518_vm4, %v17427_v43 }
 0x4a2   : > { %v11434_v19 = vpop.f32.mrb[135].mxu0 }
 0x4a3   : > { %v5305_v44 = vpop.f32.mrb[64].mxu1 }
 0x4a4   : > { %v11349_v28 = vpop.f32.mrb[65].mxu1  ;;  %11740 = vmatmul.mubr.bf16.gmra.mrb[240].mxu0 %v6981_v45  ;;  %v16543_v52 = vadd.f32 %v5578_v20, %v5305_v44  ;;  %v6984_v45 = vor.u32 %v6982_v59, %v6980_v13  ;;  %v6990_v59 = vshrl.u32 %v12427_v26, 16 }
 0x4a5   : > { %v5308_v30 = vpop.f32.mrb[66].mxu1  ;;  %11743 = vmatprep.mubr.msk.bf16.mxu0 %vm17518_vm4, %v17427_v43 }
 0x4a6   : > { %v11350_v14 = vpop.f32.mrb[67].mxu1  ;;  %v16547_v24 = vadd.f32 %v5581_v6, %v5308_v30  ;;  %v6994_v6 = vshll.u32 %v12428_v41, 16 }
 0x4a7   : > { %v5586_v21 = vpop.f32.mrb[136].mxu0  ;;  %v6989_v14 = vsel %vm17777_vm0, %v6984_v45, %v6988_v35  ;;  %v17780_v45 = vcombine.low %v17778_v23, %v17779_v8 }
 0x4a8   : > { %v11437_v19 = vpop.f32.mrb[137].mxu0  ;;  %11656 = vmatmul.mubr.bf16.gmra.mrb[172].mxu1 %v17776_v49  ;;  %v12430_v49 = vld [vmem:[#allocation2 + $0x58] sm:$0xff]  }
 0x4a9   : > { %v5589_v28 = vpop.f32.mrb[138].mxu0  ;;  %11659 = vmatprep.mubr.msk.bf16.mxu1 %vm17518_vm4, %v17427_v43  ;;  %v6996_v19 = vrot.slane %v6994_v6, 1 }
 0x4aa   : > { %v11438_v20 = vpop.f32.mrb[139].mxu0 }
 0x4ab   : > { %v5313_v44 = vpop.f32.mrb[68].mxu1 }
 0x4ac   : > { %v11353_v30 = vpop.f32.mrb[69].mxu1  ;;  %11744 = vmatmul.mubr.bf16.gmra.mrb[244].mxu0 %v6989_v14  ;;  %v16555_v51 = vadd.f32 %v5586_v21, %v5313_v44  ;;  %v6992_v14 = vor.u32 %v6990_v59, %v6988_v35  ;;  %v6998_v59 = vshrl.u32 %v12428_v41, 16 }
 0x4ad   : > { %v5316_v7 = vpop.f32.mrb[70].mxu1  ;;  %11747 = vmatprep.mubr.msk.bf16.mxu0 %vm17518_vm4, %v17427_v43 }
 0x4ae   : > { %v11354_v36 = vpop.f32.mrb[71].mxu1  ;;  %v16559_v42 = vadd.f32 %v5589_v28, %v5316_v7  ;;  %v7002_v28 = vshll.u32 %v12430_v49, 16 }
 0x4af   : > { %v5594_v13 = vpop.f32.mrb[140].mxu0  ;;  %v6997_v36 = vsel %vm17781_vm1, %v6992_v14, %v6996_v19  ;;  %v17786_v14 = vcombine.low %v17784_v16, %v17785_v58  ;;  %vm17816_vm1 = vmmov %vm17777_vm0 }
 0x4b0   : > { %v11441_v20 = vpop.f32.mrb[141].mxu0  ;;  %11660 = vmatmul.mubr.bf16.gmra.mrb[176].mxu1 %v17780_v45  ;;  %v12431_v45 = vld [vmem:[#allocation2 + $0x60] sm:$0xff]  }
 0x4b1   : > { %v5597_v30 = vpop.f32.mrb[142].mxu0  ;;  %11663 = vmatprep.mubr.msk.bf16.mxu1 %vm17518_vm4, %v17427_v43  ;;  %v7004_v20 = vrot.slane %v7002_v28, 1 }
 0x4b2   : > { %v11442_v21 = vpop.f32.mrb[143].mxu0 }
 0x4b3   : > { %v5321_v44 = vpop.f32.mrb[72].mxu1 }
 0x4b4   : > { %v11357_v7 = vpop.f32.mrb[73].mxu1  ;;  %11748 = vmatmul.mubr.bf16.gmra.mrb[248].mxu0 %v6997_v36  ;;  %v16567_v26 = vadd.f32 %v5594_v13, %v5321_v44  ;;  %v7000_v36 = vor.u32 %v6998_v59, %v6996_v19  ;;  %v7006_v59 = vshrl.u32 %v12430_v49, 16 }
 0x4b5   : > { %v5324_v6 = vpop.f32.mrb[74].mxu1  ;;  %11751 = vmatprep.mubr.msk.bf16.mxu0 %vm17518_vm4, %v17427_v43 }
 0x4b6   : > { %17782 = vst [vmem:[#allocation29_spill] sm:$0xff] %v16567_v26  ;;  %v11358_v23 = vpop.f32.mrb[75].mxu1  ;;  %v16571_v8 = vadd.f32 %v5597_v30, %v5324_v6  ;;  %v7010_v30 = vshll.u32 %v12431_v45, 16  ;;  %v17791_v26 = vld [vmem:[#allocation18_spill] sm:$0xff] }
 0x4b7   : > { %v5602_v35 = vpop.f32.mrb[144].mxu0  ;;  %v7005_v23 = vsel %vm17787_vm6, %v7000_v36, %v7004_v20  ;;  %vm17817_vm6 = vmmov %vm17777_vm0 }
 0x4b8   : > { %17783 = vst [vmem:[#allocation21_spill] sm:$0xff] %v16571_v8  ;;  %v11445_v21 = vpop.f32.mrb[145].mxu0  ;;  %11664 = vmatmul.mubr.bf16.gmra.mrb[180].mxu1 %v17786_v14  ;;  %v12433_v14 = vld [vmem:[#allocation2 + $0x68] sm:$0xff]   ;;  %v17790_v8 = vld [vmem:[#allocation17_spill] sm:$0xff] }
 0x4b9   : > { %v5605_v7 = vpop.f32.mrb[146].mxu0  ;;  %11667 = vmatprep.mubr.msk.bf16.mxu1 %vm17518_vm4, %v17427_v43  ;;  %v7012_v21 = vrot.slane %v7010_v30, 1  ;;  %v17792_v36 = vcombine.low %v17790_v8, %v17791_v26 }
 0x4ba   : > { %v11446_v13 = vpop.f32.mrb[147].mxu0 }
 0x4bb   : > { %v5329_v44 = vpop.f32.mrb[76].mxu1 }
 0x4bc   : > { %v11361_v6 = vpop.f32.mrb[77].mxu1  ;;  %11752 = vmatmul.mubr.bf16.gmra.mrb[252].mxu0 %v7005_v23  ;;  %v16579_v41 = vadd.f32 %v5602_v35, %v5329_v44  ;;  %v7008_v23 = vor.u32 %v7006_v59, %v7004_v20  ;;  %v7014_v59 = vshrl.u32 %v12431_v45, 16 }
 0x4bd   : > { %v5332_v28 = vpop.f32.mrb[78].mxu1  ;;  %11755 = vmatprep.mubr.msk.bf16.mxu0 %vm17518_vm4, %v17427_v43 }
 0x4be   : > { %17788 = vst [vmem:[#allocation22_spill] sm:$0xff] %v16579_v41  ;;  %v11362_v58 = vpop.f32.mrb[79].mxu1  ;;  %v16583_v16 = vadd.f32 %v5605_v7, %v5332_v28  ;;  %v7018_v7 = vshll.u32 %v12433_v14, 16  ;;  %v17796_v41 = vld [vmem:[#allocation20_spill] sm:$0xff] }
 0x4bf   : > { %v5610_v19 = vpop.f32.mrb[148].mxu0  ;;  %v7013_v58 = vsel %vm17793_vm9, %v7008_v23, %v7012_v21  ;;  %vm17818_vm9 = vmmov %vm17777_vm0 }
 0x4c0   : > { %17789 = vst [vmem:[#allocation30_spill] sm:$0xff] %v16583_v16  ;;  %v11449_v13 = vpop.f32.mrb[149].mxu0  ;;  %11668 = vmatmul.mubr.bf16.gmra.mrb[184].mxu1 %v17792_v36  ;;  %v12434_v36 = vld [vmem:[#allocation2 + $0x70] sm:$0xff]   ;;  %v17795_v16 = vld [vmem:[#allocation19_spill] sm:$0xff] }
 0x4c1   : > { %v5613_v6 = vpop.f32.mrb[150].mxu0  ;;  %11671 = vmatprep.mubr.msk.bf16.mxu1 %vm17518_vm4, %v17427_v43  ;;  %v7020_v13 = vrot.slane %v7018_v7, 1  ;;  %v17797_v23 = vcombine.low %v17795_v16, %v17796_v41 }
 0x4c2   : > { %v11450_v35 = vpop.f32.mrb[151].mxu0 }
 0x4c3   : > { %v5337_v44 = vpop.f32.mrb[80].mxu1 }
 0x4c4   : > { %v11365_v28 = vpop.f32.mrb[81].mxu1  ;;  %11756 = vmatmul.mubr.bf16.gmra.mrb[0].mxu0 %v7013_v58  ;;  %v16591_v49 = vadd.f32 %v5610_v19, %v5337_v44  ;;  %v7016_v58 = vor.u32 %v7014_v59, %v7012_v21 }
 0x4c5   : > { %v5340_v30 = vpop.f32.mrb[82].mxu1  ;;  %11759 = vmatprep.mubr.msk.bf16.mxu0 %vm17518_vm4, %v17427_v43 }
 0x4c6   : > { %v11366_v26 = vpop.f32.mrb[83].mxu1  ;;  %v16595_v8 = vadd.f32 %v5613_v6, %v5340_v30  ;;  %v7026_v6 = vshll.u32 %v12434_v36, 16 }
 0x4c7   : > { %v6319_v20 = vpop.f32.mrb[152].mxu0  ;;  %v7021_v26 = vsel %vm17798_vm11, %v7016_v58, %v7020_v13  ;;  %v17799_v58 = vcombine.low %v15898_v25, %v15900_v48  ;;  %vm17821_vm11 = vmmov %vm17777_vm0 }
 0x4c8   : > { %17794 = vst [vmem:[#allocation23_spill] sm:$0xff] %v16595_v8  ;;  %v11553_v35 = vpop.f32.mrb[153].mxu0  ;;  %11672 = vmatmul.mubr.bf16.gmra.mrb[188].mxu1 %v17797_v23  ;;  %v7028_v23 = vrot.slane %v7026_v6, 1 }
 0x4c9   : > { %v6322_v28 = vpop.f32.mrb[154].mxu0  ;;  %11675 = vmatprep.mubr.msk.bf16.mxu1 %vm17518_vm4, %v17427_v43  ;;  %v7022_v35 = vshrl.u32 %v12433_v14, 16 }
 0x4ca   : > { %v11554_v19 = vpop.f32.mrb[155].mxu0 }
 0x4cb   : > { %v5750_v44 = vpop.f32.mrb[84].mxu1  ;;  %v12436_v19 = vld [vmem:[#allocation2 + $0x78] sm:$0xff]  }
 0x4cc   : > { %v5885_v30 = vadd.f32 %v5750_v44, %v16364_v57  ;;  %v11469_v45 = vpop.f32.mrb[85].mxu1  ;;  %11760 = vmatmul.mubr.bf16.gmra.mrb[4].mxu0 %v7021_v26  ;;  %v7024_v26 = vor.u32 %v7022_v35, %v7020_v13 }
 0x4cd   : > { %v5753_v7 = vpop.f32.mrb[86].mxu1  ;;  %11763 = vmatprep.mubr.msk.bf16.mxu0 %vm17518_vm4, %v17427_v43 }
 0x4ce   : > { %v5886_v41 = vadd.f32 %v5753_v7, %v16368_v38  ;;  %v11470_v16 = vpop.f32.mrb[87].mxu1  ;;  %v16607_v21 = vadd.f32 %v6319_v20, %v5885_v30  ;;  %v7029_v20 = vsel %vm17800_vm3, %v7024_v26, %v7028_v23  ;;  %v7034_v30 = vshll.u32 %v12436_v19, 16  ;;  %vm17824_vm3 = vmmov %vm17777_vm0 }
 0x4cf   : > { %v6327_v59 = vpop.f32.mrb[156].mxu0  ;;  %v7030_v7 = vshrl.u32 %v12434_v36, 16  ;;  %v12437_v16 = vld [vmem:[#allocation2 + $0x80] sm:$0xff]  }
 0x4d0   : > { %v11557_v8 = vpop.f32.mrb[157].mxu0  ;;  %11676 = vmatmul.mubr.bf16.gmra.mrb[192].mxu1 %v17799_v58  ;;  %v16612_v57 = vadd.f32 %v6322_v28, %v5886_v41  ;;  %v7036_v41 = vrot.slane %v7034_v30, 1  ;;  %v17801_v58 = vcombine.low %v15963_v0, %v15965_v2 }
 0x4d1   : > { %v6330_v44 = vpop.f32.mrb[158].mxu0  ;;  %11679 = vmatprep.mubr.msk.bf16.mxu1 %vm17518_vm4, %v17427_v43 }
 0x4d2   : > { %v11558_v38 = vpop.f32.mrb[159].mxu0 }
 0x4d3   : > { %v5758_v45 = vpop.f32.mrb[88].mxu1  ;;  %v7032_v38 = vor.u32 %v7030_v7, %v7028_v23  ;;  %v17803_v7 = vcombine.low %v16044_v12, %v16046_v39 }
 0x4d4   : > { %v5887_v14 = vadd.f32 %v5758_v45, %v16378_v46  ;;  %v11473_v6 = vpop.f32.mrb[89].mxu1  ;;  %11764 = vmatmul.mubr.bf16.gmra.mrb[8].mxu0 %v7029_v20  ;;  %v7042_v20 = vshll.u32 %v12437_v16, 16 }
 0x4d5   : > { %v5761_v8 = vpop.f32.mrb[90].mxu1  ;;  %11767 = vmatprep.mubr.msk.bf16.mxu0 %vm17518_vm4, %v17427_v43  ;;  %v7038_v6 = vshrl.u32 %v12436_v19, 16 }
 0x4d6   : > { %v5888_v25 = vadd.f32 %v5761_v8, %v16382_v40  ;;  %v11474_v48 = vpop.f32.mrb[91].mxu1  ;;  %v16621_v13 = vadd.f32 %v6327_v59, %v5887_v14  ;;  %v7037_v59 = vsel %vm17802_vm2, %v7032_v38, %v7036_v41  ;;  %v7044_v8 = vrot.slane %v7042_v20, 1  ;;  %vm17826_vm2 = vmmov %vm17777_vm0 }
 0x4d7   : > { %v6335_v28 = vpop.f32.mrb[160].mxu0  ;;  %v7046_v20 = vshrl.u32 %v12437_v16, 16 }
 0x4d8   : > { %v11561_v35 = vpop.f32.mrb[161].mxu0  ;;  %11680 = vmatmul.mubr.bf16.gmra.mrb[196].mxu1 %v17801_v58  ;;  %v16626_v46 = vadd.f32 %v6330_v44, %v5888_v25  ;;  %v12441_v25 = vld [vmem:[#allocation2 + $0x88] sm:$0xff]   ;;  %v7040_v58 = vor.u32 %v7038_v6, %v7036_v41 }
 0x4d9   : > { %v6338_v26 = vpop.f32.mrb[162].mxu0  ;;  %11683 = vmatprep.mubr.msk.bf16.mxu1 %vm17518_vm4, %v17427_v43  ;;  %v7048_v6 = vor.u32 %v7046_v20, %v7044_v8 }
 0x4da   : > { %v11562_v40 = vpop.f32.mrb[163].mxu0 }
 0x4db   : > { %v5766_v45 = vpop.f32.mrb[92].mxu1  ;;  %v7050_v40 = vshll.u32 %v12441_v25, 16 }
 0x4dc   : > { %v5889_v36 = vadd.f32 %v5766_v45, %v16392_v27  ;;  %v11477_v30 = vpop.f32.mrb[93].mxu1  ;;  %11768 = vmatmul.mubr.bf16.gmra.mrb[12].mxu0 %v7037_v59 }
 0x4dd   : > { %v5769_v14 = vpop.f32.mrb[94].mxu1  ;;  %11771 = vmatprep.mubr.msk.bf16.mxu0 %vm17518_vm4, %v17427_v43  ;;  %v12444_v30 = vld [vmem:[#allocation2 + $0x90] sm:$0xff]  }
 0x4de   : > { %v5890_v0 = vadd.f32 %v5769_v14, %v16396_v56  ;;  %v11478_v2 = vpop.f32.mrb[95].mxu1  ;;  %v16635_v23 = vadd.f32 %v6335_v28, %v5889_v36  ;;  %v7045_v28 = vsel %vm17804_vm7, %v7040_v58, %v7044_v8  ;;  %v7052_v36 = vrot.slane %v7050_v40, 1  ;;  %v12448_v40 = vld [vmem:[#allocation2 + $0x98] ss:$0 sps:$4 sm:$0x11]   ;;  %vm17827_vm7 = vmmov %vm17777_vm0 }
 0x4df   : > { %v6343_v44 = vpop.f32.mrb[164].mxu0 }
 0x4e0   : > { %v11565_v48 = vpop.f32.mrb[165].mxu0  ;;  %11684 = vmatmul.mubr.bf16.gmra.mrb[200].mxu1 %v17803_v7  ;;  %v16640_v27 = vadd.f32 %v6338_v26, %v5890_v0  ;;  %v17805_v0 = vcombine.low %v16095_v33, %v16097_v61  ;;  %v7058_v7 = vshll.u32 %v12444_v30, 16 }
 0x4e1   : > { %v6346_v35 = vpop.f32.mrb[166].mxu0  ;;  %11687 = vmatprep.mubr.msk.bf16.mxu1 %vm17518_vm4, %v17427_v43 }
 0x4e2   : > { %v11566_v56 = vpop.f32.mrb[167].mxu0 }
 0x4e3   : > { %v5774_v38 = vpop.f32.mrb[96].mxu1 }
 0x4e4   : > { %v5891_v19 = vadd.f32 %v5774_v38, %v16406_v55  ;;  %v11481_v45 = vpop.f32.mrb[97].mxu1  ;;  %11772 = vmatmul.mubr.bf16.gmra.mrb[16].mxu0 %v7045_v28  ;;  %v7054_v38 = vshrl.u32 %v12441_v25, 16  ;;  %v7060_v28 = vrot.slane %v7058_v7, 1  ;;  %v7066_v25 = vshll.u32 %v12448_v40, 16 }
 0x4e5   : > { %v5777_v59 = vpop.f32.mrb[98].mxu1  ;;  %11775 = vmatprep.mubr.msk.bf16.mxu0 %vm17518_vm4, %v17427_v43  ;;  %v17807_v45 = vcombine.low %v16150_v10, %v16152_v50  ;;  %v7062_v10 = vshrl.u32 %v12444_v30, 16  ;;  %v12518_v50 = vld [vmem:[#allocation2 + $0x1c] sm:$0xf] }
 0x4e6   : > { %v5892_v12 = vadd.f32 %v5777_v59, %v16410_v11  ;;  %v11482_v39 = vpop.f32.mrb[99].mxu1  ;;  %v16649_v41 = vadd.f32 %v6343_v44, %v5891_v19  ;;  %v7053_v44 = vsel %vm17806_vm13, %v7048_v6, %v7052_v36  ;;  %vm17828_vm13 = vmmov %vm17777_vm0 }
 0x4e7   : > { %v6351_v26 = vpop.f32.mrb[168].mxu0  ;;  %v7742_v39 = vld [vmem:[#allocation2 + $0x18] sm:$0xf]  ;;  %v7064_v7 = vor.u32 %v7062_v10, %v7060_v28 }
 0x4e8   : > { %v11569_v14 = vpop.f32.mrb[169].mxu0  ;;  %11688 = vmatmul.mubr.bf16.gmra.mrb[204].mxu1 %v17805_v0  ;;  %v16654_v55 = vadd.f32 %v6346_v35, %v5892_v12  ;;  %v7056_v12 = vor.u32 %v7054_v38, %v7052_v36  ;;  %v9653_v36 = vcombine.low %v7742_v39, %v12518_v50  ;;  %v12519_v38 = vld [vmem:[#allocation2 + $0x20] sm:$0xff]   ;;  %v12520_v50 = vld [vmem:[#allocation2 + $0x28] sm:$0xff]  }
 0x4e9   : > { %v6354_v2 = vpop.f32.mrb[170].mxu0  ;;  %11691 = vmatprep.mubr.msk.bf16.mxu1 %vm17518_vm4, %v17427_v43  ;;  %v7890_v40 = vshll.u32 %v12519_v38, 16 }
 0x4ea   : > { %v11570_v11 = vpop.f32.mrb[171].mxu0  ;;  %v7061_v20 = vsel %vm17808_vm14, %v7056_v12, %v7060_v28  ;;  %v7885_v30 = vshll.u32 %v9653_v36, 16  ;;  %v7883_v39 = vshrl.u32 %v9653_v36, 16  ;;  %vm17829_vm14 = vmmov %vm17777_vm0 }
 0x4eb   : > { %v5782_v48 = vpop.f32.mrb[100].mxu1 }
 0x4ec   : > { %v5893_v16 = vadd.f32 %v5782_v48, %v16420_v18  ;;  %v11485_v58 = vpop.f32.mrb[101].mxu1  ;;  %11776 = vmatmul.mubr.bf16.gmra.mrb[20].mxu0 %v7053_v44 }
 0x4ed   : > { %v5785_v56 = vpop.f32.mrb[102].mxu1  ;;  %11779 = vmatprep.mubr.msk.bf16.mxu0 %vm17518_vm4, %v17427_v43 }
 0x4ee   : > { %v5894_v33 = vadd.f32 %v5785_v56, %v16424_v54  ;;  %v11486_v61 = vpop.f32.mrb[103].mxu1  ;;  %v16663_v8 = vadd.f32 %v6351_v26, %v5893_v16  ;;  %v7068_v16 = vrot.slane %v7066_v25, 1  ;;  %v17811_v25 = vcombine.low %v16186_v53, %v17743_v22  ;;  %v12454_v53 = vld [vmem:[#allocation3 + $0x200] sm:$0xff]  }
 0x4ef   : > { %v6359_v35 = vpop.f32.mrb[172].mxu0 }
 0x4f0   : > { %v11573_v19 = vpop.f32.mrb[173].mxu0  ;;  %11692 = vmatmul.mubr.bf16.gmra.mrb[208].mxu1 %v17807_v45  ;;  %v16668_v18 = vadd.f32 %v6354_v2, %v5894_v33 }
 0x4f1   : > { %v6362_v59 = vpop.f32.mrb[174].mxu0  ;;  %11695 = vmatprep.mubr.msk.bf16.mxu1 %vm17518_vm4, %v17427_v43 }
 0x4f2   : > { %v11574_v54 = vpop.f32.mrb[175].mxu0 }
 0x4f3   : > { %v5790_v26 = vpop.f32.mrb[104].mxu1 }
 0x4f4   : > { %v5895_v14 = vadd.f32 %v5790_v26, %v16432_v29  ;;  %v11489_v0 = vpop.f32.mrb[105].mxu1  ;;  %11780 = vmatmul.mubr.bf16.gmra.mrb[24].mxu0 %v7061_v20  ;;  %v17809_v29 = vcombine.low %v16177_v5, %v17739_v62  ;;  %v7887_v5 = vrot.slane %v7885_v30, 1  ;;  %v7892_v26 = vrot.slane %v7890_v40, 1  ;;  %v12459_v40 = vld [vmem:[#allocation3 + $0x208] sm:$0xff]  }
 0x4f5   : > { %v5793_v6 = vpop.f32.mrb[106].mxu1  ;;  %11783 = vmatprep.mubr.msk.bf16.mxu0 %vm17518_vm4, %v17427_v43 }
 0x4f6   : > { %v5896_v2 = vadd.f32 %v5793_v6, %v16436_v60  ;;  %v11490_v11 = vpop.f32.mrb[107].mxu1  ;;  %v16677_v48 = vadd.f32 %v6359_v35, %v5895_v14  ;;  %v7069_v35 = vsel %vm17810_vm8, %v7064_v7, %v7068_v16  ;;  %v7888_v0 = vor.u32 %v7887_v5, %v7883_v39  ;;  %v12453_v16 = vld [vmem:[#allocation2 + $0x18] sm:$0xff]   ;;  %vm17830_vm8 = vmmov %vm17777_vm0 }
 0x4f7   : > { %v6367_v44 = vpop.f32.mrb[176].mxu0 }
 0x4f8   : > { %v11577_v58 = vpop.f32.mrb[177].mxu0  ;;  %11696 = vmatmul.mubr.bf16.gmra.mrb[212].mxu1 %v17809_v29  ;;  %v16682_v56 = vadd.f32 %v6362_v59, %v5896_v2  ;;  %v7893_v10 = vsel %vm17812_vm15, %v7888_v0, %v7892_v26  ;;  %v7898_v2 = vshll.u32 %v12520_v50, 16  ;;  %vm17831_vm15 = vmmov %vm17777_vm0 }
 0x4f9   : > { %v6370_v33 = vpop.f32.mrb[178].mxu0  ;;  %11699 = vmatprep.mubr.msk.bf16.mxu1 %vm17518_vm4, %v17427_v43 }
 0x4fa   : > { %v11578_v61 = vpop.f32.mrb[179].mxu0  ;;  %v7900_v30 = vrot.slane %v7898_v2, 1 }
 0x4fb   : > { %v5798_v60 = vpop.f32.mrb[108].mxu1 }
 0x4fc   : > { %v5897_v28 = vadd.f32 %v5798_v60, %v16444_v4  ;;  %v11493_v19 = vpop.f32.mrb[109].mxu1  ;;  %11784 = vmatmul.mubr.bf16.gmra.mrb[28].mxu0 %v7069_v35 }
 0x4fd   : > { %v5801_v45 = vpop.f32.mrb[110].mxu1  ;;  %11887 = vmatprep.mubr.msk.bf16.mxu0 %vm17518_vm4, %v17427_v43 }
 0x4fe   : > { %v5898_v62 = vadd.f32 %v5801_v45, %v16448_v31  ;;  %v11494_v59 = vpop.f32.mrb[111].mxu1  ;;  %v16691_v12 = vadd.f32 %v6367_v44, %v5897_v28  ;;  %v12521_v45 = vld [vmem:[#allocation2 + $0x30] sm:$0xff]  }
 0x4ff   : > { %v6375_v54 = vpop.f32.mrb[180].mxu0 }
 0x500   : > { %v11581_v20 = vpop.f32.mrb[181].mxu0  ;;  %11700 = vmatmul.mubr.bf16.gmra.mrb[216].mxu1 %v17811_v25  ;;  %v16696_v4 = vadd.f32 %v6370_v33, %v5898_v62  ;;  %v7894_v33 = vshrl.u32 %v12519_v38, 16  ;;  %v7906_v38 = vshll.u32 %v12521_v45, 16 }
 0x501   : > { %v6378_v14 = vpop.f32.mrb[182].mxu0  ;;  %11803 = vmatprep.mubr.msk.bf16.mxu1 %vm17518_vm4, %v17427_v43  ;;  %v12456_v20 = vld [vmem:[#allocation2 + $0x20] sm:$0xff]  }
 0x502   : > { %v11582_v6 = vpop.f32.mrb[183].mxu0  ;;  %v7896_v35 = vor.u32 %v7894_v33, %v7892_v26  ;;  %v7908_v0 = vrot.slane %v7906_v38, 1  ;;  %v12475_v33 = vld [vmem:[#allocation3 + $0x220] sm:$0xff]  }
 0x503   : > { %v5806_v31 = vpop.f32.mrb[112].mxu1 }
 0x504   : > { %v5899_v36 = vadd.f32 %v5806_v31, %v16456_v1  ;;  %v11497_v11 = vpop.f32.mrb[113].mxu1  ;;  %11888 = vmatmul.mubr.bf16.vlgmr.msra.gmra.mrb[32].mxu0 %v7893_v10  ;;  %v7901_v19 = vsel %vm17813_vm5, %v7896_v35, %v7900_v30  ;;  %v12470_v10 = vld [vmem:[#allocation3 + $0x218] sm:$0xff]   ;;  %vm17832_vm5 = vmmov %vm17777_vm0 }
 0x505   : > { %v5809_v44 = vpop.f32.mrb[114].mxu1  ;;  %11891 = vmatprep.mubr.msk.bf16.mxu0 %vm17518_vm4, %v17427_v43 }
 0x506   : > { %v5900_v22 = vadd.f32 %v5809_v44, %v16461_v34  ;;  %v11498_v7 = vpop.f32.mrb[115].mxu1  ;;  %v16705_v58 = vadd.f32 %v6375_v54, %v5899_v36  ;;  %v12464_v54 = vld [vmem:[#allocation3 + $0x210] sm:$0xff]  }
 0x507   : > { %v6383_v29 = vpop.f32.mrb[184].mxu0  ;;  %v12522_v44 = vld [vmem:[#allocation2 + $0x38] sm:$0xff]  }
 0x508   : > { %v11585_v61 = vpop.f32.mrb[185].mxu0  ;;  %11804 = vmatmul.mubr.bf16.vlgmr.msra.gmra.mrb[220].mxu1 %v12453_v16  ;;  %v16707_v60 = vadd.f32 %v6378_v14, %v5900_v22  ;;  %v7902_v14 = vshrl.u32 %v12520_v50, 16  ;;  %v7914_v50 = vshll.u32 %v12522_v44, 16 }
 0x509   : > { %v6386_v1 = vpop.f32.mrb[186].mxu0  ;;  %11956 = vmatpush3.bf16.msra.mxu1 %v12454_v53  ;;  %11807 = vmatprep.mubr.msk.bf16.mxu1 %vm17518_vm4, %v17427_v43  ;;  %v12458_v61 = vld [vmem:[#allocation2 + $0x28] sm:$0xff]  }
 0x50a   : > { %v11586_v28 = vpop.f32.mrb[187].mxu0  ;;  %11957 = vmatprep.subr.bf16.mxu1 %v17427_v43  ;;  %v7904_v31 = vor.u32 %v7902_v14, %v7900_v30  ;;  %v12485_v14 = vld [vmem:[#allocation3 + $0x230] sm:$0xff]  }
 0x50b   : > { %v5814_v34 = vpop.f32.mrb[116].mxu1  ;;  %v7916_v28 = vrot.slane %v7914_v50, 1 }
 0x50c   : > { %v5901_v5 = vadd.f32 %v5814_v34, %v16474_v37  ;;  %v11501_v62 = vpop.f32.mrb[117].mxu1  ;;  %11892 = vmatmul.mubr.bf16.gmra.mrb[36].mxu0 %v7901_v19  ;;  %v7909_v11 = vsel %vm17814_vm12, %v7904_v31, %v7908_v0  ;;  %v12480_v19 = vld [vmem:[#allocation3 + $0x228] sm:$0xff]   ;;  %vm17850_vm12 = vcmask 1046528  }
 0x50d   : > { %v5817_v59 = vpop.f32.mrb[118].mxu1  ;;  %11895 = vmatprep.mubr.msk.bf16.mxu0 %vm17518_vm4, %v17427_v43  ;;  %11958 = vmatpush3.bf16.msra.mxu1 %v12459_v40  ;;  %v7910_v40 = vshrl.u32 %v12521_v45, 16 }
 0x50e   : > { %v5902_v39 = vadd.f32 %v5817_v59, %v16479_v32  ;;  %v11502_v26 = vpop.f32.mrb[119].mxu1  ;;  %11959 = vmatprep.subr.bf16.mxu1 %v17427_v43  ;;  %v16721_v32 = vadd.f32 %v6383_v29, %v5901_v5  ;;  %v12523_v59 = vld [vmem:[#allocation2 + $0x40] sm:$0xff]  }
 0x50f   : > { %v6391_v25 = vpop.f32.mrb[188].mxu0  ;;  %v7922_v45 = vshll.u32 %v12523_v59, 16 }
 0x510   : > { %v11589_v6 = vpop.f32.mrb[189].mxu0  ;;  %11808 = vmatmul.mubr.bf16.gmra.mrb[224].mxu1 %v12456_v20  ;;  %v16725_v7 = vadd.f32 %v6386_v1, %v5902_v39  ;;  %v7912_v1 = vor.u32 %v7910_v40, %v7908_v0 }
 0x511   : > { %v6394_v37 = vpop.f32.mrb[190].mxu0  ;;  %11811 = vmatprep.mubr.msk.bf16.mxu1 %vm17518_vm4, %v17427_v43  ;;  %11960 = vmatpush3.bf16.msra.mxu1 %v12464_v54  ;;  %v12461_v6 = vld [vmem:[#allocation2 + $0x30] sm:$0xff]  }
 0x512   : > { %v11590_v2 = vpop.f32.mrb[191].mxu0  ;;  %11961 = vmatprep.subr.bf16.mxu1 %v17427_v43  ;;  %v7917_v62 = vsel %vm17815_vm10, %v7912_v1, %v7916_v28  ;;  %v7926_v1 = vshrl.u32 %v12523_v59, 16  ;;  %vm17851_vm10 = vmmov %vm17850_vm12 }
 0x513   : > { %v5822_v36 = vpop.f32.mrb[120].mxu1  ;;  %v7924_v2 = vrot.slane %v7922_v45, 1 }
 0x514   : > { %v5903_v53 = vadd.f32 %v5822_v36, %v16493_v63  ;;  %v11505_v22 = vpop.f32.mrb[121].mxu1  ;;  %11896 = vmatmul.mubr.bf16.gmra.mrb[40].mxu0 %v7909_v11  ;;  %v12491_v11 = vld [vmem:[#allocation3 + $0x238] sm:$0xff]  }
 0x515   : > { %v5825_v16 = vpop.f32.mrb[122].mxu1  ;;  %11899 = vmatprep.mubr.msk.bf16.mxu0 %vm17518_vm4, %v17427_v43  ;;  %11962 = vmatpush3.bf16.msra.mxu1 %v12470_v10  ;;  %v7918_v10 = vshrl.u32 %v12522_v44, 16 }
 0x516   : > { %v5904_v29 = vadd.f32 %v5825_v16, %v16498_v17  ;;  %v11506_v30 = vpop.f32.mrb[123].mxu1  ;;  %11963 = vmatprep.subr.bf16.mxu1 %v17427_v43  ;;  %v16734_v17 = vadd.f32 %v6391_v25, %v5903_v53  ;;  %v12524_v16 = vld [vmem:[#allocation2 + $0x48] sm:$0xff]  }
 0x517   : > { %v6399_v35 = vpop.f32.mrb[192].mxu0  ;;  %v7930_v44 = vshll.u32 %v12524_v16, 16 }
 0x518   : > { %v11593_v63 = vpop.f32.mrb[193].mxu0  ;;  %11812 = vmatmul.mubr.bf16.gmra.mrb[228].mxu1 %v12458_v61  ;;  %v16738_v26 = vadd.f32 %v6394_v37, %v5904_v29  ;;  %v7920_v37 = vor.u32 %v7918_v10, %v7916_v28  ;;  %v12463_v28 = vld [vmem:[#allocation2 + $0x38] sm:$0xff]  }
 0x519   : > { %v6402_v34 = vpop.f32.mrb[194].mxu0  ;;  %11815 = vmatprep.mubr.msk.bf16.mxu1 %vm17518_vm4, %v17427_v43  ;;  %11964 = vmatpush3.bf16.msra.mxu1 %v12475_v33 }
 0x51a   : > { %v11594_v38 = vpop.f32.mrb[195].mxu0  ;;  %11965 = vmatprep.subr.bf16.mxu1 %v17427_v43  ;;  %v7925_v22 = vsel %vm17777_vm0, %v7920_v37, %v7924_v2 }
 0x51b   : > { %v5830_v5 = vpop.f32.mrb[124].mxu1 }
 0x51c   : > { %v5905_v54 = vadd.f32 %v5830_v5, %v16513_v3  ;;  %v11509_v39 = vpop.f32.mrb[125].mxu1  ;;  %11900 = vmatmul.mubr.bf16.gmra.mrb[44].mxu0 %v7917_v62 }
 0x51d   : > { %v5833_v20 = vpop.f32.mrb[126].mxu1  ;;  %11903 = vmatprep.mubr.msk.bf16.mxu0 %vm17518_vm4, %v17427_v43  ;;  %11966 = vmatpush3.bf16.msra.mxu1 %v12480_v19  ;;  %v7932_v19 = vrot.slane %v7930_v44, 1  ;;  %v12525_v39 = vld [vmem:[#allocation2 + $0x50] sm:$0xff]   ;;  %v12526_v44 = vld [vmem:[#allocation2 + $0x58] sm:$0xff]  }
 0x51e   : > { %v5906_v25 = vadd.f32 %v5833_v20, %v16518_v15  ;;  %v11510_v0 = vpop.f32.mrb[127].mxu1  ;;  %11967 = vmatprep.subr.bf16.mxu1 %v17427_v43  ;;  %v16747_v15 = vadd.f32 %v6399_v35, %v5905_v54 }
 0x51f   : > { %v6407_v31 = vpop.f32.mrb[196].mxu0 }
 0x520   : > { %v11597_v3 = vpop.f32.mrb[197].mxu0  ;;  %11816 = vmatmul.mubr.bf16.gmra.mrb[232].mxu1 %v12461_v6  ;;  %v16751_v30 = vadd.f32 %v6402_v34, %v5906_v25 }
 0x521   : > { %v6410_v36 = vpop.f32.mrb[198].mxu0  ;;  %11819 = vmatprep.mubr.msk.bf16.mxu1 %vm17518_vm4, %v17427_v43  ;;  %11968 = vmatpush3.bf16.msra.mxu1 %v12485_v14 }
 0x522   : > { %v11598_v50 = vpop.f32.mrb[199].mxu0  ;;  %11969 = vmatprep.subr.bf16.mxu1 %v17427_v43 }
 0x523   : > { %v5838_v53 = vpop.f32.mrb[128].mxu1 }
 0x524   : > { %v5907_v33 = vadd.f32 %v5838_v53, %v16529_v9  ;;  %v11513_v29 = vpop.f32.mrb[129].mxu1  ;;  %11904 = vmatmul.mubr.bf16.gmra.mrb[48].mxu0 %v7925_v22  ;;  %v7928_v9 = vor.u32 %v7926_v1, %v7924_v2  ;;  %v7934_v2 = vshrl.u32 %v12524_v16, 16  ;;  %v7942_v1 = vshrl.u32 %v12525_v39, 16 }
 0x525   : > { %v5841_v61 = vpop.f32.mrb[130].mxu1  ;;  %11907 = vmatprep.mubr.msk.bf16.mxu0 %vm17518_vm4, %v17427_v43  ;;  %11970 = vmatpush3.bf16.msra.mxu1 %v12491_v11 }
 0x526   : > { %v5908_v40 = vadd.f32 %v5841_v61, %v16534_v47  ;;  %v11514_v35 = vpop.f32.mrb[131].mxu1  ;;  %v16758_v62 = vadd.f32 %v6407_v31, %v5907_v33  ;;  %v7933_v54 = vsel %vm17816_vm1, %v7928_v9, %v7932_v19  ;;  %v7938_v47 = vshll.u32 %v12525_v39, 16  ;;  %v12466_v31 = vld [vmem:[#allocation2 + $0x40] sm:$0xff]  }
 0x527   : > { %v6415_v63 = vpop.f32.mrb[200].mxu0  ;;  %v7936_v50 = vor.u32 %v7934_v2, %v7932_v19 }
 0x528   : > { %v11601_v38 = vpop.f32.mrb[201].mxu0  ;;  %11820 = vmatmul.mubr.bf16.gmra.mrb[236].mxu1 %v12463_v28  ;;  %v16762_v59 = vadd.f32 %v6410_v36, %v5908_v40  ;;  %v7940_v3 = vrot.slane %v7938_v47, 1  ;;  %v12468_v28 = vld [vmem:[#allocation2 + $0x48] sm:$0xff]   ;;  %v12527_v47 = vld [vmem:[#allocation2 + $0x60] sm:$0xff]  }
 0x529   : > { %v6418_v5 = vpop.f32.mrb[202].mxu0  ;;  %11823 = vmatprep.mubr.msk.bf16.mxu1 %vm17518_vm4, %v17427_v43 }
 0x52a   : > { %v11602_v34 = vpop.f32.mrb[203].mxu0  ;;  %v7941_v22 = vsel %vm17817_vm6, %v7936_v50, %v7940_v3 }
 0x52b   : > { %v5846_v45 = vpop.f32.mrb[132].mxu1  ;;  %v7944_v34 = vor.u32 %v7942_v1, %v7940_v3 }
 0x52c   : > { %v5909_v20 = vadd.f32 %v5846_v45, %v16543_v52  ;;  %v11517_v14 = vpop.f32.mrb[133].mxu1  ;;  %11908 = vmatmul.mubr.bf16.gmra.mrb[52].mxu0 %v7933_v54 }
 0x52d   : > { %v5849_v25 = vpop.f32.mrb[134].mxu1  ;;  %11911 = vmatprep.mubr.msk.bf16.mxu0 %vm17518_vm4, %v17427_v43 }
 0x52e   : > { %v5910_v0 = vadd.f32 %v5849_v25, %v16547_v24  ;;  %v11518_v6 = vpop.f32.mrb[135].mxu1  ;;  %v16769_v36 = vadd.f32 %v6415_v63, %v5909_v20  ;;  %v7946_v24 = vshll.u32 %v12526_v44, 16  ;;  %v17819_v20 = vld [vmem:[#allocation29_spill] sm:$0xff] }
 0x52f   : > { %v6423_v10 = vpop.f32.mrb[204].mxu0  ;;  %v17820_v6 = vld [vmem:[#allocation21_spill] sm:$0xff] }
 0x530   : > { %v11605_v37 = vpop.f32.mrb[205].mxu0  ;;  %11824 = vmatmul.mubr.bf16.gmra.mrb[240].mxu1 %v12466_v31  ;;  %v16773_v16 = vadd.f32 %v6418_v5, %v5910_v0  ;;  %v7948_v19 = vrot.slane %v7946_v24, 1 }
 0x531   : > { %v6426_v11 = vpop.f32.mrb[206].mxu0  ;;  %11827 = vmatprep.mubr.msk.bf16.mxu1 %vm17518_vm4, %v17427_v43  ;;  %v7950_v37 = vshrl.u32 %v12526_v44, 16 }
 0x532   : > { %v11606_v52 = vpop.f32.mrb[207].mxu0  ;;  %v7949_v54 = vsel %vm17818_vm9, %v7944_v34, %v7948_v19 }
 0x533   : > { %v5854_v53 = vpop.f32.mrb[136].mxu1 }
 0x534   : > { %v5911_v33 = vadd.f32 %v5854_v53, %v16555_v51  ;;  %v11521_v29 = vpop.f32.mrb[137].mxu1  ;;  %11912 = vmatmul.mubr.bf16.gmra.mrb[56].mxu0 %v7941_v22  ;;  %v7952_v22 = vor.u32 %v7950_v37, %v7948_v19  ;;  %v17823_v19 = vld [vmem:[#allocation30_spill] sm:$0xff] }
 0x535   : > { %v5857_v61 = vpop.f32.mrb[138].mxu1  ;;  %11915 = vmatprep.mubr.msk.bf16.mxu0 %vm17518_vm4, %v17427_v43 }
 0x536   : > { %v5912_v40 = vadd.f32 %v5857_v61, %v16559_v42  ;;  %v11522_v35 = vpop.f32.mrb[139].mxu1  ;;  %v16780_v5 = vadd.f32 %v6423_v10, %v5911_v33  ;;  %v7954_v42 = vshll.u32 %v12527_v47, 16  ;;  %v12471_v10 = vld [vmem:[#allocation2 + $0x50] sm:$0xff]   ;;  %v12528_v61 = vld [vmem:[#allocation2 + $0x68] sm:$0xff]  }
 0x537   : > { %v6431_v63 = vpop.f32.mrb[208].mxu0  ;;  %v17822_v35 = vld [vmem:[#allocation22_spill] sm:$0xff] }
 0x538   : > { %v11609_v38 = vpop.f32.mrb[209].mxu0  ;;  %11828 = vmatmul.mubr.bf16.gmra.mrb[244].mxu1 %v12468_v28  ;;  %v16784_v39 = vadd.f32 %v6426_v11, %v5912_v40  ;;  %v7956_v50 = vrot.slane %v7954_v42, 1  ;;  %v7962_v40 = vshll.u32 %v12528_v61, 16 }
 0x539   : > { %v6434_v9 = vpop.f32.mrb[210].mxu0  ;;  %11831 = vmatprep.mubr.msk.bf16.mxu1 %vm17518_vm4, %v17427_v43 }
 0x53a   : > { %v11610_v51 = vpop.f32.mrb[211].mxu0  ;;  %v7957_v29 = vsel %vm17821_vm11, %v7952_v22, %v7956_v50  ;;  %v7964_v42 = vrot.slane %v7962_v40, 1  ;;  %v7966_v40 = vshrl.u32 %v12528_v61, 16 }
 0x53b   : > { %v5862_v45 = vpop.f32.mrb[140].mxu1 }
 0x53c   : > { %v5913_v14 = vadd.f32 %v5862_v45, %v17819_v20  ;;  %v11525_v25 = vpop.f32.mrb[141].mxu1  ;;  %11916 = vmatmul.mubr.bf16.gmra.mrb[60].mxu0 %v7949_v54  ;;  %v7958_v54 = vshrl.u32 %v12527_v47, 16 }
 0x53d   : > { %v5865_v0 = vpop.f32.mrb[142].mxu1  ;;  %11919 = vmatprep.mubr.msk.bf16.mxu0 %vm17518_vm4, %v17427_v43 }
 0x53e   : > { %v5914_v31 = vadd.f32 %v5865_v0, %v17820_v6  ;;  %v11526_v2 = vpop.f32.mrb[143].mxu1  ;;  %v16791_v24 = vadd.f32 %v6431_v63, %v5913_v14  ;;  %v12473_v63 = vld [vmem:[#allocation2 + $0x58] sm:$0xff]   ;;  %v7960_v25 = vor.u32 %v7958_v54, %v7956_v50  ;;  %v17825_v50 = vld [vmem:[#allocation23_spill] sm:$0xff] }
 0x53f   : > { %v6439_v3 = vpop.f32.mrb[212].mxu0  ;;  %v12529_v2 = vld [vmem:[#allocation2 + $0x70] sm:$0xff]  }
 0x540   : > { %v11613_v52 = vpop.f32.mrb[213].mxu0  ;;  %11832 = vmatmul.mubr.bf16.gmra.mrb[248].mxu1 %v12471_v10  ;;  %v16795_v44 = vadd.f32 %v6434_v9, %v5914_v31  ;;  %v7965_v31 = vsel %vm17824_vm3, %v7960_v25, %v7964_v42  ;;  %v7970_v10 = vshll.u32 %v12529_v2, 16 }
 0x541   : > { %v6442_v53 = vpop.f32.mrb[214].mxu0  ;;  %11835 = vmatprep.mubr.msk.bf16.mxu1 %vm17518_vm4, %v17427_v43 }
 0x542   : > { %v11614_v11 = vpop.f32.mrb[215].mxu0 }
 0x543   : > { %v5870_v33 = vpop.f32.mrb[144].mxu1 }
 0x544   : > { %v5915_v28 = vadd.f32 %v5870_v33, %v17822_v35  ;;  %v11529_v1 = vpop.f32.mrb[145].mxu1  ;;  %11920 = vmatmul.mubr.bf16.gmra.mrb[64].mxu0 %v7957_v29  ;;  %v7972_v35 = vrot.slane %v7970_v10, 1 }
 0x545   : > { %v5873_v38 = vpop.f32.mrb[146].mxu1  ;;  %11923 = vmatprep.mubr.msk.bf16.mxu0 %vm17518_vm4, %v17427_v43 }
 0x546   : > { %v5916_v34 = vadd.f32 %v5873_v38, %v17823_v19  ;;  %v11530_v51 = vpop.f32.mrb[147].mxu1  ;;  %v16802_v0 = vadd.f32 %v6439_v3, %v5915_v28  ;;  %v12476_v3 = vld [vmem:[#allocation2 + $0x60] sm:$0xff]   ;;  %v7968_v38 = vor.u32 %v7966_v40, %v7964_v42 }
 0x547   : > { %v6447_v45 = vpop.f32.mrb[216].mxu0  ;;  %v12530_v51 = vld [vmem:[#allocation2 + $0x78] sm:$0xff]  }
 0x548   : > { %v11617_v20 = vpop.f32.mrb[217].mxu0  ;;  %11836 = vmatmul.mubr.bf16.gmra.mrb[252].mxu1 %v12473_v63  ;;  %v16806_v47 = vadd.f32 %v6442_v53, %v5916_v34  ;;  %v7973_v34 = vsel %vm17826_vm2, %v7968_v38, %v7972_v35  ;;  %v7978_v63 = vshll.u32 %v12530_v51, 16 }
 0x549   : > { %v6450_v14 = vpop.f32.mrb[218].mxu0  ;;  %11839 = vmatprep.mubr.msk.bf16.mxu1 %vm17518_vm4, %v17427_v43 }
 0x54a   : > { %v11618_v9 = vpop.f32.mrb[219].mxu0  ;;  %v7980_v10 = vrot.slane %v7978_v63, 1 }
 0x54b   : > { %v5878_v6 = vpop.f32.mrb[148].mxu1 }
 0x54c   : > { %v5917_v37 = vadd.f32 %v5878_v6, %v16591_v49  ;;  %v11533_v52 = vpop.f32.mrb[149].mxu1  ;;  %11924 = vmatmul.mubr.bf16.gmra.mrb[68].mxu0 %v7965_v31  ;;  %v7974_v31 = vshrl.u32 %v12529_v2, 16 }
 0x54d   : > { %v5881_v22 = vpop.f32.mrb[150].mxu1  ;;  %11927 = vmatprep.mubr.msk.bf16.mxu0 %vm17518_vm4, %v17427_v43 }
 0x54e   : > { %v5918_v11 = vadd.f32 %v5881_v22, %v17825_v50  ;;  %v11534_v33 = vpop.f32.mrb[151].mxu1  ;;  %v16813_v53 = vadd.f32 %v6447_v45, %v5917_v37  ;;  %v12478_v45 = vld [vmem:[#allocation2 + $0x68] sm:$0xff]   ;;  %v7976_v22 = vor.u32 %v7974_v31, %v7972_v35 }
 0x54f   : > { %v7169_v29 = vpop.f32.mrb[220].mxu0  ;;  %v12531_v33 = vld [vmem:[#allocation2 + $0x80] sm:$0xff]  }
 0x550   : > { %v11721_v28 = vpop.f32.mrb[221].mxu0  ;;  %11840 = vmatmul.mubr.bf16.gmra.mrb[0].mxu1 %v12476_v3  ;;  %v16817_v61 = vadd.f32 %v6450_v14, %v5918_v11  ;;  %v7981_v11 = vsel %vm17827_vm7, %v7976_v22, %v7980_v10 }
 0x551   : > { %v7172_v1 = vpop.f32.mrb[222].mxu0  ;;  %11843 = vmatprep.mubr.msk.bf16.mxu1 %vm17518_vm4, %v17427_v43 }
 0x552   : > { %v11722_v49 = vpop.f32.mrb[223].mxu0 }
 0x553   : > { %v6621_v19 = vpop.f32.mrb[152].mxu1 }
 0x554   : > { %v6756_v54 = vadd.f32 %v6621_v19, %v16607_v21  ;;  %v11637_v20 = vpop.f32.mrb[153].mxu1  ;;  %11928 = vmatmul.mubr.bf16.gmra.mrb[72].mxu0 %v7973_v34  ;;  %v7982_v19 = vshrl.u32 %v12530_v51, 16 }
 0x555   : > { %v6624_v25 = vpop.f32.mrb[154].mxu1  ;;  %11931 = vmatprep.mubr.msk.bf16.mxu0 %vm17518_vm4, %v17427_v43 }
 0x556   : > { %v6757_v42 = vadd.f32 %v6624_v25, %v16612_v57  ;;  %v11638_v9 = vpop.f32.mrb[155].mxu1  ;;  %v16824_v14 = vadd.f32 %v7169_v29, %v6756_v54  ;;  %v7986_v57 = vshll.u32 %v12531_v33, 16  ;;  %v12481_v29 = vld [vmem:[#allocation2 + $0x70] sm:$0xff]   ;;  %v7984_v20 = vor.u32 %v7982_v19, %v7980_v10 }
 0x557   : > { %v7177_v6 = vpop.f32.mrb[224].mxu0  ;;  %v12532_v9 = vld [vmem:[#allocation2 + $0x88] sm:$0xff]  }
 0x558   : > { %v11725_v37 = vpop.f32.mrb[225].mxu0  ;;  %11844 = vmatmul.mubr.bf16.gmra.mrb[4].mxu1 %v12478_v45  ;;  %v16828_v2 = vadd.f32 %v7172_v1, %v6757_v42  ;;  %v7988_v34 = vrot.slane %v7986_v57, 1 }
 0x559   : > { %v7180_v52 = vpop.f32.mrb[226].mxu0  ;;  %11847 = vmatprep.mubr.msk.bf16.mxu1 %vm17518_vm4, %v17427_v43 }
 0x55a   : > { %v11726_v21 = vpop.f32.mrb[227].mxu0  ;;  %v7989_v42 = vsel %vm17828_vm13, %v7984_v20, %v7988_v34 }
 0x55b   : > { %v6629_v50 = vpop.f32.mrb[156].mxu1 }
 0x55c   : > { %v6758_v3 = vadd.f32 %v6629_v50, %v16621_v13  ;;  %v11641_v40 = vpop.f32.mrb[157].mxu1  ;;  %11932 = vmatmul.mubr.bf16.gmra.mrb[76].mxu0 %v7981_v11  ;;  %v7990_v50 = vshrl.u32 %v12531_v33, 16 }
 0x55d   : > { %v6632_v28 = vpop.f32.mrb[158].mxu1  ;;  %11935 = vmatprep.mubr.msk.bf16.mxu0 %vm17518_vm4, %v17427_v43 }
 0x55e   : > { %v6759_v35 = vadd.f32 %v6632_v28, %v16626_v46  ;;  %v11642_v38 = vpop.f32.mrb[159].mxu1  ;;  %v16835_v1 = vadd.f32 %v7177_v6, %v6758_v3  ;;  %v7994_v46 = vshll.u32 %v12532_v9, 16  ;;  %v12483_v6 = vld [vmem:[#allocation2 + $0x78] sm:$0xff]   ;;  %v7992_v40 = vor.u32 %v7990_v50, %v7988_v34 }
 0x55f   : > { %v7185_v49 = vpop.f32.mrb[228].mxu0  ;;  %v12533_v38 = vld [vmem:[#allocation2 + $0x90] sm:$0xff]  }
 0x560   : > { %v11729_v63 = vpop.f32.mrb[229].mxu0  ;;  %11848 = vmatmul.mubr.bf16.gmra.mrb[8].mxu1 %v12481_v29  ;;  %v16839_v51 = vadd.f32 %v7180_v52, %v6759_v35  ;;  %v7996_v11 = vrot.slane %v7994_v46, 1 }
 0x561   : > { %v7188_v54 = vpop.f32.mrb[230].mxu0  ;;  %11851 = vmatprep.mubr.msk.bf16.mxu1 %vm17518_vm4, %v17427_v43 }
 0x562   : > { %v11730_v13 = vpop.f32.mrb[231].mxu0  ;;  %v7997_v35 = vsel %vm17829_vm14, %v7992_v40, %v7996_v11  ;;  %v16868_v40 = vld [vmem:[#allocation2 + $0xa0] ss:$0 sps:$4 sm:$0x11]  }
 0x563   : > { %v6637_v25 = vpop.f32.mrb[160].mxu1 }
 0x564   : > { %v6760_v45 = vadd.f32 %v6637_v25, %v16635_v23  ;;  %v11645_v31 = vpop.f32.mrb[161].mxu1  ;;  %11936 = vmatmul.mubr.bf16.gmra.mrb[80].mxu0 %v7989_v42  ;;  %v7998_v25 = vshrl.u32 %v12532_v9, 16 }
 0x565   : > { %v6640_v37 = vpop.f32.mrb[162].mxu1  ;;  %11939 = vmatprep.mubr.msk.bf16.mxu0 %vm17518_vm4, %v17427_v43 }
 0x566   : > { %v6761_v10 = vadd.f32 %v6640_v37, %v16640_v27  ;;  %v11646_v22 = vpop.f32.mrb[163].mxu1  ;;  %v16846_v52 = vadd.f32 %v7185_v49, %v6760_v45  ;;  %v8002_v27 = vshll.u32 %v12533_v38, 16  ;;  %v12486_v49 = vld [vmem:[#allocation2 + $0x80] sm:$0xff]   ;;  %v8000_v31 = vor.u32 %v7998_v25, %v7996_v11 }
 0x567   : > { %v7193_v21 = vpop.f32.mrb[232].mxu0 }
 0x568   : > { %v11733_v57 = vpop.f32.mrb[233].mxu0  ;;  %11852 = vmatmul.mubr.bf16.gmra.mrb[12].mxu1 %v12483_v6  ;;  %v16850_v33 = vadd.f32 %v7188_v54, %v6761_v10  ;;  %v8004_v42 = vrot.slane %v8002_v27, 1 }
 0x569   : > { %v7196_v3 = vpop.f32.mrb[234].mxu0  ;;  %11855 = vmatprep.mubr.msk.bf16.mxu1 %vm17518_vm4, %v17427_v43  ;;  %v8006_v57 = vshrl.u32 %v12533_v38, 16 }
 0x56a   : > { %v11734_v23 = vpop.f32.mrb[235].mxu0 }
 0x56b   : > { %v6645_v28 = vpop.f32.mrb[164].mxu1  ;;  %v8008_v27 = vor.u32 %v8006_v57, %v8004_v42 }
 0x56c   : > { %v6762_v29 = vadd.f32 %v6645_v28, %v16649_v41  ;;  %v11649_v19 = vpop.f32.mrb[165].mxu1  ;;  %11940 = vmatmul.mubr.bf16.gmra.mrb[84].mxu0 %v7997_v35  ;;  %v16857_v41 = vld [vmem:[#allocation2 + $0x98] sm:$0xff]   ;;  %v12488_v28 = vld [vmem:[#allocation2 + $0x88] sm:$0xff]  }
 0x56d   : > { %v6648_v63 = vpop.f32.mrb[166].mxu1  ;;  %11943 = vmatprep.mubr.msk.bf16.mxu0 %vm17518_vm4, %v17427_v43  ;;  %v8010_v22 = vshll.u32 %v16857_v41, 16 }
 0x56e   : > { %v6763_v34 = vadd.f32 %v6648_v63, %v16654_v55  ;;  %v11650_v20 = vpop.f32.mrb[167].mxu1  ;;  %v16859_v37 = vadd.f32 %v7193_v21, %v6762_v29  ;;  %v8005_v55 = vsel %vm17830_vm8, %v8000_v31, %v8004_v42  ;;  %v8018_v63 = vshll.u32 %v16868_v40, 16 }
 0x56f   : > { %v7201_v13 = vpop.f32.mrb[236].mxu0  ;;  %v8012_v29 = vrot.slane %v8010_v22, 1 }
 0x570   : > { %v11737_v46 = vpop.f32.mrb[237].mxu0  ;;  %11856 = vmatmul.mubr.bf16.gmra.mrb[16].mxu1 %v12486_v49  ;;  %v16864_v50 = vadd.f32 %v7196_v3, %v6763_v34  ;;  %v8014_v3 = vshrl.u32 %v16857_v41, 16 }
 0x571   : > { %v7204_v45 = vpop.f32.mrb[238].mxu0  ;;  %11859 = vmatprep.mubr.msk.bf16.mxu1 %vm17518_vm4, %v17427_v43 }
 0x572   : > { %v11738_v54 = vpop.f32.mrb[239].mxu0  ;;  %v8016_v31 = vor.u32 %v8014_v3, %v8012_v29 }
 0x573   : > { %v6653_v10 = vpop.f32.mrb[168].mxu1  ;;  %v8020_v54 = vrot.slane %v8018_v63, 1 }
 0x574   : > { %v6764_v9 = vadd.f32 %v6653_v10, %v16663_v8  ;;  %v11653_v6 = vpop.f32.mrb[169].mxu1  ;;  %11944 = vmatmul.mubr.bf16.gmra.mrb[88].mxu0 %v8005_v55 }
 0x575   : > { %v6656_v11 = vpop.f32.mrb[170].mxu1  ;;  %11947 = vmatprep.mubr.msk.bf16.mxu0 %vm17518_vm4, %v17427_v43 }
 0x576   : > { %v6765_v21 = vadd.f32 %v6656_v11, %v16668_v18  ;;  %v11654_v23 = vpop.f32.mrb[171].mxu1  ;;  %v16875_v34 = vadd.f32 %v7201_v13, %v6764_v9  ;;  %v8013_v18 = vsel %vm17831_vm15, %v8008_v27, %v8012_v29  ;;  %v12490_v13 = vld [vmem:[#allocation2 + $0x90] sm:$0xff]  }
 0x577   : > { %v7209_v35 = vpop.f32.mrb[240].mxu0 }
 0x578   : > { %v11741_v19 = vpop.f32.mrb[241].mxu0  ;;  %11860 = vmatmul.mubr.bf16.gmra.mrb[20].mxu1 %v12488_v28  ;;  %v16879_v42 = vadd.f32 %v7204_v45, %v6765_v21  ;;  %v12492_v28 = vld [vmem:[#allocation2 + $0x98] sm:$0xff]  }
 0x579   : > { %v7212_v8 = vpop.f32.mrb[242].mxu0  ;;  %11863 = vmatprep.mubr.msk.bf16.mxu1 %vm17518_vm4, %v17427_v43 }
 0x57a   : > { %v11742_v38 = vpop.f32.mrb[243].mxu0 }
 0x57b   : > { %v6661_v20 = vpop.f32.mrb[172].mxu1 }
 0x57c   : > { %v6766_v49 = vadd.f32 %v6661_v20, %v16677_v48  ;;  %v11657_v25 = vpop.f32.mrb[173].mxu1  ;;  %11948 = vmatmul.mubr.bf16.gmra.mrb[92].mxu0 %v8013_v18  ;;  %v8021_v48 = vsel %vm17832_vm5, %v8016_v31, %v8020_v54 }
 0x57d   : > { %v6664_v46 = vpop.f32.mrb[174].mxu1  ;;  %11951 = vmatprep.mubr.msk.bf16.mxu0 %vm17518_vm4, %v17427_v43 }
 0x57e   : > { %v6767_v10 = vadd.f32 %v6664_v46, %v16682_v56  ;;  %v11658_v55 = vpop.f32.mrb[175].mxu1  ;;  %v16887_v11 = vadd.f32 %v7209_v35, %v6766_v49 }
 0x57f   : > { %v7217_v22 = vpop.f32.mrb[244].mxu0 }
 0x580   : > { %v11745_v9 = vpop.f32.mrb[245].mxu0  ;;  %11864 = vmatmul.mubr.bf16.gmra.mrb[24].mxu1 %v12490_v13  ;;  %v16890_v56 = vadd.f32 %v7212_v8, %v6767_v10  ;;  %v17833_v10 = vld [vmem:[#allocation39_spill] sm:$0xff] }
 0x581   : > { %v7220_v6 = vpop.f32.mrb[246].mxu0  ;;  %11867 = vmatprep.mubr.msk.bf16.mxu1 %vm17518_vm4, %v17427_v43 }
 0x582   : > { %v11746_v45 = vpop.f32.mrb[247].mxu0 }
 0x583   : > { %v6669_v57 = vpop.f32.mrb[176].mxu1 }
 0x584   : > { %v6768_v21 = vadd.f32 %v6669_v57, %v16691_v12  ;;  %v11661_v23 = vpop.f32.mrb[177].mxu1  ;;  %11952 = vmatmul.mubr.bf16.gmra.mrb[96].mxu0 %v8021_v48 }
 0x585   : > { %v6672_v27 = vpop.f32.mrb[178].mxu1 }
 0x586   : > { %v6769_v29 = vadd.f32 %v6672_v27, %v16696_v4  ;;  %v11662_v19 = vpop.f32.mrb[179].mxu1  ;;  %v16895_v20 = vadd.f32 %v7217_v22, %v6768_v21 }
 0x587   : > { %v7225_v3 = vpop.f32.mrb[248].mxu0 }
 0x588   : > { %v11749_v63 = vpop.f32.mrb[249].mxu0  ;;  %11868 = vmatmul.mubr.bf16.gmra.mrb[28].mxu1 %v12492_v28  ;;  %v16898_v8 = vadd.f32 %v7220_v6, %v6769_v29  ;;  %v17834_v28 = vld [vmem:[#allocation40_spill] sm:$0xff] }
 0x589   : > { %v7228_v38 = vpop.f32.mrb[250].mxu0  ;;  %11971 = vmatprep.mubr.msk.bf16.mxu1 %vm17518_vm4, %v17427_v43 }
 0x58a   : > { %v11750_v35 = vpop.f32.mrb[251].mxu0 }
 0x58b   : > { %v6677_v12 = vpop.f32.mrb[180].mxu1 }
 0x58c   : > { %v6770_v18 = vadd.f32 %v6677_v12, %v16705_v58  ;;  %v11665_v49 = vpop.f32.mrb[181].mxu1 }
 0x58d   : > { %v6680_v25 = vpop.f32.mrb[182].mxu1 }
 0x58e   : > { %v6771_v4 = vadd.f32 %v6680_v25, %v16707_v60  ;;  %v11666_v46 = vpop.f32.mrb[183].mxu1  ;;  %v16904_v22 = vadd.f32 %v7225_v3, %v6770_v18  ;;  %v17835_v25 = vld [vmem:[#allocation41_spill] sm:$0xff] }
 0x58f   : > { %v7233_v31 = vpop.f32.mrb[252].mxu0 }
 0x590   : > { %v11753_v54 = vpop.f32.mrb[253].mxu0  ;;  %11972 = vmatmul.mubr.bf16.vlgmr.msra.gmra.mrb[32].mxu1 %v17833_v10  ;;  %v16907_v48 = vadd.f32 %v7228_v38, %v6771_v4 }
 0x591   : > { %v7236_v55 = vpop.f32.mrb[254].mxu0  ;;  %11975 = vmatprep.mubr.msk.bf16.mxu1 %vm17518_vm4, %v17427_v43 }
 0x592   : > { %v11754_v13 = vpop.f32.mrb[255].mxu0 }
 0x593   : > { %v6685_v9 = vpop.f32.mrb[184].mxu1 }
 0x594   : > { %v6772_v58 = vadd.f32 %v6685_v9, %v16721_v32  ;;  %v11669_v6 = vpop.f32.mrb[185].mxu1 }
 0x595   : > { %v6688_v45 = vpop.f32.mrb[186].mxu1 }
 0x596   : > { %v6773_v60 = vadd.f32 %v6688_v45, %v16725_v7  ;;  %v11670_v57 = vpop.f32.mrb[187].mxu1  ;;  %v16913_v19 = vadd.f32 %v7233_v31, %v6772_v58  ;;  %v17836_v45 = vld [vmem:[#allocation42_spill] sm:$0xff] }
 0x597   : > { %v7241_v21 = vpop.f32.mrb[0].mxu0 }
 0x598   : > { %v11757_v23 = vpop.f32.mrb[1].mxu0  ;;  %11976 = vmatmul.mubr.bf16.gmra.mrb[36].mxu1 %v17834_v28  ;;  %v16916_v38 = vadd.f32 %v7236_v55, %v6773_v60 }
 0x599   : > { %v7244_v27 = vpop.f32.mrb[2].mxu0  ;;  %11979 = vmatprep.mubr.msk.bf16.mxu1 %vm17518_vm4, %v17427_v43 }
 0x59a   : > { %v11758_v29 = vpop.f32.mrb[3].mxu0 }
 0x59b   : > { %v6693_v3 = vpop.f32.mrb[188].mxu1 }
 0x59c   : > { %v6774_v32 = vadd.f32 %v6693_v3, %v16734_v17  ;;  %v11673_v63 = vpop.f32.mrb[189].mxu1 }
 0x59d   : > { %v6696_v35 = vpop.f32.mrb[190].mxu1 }
 0x59e   : > { %v6775_v7 = vadd.f32 %v6696_v35, %v16738_v26  ;;  %v11674_v12 = vpop.f32.mrb[191].mxu1  ;;  %v16922_v31 = vadd.f32 %v7241_v21, %v6774_v32  ;;  %v17837_v35 = vld [vmem:[#allocation44_spill] sm:$0xff] }
 0x59f   : > { %v7249_v18 = vpop.f32.mrb[4].mxu0 }
 0x5a0   : > { %v11761_v49 = vpop.f32.mrb[5].mxu0  ;;  %11980 = vmatmul.mubr.bf16.gmra.mrb[40].mxu1 %v17835_v25  ;;  %v16925_v55 = vadd.f32 %v7244_v27, %v6775_v7 }
 0x5a1   : > { %v7252_v4 = vpop.f32.mrb[6].mxu0  ;;  %11983 = vmatprep.mubr.msk.bf16.mxu1 %vm17518_vm4, %v17427_v43 }
 0x5a2   : > { %v11762_v46 = vpop.f32.mrb[7].mxu0 }
 0x5a3   : > { %v6701_v54 = vpop.f32.mrb[192].mxu1 }
 0x5a4   : > { %v6776_v17 = vadd.f32 %v6701_v54, %v16747_v15  ;;  %v11677_v10 = vpop.f32.mrb[193].mxu1 }
 0x5a5   : > { %v6704_v13 = vpop.f32.mrb[194].mxu1 }
 0x5a6   : > { %v6777_v26 = vadd.f32 %v6704_v13, %v16751_v30  ;;  %v11678_v9 = vpop.f32.mrb[195].mxu1  ;;  %v16931_v21 = vadd.f32 %v7249_v18, %v6776_v17  ;;  %v17838_v13 = vld [vmem:[#allocation45_spill] sm:$0xff] }
 0x5a7   : > { %v7257_v58 = vpop.f32.mrb[8].mxu0 }
 0x5a8   : > { %v11765_v6 = vpop.f32.mrb[9].mxu0  ;;  %11984 = vmatmul.mubr.bf16.gmra.mrb[44].mxu1 %v17836_v45  ;;  %v16934_v27 = vadd.f32 %v7252_v4, %v6777_v26 }
 0x5a9   : > { %v7260_v60 = vpop.f32.mrb[10].mxu0  ;;  %11987 = vmatprep.mubr.msk.bf16.mxu1 %vm17518_vm4, %v17427_v43 }
 0x5aa   : > { %v11766_v57 = vpop.f32.mrb[11].mxu0 }
 0x5ab   : > { %v6709_v23 = vpop.f32.mrb[196].mxu1 }
 0x5ac   : > { %v6778_v15 = vadd.f32 %v6709_v23, %v16758_v62  ;;  %v11681_v28 = vpop.f32.mrb[197].mxu1 }
 0x5ad   : > { %v6712_v29 = vpop.f32.mrb[198].mxu1 }
 0x5ae   : > { %v6779_v30 = vadd.f32 %v6712_v29, %v16762_v59  ;;  %v11682_v3 = vpop.f32.mrb[199].mxu1  ;;  %v16940_v18 = vadd.f32 %v7257_v58, %v6778_v15  ;;  %v17839_v29 = vld [vmem:[#allocation46_spill] sm:$0xff] }
 0x5af   : > { %v7265_v32 = vpop.f32.mrb[12].mxu0 }
 0x5b0   : > { %v11769_v63 = vpop.f32.mrb[13].mxu0  ;;  %11988 = vmatmul.mubr.bf16.gmra.mrb[48].mxu1 %v17837_v35  ;;  %v16943_v4 = vadd.f32 %v7260_v60, %v6779_v30 }
 0x5b1   : > { %v7268_v7 = vpop.f32.mrb[14].mxu0  ;;  %11991 = vmatprep.mubr.msk.bf16.mxu1 %vm17518_vm4, %v17427_v43 }
 0x5b2   : > { %v11770_v12 = vpop.f32.mrb[15].mxu0 }
 0x5b3   : > { %v6717_v49 = vpop.f32.mrb[200].mxu1 }
 0x5b4   : > { %v6780_v62 = vadd.f32 %v6717_v49, %v16769_v36  ;;  %v11685_v25 = vpop.f32.mrb[201].mxu1 }
 0x5b5   : > { %v6720_v46 = vpop.f32.mrb[202].mxu1 }
 0x5b6   : > { %v6781_v59 = vadd.f32 %v6720_v46, %v16773_v16  ;;  %v11686_v54 = vpop.f32.mrb[203].mxu1  ;;  %v16949_v58 = vadd.f32 %v7265_v32, %v6780_v62  ;;  %v17840_v46 = vld [vmem:[#allocation47_spill] sm:$0xff] }
 0x5b7   : > { %v7273_v17 = vpop.f32.mrb[16].mxu0 }
 0x5b8   : > { %v11773_v10 = vpop.f32.mrb[17].mxu0  ;;  %11992 = vmatmul.mubr.bf16.gmra.mrb[52].mxu1 %v17838_v13  ;;  %v16952_v60 = vadd.f32 %v7268_v7, %v6781_v59 }
 0x5b9   : > { %v7276_v26 = vpop.f32.mrb[18].mxu0  ;;  %11995 = vmatprep.mubr.msk.bf16.mxu1 %vm17518_vm4, %v17427_v43 }
 0x5ba   : > { %v11774_v9 = vpop.f32.mrb[19].mxu0 }
 0x5bb   : > { %v6725_v6 = vpop.f32.mrb[204].mxu1 }
 0x5bc   : > { %v6782_v36 = vadd.f32 %v6725_v6, %v16780_v5  ;;  %v11689_v45 = vpop.f32.mrb[205].mxu1 }
 0x5bd   : > { %v6728_v57 = vpop.f32.mrb[206].mxu1 }
 0x5be   : > { %v6783_v16 = vadd.f32 %v6728_v57, %v16784_v39  ;;  %v11690_v23 = vpop.f32.mrb[207].mxu1  ;;  %v16958_v32 = vadd.f32 %v7273_v17, %v6782_v36  ;;  %v17841_v57 = vld [vmem:[#allocation48_spill] sm:$0xff] }
 0x5bf   : > { %v7281_v15 = vpop.f32.mrb[20].mxu0 }
 0x5c0   : > { %v11777_v28 = vpop.f32.mrb[21].mxu0  ;;  %11996 = vmatmul.mubr.bf16.gmra.mrb[56].mxu1 %v17839_v29  ;;  %v16961_v7 = vadd.f32 %v7276_v26, %v6783_v16 }
 0x5c1   : > { %v7284_v30 = vpop.f32.mrb[22].mxu0  ;;  %11999 = vmatprep.mubr.msk.bf16.mxu1 %vm17518_vm4, %v17427_v43 }
 0x5c2   : > { %v11778_v3 = vpop.f32.mrb[23].mxu0 }
 0x5c3   : > { %v6733_v63 = vpop.f32.mrb[208].mxu1 }
 0x5c4   : > { %v6784_v5 = vadd.f32 %v6733_v63, %v16791_v24  ;;  %v11693_v35 = vpop.f32.mrb[209].mxu1 }
 0x5c5   : > { %v6736_v12 = vpop.f32.mrb[210].mxu1 }
 0x5c6   : > { %v6785_v39 = vadd.f32 %v6736_v12, %v16795_v44  ;;  %v11694_v49 = vpop.f32.mrb[211].mxu1  ;;  %v16967_v17 = vadd.f32 %v7281_v15, %v6784_v5 }
 0x5c7   : > { %v7289_v62 = vpop.f32.mrb[24].mxu0 }
 0x5c8   : > { %v11781_v25 = vpop.f32.mrb[25].mxu0  ;;  %12000 = vmatmul.mubr.bf16.gmra.mrb[60].mxu1 %v17840_v46  ;;  %v16970_v26 = vadd.f32 %v7284_v30, %v6785_v39  ;;  %v17842_v39 = vld [vmem:[#allocation49_spill] sm:$0xff] }
 0x5c9   : > { %v7292_v59 = vpop.f32.mrb[26].mxu0  ;;  %12003 = vmatprep.mubr.msk.bf16.mxu1 %vm17518_vm4, %v17427_v43 }
 0x5ca   : > { %v11782_v54 = vpop.f32.mrb[27].mxu0 }
 0x5cb   : > { %v6741_v10 = vpop.f32.mrb[212].mxu1 }
 0x5cc   : > { %v6786_v24 = vadd.f32 %v6741_v10, %v16802_v0  ;;  %v11697_v13 = vpop.f32.mrb[213].mxu1 }
 0x5cd   : > { %v6744_v9 = vpop.f32.mrb[214].mxu1 }
 0x5ce   : > { %v6787_v44 = vadd.f32 %v6744_v9, %v16806_v47  ;;  %v11698_v6 = vpop.f32.mrb[215].mxu1  ;;  %v16976_v15 = vadd.f32 %v7289_v62, %v6786_v24  ;;  %v17843_v9 = vld [vmem:[#allocation50_spill] sm:$0xff] }
 0x5cf   : > { %v7297_v36 = vpop.f32.mrb[28].mxu0 }
 0x5d0   : > { %v11785_v45 = vpop.f32.mrb[29].mxu0  ;;  %12004 = vmatmul.mubr.bf16.gmra.mrb[64].mxu1 %v17841_v57  ;;  %v16979_v30 = vadd.f32 %v7292_v59, %v6787_v44 }
 0x5d1   : > { %v7300_v16 = vpop.f32.mrb[30].mxu0  ;;  %12007 = vmatprep.mubr.msk.bf16.mxu1 %vm17518_vm4, %v17427_v43 }
 0x5d2   : > { %v11786_v23 = vpop.f32.mrb[31].mxu0 }
 0x5d3   : > { %v6749_v28 = vpop.f32.mrb[216].mxu1 }
 0x5d4   : > { %v6788_v0 = vadd.f32 %v6749_v28, %v16813_v53  ;;  %v11701_v29 = vpop.f32.mrb[217].mxu1 }
 0x5d5   : > { %v6752_v3 = vpop.f32.mrb[218].mxu1  ;;  %v17844_v29 = vld [vmem:[#allocation51_spill] sm:$0xff] }
 0x5d6   : > { %v6789_v47 = vadd.f32 %v6752_v3, %v16817_v61  ;;  %v11702_v63 = vpop.f32.mrb[219].mxu1  ;;  %v16982_v5 = vadd.f32 %v7297_v36, %v6788_v0 }
 0x5d7   : > { %v8121_v35 = vpop.f32.mrb[32].mxu0 }
 0x5d8   : > { %v11889_v12 = vpop.f32.mrb[33].mxu0  ;;  %12008 = vmatmul.mubr.bf16.gmra.mrb[68].mxu1 %v17842_v39  ;;  %v16988_v59 = vadd.f32 %v7300_v16, %v6789_v47 }
 0x5d9   : > { %v8124_v49 = vpop.f32.mrb[34].mxu0  ;;  %12011 = vmatprep.mubr.msk.bf16.mxu1 %vm17518_vm4, %v17427_v43 }
 0x5da   : > { %v11890_v62 = vpop.f32.mrb[35].mxu0 }
 0x5db   : > { %v7573_v25 = vpop.f32.mrb[220].mxu1 }
 0x5dc   : > { %v7708_v53 = vadd.f32 %v7573_v25, %v16824_v14  ;;  %v11805_v46 = vpop.f32.mrb[221].mxu1 }
 0x5dd   : > { %v7576_v54 = vpop.f32.mrb[222].mxu1  ;;  %v17845_v46 = vld [vmem:[#allocation52_spill] sm:$0xff] }
 0x5de   : > { %v7709_v61 = vadd.f32 %v7576_v54, %v16828_v2  ;;  %v11806_v10 = vpop.f32.mrb[223].mxu1  ;;  %v16992_v44 = vadd.f32 %v8121_v35, %v7708_v53 }
 0x5df   : > { %v8129_v24 = vpop.f32.mrb[36].mxu0 }
 0x5e0   : > { %v11893_v13 = vpop.f32.mrb[37].mxu0  ;;  %12012 = vmatmul.mubr.bf16.gmra.mrb[72].mxu1 %v17843_v9  ;;  %v17001_v63 = vadd.f32 %v8124_v49, %v7709_v61 }
 0x5e1   : > { %v8132_v6 = vpop.f32.mrb[38].mxu0  ;;  %12015 = vmatprep.mubr.msk.bf16.mxu1 %vm17518_vm4, %v17427_v43 }
 0x5e2   : > { %v11894_v36 = vpop.f32.mrb[39].mxu0 }
 0x5e3   : > { %v7581_v45 = vpop.f32.mrb[224].mxu1 }
 0x5e4   : > { %v7710_v14 = vadd.f32 %v7581_v45, %v16835_v1  ;;  %v11809_v57 = vpop.f32.mrb[225].mxu1 }
 0x5e5   : > { %v7584_v16 = vpop.f32.mrb[226].mxu1 }
 0x5e6   : > { %v7711_v23 = vadd.f32 %v7584_v16, %v16839_v51  ;;  %v11810_v2 = vpop.f32.mrb[227].mxu1  ;;  %v17006_v54 = vadd.f32 %v8129_v24, %v7710_v14 }
 0x5e7   : > { %v8137_v28 = vpop.f32.mrb[40].mxu0  ;;  %v17846_v2 = vld [vmem:[#allocation53_spill] sm:$0xff] }
 0x5e8   : > { %v11897_v0 = vpop.f32.mrb[41].mxu0  ;;  %12016 = vmatmul.mubr.bf16.gmra.mrb[76].mxu1 %v17844_v29  ;;  %v17010_v61 = vadd.f32 %v8132_v6, %v7711_v23 }
 0x5e9   : > { %v8140_v3 = vpop.f32.mrb[42].mxu0  ;;  %12019 = vmatprep.mubr.msk.bf16.mxu1 %vm17518_vm4, %v17427_v43 }
 0x5ea   : > { %v11898_v47 = vpop.f32.mrb[43].mxu0 }
 0x5eb   : > { %v7589_v35 = vpop.f32.mrb[228].mxu1 }
 0x5ec   : > { %v7712_v12 = vadd.f32 %v7589_v35, %v16846_v52  ;;  %v11813_v1 = vpop.f32.mrb[229].mxu1 }
 0x5ed   : > { %v7592_v39 = vpop.f32.mrb[230].mxu1 }
 0x5ee   : > { %v7713_v62 = vadd.f32 %v7592_v39, %v16850_v33  ;;  %v11814_v51 = vpop.f32.mrb[231].mxu1  ;;  %v17015_v24 = vadd.f32 %v8137_v28, %v7712_v12 }
 0x5ef   : > { %v8145_v25 = vpop.f32.mrb[44].mxu0  ;;  %v17847_v51 = vld [vmem:[#allocation54_spill] sm:$0xff] }
 0x5f0   : > { %v11901_v53 = vpop.f32.mrb[45].mxu0  ;;  %12020 = vmatmul.mubr.bf16.gmra.mrb[80].mxu1 %v17845_v46  ;;  %v17019_v23 = vadd.f32 %v8140_v3, %v7713_v62 }
 0x5f1   : > { %v8148_v10 = vpop.f32.mrb[46].mxu0  ;;  %12023 = vmatprep.mubr.msk.bf16.mxu1 %vm17518_vm4, %v17427_v43 }
 0x5f2   : > { %v11902_v49 = vpop.f32.mrb[47].mxu0 }
 0x5f3   : > { %v7597_v13 = vpop.f32.mrb[232].mxu1 }
 0x5f4   : > { %v7714_v52 = vadd.f32 %v7597_v13, %v16859_v37  ;;  %v11817_v9 = vpop.f32.mrb[233].mxu1 }
 0x5f5   : > { %v7600_v36 = vpop.f32.mrb[234].mxu1 }
 0x5f6   : > { %v7715_v33 = vadd.f32 %v7600_v36, %v16864_v50  ;;  %v11818_v45 = vpop.f32.mrb[235].mxu1  ;;  %v17024_v28 = vadd.f32 %v8145_v25, %v7714_v52  ;;  %v17848_v25 = vld [vmem:[#allocation43_spill] sm:$0xff] }
 0x5f7   : > { %v8153_v57 = vpop.f32.mrb[48].mxu0  ;;  %v17849_v52 = vrot.slane %v17848_v25, 1 }
 0x5f8   : > { %v11905_v16 = vpop.f32.mrb[49].mxu0  ;;  %12024 = vmatmul.mubr.bf16.gmra.mrb[84].mxu1 %v17846_v2  ;;  %v17028_v62 = vadd.f32 %v8148_v10, %v7715_v33 }
 0x5f9   : > { %v8156_v14 = vpop.f32.mrb[50].mxu0  ;;  %12027 = vmatprep.mubr.msk.bf16.mxu1 %vm17518_vm4, %v17427_v43 }
 0x5fa   : > { %v11906_v6 = vpop.f32.mrb[51].mxu0 }
 0x5fb   : > { %v7605_v0 = vpop.f32.mrb[236].mxu1 }
 0x5fc   : > { %v7716_v37 = vadd.f32 %v7605_v0, %v16875_v34  ;;  %v11821_v29 = vpop.f32.mrb[237].mxu1  ;;  %v8342_v34 = vrot.slane %v16857_v41, 1  ;;  %v8344_v41 = vrot.slane %v16868_v40, 1 }
 0x5fd   : > { %v7608_v47 = vpop.f32.mrb[238].mxu1 }
 0x5fe   : > { %v7717_v50 = vadd.f32 %v7608_v47, %v16879_v42  ;;  %v11822_v35 = vpop.f32.mrb[239].mxu1  ;;  %v8343_v45 = vsel %vm17850_vm12, %v17849_v52, %v8342_v34  ;;  %v17036_v2 = vadd.f32 %v8153_v57, %v7716_v37  ;;  %v8345_v47 = vsel %vm17851_vm10, %v8342_v34, %v8344_v41 }
 0x5ff   : > { %v8161_v1 = vpop.f32.mrb[52].mxu0 }
 0x600   : > { %v11909_v39 = vpop.f32.mrb[53].mxu0  ;;  %12028 = vmatmul.mubr.bf16.gmra.mrb[88].mxu1 %v17847_v51  ;;  %v17041_v33 = vadd.f32 %v8156_v14, %v7717_v50 }
 0x601   : > { %v8164_v12 = vpop.f32.mrb[54].mxu0  ;;  %12031 = vmatprep.mubr.msk.bf16.mxu1 %vm17518_vm4, %v17427_v43 }
 0x602   : > { %v11910_v3 = vpop.f32.mrb[55].mxu0 }
 0x603   : > { %v7613_v53 = vpop.f32.mrb[240].mxu1 }
 0x604   : > { %v7718_v46 = vadd.f32 %v7613_v53, %v16887_v11  ;;  %v11825_v42 = vpop.f32.mrb[241].mxu1 }
 0x605   : > { %v7616_v49 = vpop.f32.mrb[242].mxu1 }
 0x606   : > { %v7719_v13 = vadd.f32 %v7616_v49, %v16890_v56  ;;  %v11826_v9 = vpop.f32.mrb[243].mxu1  ;;  %v17046_v51 = vadd.f32 %v8161_v1, %v7718_v46 }
 0x607   : > { %v8169_v36 = vpop.f32.mrb[56].mxu0 }
 0x608   : > { %v11913_v16 = vpop.f32.mrb[57].mxu0  ;;  %12032 = vmatmul.mubr.bf16.gmra.mrb[92].mxu1 %v8343_v45  ;;  %v17048_v3 = vadd.f32 %v8164_v12, %v7719_v13 }
 0x609   : > { %v8172_v10 = vpop.f32.mrb[58].mxu0  ;;  %12035 = vmatprep.mubr.msk.bf16.mxu1 %vm17518_vm4, %v17427_v43  ;;  %vm17852_vm4 = vcmask 1045504  }
 0x60a   : > { %v11914_v11 = vpop.f32.mrb[59].mxu0  ;;  %vm17853_vm0 = vmmov %vm17852_vm4 }
 0x60b   : > { %v7621_v56 = vpop.f32.mrb[244].mxu1  ;;  %vm17854_vm1 = vmmov %vm17853_vm0 }
 0x60c   : > { %v7720_v6 = vadd.f32 %v7621_v56, %v16895_v20  ;;  %v11829_v0 = vpop.f32.mrb[245].mxu1  ;;  %vm17855_vm6 = vmmov %vm17853_vm0 }
 0x60d   : > { %v7624_v29 = vpop.f32.mrb[246].mxu1  ;;  %vm17856_vm9 = vmmov %vm17853_vm0 }
 0x60e   : > { %v7721_v35 = vadd.f32 %v7624_v29, %v16898_v8  ;;  %v11830_v57 = vpop.f32.mrb[247].mxu1  ;;  %v17052_v9 = vadd.f32 %v8169_v36, %v7720_v6  ;;  %vm17857_vm11 = vmmov %vm17853_vm0 }
 0x60f   : > { %v8177_v37 = vpop.f32.mrb[60].mxu0  ;;  %vm17858_vm3 = vmmov %vm17853_vm0 }
 0x610   : > { %v11917_v39 = vpop.f32.mrb[61].mxu0  ;;  %12036 = vmatmul.mubr.bf16.gmra.mrb[96].mxu1 %v8345_v47  ;;  %v17054_v1 = vadd.f32 %v8172_v10, %v7721_v35  ;;  %vm17859_vm2 = vmmov %vm17853_vm0 }
 0x611   : > { %v8180_v43 = vpop.f32.mrb[62].mxu0  ;;  %vm17860_vm7 = vmmov %vm17853_vm0 }
 0x612   : > { %v11918_v40 = vpop.f32.mrb[63].mxu0  ;;  %vm17861_vm13 = vmmov %vm17853_vm0 }
 0x613   : > { %v7629_v14 = vpop.f32.mrb[248].mxu1  ;;  %vm17862_vm14 = vmmov %vm17853_vm0 }
 0x614   : > { %v7722_v50 = vadd.f32 %v7629_v14, %v16904_v22  ;;  %v11833_v20 = vpop.f32.mrb[249].mxu1  ;;  %vm17863_vm8 = vmmov %vm17853_vm0 }
 0x615   : > { %v7632_v53 = vpop.f32.mrb[250].mxu1  ;;  %vm17864_vm15 = vmmov %vm17853_vm0 }
 0x616   : > { %v7723_v42 = vadd.f32 %v7632_v53, %v16907_v48  ;;  %v11834_v34 = vpop.f32.mrb[251].mxu1  ;;  %v17058_v48 = vadd.f32 %v8177_v37, %v7722_v50  ;;  %vm17865_vm5 = vmmov %vm17853_vm0 }
 0x617   : > { %v8185_v49 = vpop.f32.mrb[64].mxu0  ;;  %vm17866_vm12 = vmmov %vm17853_vm0 }
 0x618   : > { %v11921_v8 = vpop.f32.mrb[65].mxu0  ;;  %v17060_v36 = vadd.f32 %v8180_v43, %v7723_v42  ;;  %vm17867_vm10 = vmmov %vm17853_vm0 }
 0x619   : > { %v8188_v25 = vpop.f32.mrb[66].mxu0 }
 0x61a   : > { %v11922_v52 = vpop.f32.mrb[67].mxu0 }
 0x61b   : > { %v7637_v46 = vpop.f32.mrb[252].mxu1 }
 0x61c   : > { %v7724_v12 = vadd.f32 %v7637_v46, %v16913_v19  ;;  %v11837_v13 = vpop.f32.mrb[253].mxu1 }
 0x61d   : > { %v7640_v45 = vpop.f32.mrb[254].mxu1 }
 0x61e   : > { %v7725_v22 = vadd.f32 %v7640_v45, %v16916_v38  ;;  %v11838_v16 = vpop.f32.mrb[255].mxu1  ;;  %v17064_v38 = vadd.f32 %v8185_v49, %v7724_v12 }
 0x61f   : > { %v8193_v41 = vpop.f32.mrb[68].mxu0 }
 0x620   : > { %v11925_v11 = vpop.f32.mrb[69].mxu0  ;;  %v17066_v37 = vadd.f32 %v8188_v25, %v7725_v22 }
 0x621   : > { %v8196_v56 = vpop.f32.mrb[70].mxu0 }
 0x622   : > { %v11926_v0 = vpop.f32.mrb[71].mxu0 }
 0x623   : > { %v7645_v6 = vpop.f32.mrb[0].mxu1 }
 0x624   : > { %v7726_v10 = vadd.f32 %v7645_v6, %v16922_v31  ;;  %v11841_v29 = vpop.f32.mrb[1].mxu1 }
 0x625   : > { %v7648_v47 = vpop.f32.mrb[2].mxu1 }
 0x626   : > { %v7727_v19 = vadd.f32 %v7648_v47, %v16925_v55  ;;  %v11842_v35 = vpop.f32.mrb[3].mxu1  ;;  %v17070_v55 = vadd.f32 %v8193_v41, %v7726_v10 }
 0x627   : > { %v8201_v57 = vpop.f32.mrb[72].mxu0 }
 0x628   : > { %v11929_v39 = vpop.f32.mrb[73].mxu0  ;;  %v17072_v49 = vadd.f32 %v8196_v56, %v7727_v19 }
 0x629   : > { %v8204_v40 = vpop.f32.mrb[74].mxu0 }
 0x62a   : > { %v11930_v14 = vpop.f32.mrb[75].mxu0 }
 0x62b   : > { %v7653_v50 = vpop.f32.mrb[4].mxu1 }
 0x62c   : > { %v7728_v43 = vadd.f32 %v7653_v50, %v16931_v21  ;;  %v11845_v20 = vpop.f32.mrb[5].mxu1 }
 0x62d   : > { %v7656_v53 = vpop.f32.mrb[6].mxu1 }
 0x62e   : > { %v7729_v31 = vadd.f32 %v7656_v53, %v16934_v27  ;;  %v11846_v42 = vpop.f32.mrb[7].mxu1  ;;  %v17076_v27 = vadd.f32 %v8201_v57, %v7728_v43 }
 0x62f   : > { %v8209_v34 = vpop.f32.mrb[76].mxu0 }
 0x630   : > { %v11933_v8 = vpop.f32.mrb[77].mxu0  ;;  %v17078_v41 = vadd.f32 %v8204_v40, %v7729_v31 }
 0x631   : > { %v8212_v52 = vpop.f32.mrb[78].mxu0 }
 0x632   : > { %v11934_v46 = vpop.f32.mrb[79].mxu0 }
 0x633   : > { %v7661_v12 = vpop.f32.mrb[8].mxu1 }
 0x634   : > { %v7730_v25 = vadd.f32 %v7661_v12, %v16940_v18  ;;  %v11849_v13 = vpop.f32.mrb[9].mxu1 }
 0x635   : > { %v7664_v45 = vpop.f32.mrb[10].mxu1 }
 0x636   : > { %v7731_v21 = vadd.f32 %v7664_v45, %v16943_v4  ;;  %v11850_v22 = vpop.f32.mrb[11].mxu1  ;;  %v17082_v4 = vadd.f32 %v8209_v34, %v7730_v25 }
 0x637   : > { %v8217_v16 = vpop.f32.mrb[80].mxu0 }
 0x638   : > { %v11937_v11 = vpop.f32.mrb[81].mxu0  ;;  %v17084_v57 = vadd.f32 %v8212_v52, %v7731_v21 }
 0x639   : > { %v8220_v0 = vpop.f32.mrb[82].mxu0 }
 0x63a   : > { %v11938_v6 = vpop.f32.mrb[83].mxu0 }
 0x63b   : > { %v7669_v10 = vpop.f32.mrb[12].mxu1 }
 0x63c   : > { %v7732_v56 = vadd.f32 %v7669_v10, %v16949_v58  ;;  %v11853_v29 = vpop.f32.mrb[13].mxu1 }
 0x63d   : > { %v7672_v47 = vpop.f32.mrb[14].mxu1 }
 0x63e   : > { %v7733_v18 = vadd.f32 %v7672_v47, %v16952_v60  ;;  %v11854_v19 = vpop.f32.mrb[15].mxu1  ;;  %v17088_v60 = vadd.f32 %v8217_v16, %v7732_v56 }
 0x63f   : > { %v8225_v35 = vpop.f32.mrb[84].mxu0 }
 0x640   : > { %v11941_v39 = vpop.f32.mrb[85].mxu0  ;;  %v17090_v34 = vadd.f32 %v8220_v0, %v7733_v18 }
 0x641   : > { %v8228_v14 = vpop.f32.mrb[86].mxu0 }
 0x642   : > { %v11942_v50 = vpop.f32.mrb[87].mxu0 }
 0x643   : > { %v7677_v43 = vpop.f32.mrb[16].mxu1 }
 0x644   : > { %v7734_v40 = vadd.f32 %v7677_v43, %v16958_v32  ;;  %v11857_v20 = vpop.f32.mrb[17].mxu1  ;;  %v8656_v43 = vld [vmem:[%s12793_s9 + $0xc] sm:$0xf] }
 0x645   : > { %v7680_v53 = vpop.f32.mrb[18].mxu1 }
 0x646   : > { %v7735_v58 = vadd.f32 %v7680_v53, %v16961_v7  ;;  %v11858_v31 = vpop.f32.mrb[19].mxu1  ;;  %v17094_v11 = vadd.f32 %v8225_v35, %v7734_v40  ;;  %v8655_v35 = vld [vmem:[%s12793_s9 + $0x8] sm:$0xe] }
 0x647   : > { %v8233_v42 = vpop.f32.mrb[88].mxu0 }
 0x648   : > { %v11945_v8 = vpop.f32.mrb[89].mxu0  ;;  %v17096_v10 = vadd.f32 %v8228_v14, %v7735_v58  ;;  %v10045_v58 = vld [vmem:[%s12793_s9 + $0x10] sm:$0xff]  }
 0x649   : > { %v8236_v46 = vpop.f32.mrb[90].mxu0  ;;  %v8690_v8 = vunpack.c.l.bf16 %v8655_v35 }
 0x64a   : > { %v11946_v12 = vpop.f32.mrb[91].mxu0 }
 0x64b   : > { %v7685_v25 = vpop.f32.mrb[20].mxu1 }
 0x64c   : > { %v7736_v52 = vadd.f32 %v7685_v25, %v16967_v17  ;;  %v11861_v13 = vpop.f32.mrb[21].mxu1 }
 0x64d   : > { %v7688_v45 = vpop.f32.mrb[22].mxu1 }
 0x64e   : > { %v7737_v32 = vadd.f32 %v7688_v45, %v16970_v26  ;;  %v11862_v21 = vpop.f32.mrb[23].mxu1  ;;  %v17100_v39 = vadd.f32 %v8233_v42, %v7736_v52  ;;  %v9881_v52 = vunpack.c.l.bf16 %v10045_v58  ;;  %v8761_v45 = vrot.slane %v8690_v8, 2  ;;  %v10047_v8 = vld [vmem:[%s12793_s9 + $0x20] sm:$0xff]  }
 0x64f   : > { %v8241_v22 = vpop.f32.mrb[92].mxu0 }
 0x650   : > { %v11949_v7 = vpop.f32.mrb[93].mxu0  ;;  %v17104_v40 = vadd.f32 %v8236_v46, %v7737_v32 }
 0x651   : > { %v8244_v16 = vpop.f32.mrb[94].mxu0  ;;  %v17120_v7 = vld [vmem:[%s17318_s4] ss:$0 sm:$0xff] }
 0x652   : > { %v11950_v6 = vpop.f32.mrb[95].mxu0 }
 0x653   : > { %v7693_v0 = vpop.f32.mrb[24].mxu1 }
 0x654   : > { %v7738_v56 = vadd.f32 %v7693_v0, %v16976_v15  ;;  %v11865_v17 = vpop.f32.mrb[25].mxu1 }
 0x655   : > { %v7696_v29 = vpop.f32.mrb[26].mxu1  ;;  %v10046_v17 = vld [vmem:[%s12793_s9 + $0x18] sm:$0xff]  }
 0x656   : > { %v7739_v47 = vadd.f32 %v7696_v29, %v16979_v30  ;;  %v11866_v26 = vpop.f32.mrb[27].mxu1  ;;  %v8691_v30 = vunpack.c.l.bf16 %v8656_v43  ;;  %v17113_v46 = vadd.f32 %v8241_v22, %v7738_v56  ;;  %v9882_v56 = vunpack.c.h.bf16 %v10045_v58 }
 0x657   : > { %v8249_v18 = vpop.f32.mrb[96].mxu0 }
 0x658   : > { %v11953_v19 = vpop.f32.mrb[97].mxu0  ;;  %v8762_v32 = vrot.slane %v8691_v30, 2 }
 0x659   : > { %v8252_v50 = vpop.f32.mrb[98].mxu0  ;;  %v9885_v19 = vunpack.c.l.bf16 %v10046_v17 }
 0x65a   : > { %v11954_v14 = vpop.f32.mrb[99].mxu0  ;;  %v8763_v29 = vsel %vm17852_vm4, %v8761_v45, %v8762_v32  ;;  %vm17868_vm4 = vmmov %vm17853_vm0 }
 0x65b   : > { %v7701_v20 = vpop.f32.mrb[28].mxu1 }
 0x65c   : > { %v7740_v53 = vadd.f32 %v7701_v20, %v16982_v5  ;;  %v11869_v15 = vpop.f32.mrb[29].mxu1  ;;  %v17115_v5 = vadd.f32 %v8244_v16, %v7739_v47  ;;  %v8768_v20 = vrot.slane %v9885_v19, 2 }
 0x65d   : > { %v7704_v31 = vpop.f32.mrb[30].mxu1 }
 0x65e   : > { %v7741_v12 = vadd.f32 %v7704_v31, %v16988_v59  ;;  %v17109_v25 = vadd.f32 %v8249_v18, %v7740_v53  ;;  %v11870_v42 = vpop.f32.mrb[31].mxu1  ;;  %v8764_v59 = vrot.slane %v9881_v52, 2 }
 0x660   : > { %v17111_v13 = vadd.f32 %v8252_v50, %v7741_v12  ;;  %v8765_v18 = vsel %vm17853_vm0, %v8762_v32, %v8764_v59  ;;  %v9886_v12 = vunpack.c.h.bf16 %v10046_v17 }
 0x663   : > { %v8445_v21 = vpop.f32.mrb[32].mxu1 }
 0x664   : > { %v8580_v6 = vadd.f32 %v8445_v21, %v16992_v44  ;;  %v11973_v0 = vpop.f32.mrb[33].mxu1  ;;  %v8766_v44 = vrot.slane %v9882_v56, 2 }
 0x665   : > { %v8448_v22 = vpop.f32.mrb[34].mxu1 }
 0x666   : > { %v8621_v26 = vadd.f32 %v17120_v7, %v8580_v6  ;;  %v8581_v16 = vadd.f32 %v8448_v22, %v17001_v63  ;;  %v11974_v47 = vpop.f32.mrb[35].mxu1  ;;  %v8767_v63 = vsel %vm17854_vm1, %v8764_v59, %v8766_v44  ;;  %v8769_v21 = vsel %vm17855_vm6, %v8766_v44, %v8768_v20  ;;  %vm17869_vm1 = vmmov %vm17853_vm0 }
 0x667   : > { %v9889_v6 = vunpack.c.l.bf16 %v10047_v8  ;;  %v8770_v59 = vrot.slane %v9886_v12, 2  ;;  %v10048_v47 = vld [vmem:[%s12793_s9 + $0x28] sm:$0xff]   ;;  %vm17870_vm6 = vmmov %vm17853_vm0 }
 0x668   : > { %v8864_v50 = vadd.f32 %v8763_v29, %v8621_v26  ;;  %v8622_v35 = vadd.f32 %v17120_v7, %v8581_v16 }
 0x669   : > { %v8772_v22 = vrot.slane %v9889_v6, 2 }
 0x66a   : > { %v8865_v43 = vadd.f32 %v8765_v18, %v8622_v35  ;;  %v8898_v53 = vmax.f32 %v8864_v50, 0.0  ;;  %v8771_v18 = vsel %vm17856_vm9, %v8768_v20, %v8770_v59  ;;  %v9890_v50 = vunpack.c.h.bf16 %v10047_v8  ;;  %vm17871_vm9 = vmmov %vm17853_vm0 }
 0x66b   : > { %v8453_v14 = vpop.f32.mrb[36].mxu1 }
 0x66c   : > { %v8899_v15 = vmax.f32 %v8865_v43, 0.0  ;;  %v8582_v58 = vadd.f32 %v8453_v14, %v17006_v54  ;;  %v11977_v31 = vpop.f32.mrb[37].mxu1 }
 0x66d   : > { %v8456_v30 = vpop.f32.mrb[38].mxu1  ;;  %v8774_v31 = vrot.slane %v9890_v50, 2 }
 0x66e   : > { %v9946_v42 = vpack.c.bf16 %v8899_v15, %v8898_v53  ;;  %v8623_v52 = vadd.f32 %v17120_v7, %v8582_v58  ;;  %v8583_v45 = vadd.f32 %v8456_v30, %v17010_v61  ;;  %v11978_v32 = vpop.f32.mrb[39].mxu1  ;;  %v8773_v53 = vsel %vm17857_vm11, %v8770_v59, %v8772_v22  ;;  %vm17872_vm11 = vmmov %vm17853_vm0 }
 0x66f   : > { %v9893_v15 = vunpack.c.l.bf16 %v10048_v47 }
 0x670   : > { %9947 = vst [vmem:[%s17138_s11] sm:$0xff] %v9946_v42   ;;  %v8866_v54 = vadd.f32 %v8767_v63, %v8623_v52  ;;  %v8624_v0 = vadd.f32 %v17120_v7, %v8583_v45  ;;  %v10049_v45 = vld [vmem:[%s12793_s9 + $0x30] sm:$0xff]  }
 0x671   : > { %v8776_v20 = vrot.slane %v9893_v15, 2 }
 0x672   : > { %v8867_v29 = vadd.f32 %v8769_v21, %v8624_v0  ;;  %v8900_v56 = vmax.f32 %v8866_v54, 0.0  ;;  %v9894_v21 = vunpack.c.h.bf16 %v10048_v47 }
 0x673   : > { %v8461_v17 = vpop.f32.mrb[40].mxu1 }
 0x674   : > { %v8901_v26 = vmax.f32 %v8867_v29, 0.0  ;;  %v8584_v61 = vadd.f32 %v8461_v17, %v17015_v24  ;;  %v11981_v16 = vpop.f32.mrb[41].mxu1  ;;  %v8777_v29 = vsel %vm17859_vm2, %v8774_v31, %v8776_v20  ;;  %v9897_v17 = vunpack.c.l.bf16 %v10049_v45  ;;  %vm17874_vm2 = vmmov %vm17853_vm0 }
 0x675   : > { %v8464_v19 = vpop.f32.mrb[42].mxu1 }
 0x676   : > { %v9951_v35 = vpack.c.bf16 %v8901_v26, %v8900_v56  ;;  %v8625_v44 = vadd.f32 %v17120_v7, %v8584_v61  ;;  %v8585_v43 = vadd.f32 %v8464_v19, %v17019_v23  ;;  %v11982_v14 = vpop.f32.mrb[43].mxu1  ;;  %v8775_v23 = vsel %vm17858_vm3, %v8772_v22, %v8774_v31  ;;  %vm17873_vm3 = vmmov %vm17853_vm0 }
 0x677   : > { %v8778_v26 = vrot.slane %v9894_v21, 2  ;;  %v8780_v22 = vrot.slane %v9897_v17, 2 }
 0x678   : > { %10061 = vst [vmem:[%s17138_s11 + $0x8] sm:$0xff] %v9951_v35   ;;  %v8868_v58 = vadd.f32 %v8771_v18, %v8625_v44  ;;  %v8626_v24 = vadd.f32 %v17120_v7, %v8585_v43  ;;  %v10050_v35 = vld [vmem:[%s12793_s9 + $0x38] sm:$0xff]   ;;  %v9898_v43 = vunpack.c.h.bf16 %v10049_v45 }
 0x679   : > { %v9901_v31 = vunpack.c.l.bf16 %v10050_v35 }
 0x67a   : > { %v8869_v63 = vadd.f32 %v8773_v53, %v8626_v24  ;;  %v8902_v8 = vmax.f32 %v8868_v58, 0.0  ;;  %v8781_v24 = vsel %vm17861_vm13, %v8778_v26, %v8780_v22  ;;  %vm17876_vm13 = vmmov %vm17853_vm0 }
 0x67b   : > { %v8469_v30 = vpop.f32.mrb[44].mxu1 }
 0x67c   : > { %v8903_v12 = vmax.f32 %v8869_v63, 0.0  ;;  %v8586_v42 = vadd.f32 %v8469_v30, %v17024_v28  ;;  %v11985_v52 = vpop.f32.mrb[45].mxu1  ;;  %v8782_v30 = vrot.slane %v9898_v43, 2 }
 0x67d   : > { %v8472_v32 = vpop.f32.mrb[46].mxu1 }
 0x67e   : > { %v9956_v6 = vpack.c.bf16 %v8903_v12, %v8902_v8  ;;  %v8627_v54 = vadd.f32 %v17120_v7, %v8586_v42  ;;  %v8587_v0 = vadd.f32 %v8472_v32, %v17028_v62  ;;  %v11986_v59 = vpop.f32.mrb[47].mxu1  ;;  %v8779_v62 = vsel %vm17860_vm7, %v8776_v20, %v8778_v26  ;;  %v10051_v32 = vld [vmem:[%s12793_s9 + $0x40] sm:$0xff]   ;;  %vm17875_vm7 = vmmov %vm17853_vm0 }
 0x67f   : > { %v8784_v20 = vrot.slane %v9901_v31, 2 }
 0x680   : > { %10062 = vst [vmem:[%s17138_s11 + $0x10] sm:$0xff] %v9956_v6   ;;  %v8870_v56 = vadd.f32 %v8775_v23, %v8627_v54  ;;  %v8628_v28 = vadd.f32 %v17120_v7, %v8587_v0  ;;  %v9902_v6 = vunpack.c.h.bf16 %v10050_v35  ;;  %v10052_v35 = vld [vmem:[%s12793_s9 + $0x48] sm:$0xff]  }
 0x681   : > { %v8785_v17 = vsel %vm17863_vm8, %v8782_v30, %v8784_v20  ;;  %vm17878_vm8 = vmmov %vm17853_vm0 }
 0x682   : > { %v8871_v61 = vadd.f32 %v8777_v29, %v8628_v28  ;;  %v8904_v47 = vmax.f32 %v8870_v56, 0.0  ;;  %v9905_v56 = vunpack.c.l.bf16 %v10051_v32  ;;  %v8786_v26 = vrot.slane %v9902_v6, 2 }
 0x683   : > { %v8477_v16 = vpop.f32.mrb[48].mxu1 }
 0x684   : > { %v8905_v18 = vmax.f32 %v8871_v61, 0.0  ;;  %v8588_v19 = vadd.f32 %v8477_v16, %v17036_v2  ;;  %v11989_v50 = vpop.f32.mrb[49].mxu1 }
 0x685   : > { %v8480_v44 = vpop.f32.mrb[50].mxu1 }
 0x686   : > { %v9961_v14 = vpack.c.bf16 %v8905_v18, %v8904_v47  ;;  %v8629_v53 = vadd.f32 %v17120_v7, %v8588_v19  ;;  %v8589_v15 = vadd.f32 %v8480_v44, %v17041_v33  ;;  %v11990_v58 = vpop.f32.mrb[51].mxu1  ;;  %v8783_v33 = vsel %vm17862_vm14, %v8780_v22, %v8782_v30  ;;  %vm17877_vm14 = vmmov %vm17853_vm0 }
 0x687   : > { %v8788_v22 = vrot.slane %v9905_v56, 2  ;;  %v9906_v44 = vunpack.c.h.bf16 %v10051_v32  ;;  %v9910_v32 = vunpack.c.h.bf16 %v10052_v35 }
 0x688   : > { %10063 = vst [vmem:[%s17138_s11 + $0x18] sm:$0xff] %v9961_v14   ;;  %v8872_v63 = vadd.f32 %v8779_v62, %v8629_v53  ;;  %v8630_v2 = vadd.f32 %v17120_v7, %v8589_v15 }
 0x689   : > { %v8789_v58 = vsel %vm17865_vm5, %v8786_v26, %v8788_v22  ;;  %vm17880_vm5 = vmmov %vm17853_vm0 }
 0x68a   : > { %v8873_v8 = vadd.f32 %v8781_v24, %v8630_v2  ;;  %v8906_v42 = vmax.f32 %v8872_v63, 0.0  ;;  %v9909_v24 = vunpack.c.l.bf16 %v10052_v35  ;;  %v8790_v63 = vrot.slane %v9906_v44, 2 }
 0x68b   : > { %v8485_v12 = vpop.f32.mrb[52].mxu1 }
 0x68c   : > { %v8907_v52 = vmax.f32 %v8873_v8, 0.0  ;;  %v8590_v45 = vadd.f32 %v8485_v12, %v17046_v51  ;;  %v11993_v23 = vpop.f32.mrb[53].mxu1  ;;  %v8792_v8 = vrot.slane %v9909_v24, 2 }
 0x68d   : > { %v8488_v21 = vpop.f32.mrb[54].mxu1 }
 0x68e   : > { %v9966_v54 = vpack.c.bf16 %v8907_v52, %v8906_v42  ;;  %v8631_v0 = vadd.f32 %v17120_v7, %v8590_v45  ;;  %v8591_v59 = vadd.f32 %v8488_v21, %v17048_v3  ;;  %v11994_v29 = vpop.f32.mrb[55].mxu1  ;;  %v8787_v3 = vsel %vm17864_vm15, %v8784_v20, %v8786_v26  ;;  %v10053_v45 = vld [vmem:[%s12793_s9 + $0x50] sm:$0xff]   ;;  %vm17879_vm15 = vmmov %vm17853_vm0 }
 0x690   : > { %10064 = vst [vmem:[%s17138_s11 + $0x20] sm:$0xff] %v9966_v54   ;;  %v8874_v28 = vadd.f32 %v8783_v33, %v8631_v0  ;;  %v8632_v51 = vadd.f32 %v17120_v7, %v8591_v59  ;;  %v8793_v0 = vsel %vm17867_vm10, %v8790_v63, %v8792_v8  ;;  %v9913_v59 = vunpack.c.l.bf16 %v10053_v45  ;;  %vm17882_vm10 = vmmov %vm17853_vm0 }
 0x692   : > { %v8875_v61 = vadd.f32 %v8785_v17, %v8632_v51  ;;  %v8908_v47 = vmax.f32 %v8874_v28, 0.0  ;;  %v8794_v17 = vrot.slane %v9910_v32, 2  ;;  %v8796_v51 = vrot.slane %v9913_v59, 2 }
 0x693   : > { %v8493_v16 = vpop.f32.mrb[56].mxu1 }
 0x694   : > { %v8909_v18 = vmax.f32 %v8875_v61, 0.0  ;;  %v8592_v19 = vadd.f32 %v8493_v16, %v17052_v9  ;;  %v11997_v50 = vpop.f32.mrb[57].mxu1  ;;  %v8797_v44 = vsel %vm17853_vm0, %v8794_v17, %v8796_v51 }
 0x695   : > { %v8496_v62 = vpop.f32.mrb[58].mxu1 }
 0x696   : > { %v9971_v43 = vpack.c.bf16 %v8909_v18, %v8908_v47  ;;  %v8633_v14 = vadd.f32 %v17120_v7, %v8592_v19  ;;  %v8593_v53 = vadd.f32 %v8496_v62, %v17054_v1  ;;  %v11998_v15 = vpop.f32.mrb[59].mxu1  ;;  %v8791_v1 = vsel %vm17866_vm12, %v8788_v22, %v8790_v63  ;;  %v10054_v47 = vld [vmem:[%s12793_s9 + $0x58] sm:$0xff]   ;;  %vm17881_vm12 = vmmov %vm17853_vm0 }
 0x697   : > { %v9914_v19 = vunpack.c.h.bf16 %v10053_v45 }
 0x698   : > { %10065 = vst [vmem:[%s17138_s11 + $0x28] sm:$0xff] %v9971_v43   ;;  %v8876_v31 = vadd.f32 %v8787_v3, %v8633_v14  ;;  %v8634_v9 = vadd.f32 %v17120_v7, %v8593_v53  ;;  %v9917_v43 = vunpack.c.l.bf16 %v10054_v47 }
 0x699   : > { %v8798_v53 = vrot.slane %v9914_v19, 2 }
 0x69a   : > { %v8877_v2 = vadd.f32 %v8789_v58, %v8634_v9  ;;  %v8910_v12 = vmax.f32 %v8876_v31, 0.0  ;;  %v8800_v24 = vrot.slane %v9917_v43, 2 }
 0x69b   : > { %v8501_v30 = vpop.f32.mrb[60].mxu1 }
 0x69c   : > { %v8911_v20 = vmax.f32 %v8877_v2, 0.0  ;;  %v8594_v42 = vadd.f32 %v8501_v30, %v17058_v48  ;;  %v12001_v52 = vpop.f32.mrb[61].mxu1  ;;  %v10055_v30 = vld [vmem:[%s12793_s9 + $0x60] sm:$0xff]  }
 0x69d   : > { %v8504_v23 = vpop.f32.mrb[62].mxu1 }
 0x69e   : > { %v9976_v33 = vpack.c.bf16 %v8911_v20, %v8910_v12  ;;  %v8635_v21 = vadd.f32 %v17120_v7, %v8594_v42  ;;  %v8595_v6 = vadd.f32 %v8504_v23, %v17060_v36  ;;  %v12002_v54 = vpop.f32.mrb[63].mxu1  ;;  %v8795_v36 = vsel %vm17868_vm4, %v8792_v8, %v8794_v17  ;;  %v10056_v17 = vld [vmem:[%s12793_s9 + $0x68] sm:$0xff]   ;;  %vm17883_vm4 = vmmov %vm17853_vm0 }
 0x69f   : > { %v9918_v12 = vunpack.c.h.bf16 %v10054_v47  ;;  %v9921_v23 = vunpack.c.l.bf16 %v10055_v30  ;;  %v9925_v47 = vunpack.c.l.bf16 %v10056_v17 }
 0x6a0   : > { %10066 = vst [vmem:[%s17138_s11 + $0x30] sm:$0xff] %v9976_v33   ;;  %v8878_v29 = vadd.f32 %v8791_v1, %v8635_v21  ;;  %v8636_v48 = vadd.f32 %v17120_v7, %v8595_v6  ;;  %v8801_v1 = vsel %vm17870_vm6, %v8798_v53, %v8800_v24 }
 0x6a1   : > { %v8802_v33 = vrot.slane %v9918_v12, 2  ;;  %v8804_v54 = vrot.slane %v9921_v23, 2 }
 0x6a2   : > { %v8879_v56 = vadd.f32 %v8793_v0, %v8636_v48  ;;  %v8912_v26 = vmax.f32 %v8878_v29, 0.0 }
 0x6a3   : > { %v8509_v28 = vpop.f32.mrb[64].mxu1 }
 0x6a4   : > { %v8913_v61 = vmax.f32 %v8879_v56, 0.0  ;;  %v8596_v16 = vadd.f32 %v8509_v28, %v17064_v38  ;;  %v12005_v22 = vpop.f32.mrb[65].mxu1  ;;  %v9922_v28 = vunpack.c.h.bf16 %v10055_v30 }
 0x6a5   : > { %v8512_v18 = vpop.f32.mrb[66].mxu1  ;;  %v8805_v22 = vsel %vm17872_vm11, %v8802_v33, %v8804_v54 }
 0x6a6   : > { %v9981_v50 = vpack.c.bf16 %v8913_v61, %v8912_v26  ;;  %v8637_v35 = vadd.f32 %v17120_v7, %v8596_v16  ;;  %v8597_v3 = vadd.f32 %v8512_v18, %v17066_v37  ;;  %v12006_v62 = vpop.f32.mrb[67].mxu1  ;;  %v8799_v37 = vsel %vm17869_vm1, %v8796_v51, %v8798_v53 }
 0x6a7   : > { %v8806_v18 = vrot.slane %v9922_v28, 2  ;;  %v9926_v53 = vunpack.c.h.bf16 %v10056_v17 }
 0x6a8   : > { %10067 = vst [vmem:[%s17138_s11 + $0x38] sm:$0xff] %v9981_v50   ;;  %v8880_v14 = vadd.f32 %v8795_v36, %v8637_v35  ;;  %v8638_v38 = vadd.f32 %v17120_v7, %v8597_v3  ;;  %v8808_v35 = vrot.slane %v9925_v47, 2 }
 0x6a9   : > { %v8810_v30 = vrot.slane %v9926_v53, 2 }
 0x6aa   : > { %v8881_v15 = vadd.f32 %v8797_v44, %v8638_v38  ;;  %v8914_v31 = vmax.f32 %v8880_v14, 0.0  ;;  %v10057_v14 = vld [vmem:[%s12793_s9 + $0x70] sm:$0xff]  }
 0x6ab   : > { %v8517_v58 = vpop.f32.mrb[68].mxu1 }
 0x6ac   : > { %v8915_v9 = vmax.f32 %v8881_v15, 0.0  ;;  %v8598_v63 = vadd.f32 %v8517_v58, %v17070_v55  ;;  %v12009_v2 = vpop.f32.mrb[69].mxu1 }
 0x6ad   : > { %v8520_v8 = vpop.f32.mrb[70].mxu1 }
 0x6ae   : > { %v9986_v20 = vpack.c.bf16 %v8915_v9, %v8914_v31  ;;  %v8639_v42 = vadd.f32 %v17120_v7, %v8598_v63  ;;  %v8599_v52 = vadd.f32 %v8520_v8, %v17072_v49  ;;  %v12010_v45 = vpop.f32.mrb[71].mxu1  ;;  %v8803_v49 = vsel %vm17871_vm9, %v8800_v24, %v8802_v33 }
 0x6af   : > { %v8809_v9 = vsel %vm17874_vm2, %v8806_v18, %v8808_v35  ;;  %v9929_v63 = vunpack.c.l.bf16 %v10057_v14 }
 0x6b0   : > { %10068 = vst [vmem:[%s17138_s11 + $0x40] sm:$0xff] %v9986_v20   ;;  %v8882_v32 = vadd.f32 %v8799_v37, %v8639_v42  ;;  %v8640_v55 = vadd.f32 %v17120_v7, %v8599_v52 }
 0x6b1   : > { %v8812_v12 = vrot.slane %v9929_v63, 2 }
 0x6b2   : > { %v8883_v21 = vadd.f32 %v8801_v1, %v8640_v55  ;;  %v8916_v0 = vmax.f32 %v8882_v32, 0.0  ;;  %v10058_v1 = vld [vmem:[%s12793_s9 + $0x78] sm:$0xff]   ;;  %v9930_v32 = vunpack.c.h.bf16 %v10057_v14 }
 0x6b3   : > { %v8525_v6 = vpop.f32.mrb[72].mxu1 }
 0x6b4   : > { %v8917_v59 = vmax.f32 %v8883_v21, 0.0  ;;  %v8600_v29 = vadd.f32 %v8525_v6, %v17076_v27  ;;  %v12013_v48 = vpop.f32.mrb[73].mxu1 }
 0x6b5   : > { %v8528_v56 = vpop.f32.mrb[74].mxu1 }
 0x6b6   : > { %v9991_v51 = vpack.c.bf16 %v8917_v59, %v8916_v0  ;;  %v8641_v26 = vadd.f32 %v17120_v7, %v8600_v29  ;;  %v8601_v61 = vadd.f32 %v8528_v56, %v17078_v41  ;;  %v12014_v16 = vpop.f32.mrb[75].mxu1  ;;  %v8807_v41 = vsel %vm17873_vm3, %v8804_v54, %v8806_v18 }
 0x6b7   : > { %v8813_v54 = vsel %vm17876_vm13, %v8810_v30, %v8812_v12  ;;  %v9933_v0 = vunpack.c.l.bf16 %v10058_v1  ;;  %v8814_v29 = vrot.slane %v9930_v32, 2 }
 0x6b8   : > { %10069 = vst [vmem:[%s17138_s11 + $0x48] sm:$0xff] %v9991_v51   ;;  %v8884_v36 = vadd.f32 %v8803_v49, %v8641_v26  ;;  %v8642_v27 = vadd.f32 %v17120_v7, %v8601_v61  ;;  %v10059_v61 = vld [vmem:[%s12793_s9 + $0x80] sm:$0xff]  }
 0x6b9   : > { %v8816_v49 = vrot.slane %v9933_v0, 2 }
 0x6ba   : > { %v8885_v19 = vadd.f32 %v8805_v22, %v8642_v27  ;;  %v8918_v3 = vmax.f32 %v8884_v36, 0.0  ;;  %v9934_v22 = vunpack.c.h.bf16 %v10058_v1 }
 0x6bb   : > { %v8533_v50 = vpop.f32.mrb[76].mxu1 }
 0x6bc   : > { %v8919_v62 = vmax.f32 %v8885_v19, 0.0  ;;  %v8602_v44 = vadd.f32 %v8533_v50, %v17082_v4  ;;  %v12017_v43 = vpop.f32.mrb[77].mxu1  ;;  %v8817_v19 = vsel %vm17878_vm8, %v8814_v29, %v8816_v49  ;;  %v9937_v50 = vunpack.c.l.bf16 %v10059_v61 }
 0x6bd   : > { %v8536_v38 = vpop.f32.mrb[78].mxu1 }
 0x6be   : > { %v9996_v15 = vpack.c.bf16 %v8919_v62, %v8918_v3  ;;  %v8643_v58 = vadd.f32 %v17120_v7, %v8602_v44  ;;  %v8603_v24 = vadd.f32 %v8536_v38, %v17084_v57  ;;  %v12018_v31 = vpop.f32.mrb[79].mxu1  ;;  %v8811_v57 = vsel %vm17875_vm7, %v8808_v35, %v8810_v30 }
 0x6bf   : > { %v8818_v3 = vrot.slane %v9934_v22, 2  ;;  %v8820_v43 = vrot.slane %v9937_v50, 2 }
 0x6c0   : > { %10070 = vst [vmem:[%s17138_s11 + $0x50] sm:$0xff] %v9996_v15   ;;  %v8886_v2 = vadd.f32 %v8807_v41, %v8643_v58  ;;  %v8644_v4 = vadd.f32 %v17120_v7, %v8603_v24  ;;  %v10060_v15 = vld [vmem:[%s12793_s9 + $0x88] sm:$0xff]   ;;  %v9938_v24 = vunpack.c.h.bf16 %v10059_v61 }
 0x6c1   : > { %v9941_v30 = vunpack.c.l.bf16 %v10060_v15 }
 0x6c2   : > { %v8887_v37 = vadd.f32 %v8809_v9, %v8644_v4  ;;  %v8920_v20 = vmax.f32 %v8886_v2, 0.0  ;;  %v8821_v4 = vsel %vm17880_vm5, %v8818_v3, %v8820_v43 }
 0x6c3   : > { %v8541_v8 = vpop.f32.mrb[80].mxu1 }
 0x6c4   : > { %v8921_v42 = vmax.f32 %v8887_v37, 0.0  ;;  %v8604_v52 = vadd.f32 %v8541_v8, %v17088_v60  ;;  %v12021_v45 = vpop.f32.mrb[81].mxu1  ;;  %v8822_v8 = vrot.slane %v9938_v24, 2 }
 0x6c5   : > { %v8544_v23 = vpop.f32.mrb[82].mxu1 }
 0x6c6   : > { %v10001_v55 = vpack.c.bf16 %v8921_v42, %v8920_v20  ;;  %v8645_v33 = vadd.f32 %v17120_v7, %v8604_v52  ;;  %v8605_v21 = vadd.f32 %v8544_v23, %v17090_v34  ;;  %v12022_v6 = vpop.f32.mrb[83].mxu1  ;;  %v8815_v34 = vsel %vm17877_vm14, %v8812_v12, %v8814_v29  ;;  %v8689_v23 = vld [vmem:[%s12793_s9 + $0x90] sm:$0x1]  ;;  %s12109_s9 = smul.u32 2176, %s12690_s22  ;;  %s12636_s22 = smov [#allocation6]  }
 0x6c7   : > { %v8824_v42 = vrot.slane %v9941_v30, 2  ;;  %s12566_s23 = sshll.u32 %s12636_s22, 4  ;;  %s12567_s23 = int_to_ptr.vmem [resolvable:$false] %s12566_s23 }
 0x6c8   : > { %10071 = vst [vmem:[%s17138_s11 + $0x58] sm:$0xff] %v10001_v55   ;;  %v8888_v59 = vadd.f32 %v8811_v57, %v8645_v33  ;;  %v8646_v60 = vadd.f32 %v17120_v7, %v8605_v21  ;;  %v9942_v55 = vunpack.c.h.bf16 %v10060_v15  ;;  %s17268_s15 = scalar_lea.hbm %s17319_s5, %s12109_s9  ;;  %s12568_s25 = scalar_lea.vmem %s12567_s23, 4352 }
 0x6c9   : > { %v8825_v0 = vsel %vm17882_vm10, %v8822_v8, %v8824_v42  ;;  %p12569_p2 = scmp.lt.s32.totalorder %s17263_s12, %s12567_s23  ;;  %p12570_p3 = scmp.lt.s32.totalorder %s12568_s25, %s12562_s17 }
 0x6ca   : > { %v8889_v48 = vadd.f32 %v8813_v54, %v8646_v60  ;;  %v8922_v56 = vmax.f32 %v8888_v59, 0.0  ;;  %v8724_v59 = vunpack.c.l.bf16 %v8689_v23 }
 0x6cb   : > { %v8549_v17 = vpop.f32.mrb[84].mxu1  ;;  %p12571_p4 = por %p12570_p3, %p12569_p2 }
 0x6cc   : > { %v8923_v28 = vmax.f32 %v8889_v48, 0.0  ;;  %v8606_v51 = vadd.f32 %v8549_v17, %v17094_v11  ;;  %v12025_v26 = vpop.f32.mrb[85].mxu1 }
 0x6cd   : > { %v8552_v16 = vpop.f32.mrb[86].mxu1  ;;  %p12572_p7 = pnand %p12571_p4, %p12565_p12 }
 0x6ce   : > { %v10006_v47 = vpack.c.bf16 %v8923_v28, %v8922_v56  ;;  %v8647_v36 = vadd.f32 %v17120_v7, %v8606_v51  ;;  %v8607_v27 = vadd.f32 %v8552_v16, %v17096_v10  ;;  %v12026_v18 = vpop.f32.mrb[87].mxu1  ;;  %v8819_v10 = vsel %vm17879_vm15, %v8816_v49, %v8818_v3 }
 0x6cf   : > { %v8828_v49 = vrot.slane %v8724_v59, 2 }
 0x6d0   : > { %10072 = vst [vmem:[%s17138_s11 + $0x60] sm:$0xff] %v10006_v47   ;;  %v8890_v35 = vadd.f32 %v8815_v34, %v8647_v36  ;;  %v8648_v11 = vadd.f32 %v17120_v7, %v8607_v27 }
 0x6d2   : > { %v8891_v62 = vadd.f32 %v8817_v19, %v8648_v11  ;;  %v8924_v14 = vmax.f32 %v8890_v35, 0.0 }
 0x6d3   : > { %v8557_v44 = vpop.f32.mrb[88].mxu1 }
 0x6d4   : > { %v8925_v41 = vmax.f32 %v8891_v62, 0.0  ;;  %v8608_v38 = vadd.f32 %v8557_v44, %v17100_v39  ;;  %v12029_v53 = vpop.f32.mrb[89].mxu1 }
 0x6d5   : > { %v8560_v58 = vpop.f32.mrb[90].mxu1 }
 0x6d6   : > { %v10011_v31 = vpack.c.bf16 %v8925_v41, %v8924_v14  ;;  %v8649_v9 = vadd.f32 %v17120_v7, %v8608_v38  ;;  %v8609_v63 = vadd.f32 %v8560_v58, %v17104_v40  ;;  %v12030_v2 = vpop.f32.mrb[91].mxu1  ;;  %v8823_v40 = vsel %vm17881_vm12, %v8820_v43, %v8822_v8 }
 0x6d8   : > { %10073 = vst [vmem:[%s17138_s11 + $0x68] sm:$0xff] %v10011_v31   ;;  %v8892_v37 = vadd.f32 %v8819_v10, %v8649_v9  ;;  %v8650_v39 = vadd.f32 %v17120_v7, %v8609_v63 }
 0x6da   : > { %v8893_v12 = vadd.f32 %v8821_v4, %v8650_v39  ;;  %v8926_v52 = vmax.f32 %v8892_v37, 0.0 }
 0x6db   : > { %v8565_v20 = vpop.f32.mrb[92].mxu1 }
 0x6dc   : > { %v8927_v45 = vmax.f32 %v8893_v12, 0.0  ;;  %v8610_v1 = vadd.f32 %v8565_v20, %v17113_v46  ;;  %v12033_v57 = vpop.f32.mrb[93].mxu1  ;;  %v8826_v46 = vrot.slane %v9942_v55, 2 }
 0x6dd   : > { %v8568_v32 = vpop.f32.mrb[94].mxu1 }
 0x6de   : > { %v10016_v33 = vpack.c.bf16 %v8927_v45, %v8926_v52  ;;  %v8651_v21 = vadd.f32 %v17120_v7, %v8610_v1  ;;  %v8611_v6 = vadd.f32 %v8568_v32, %v17115_v5  ;;  %v12034_v54 = vpop.f32.mrb[95].mxu1  ;;  %v8827_v26 = vsel %vm17883_vm4, %v8824_v42, %v8826_v46 }
 0x6df   : > { %v8829_v36 = vsel %vm17853_vm0, %v8826_v46, %v8828_v49 }
 0x6e0   : > { %10074 = vst [vmem:[%s17138_s11 + $0x70] sm:$0xff] %v10016_v33   ;;  %v8894_v60 = vadd.f32 %v8823_v40, %v8651_v21  ;;  %v8652_v29 = vadd.f32 %v17120_v7, %v8611_v6 }
 0x6e2   : > { %v8895_v48 = vadd.f32 %v8825_v0, %v8652_v29  ;;  %v8928_v56 = vmax.f32 %v8894_v60, 0.0 }
 0x6e3   : > { %v8573_v17 = vpop.f32.mrb[96].mxu1 }
 0x6e4   : > { %v8929_v28 = vmax.f32 %v8895_v48, 0.0  ;;  %v8612_v51 = vadd.f32 %v8573_v17, %v17109_v25  ;;  %v12037_v5 = vpop.f32.mrb[97].mxu1 }
 0x6e5   : > { %v8576_v61 = vpop.f32.mrb[98].mxu1 }
 0x6e6   : > { %v10021_v34 = vpack.c.bf16 %v8929_v28, %v8928_v56  ;;  %v8653_v16 = vadd.f32 %v17120_v7, %v8612_v51  ;;  %v8613_v22 = vadd.f32 %v8576_v61, %v17111_v13  ;;  %v12038_v47 = vpop.f32.mrb[99].mxu1 }
 0x6e8   : > { %10075 = vst [vmem:[%s17138_s11 + $0x78] sm:$0xff] %v10021_v34   ;;  %v8896_v27 = vadd.f32 %v8827_v26, %v8653_v16  ;;  %v8654_v18 = vadd.f32 %v17120_v7, %v8613_v22 }
 0x6ea   : > { %v8897_v25 = vadd.f32 %v8829_v36, %v8654_v18  ;;  %v8930_v19 = vmax.f32 %v8896_v27, 0.0 }
 0x6ec   : > { %v8931_v50 = vmax.f32 %v8897_v25, 0.0 }
 0x6ee   : > { %v10026_v35 = vpack.c.bf16 %v8931_v50, %v8930_v19 }
 0x6f0   : > { %10076 = vst [vmem:[%s17138_s11 + $0x80] sm:$0xff] %v10026_v35  }
 0x6f1   : > { %12575 = shalt.err (!%p12572_p7)
}
 0x6f2   : > { %s12576_s26 = scalar_lea.hbm %s17268_s15, 2176  ;;  %s12580_s7 = scalar_lea.hbm %s17319_s5, 4352 }
 0x6f3   : > { %p12577_p8 = scmp.ne.s32.totalorder %s17268_s15, %s12576_s26  ;;  %p12581_p1 = scmp.lt.u32.totalorder %s17268_s15, %s17319_s5 }
 0x6f4   : > { %p12582_p0 = scmp.lt.u32.totalorder %s12580_s7, %s12576_s26  ;;  %p12584_p6 = scmp.lt.u32.totalorder %s12576_s26, %s17268_s15 }
 0x6f5   : > { %p12578_p11 = pnand %p12577_p8, %p17884_p9 }
 0x6f6   : > { %p12583_p5 = por %p12582_p0, %p12581_p1 }
 0x6f7   : > { %p12579_p13 = pneg %p12578_p11 }
 0x6f8   : > { %p12585_p10 = por %p12584_p6, %p12583_p5 }
 0x6fa   : > { %p12586_p12 = pnand %p12585_p10, %p12579_p13 }
 0x6fc   : > { %12589 = shalt.err (!%p12586_p12)
}
 0x6fd   : > { %s12637_s11 = smov 64   ;;  %s12638_s9 = smov 4  }
 0x6fe   : > { %12114 = dma.vmem_to_hbm [thread:$0]  (%p17884_p9), %s17263_s12, 2176, %s17268_s15, %s17273_s16, %s12637_s11, %s12637_s11, %s12638_s9  }
 0x6ff PF: > { %p12126_p2 = scmp.ge.s32.totalorder %s12628_s21, 2  ;;  %s9131_s13 = sand.u32 1, %s12616_s18  }
 0x700   : > { %p17885_p3 = scmp.ne.s32.totalorder %s17398_s29, 0  ;;  %s9132_s14 = scalar_lea.sflag [#allocation5], %s9131_s13 }
 0x702   : > { %p12121_p4 = pnand %p12126_p2, %p17885_p3 }
 0x704   : > { %12611 = dma.done.wait (!%p12121_p4), %s9132_s14, 2176  }
 0x705   : > { %12613 = vsyncadd (!%p12121_p4), %s9132_s14, 4294965120  ;;  %p16_p7 = scmp.ge.s32.totalorder %s12694_s24, 4   ;;  %s17886_s18 = smov %s12620_s19 }
 0x706   : > { %s17887_s19 = smov %s12624_s20  ;;  %s17888_s20 = smov %s12705_s27 }
 0x707   : > { %s17889_s21 = smov %s12694_s24  ;;  %18 = sbr.rel (!%p16_p7) target bundleno = 4 (0x4), region = 96 }
 0x70e   :  { %9137 = vsyncpa [#allocation4], 1 }
 0x70f   :  { %9139 = vsyncpa [#allocation4 + $0x1], 1 }
 0x710   :  { %9140 = vsyncpa [#allocation5], 1 }
 0x711   :  { %9142 = vsyncpa [#allocation5 + $0x1], 1 }

</bundles_post_ra>
